<compile_context>
chip_gen: v7x
topology: tpu7x:2x2x1
jax: 0.10.0
libtpu: 0.0.40
codegen_flags: <defaults>
</compile_context>

<pallas_src>
import functools

import jax
import jax.numpy as jnp
from jax.experimental import pallas as pl
from jax.experimental.pallas import tpu as pltpu


# ----------------------------------------------------------------------------
# Kernel 1: module-standard row-major inputs, no wrapper-side data movement.
# Tiles: edge_attr (TE, F+1), source/target (TE, F), out (TE, 1).
# ----------------------------------------------------------------------------
def _bilin_dir_rowmajor_kernel(edge_attr_ref, source_ref, target_ref, out_ref,
                               *, F, neg_inv_rad):
    edge_A = edge_attr_ref[:, :F].astype(jnp.float32)        # (TE, F)  free lane slice
    edge_l = edge_attr_ref[:, F:F + 1].astype(jnp.float32)   # (TE, 1)  last column
    src = source_ref[...].astype(jnp.float32)                # (TE, F)
    tgt = target_ref[...].astype(jnp.float32)                # (TE, F)

    # Per-edge dot products: VPU multiply + minor(lane)-axis reduce on the XLU.
    w1 = jnp.sum(edge_A * src, axis=1, keepdims=True)        # (TE, 1)
    w2 = jnp.sum(edge_A * tgt, axis=1, keepdims=True)        # (TE, 1)
    wl = jnp.exp(edge_l * neg_inv_rad)                       # (TE, 1)  EUP
    out_ref[...] = (jnp.minimum(w1, w2) * wl).astype(out_ref.dtype)


def bilin_dir_model(source, target, edge_attr, u=None, batch=None, *,
                    radlength, block_e=4096):
    """Pallas BilinDirModel.forward on row-major inputs. `u`/`batch` unused."""
    E, F = source.shape
    assert target.shape == (E, F)
    assert edge_attr.shape == (E, F + 1)

    # No pad, no transpose: clamp the block to E (block == full dim is always
    # legal) or keep it a multiple of 8 (sublane rule) when tiling; the ragged
    # last block is handled by Pallas and clipped on writeback.
    block_e = int(min(block_e, E))
    if block_e < E:
        block_e = max(8, (block_e // 8) * 8)
    grid = (pl.cdiv(E, block_e),)

    out = pl.pallas_call(
        functools.partial(_bilin_dir_rowmajor_kernel, F=F,
                          neg_inv_rad=-1.0 / float(radlength)),
        out_shape=jax.ShapeDtypeStruct((E, 1), jnp.float32),
        grid_spec=pltpu.PrefetchScalarGridSpec(
            num_scalar_prefetch=0,
            grid=grid,
            in_specs=[
                pl.BlockSpec((block_e, F + 1), lambda i: (i, 0)),  # edge_attr
                pl.BlockSpec((block_e, F), lambda i: (i, 0)),      # source
                pl.BlockSpec((block_e, F), lambda i: (i, 0)),      # target
            ],
            out_specs=pl.BlockSpec((block_e, 1), lambda i: (i, 0)),
        ),
        compiler_params=pltpu.CompilerParams(
            dimension_semantics=("parallel",),
            # (block_e, 9) f32 tiles are lane-padded to 128 in VMEM; 40 MiB covers
            # the double-buffered working set at block_e=4096 and stays well under
            # v7x's 64 MiB physical VMEM.
            vmem_limit_bytes=40 * 1024 * 1024,
        ),
    )(edge_attr, source, target)
    return out[:, 0]


# ----------------------------------------------------------------------------
# Kernel 2: fast path for an upstream-produced stacked feature-major array
#   features = rows [0:F)=source^T, [F:2F)=target^T, [2F:3F)=edge_A^T, [3F]=edge_l
# One DMA stream per step, sublane slices, depth-F sublane reduce, lane-dense
# (1, TE) stores.
# ----------------------------------------------------------------------------
def _bilin_dir_fmajor_kernel(feat_ref, out_ref, *, F, neg_inv_rad):
    src = feat_ref[0:F, :].astype(jnp.float32)               # (F, TE)
    tgt = feat_ref[F:2 * F, :].astype(jnp.float32)           # (F, TE)
    edge_A = feat_ref[2 * F:3 * F, :].astype(jnp.float32)    # (F, TE)
    edge_l = feat_ref[3 * F:3 * F + 1, :].astype(jnp.float32)  # (1, TE)

    w1 = jnp.sum(edge_A * src, axis=0, keepdims=True)        # (1, TE) sublane reduce
    w2 = jnp.sum(edge_A * tgt, axis=0, keepdims=True)        # (1, TE)
    wl = jnp.exp(edge_l * neg_inv_rad)                       # (1, TE) EUP
    out_ref[...] = (jnp.minimum(w1, w2) * wl).astype(out_ref.dtype)


def bilin_dir_model_feature_major(features, *, radlength, F, block_e=8192):
    """Fast path: `features` is the stacked (3F+1, E) feature-major array."""
    nrows, E = features.shape
    assert nrows == 3 * F + 1

    block_e = int(min(block_e, E))
    if block_e < E:
        block_e = max(128, (block_e // 128) * 128)   # lane-aligned when tiling
    grid = (pl.cdiv(E, block_e),)

    out = pl.pallas_call(
        functools.partial(_bilin_dir_fmajor_kernel, F=F,
                          neg_inv_rad=-1.0 / float(radlength)),
        out_shape=jax.ShapeDtypeStruct((1, E), jnp.float32),
        grid_spec=pltpu.PrefetchScalarGridSpec(
            num_scalar_prefetch=0,
            grid=grid,
            in_specs=[pl.BlockSpec((3 * F + 1, block_e), lambda i: (0, i))],
            out_specs=pl.BlockSpec((1, block_e), lambda i: (0, i)),
        ),
        compiler_params=pltpu.CompilerParams(
            dimension_semantics=("parallel",)),
    )(features)
    return out[0]


def _reference(source, target, edge_attr, radlength):
    edge_A = edge_attr[:, :-1]
    edge_l = edge_attr[:, -1]
    wl = jnp.exp(-edge_l / radlength)
    w1 = jnp.sum(edge_A * source, axis=1)
    w2 = jnp.sum(edge_A * target, axis=1)
    return jnp.minimum(w1, w2) * wl


if __name__ == "__main__":
    E, F = 2000, 8          # non-multiple of 128 / of the block size
    radlength = 14.0        # scalar hyperparameter from __init__

    key = jax.random.PRNGKey(0)
    k1, k2, k3 = jax.random.split(key, 3)
    source = jax.random.normal(k1, (E, F), dtype=jnp.float32)
    target = jax.random.normal(k2, (E, F), dtype=jnp.float32)
    edge_attr = jax.random.normal(k3, (E, F + 1), dtype=jnp.float32)
    u = jnp.zeros((1, 4), dtype=jnp.float32)      # unused by forward
    batch = jnp.zeros((E,), dtype=jnp.int32)      # unused by forward

    w_ref = _reference(source, target, edge_attr, radlength)

    # 1) Module-standard row-major path (no wrapper copies), single block.
    w = jax.block_until_ready(
        bilin_dir_model(source, target, edge_attr, u, batch, radlength=radlength))
    assert w.shape == (E,)
    assert jnp.allclose(w, w_ref, atol=1e-5, rtol=1e-5)

    # 2) Same path with a multi-step grid and a ragged last block (512 does not
    #    divide 2000) to exercise the pad-free boundary handling.
    w2 = jax.block_until_ready(
        bilin_dir_model(source, target, edge_attr, u, batch,
                        radlength=radlength, block_e=512))
    assert jnp.allclose(w2, w_ref, atol=1e-5, rtol=1e-5)

    # 3) Feature-major fast path. In production the upstream producer writes this
    #    layout directly (zero cost); the concatenate below exists only to build
    #    test data for the numerics check.
    feats = jnp.concatenate(
        [source.T, target.T, edge_attr[:, :F].T, edge_attr[:, F:].T], axis=0)
    w3 = jax.block_until_ready(
        bilin_dir_model_feature_major(feats, radlength=radlength, F=F))
    assert jnp.allclose(w3, w_ref, atol=1e-5, rtol=1e-5)

    # 4) Feature-major path with a ragged multi-step grid.
    w4 = jax.block_until_ready(
        bilin_dir_model_feature_major(feats, radlength=radlength, F=F, block_e=512))
    assert jnp.allclose(w4, w_ref, atol=1e-5, rtol=1e-5)

    print("KERNEL_OK")
</pallas_src>

<mosaic_0001>
module attributes {stable_mosaic.version = 11 : i64} {
  func.func @_bilin_dir_rowmajor_kernel(%arg0: i32, %arg1: memref<2000x9xf32, #tpu.memory_space<vmem>>, %arg2: memref<2000x8xf32, #tpu.memory_space<vmem>>, %arg3: memref<2000x8xf32, #tpu.memory_space<vmem>>, %arg4: memref<2000x1xf32, #tpu.memory_space<vmem>>) attributes {dimension_semantics = [#tpu.dimension_semantics<parallel>], iteration_bounds = array<i64: 1>, scalar_prefetch = 0 : i64, scratch_operands = 0 : i64, tpu.core_type = #tpu.core_type<tc>, window_params = [{transform_indices = @transform_0, window_bounds = array<i64: 2000, 9>}, {transform_indices = @transform_1, window_bounds = array<i64: 2000, 8>}, {transform_indices = @transform_2, window_bounds = array<i64: 2000, 8>}, {transform_indices = @transform_3, window_bounds = array<i64: 2000, 1>}]} {
    %c0 = arith.constant 0 : index
    %c0_0 = arith.constant 0 : index
    %0 = vector.load %arg1[%c0, %c0_0] : memref<2000x9xf32, #tpu.memory_space<vmem>>, vector<2000x8xf32>
    %c0_1 = arith.constant 0 : index
    %c8 = arith.constant 8 : index
    %1 = vector.load %arg1[%c0_1, %c8] : memref<2000x9xf32, #tpu.memory_space<vmem>>, vector<2000x1xf32>
    %c0_2 = arith.constant 0 : index
    %c0_3 = arith.constant 0 : index
    %2 = vector.load %arg2[%c0_2, %c0_3] : memref<2000x8xf32, #tpu.memory_space<vmem>>, vector<2000x8xf32>
    %c0_4 = arith.constant 0 : index
    %c0_5 = arith.constant 0 : index
    %3 = vector.load %arg3[%c0_4, %c0_5] : memref<2000x8xf32, #tpu.memory_space<vmem>>, vector<2000x8xf32>
    %4 = arith.mulf %0, %2 : vector<2000x8xf32>
    %cst = arith.constant dense<0.000000e+00> : vector<2000xf32>
    %5 = vector.multi_reduction <add>, %4, %cst [1] : vector<2000x8xf32> to vector<2000xf32>
    %6 = vector.shape_cast %5 : vector<2000xf32> to vector<2000x1xf32>
    %7 = arith.mulf %0, %3 : vector<2000x8xf32>
    %cst_6 = arith.constant dense<0.000000e+00> : vector<2000xf32>
    %8 = vector.multi_reduction <add>, %7, %cst_6 [1] : vector<2000x8xf32> to vector<2000xf32>
    %9 = vector.shape_cast %8 : vector<2000xf32> to vector<2000x1xf32>
    %cst_7 = arith.constant -0.0714285746 : f32
    %10 = vector.broadcast %cst_7 : f32 to vector<2000x1xf32>
    %11 = arith.mulf %1, %10 : vector<2000x1xf32>
    %12 = math.exp %11 : vector<2000x1xf32>
    %13 = arith.minimumf %6, %9 : vector<2000x1xf32>
    %14 = arith.mulf %13, %12 : vector<2000x1xf32>
    %c0_8 = arith.constant 0 : index
    %c0_9 = arith.constant 0 : index
    %15 = vector.load %arg4[%c0_8, %c0_9] : memref<2000x1xf32, #tpu.memory_space<vmem>>, vector<2000x1xf32>
    tpu.vector_store %arg4[%c0_8, %c0_9], %14 {strides = array<i32>} : memref<2000x1xf32, #tpu.memory_space<vmem>>, vector<2000x1xf32>,
    return
  }
  func.func @transform_0(%arg0: i32) -> (i32, i32) {
    %c0_i32 = arith.constant 0 : i32
    %c0_i32_0 = arith.constant 0 : i32
    return %arg0, %c0_i32 : i32, i32
  }
  func.func @transform_1(%arg0: i32) -> (i32, i32) {
    %c0_i32 = arith.constant 0 : i32
    %c0_i32_0 = arith.constant 0 : i32
    return %arg0, %c0_i32 : i32, i32
  }
  func.func @transform_2(%arg0: i32) -> (i32, i32) {
    %c0_i32 = arith.constant 0 : i32
    %c0_i32_0 = arith.constant 0 : i32
    return %arg0, %c0_i32 : i32, i32
  }
  func.func @transform_3(%arg0: i32) -> (i32, i32) {
    %c0_i32 = arith.constant 0 : i32
    %c0_i32_0 = arith.constant 0 : i32
    return %arg0, %c0_i32 : i32, i32
  }
}

</mosaic_0001>

<bundles_post_ra>
// kernel: tpu_custom_call.1
= control target key start
LH: loop header
LB: loop body
LE: loop exit
PB: predicated region body
PF: predicated region fallthrough
CT: control target
= control target key end

     0   :  { %vm1014_vm0 = vcmask 64512   ;;  %s6271_s25 = smov 120   ;;  %vm5015_vm1 = vcmask 7168   ;;  %s13292_s0 = inlined_call_operand.vmem [shape: f32[2000,9], index: 0, kind: input, shape index: {}]   ;;  %s13293_s1 = inlined_call_operand.vmem [shape: f32[2000,8], index: 1, kind: input, shape index: {}]   ;;  %s13294_s2 = inlined_call_operand.vmem [shape: f32[2000,8], index: 2, kind: input, shape index: {}]   ;;  %s13295_s3 = inlined_call_operand.vmem [shape: f32[2000,1], index: 3, kind: output, shape index: {}]  }
   0x1   :  { %v16_v0 = vld [vmem:[%s13292_s0 + $0x10] sm:$0xff]  ;;  %v14_v2 = vld [vmem:[%s13292_s0] sm:$0xff]  ;;  %v17_v5 = vld [vmem:[%s13292_s0 + $0x18] sm:$0xff] }
   0x2   :  { %v266_v1 = vld [vmem:[%s13293_s1 + $0x10] sm:$0xff]  ;;  %v264_v4 = vld [vmem:[%s13293_s1] sm:$0xff]  ;;  %v267_v7 = vld [vmem:[%s13293_s1 + $0x18] sm:$0xff] }
   0x3   :  { %v766_v3 = vmul.f32 %v266_v1, %v16_v0  ;;  %v764_v6 = vmul.f32 %v264_v4, %v14_v2  ;;  %v15_v8 = vld [vmem:[%s13292_s0 + $0x8] sm:$0xff]  ;;  %v767_v11 = vmul.f32 %v267_v7, %v17_v5  ;;  %v18_v18 = vld [vmem:[%s13292_s0 + $0x20] sm:$0xff]  ;;  %v21_v22 = vld [vmem:[%s13292_s0 + $0x38] sm:$0xff] }
   0x4   :  { %v265_v9 = vld [vmem:[%s13293_s1 + $0x8] sm:$0xff]  ;;  %v268_v19 = vld [vmem:[%s13293_s1 + $0x20] sm:$0xff]  ;;  %v271_v23 = vld [vmem:[%s13293_s1 + $0x38] sm:$0xff] }
   0x5   :  { %v1021_v10 = vsel %vm1014_vm0, %v766_v3, 0.0  ;;  %v19_v12 = vld [vmem:[%s13292_s0 + $0x28] sm:$0xff]  ;;  %v1015_v13 = vsel %vm1014_vm0, %v764_v6, 0.0  ;;  %v765_v14 = vmul.f32 %v265_v9, %v15_v8  ;;  %v1024_v16 = vsel %vm1014_vm0, %v767_v11, 0.0  ;;  %v20_v24 = vld [vmem:[%s13292_s0 + $0x30] sm:$0xff]  ;;  %v22_v32 = vld [vmem:[%s13292_s0 + $0x40] sm:$0xff] }
   0x6   :  { %1022 = vadd.xlane.f32.xlu1 %v1021_v10  ;;  %v269_v15 = vld [vmem:[%s13293_s1 + $0x28] sm:$0xff]  ;;  %1016 = vadd.xlane.f32.xlu0 %v1015_v13  ;;  %v768_v21 = vmul.f32 %v268_v19, %v18_v18  ;;  %v270_v25 = vld [vmem:[%s13293_s1 + $0x30] sm:$0xff]  ;;  %v771_v27 = vmul.f32 %v271_v23, %v21_v22  ;;  %v272_v33 = vld [vmem:[%s13293_s1 + $0x40] sm:$0xff] }
   0x7   :  { %v769_v17 = vmul.f32 %v269_v15, %v19_v12  ;;  %v1018_v20 = vsel %vm1014_vm0, %v765_v14, 0.0  ;;  %v770_v29 = vmul.f32 %v270_v25, %v20_v24  ;;  %v23_v30 = vld [vmem:[%s13292_s0 + $0x48] sm:$0xff]  ;;  %v772_v37 = vmul.f32 %v272_v33, %v22_v32  ;;  %v25_v38 = vld [vmem:[%s13292_s0 + $0x58] sm:$0xff]  ;;  %v24_v40 = vld [vmem:[%s13292_s0 + $0x50] sm:$0xff] }
   0x8   :  { %v1027_v28 = vsel %vm1014_vm0, %v768_v21, 0.0  ;;  %v273_v31 = vld [vmem:[%s13293_s1 + $0x48] sm:$0xff]  ;;  %v1036_v34 = vsel %vm1014_vm0, %v771_v27, 0.0  ;;  %v275_v39 = vld [vmem:[%s13293_s1 + $0x58] sm:$0xff]  ;;  %v274_v41 = vld [vmem:[%s13293_s1 + $0x50] sm:$0xff] }
   0x9   :  { %v1030_v26 = vsel %vm1014_vm0, %v769_v17, 0.0  ;;  %v773_v35 = vmul.f32 %v273_v31, %v23_v30  ;;  %v1033_v36 = vsel %vm1014_vm0, %v770_v29, 0.0  ;;  %v775_v43 = vmul.f32 %v275_v39, %v25_v38  ;;  %v27_v46 = vld [vmem:[%s13292_s0 + $0x68] sm:$0xff]  ;;  %v26_v48 = vld [vmem:[%s13292_s0 + $0x60] sm:$0xff]  ;;  %v29_v54 = vld [vmem:[%s13292_s0 + $0x78] sm:$0xff] }
   0xa   :  { %1025 = vadd.xlane.f32.xlu1 %v1024_v16  ;;  %1019 = vadd.xlane.f32.xlu0 %v1018_v20  ;;  %v1039_v44 = vsel %vm1014_vm0, %v772_v37, 0.0  ;;  %v774_v45 = vmul.f32 %v274_v41, %v24_v40  ;;  %v277_v47 = vld [vmem:[%s13293_s1 + $0x68] sm:$0xff]  ;;  %v276_v49 = vld [vmem:[%s13293_s1 + $0x60] sm:$0xff]  ;;  %v279_v55 = vld [vmem:[%s13293_s1 + $0x78] sm:$0xff] }
   0xb   :  { %v1042_v42 = vsel %vm1014_vm0, %v773_v35, 0.0  ;;  %v1048_v50 = vsel %vm1014_vm0, %v775_v43, 0.0  ;;  %v777_v51 = vmul.f32 %v277_v47, %v27_v46  ;;  %v776_v53 = vmul.f32 %v276_v49, %v26_v48  ;;  %v28_v56 = vld [vmem:[%s13292_s0 + $0x70] sm:$0xff]  ;;  %v31_v62 = vld [vmem:[%s13292_s0 + $0x88] sm:$0xff]  ;;  %v30_v0 = vld [vmem:[%s13292_s0 + $0x80] sm:$0xff] }
   0xc   :  { %v1045_v52 = vsel %vm1014_vm0, %v774_v45, 0.0  ;;  %v278_v57 = vld [vmem:[%s13293_s1 + $0x70] sm:$0xff]  ;;  %v779_v59 = vmul.f32 %v279_v55, %v29_v54  ;;  %v281_v63 = vld [vmem:[%s13293_s1 + $0x88] sm:$0xff]  ;;  %v280_v1 = vld [vmem:[%s13293_s1 + $0x80] sm:$0xff] }
   0xd   :  { %v1054_v58 = vsel %vm1014_vm0, %v777_v51, 0.0  ;;  %v1051_v60 = vsel %vm1014_vm0, %v776_v53, 0.0  ;;  %v778_v61 = vmul.f32 %v278_v57, %v28_v56  ;;  %v781_v3 = vmul.f32 %v281_v63, %v31_v62  ;;  %v33_v6 = vld [vmem:[%s13292_s0 + $0x98] sm:$0xff]  ;;  %v32_v8 = vld [vmem:[%s13292_s0 + $0x90] sm:$0xff]  ;;  %v35_v14 = vld [vmem:[%s13292_s0 + $0xa8] sm:$0xff] }
   0xe   :  { %1031 = vadd.xlane.f32.xlu1 %v1030_v26  ;;  %1028 = vadd.xlane.f32.xlu0 %v1027_v28  ;;  %v1060_v2 = vsel %vm1014_vm0, %v779_v59, 0.0  ;;  %v780_v5 = vmul.f32 %v280_v1, %v30_v0  ;;  %v283_v7 = vld [vmem:[%s13293_s1 + $0x98] sm:$0xff]  ;;  %v282_v9 = vld [vmem:[%s13293_s1 + $0x90] sm:$0xff]  ;;  %v285_v15 = vld [vmem:[%s13293_s1 + $0xa8] sm:$0xff] }
   0xf   :  { %v1057_v4 = vsel %vm1014_vm0, %v778_v61, 0.0  ;;  %v1066_v10 = vsel %vm1014_vm0, %v781_v3, 0.0  ;;  %v783_v11 = vmul.f32 %v283_v7, %v33_v6  ;;  %v782_v13 = vmul.f32 %v282_v9, %v32_v8  ;;  %v34_v16 = vld [vmem:[%s13292_s0 + $0xa0] sm:$0xff]  ;;  %v37_v22 = vld [vmem:[%s13292_s0 + $0xb8] sm:$0xff]  ;;  %v36_v24 = vld [vmem:[%s13292_s0 + $0xb0] sm:$0xff] }
  0x10   :  { %v1063_v12 = vsel %vm1014_vm0, %v780_v5, 0.0  ;;  %v284_v17 = vld [vmem:[%s13293_s1 + $0xa0] sm:$0xff]  ;;  %v785_v19 = vmul.f32 %v285_v15, %v35_v14  ;;  %v287_v23 = vld [vmem:[%s13293_s1 + $0xb8] sm:$0xff]  ;;  %v286_v25 = vld [vmem:[%s13293_s1 + $0xb0] sm:$0xff] }
  0x11   :  { %v1072_v18 = vsel %vm1014_vm0, %v783_v11, 0.0  ;;  %v1069_v20 = vsel %vm1014_vm0, %v782_v13, 0.0  ;;  %v784_v21 = vmul.f32 %v284_v17, %v34_v16  ;;  %v787_v27 = vmul.f32 %v287_v23, %v37_v22  ;;  %v39_v30 = vld [vmem:[%s13292_s0 + $0xc8] sm:$0xff]  ;;  %v38_v32 = vld [vmem:[%s13292_s0 + $0xc0] sm:$0xff]  ;;  %v41_v38 = vld [vmem:[%s13292_s0 + $0xd8] sm:$0xff] }
  0x12   :  { %1037 = vadd.xlane.f32.xlu1 %v1036_v34  ;;  %1034 = vadd.xlane.f32.xlu0 %v1033_v36  ;;  %v1078_v26 = vsel %vm1014_vm0, %v785_v19, 0.0  ;;  %v786_v29 = vmul.f32 %v286_v25, %v36_v24  ;;  %v289_v31 = vld [vmem:[%s13293_s1 + $0xc8] sm:$0xff]  ;;  %v288_v33 = vld [vmem:[%s13293_s1 + $0xc0] sm:$0xff]  ;;  %v291_v39 = vld [vmem:[%s13293_s1 + $0xd8] sm:$0xff] }
  0x13   :  { %v1075_v28 = vsel %vm1014_vm0, %v784_v21, 0.0  ;;  %v1084_v34 = vsel %vm1014_vm0, %v787_v27, 0.0  ;;  %v789_v35 = vmul.f32 %v289_v31, %v39_v30  ;;  %v788_v37 = vmul.f32 %v288_v33, %v38_v32  ;;  %v40_v40 = vld [vmem:[%s13292_s0 + $0xd0] sm:$0xff]  ;;  %v43_v46 = vld [vmem:[%s13292_s0 + $0xe8] sm:$0xff]  ;;  %v42_v48 = vld [vmem:[%s13292_s0 + $0xe0] sm:$0xff] }
  0x14   :  { %v1081_v36 = vsel %vm1014_vm0, %v786_v29, 0.0  ;;  %v290_v41 = vld [vmem:[%s13293_s1 + $0xd0] sm:$0xff]  ;;  %v791_v43 = vmul.f32 %v291_v39, %v41_v38  ;;  %v293_v47 = vld [vmem:[%s13293_s1 + $0xe8] sm:$0xff]  ;;  %v292_v49 = vld [vmem:[%s13293_s1 + $0xe0] sm:$0xff] }
  0x15   :  { %v790_v45 = vmul.f32 %v290_v41, %v40_v40  ;;  %v793_v51 = vmul.f32 %v293_v47, %v43_v46  ;;  %v792_v53 = vmul.f32 %v292_v49, %v42_v48  ;;  %v45_v54 = vld [vmem:[%s13292_s0 + $0xf8] sm:$0xff]  ;;  %v44_v56 = vld [vmem:[%s13292_s0 + $0xf0] sm:$0xff]  ;;  %v47_v62 = vld [vmem:[%s13292_s0 + $0x108] sm:$0xff] }
  0x16   :  { %1043 = vadd.xlane.f32.xlu1 %v1042_v42  ;;  %1040 = vadd.xlane.f32.xlu0 %v1039_v44  ;;  %v1090_v42 = vsel %vm1014_vm0, %v789_v35, 0.0  ;;  %v1087_v44 = vsel %vm1014_vm0, %v788_v37, 0.0  ;;  %v295_v55 = vld [vmem:[%s13293_s1 + $0xf8] sm:$0xff]  ;;  %v294_v57 = vld [vmem:[%s13293_s1 + $0xf0] sm:$0xff]  ;;  %v297_v63 = vld [vmem:[%s13293_s1 + $0x108] sm:$0xff] }
  0x17   :  { %v795_v59 = vmul.f32 %v295_v55, %v45_v54  ;;  %v794_v61 = vmul.f32 %v294_v57, %v44_v56  ;;  %v46_v0 = vld [vmem:[%s13292_s0 + $0x100] sm:$0xff]  ;;  %v797_v3 = vmul.f32 %v297_v63, %v47_v62  ;;  %v49_v6 = vld [vmem:[%s13292_s0 + $0x118] sm:$0xff]  ;;  %v48_v8 = vld [vmem:[%s13292_s0 + $0x110] sm:$0xff] }
  0x18   :  { %v296_v1 = vld [vmem:[%s13293_s1 + $0x100] sm:$0xff]  ;;  %v299_v7 = vld [vmem:[%s13293_s1 + $0x118] sm:$0xff]  ;;  %v298_v9 = vld [vmem:[%s13293_s1 + $0x110] sm:$0xff] }
  0x19   :  { %v796_v5 = vmul.f32 %v296_v1, %v46_v0  ;;  %v799_v11 = vmul.f32 %v299_v7, %v49_v6  ;;  %v798_v13 = vmul.f32 %v298_v9, %v48_v8  ;;  %v51_v14 = vld [vmem:[%s13292_s0 + $0x128] sm:$0xff]  ;;  %v50_v16 = vld [vmem:[%s13292_s0 + $0x120] sm:$0xff]  ;;  %v53_v22 = vld [vmem:[%s13292_s0 + $0x138] sm:$0xff] }
  0x1a   :  { %1049 = vadd.xlane.f32.xlu1 %v1048_v50  ;;  %1046 = vadd.xlane.f32.xlu0 %v1045_v52  ;;  %v1096_v50 = vsel %vm1014_vm0, %v791_v43, 0.0  ;;  %v1093_v52 = vsel %vm1014_vm0, %v790_v45, 0.0  ;;  %v301_v15 = vld [vmem:[%s13293_s1 + $0x128] sm:$0xff]  ;;  %v300_v17 = vld [vmem:[%s13293_s1 + $0x120] sm:$0xff]  ;;  %v303_v23 = vld [vmem:[%s13293_s1 + $0x138] sm:$0xff] }
  0x1b   :  { %v801_v19 = vmul.f32 %v301_v15, %v51_v14  ;;  %v800_v21 = vmul.f32 %v300_v17, %v50_v16  ;;  %v52_v24 = vld [vmem:[%s13292_s0 + $0x130] sm:$0xff]  ;;  %v803_v27 = vmul.f32 %v303_v23, %v53_v22  ;;  %v55_v30 = vld [vmem:[%s13292_s0 + $0x148] sm:$0xff]  ;;  %v54_v32 = vld [vmem:[%s13292_s0 + $0x140] sm:$0xff] }
  0x1c   :  { %v302_v25 = vld [vmem:[%s13293_s1 + $0x130] sm:$0xff]  ;;  %v305_v31 = vld [vmem:[%s13293_s1 + $0x148] sm:$0xff]  ;;  %v304_v33 = vld [vmem:[%s13293_s1 + $0x140] sm:$0xff] }
  0x1d   :  { %v802_v29 = vmul.f32 %v302_v25, %v52_v24  ;;  %v805_v35 = vmul.f32 %v305_v31, %v55_v30  ;;  %v804_v37 = vmul.f32 %v304_v33, %v54_v32  ;;  %v57_v38 = vld [vmem:[%s13292_s0 + $0x158] sm:$0xff]  ;;  %v56_v40 = vld [vmem:[%s13292_s0 + $0x150] sm:$0xff]  ;;  %v59_v46 = vld [vmem:[%s13292_s0 + $0x168] sm:$0xff] }
  0x1e   :  { %1055 = vadd.xlane.f32.xlu1 %v1054_v58  ;;  %1052 = vadd.xlane.f32.xlu0 %v1051_v60  ;;  %v1102_v58 = vsel %vm1014_vm0, %v793_v51, 0.0  ;;  %v1099_v60 = vsel %vm1014_vm0, %v792_v53, 0.0  ;;  %v307_v39 = vld [vmem:[%s13293_s1 + $0x158] sm:$0xff]  ;;  %v306_v41 = vld [vmem:[%s13293_s1 + $0x150] sm:$0xff]  ;;  %v309_v47 = vld [vmem:[%s13293_s1 + $0x168] sm:$0xff] }
  0x1f   :  { %v807_v43 = vmul.f32 %v307_v39, %v57_v38  ;;  %v806_v45 = vmul.f32 %v306_v41, %v56_v40  ;;  %v58_v48 = vld [vmem:[%s13292_s0 + $0x160] sm:$0xff]  ;;  %v809_v51 = vmul.f32 %v309_v47, %v59_v46  ;;  %v61_v54 = vld [vmem:[%s13292_s0 + $0x178] sm:$0xff]  ;;  %v60_v56 = vld [vmem:[%s13292_s0 + $0x170] sm:$0xff] }
  0x20   :  { %v308_v49 = vld [vmem:[%s13293_s1 + $0x160] sm:$0xff]  ;;  %v311_v55 = vld [vmem:[%s13293_s1 + $0x178] sm:$0xff]  ;;  %v310_v57 = vld [vmem:[%s13293_s1 + $0x170] sm:$0xff] }
  0x21   :  { %v808_v53 = vmul.f32 %v308_v49, %v58_v48  ;;  %v63_v62 = vld [vmem:[%s13292_s0 + $0x188] sm:$0xff]  ;;  %v62_v0 = vld [vmem:[%s13292_s0 + $0x180] sm:$0xff]  ;;  %v65_v6 = vld [vmem:[%s13292_s0 + $0x198] sm:$0xff] }
  0x22   :  { %1061 = vadd.xlane.f32.xlu1 %v1060_v2  ;;  %1058 = vadd.xlane.f32.xlu0 %v1057_v4  ;;  %v1108_v2 = vsel %vm1014_vm0, %v795_v59, 0.0  ;;  %v1105_v4 = vsel %vm1014_vm0, %v794_v61, 0.0  ;;  %v811_v59 = vmul.f32 %v311_v55, %v61_v54  ;;  %v810_v61 = vmul.f32 %v310_v57, %v60_v56  ;;  %v313_v63 = vld [vmem:[%s13293_s1 + $0x188] sm:$0xff]  ;;  %v312_v1 = vld [vmem:[%s13293_s1 + $0x180] sm:$0xff]  ;;  %v315_v7 = vld [vmem:[%s13293_s1 + $0x198] sm:$0xff] }
  0x23   :  { %v64_v8 = vld [vmem:[%s13292_s0 + $0x190] sm:$0xff]  ;;  %v67_v14 = vld [vmem:[%s13292_s0 + $0x1a8] sm:$0xff]  ;;  %v66_v16 = vld [vmem:[%s13292_s0 + $0x1a0] sm:$0xff] }
  0x24   :  { %v314_v9 = vld [vmem:[%s13293_s1 + $0x190] sm:$0xff]  ;;  %v317_v15 = vld [vmem:[%s13293_s1 + $0x1a8] sm:$0xff]  ;;  %v316_v17 = vld [vmem:[%s13293_s1 + $0x1a0] sm:$0xff] }
  0x25   :  { %v69_v22 = vld [vmem:[%s13292_s0 + $0x1b8] sm:$0xff]  ;;  %v68_v24 = vld [vmem:[%s13292_s0 + $0x1b0] sm:$0xff]  ;;  %v71_v30 = vld [vmem:[%s13292_s0 + $0x1c8] sm:$0xff] }
  0x26   :  { %1067 = vadd.xlane.f32.xlu1 %v1066_v10  ;;  %1064 = vadd.xlane.f32.xlu0 %v1063_v12  ;;  %v1114_v10 = vsel %vm1014_vm0, %v797_v3, 0.0  ;;  %v1111_v12 = vsel %vm1014_vm0, %v796_v5, 0.0  ;;  %v813_v3 = vmul.f32 %v313_v63, %v63_v62  ;;  %v812_v5 = vmul.f32 %v312_v1, %v62_v0  ;;  %v319_v23 = vld [vmem:[%s13293_s1 + $0x1b8] sm:$0xff]  ;;  %v318_v25 = vld [vmem:[%s13293_s1 + $0x1b0] sm:$0xff]  ;;  %v321_v31 = vld [vmem:[%s13293_s1 + $0x1c8] sm:$0xff] }
  0x27   :  { %v70_v32 = vld [vmem:[%s13292_s0 + $0x1c0] sm:$0xff]  ;;  %v73_v38 = vld [vmem:[%s13292_s0 + $0x1d8] sm:$0xff]  ;;  %v72_v40 = vld [vmem:[%s13292_s0 + $0x1d0] sm:$0xff] }
  0x28   :  { %v320_v33 = vld [vmem:[%s13293_s1 + $0x1c0] sm:$0xff]  ;;  %v323_v39 = vld [vmem:[%s13293_s1 + $0x1d8] sm:$0xff]  ;;  %v322_v41 = vld [vmem:[%s13293_s1 + $0x1d0] sm:$0xff] }
  0x29   :  { %v75_v46 = vld [vmem:[%s13292_s0 + $0x1e8] sm:$0xff]  ;;  %v74_v48 = vld [vmem:[%s13292_s0 + $0x1e0] sm:$0xff]  ;;  %v77_v54 = vld [vmem:[%s13292_s0 + $0x1f8] sm:$0xff] }
  0x2a   :  { %1073 = vadd.xlane.f32.xlu1 %v1072_v18  ;;  %1070 = vadd.xlane.f32.xlu0 %v1069_v20  ;;  %v1120_v18 = vsel %vm1014_vm0, %v799_v11, 0.0  ;;  %v1117_v20 = vsel %vm1014_vm0, %v798_v13, 0.0  ;;  %v815_v11 = vmul.f32 %v315_v7, %v65_v6  ;;  %v814_v13 = vmul.f32 %v314_v9, %v64_v8  ;;  %v325_v47 = vld [vmem:[%s13293_s1 + $0x1e8] sm:$0xff]  ;;  %v324_v49 = vld [vmem:[%s13293_s1 + $0x1e0] sm:$0xff]  ;;  %v327_v55 = vld [vmem:[%s13293_s1 + $0x1f8] sm:$0xff] }
  0x2b   :  { %v76_v56 = vld [vmem:[%s13292_s0 + $0x1f0] sm:$0xff]  ;;  %v79_v62 = vld [vmem:[%s13292_s0 + $0x208] sm:$0xff]  ;;  %v78_v0 = vld [vmem:[%s13292_s0 + $0x200] sm:$0xff] }
  0x2c   :  { %v326_v57 = vld [vmem:[%s13293_s1 + $0x1f0] sm:$0xff]  ;;  %v329_v63 = vld [vmem:[%s13293_s1 + $0x208] sm:$0xff]  ;;  %v328_v1 = vld [vmem:[%s13293_s1 + $0x200] sm:$0xff] }
  0x2d   :  { %v81_v6 = vld [vmem:[%s13292_s0 + $0x218] sm:$0xff]  ;;  %v80_v8 = vld [vmem:[%s13292_s0 + $0x210] sm:$0xff] }
  0x2e   :  { %1079 = vadd.xlane.f32.xlu1 %v1078_v26  ;;  %1076 = vadd.xlane.f32.xlu0 %v1075_v28  ;;  %v1126_v26 = vsel %vm1014_vm0, %v801_v19, 0.0  ;;  %v1123_v28 = vsel %vm1014_vm0, %v800_v21, 0.0  ;;  %v817_v19 = vmul.f32 %v317_v15, %v67_v14  ;;  %v816_v21 = vmul.f32 %v316_v17, %v66_v16  ;;  %v331_v7 = vld [vmem:[%s13293_s1 + $0x218] sm:$0xff]  ;;  %v330_v9 = vld [vmem:[%s13293_s1 + $0x210] sm:$0xff]  ;;  %v83_v14 = vld [vmem:[%s13292_s0 + $0x228] sm:$0xff] }
  0x2f   :  { %v333_v15 = vld [vmem:[%s13293_s1 + $0x228] sm:$0xff]  ;;  %v82_v16 = vld [vmem:[%s13292_s0 + $0x220] sm:$0xff] }
  0x30   :  { %v332_v17 = vld [vmem:[%s13293_s1 + $0x220] sm:$0xff] }
  0x32   :  { %1085 = vadd.xlane.f32.xlu1 %v1084_v34  ;;  %1082 = vadd.xlane.f32.xlu0 %v1081_v36  ;;  %v1132_v34 = vsel %vm1014_vm0, %v803_v27, 0.0  ;;  %v1129_v36 = vsel %vm1014_vm0, %v802_v29, 0.0  ;;  %v819_v27 = vmul.f32 %v319_v23, %v69_v22  ;;  %v818_v29 = vmul.f32 %v318_v25, %v68_v24  ;;  %v85_v22 = vld [vmem:[%s13292_s0 + $0x238] sm:$0xff]  ;;  %v84_v24 = vld [vmem:[%s13292_s0 + $0x230] sm:$0xff] }
  0x33   :  { %v335_v23 = vld [vmem:[%s13293_s1 + $0x238] sm:$0xff]  ;;  %v334_v25 = vld [vmem:[%s13293_s1 + $0x230] sm:$0xff] }
  0x36   :  { %1091 = vadd.xlane.f32.xlu1 %v1090_v42  ;;  %1088 = vadd.xlane.f32.xlu0 %v1087_v44  ;;  %v1138_v42 = vsel %vm1014_vm0, %v805_v35, 0.0  ;;  %v1135_v44 = vsel %vm1014_vm0, %v804_v37, 0.0  ;;  %v821_v35 = vmul.f32 %v321_v31, %v71_v30  ;;  %v820_v37 = vmul.f32 %v320_v33, %v70_v32  ;;  %v87_v30 = vld [vmem:[%s13292_s0 + $0x248] sm:$0xff]  ;;  %v86_v32 = vld [vmem:[%s13292_s0 + $0x240] sm:$0xff] }
  0x37   :  { %v337_v31 = vld [vmem:[%s13293_s1 + $0x248] sm:$0xff]  ;;  %v336_v33 = vld [vmem:[%s13293_s1 + $0x240] sm:$0xff] }
  0x3a   :  { %1097 = vadd.xlane.f32.xlu1 %v1096_v50  ;;  %1094 = vadd.xlane.f32.xlu0 %v1093_v52  ;;  %v1144_v50 = vsel %vm1014_vm0, %v807_v43, 0.0  ;;  %v1141_v52 = vsel %vm1014_vm0, %v806_v45, 0.0  ;;  %v823_v43 = vmul.f32 %v323_v39, %v73_v38  ;;  %v822_v45 = vmul.f32 %v322_v41, %v72_v40  ;;  %v89_v38 = vld [vmem:[%s13292_s0 + $0x258] sm:$0xff]  ;;  %v88_v40 = vld [vmem:[%s13292_s0 + $0x250] sm:$0xff] }
  0x3b   :  { %v339_v39 = vld [vmem:[%s13293_s1 + $0x258] sm:$0xff]  ;;  %v338_v41 = vld [vmem:[%s13293_s1 + $0x250] sm:$0xff] }
  0x3e   :  { %1103 = vadd.xlane.f32.xlu1 %v1102_v58  ;;  %1100 = vadd.xlane.f32.xlu0 %v1099_v60  ;;  %v1150_v58 = vsel %vm1014_vm0, %v809_v51, 0.0  ;;  %v1147_v60 = vsel %vm1014_vm0, %v808_v53, 0.0  ;;  %v825_v51 = vmul.f32 %v325_v47, %v75_v46  ;;  %v824_v53 = vmul.f32 %v324_v49, %v74_v48  ;;  %v91_v48 = vld [vmem:[%s13292_s0 + $0x268] sm:$0xff] }
  0x3f   :  { %v838_v47 = vmul.f32 %v338_v41, %v88_v40  ;;  %v341_v49 = vld [vmem:[%s13293_s1 + $0x268] sm:$0xff] }
  0x42   :  { %1109 = vadd.xlane.f32.xlu1 %v1108_v2  ;;  %1106 = vadd.xlane.f32.xlu0 %v1105_v4  ;;  %v1156_v2 = vsel %vm1014_vm0, %v811_v59, 0.0  ;;  %v1153_v4 = vsel %vm1014_vm0, %v810_v61, 0.0  ;;  %v827_v59 = vmul.f32 %v327_v55, %v77_v54  ;;  %v826_v61 = vmul.f32 %v326_v57, %v76_v56 }
  0x43   :  { %v841_v54 = vmul.f32 %v341_v49, %v91_v48  ;;  %v1237_v56 = vsel %vm1014_vm0, %v838_v47, 0.0  ;;  %v353_v47 = vld [vmem:[%s13293_s1 + $0x2c8] sm:$0xff]  ;;  %v102_v48 = vld [vmem:[%s13292_s0 + $0x2c0] sm:$0xff] }
  0x44   :  { %v352_v49 = vld [vmem:[%s13293_s1 + $0x2c0] sm:$0xff] }
  0x46   :  { %1115 = vadd.xlane.f32.xlu1 %v1114_v10  ;;  %1112 = vadd.xlane.f32.xlu0 %v1111_v12  ;;  %v1162_v10 = vsel %vm1014_vm0, %v813_v3, 0.0  ;;  %v1159_v12 = vsel %vm1014_vm0, %v812_v5, 0.0  ;;  %v829_v3 = vmul.f32 %v329_v63, %v79_v62  ;;  %v828_v5 = vmul.f32 %v328_v1, %v78_v0 }
  0x47   :  { %v1246_v63 = vsel %vm1014_vm0, %v841_v54, 0.0 }
  0x4a   :  { %1121 = vadd.xlane.f32.xlu1 %v1120_v18  ;;  %1118 = vadd.xlane.f32.xlu0 %v1117_v20  ;;  %v1168_v18 = vsel %vm1014_vm0, %v815_v11, 0.0  ;;  %v1165_v20 = vsel %vm1014_vm0, %v814_v13, 0.0  ;;  %v831_v11 = vmul.f32 %v331_v7, %v81_v6  ;;  %v830_v13 = vmul.f32 %v330_v9, %v80_v8  ;;  %v94_v6 = vld [vmem:[%s13292_s0 + $0x280] sm:$0xff] }
  0x4b   :  { %v344_v7 = vld [vmem:[%s13293_s1 + $0x280] sm:$0xff] }
  0x4e   :  { %1127 = vadd.xlane.f32.xlu1 %v1126_v26  ;;  %1124 = vadd.xlane.f32.xlu0 %v1123_v28  ;;  %v1174_v26 = vsel %vm1014_vm0, %v817_v19, 0.0  ;;  %v1171_v28 = vsel %vm1014_vm0, %v816_v21, 0.0  ;;  %v833_v19 = vmul.f32 %v333_v15, %v83_v14  ;;  %v832_v21 = vmul.f32 %v332_v17, %v82_v16  ;;  %v97_v14 = vld [vmem:[%s13292_s0 + $0x298] sm:$0xff]  ;;  %v96_v16 = vld [vmem:[%s13292_s0 + $0x290] sm:$0xff] }
  0x4f   :  { %v347_v15 = vld [vmem:[%s13293_s1 + $0x298] sm:$0xff]  ;;  %v346_v17 = vld [vmem:[%s13293_s1 + $0x290] sm:$0xff] }
  0x52   :  { %1133 = vadd.xlane.f32.xlu1 %v1132_v34  ;;  %1130 = vadd.xlane.f32.xlu0 %v1129_v36  ;;  %v1180_v34 = vsel %vm1014_vm0, %v819_v27, 0.0  ;;  %v1177_v36 = vsel %vm1014_vm0, %v818_v29, 0.0  ;;  %v835_v27 = vmul.f32 %v335_v23, %v85_v22  ;;  %v834_v29 = vmul.f32 %v334_v25, %v84_v24  ;;  %v99_v24 = vld [vmem:[%s13292_s0 + $0x2a8] sm:$0xff] }
  0x53   :  { %v846_v23 = vmul.f32 %v346_v17, %v96_v16  ;;  %v349_v25 = vld [vmem:[%s13293_s1 + $0x2a8] sm:$0xff] }
  0x56   :  { %1139 = vadd.xlane.f32.xlu1 %v1138_v42  ;;  %1136 = vadd.xlane.f32.xlu0 %v1135_v44  ;;  %v1186_v42 = vsel %vm1014_vm0, %v821_v35, 0.0  ;;  %v1183_v44 = vsel %vm1014_vm0, %v820_v37, 0.0  ;;  %v837_v35 = vmul.f32 %v337_v31, %v87_v30  ;;  %v836_v37 = vmul.f32 %v336_v33, %v86_v32 }
  0x57   :  { %v849_v30 = vmul.f32 %v349_v25, %v99_v24  ;;  %v1261_v32 = vsel %vm1014_vm0, %v846_v23, 0.0  ;;  %v358_v23 = vld [vmem:[%s13293_s1 + $0x2f0] sm:$0xff] }
  0x58   :  { %v1231_v46 = vsel %vm1014_vm0, %v836_v37, 0.0  ;;  %v350_v37 = vld [vmem:[%s13293_s1 + $0x2b0] sm:$0xff] }
  0x5a   :  { %1145 = vadd.xlane.f32.xlu1 %v1144_v50  ;;  %1142 = vadd.xlane.f32.xlu0 %v1141_v52  ;;  %v1192_v50 = vsel %vm1014_vm0, %v823_v43, 0.0  ;;  %v1189_v52 = vsel %vm1014_vm0, %v822_v45, 0.0  ;;  %v1234_v43 = vsel %vm1014_vm0, %v837_v35, 0.0  ;;  %v351_v35 = vld [vmem:[%s13293_s1 + $0x2b8] sm:$0xff] }
  0x5e   :  { %1151 = vadd.xlane.f32.xlu1 %v1150_v58  ;;  %1148 = vadd.xlane.f32.xlu0 %v1147_v60  ;;  %v1198_v58 = vsel %vm1014_vm0, %v825_v51, 0.0  ;;  %v1195_v60 = vsel %vm1014_vm0, %v824_v53, 0.0  ;;  %v340_v51 = vld [vmem:[%s13293_s1 + $0x260] sm:$0xff] }
  0x62   :  { %1157 = vadd.xlane.f32.xlu1 %v1156_v2  ;;  %1154 = vadd.xlane.f32.xlu0 %v1153_v4  ;;  %v1204_v2 = vsel %vm1014_vm0, %v827_v59, 0.0  ;;  %v1201_v4 = vsel %vm1014_vm0, %v826_v61, 0.0  ;;  %v343_v59 = vld [vmem:[%s13293_s1 + $0x278] sm:$0xff]  ;;  %v342_v61 = vld [vmem:[%s13293_s1 + $0x270] sm:$0xff] }
  0x66   :  { %1163 = vadd.xlane.f32.xlu1 %v1162_v10  ;;  %1160 = vadd.xlane.f32.xlu0 %v1159_v12  ;;  %v1210_v10 = vsel %vm1014_vm0, %v829_v3, 0.0  ;;  %v1207_v12 = vsel %vm1014_vm0, %v828_v5, 0.0  ;;  %v345_v5 = vld [vmem:[%s13293_s1 + $0x288] sm:$0xff] }
  0x6a   :  { %1169 = vadd.xlane.f32.xlu1 %v1168_v18  ;;  %1166 = vadd.xlane.f32.xlu0 %v1165_v20  ;;  %v1216_v18 = vsel %vm1014_vm0, %v831_v11, 0.0  ;;  %v1213_v20 = vsel %vm1014_vm0, %v830_v13, 0.0  ;;  %v844_v13 = vmul.f32 %v344_v7, %v94_v6  ;;  %v107_v6 = vld [vmem:[%s13292_s0 + $0x2e8] sm:$0xff] }
  0x6b   :  { %v357_v7 = vld [vmem:[%s13293_s1 + $0x2e8] sm:$0xff] }
  0x6c   :  { %v1255_v22 = vsel %vm1014_vm0, %v844_v13, 0.0 }
  0x6e   :  { %1175 = vadd.xlane.f32.xlu1 %v1174_v26  ;;  %1172 = vadd.xlane.f32.xlu0 %v1171_v28  ;;  %v1222_v26 = vsel %vm1014_vm0, %v833_v19, 0.0  ;;  %v1219_v28 = vsel %vm1014_vm0, %v832_v21, 0.0 }
  0x72   :  { %1181 = vadd.xlane.f32.xlu1 %v1180_v34  ;;  %1178 = vadd.xlane.f32.xlu0 %v1177_v36  ;;  %v1228_v34 = vsel %vm1014_vm0, %v835_v27, 0.0  ;;  %v1225_v36 = vsel %vm1014_vm0, %v834_v29, 0.0  ;;  %v348_v27 = vld [vmem:[%s13293_s1 + $0x2a0] sm:$0xff] }
  0x76   :  { %1187 = vadd.xlane.f32.xlu1 %v1186_v42  ;;  %1184 = vadd.xlane.f32.xlu0 %v1183_v44  ;;  %v839_v44 = vmul.f32 %v339_v39, %v89_v38  ;;  %v1270_v39 = vsel %vm1014_vm0, %v849_v30, 0.0 }
  0x78   :  { %v1240_v53 = vsel %vm1014_vm0, %v839_v44, 0.0 }
  0x7a   :  { %1193 = vadd.xlane.f32.xlu1 %v1192_v50  ;;  %1190 = vadd.xlane.f32.xlu0 %v1189_v52  ;;  %v90_v50 = vld [vmem:[%s13292_s0 + $0x260] sm:$0xff] }
  0x7b   :  { %v840_v57 = vmul.f32 %v340_v51, %v90_v50 }
  0x7e   :  { %1199 = vadd.xlane.f32.xlu1 %v1198_v58  ;;  %1196 = vadd.xlane.f32.xlu0 %v1195_v60  ;;  %v93_v58 = vld [vmem:[%s13292_s0 + $0x278] sm:$0xff]  ;;  %v92_v60 = vld [vmem:[%s13292_s0 + $0x270] sm:$0xff] }
  0x7f   :  { %v843_v0 = vmul.f32 %v343_v59, %v93_v58  ;;  %v842_v3 = vmul.f32 %v342_v61, %v92_v60  ;;  %v105_v58 = vld [vmem:[%s13292_s0 + $0x2d8] sm:$0xff]  ;;  %v104_v60 = vld [vmem:[%s13292_s0 + $0x2d0] sm:$0xff] }
  0x80   :  { %v355_v59 = vld [vmem:[%s13293_s1 + $0x2d8] sm:$0xff]  ;;  %v354_v61 = vld [vmem:[%s13293_s1 + $0x2d0] sm:$0xff] }
  0x81   :  { %v1252_v9 = vsel %vm1014_vm0, %v843_v0, 0.0 }
  0x82   :  { %1205 = vadd.xlane.f32.xlu1 %v1204_v2  ;;  %1202 = vadd.xlane.f32.xlu0 %v1201_v4  ;;  %v1243_v2 = vsel %vm1014_vm0, %v840_v57, 0.0  ;;  %v95_v4 = vld [vmem:[%s13292_s0 + $0x288] sm:$0xff]  ;;  %v852_v57 = vmul.f32 %v352_v49, %v102_v48  ;;  %v112_v48 = vld [vmem:[%s13292_s0 + $0x310] sm:$0xff] }
  0x83   :  { %v362_v49 = vld [vmem:[%s13293_s1 + $0x310] sm:$0xff] }
  0x86   :  { %1211 = vadd.xlane.f32.xlu1 %v1210_v10  ;;  %1208 = vadd.xlane.f32.xlu0 %v1207_v12  ;;  %v845_v10 = vmul.f32 %v345_v5, %v95_v4  ;;  %v1249_v12 = vsel %vm1014_vm0, %v842_v3, 0.0  ;;  %v1279_v4 = vsel %vm1014_vm0, %v852_v57, 0.0  ;;  %v854_v5 = vmul.f32 %v354_v61, %v104_v60  ;;  %v115_v60 = vld [vmem:[%s13292_s0 + $0x328] sm:$0xff] }
  0x87   :  { %v365_v61 = vld [vmem:[%s13293_s1 + $0x328] sm:$0xff] }
  0x88   :  { %v1258_v19 = vsel %vm1014_vm0, %v845_v10, 0.0  ;;  %v356_v10 = vld [vmem:[%s13293_s1 + $0x2e0] sm:$0xff]  ;;  %v1285_v16 = vsel %vm1014_vm0, %v854_v5, 0.0 }
  0x8a   :  { %1217 = vadd.xlane.f32.xlu1 %v1216_v18  ;;  %1214 = vadd.xlane.f32.xlu0 %v1213_v20  ;;  %v847_v20 = vmul.f32 %v347_v15, %v97_v14  ;;  %v857_v14 = vmul.f32 %v357_v7, %v107_v6  ;;  %v865_v6 = vmul.f32 %v365_v61, %v115_v60 }
  0x8c   :  { %v1264_v29 = vsel %vm1014_vm0, %v847_v20, 0.0  ;;  %v359_v20 = vld [vmem:[%s13293_s1 + $0x2f8] sm:$0xff]  ;;  %v1294_v25 = vsel %vm1014_vm0, %v857_v14, 0.0 }
  0x8d   :  { %v367_v14 = vld [vmem:[%s13293_s1 + $0x338] sm:$0xff] }
  0x8e   :  { %1223 = vadd.xlane.f32.xlu1 %v1222_v26  ;;  %1220 = vadd.xlane.f32.xlu0 %v1219_v28  ;;  %v98_v26 = vld [vmem:[%s13292_s0 + $0x2a0] sm:$0xff] }
  0x8f   :  { %v848_v33 = vmul.f32 %v348_v27, %v98_v26 }
  0x92   :  { %1229 = vadd.xlane.f32.xlu1 %v1228_v34  ;;  %1226 = vadd.xlane.f32.xlu0 %v1225_v36  ;;  %v101_v34 = vld [vmem:[%s13292_s0 + $0x2b8] sm:$0xff]  ;;  %v100_v36 = vld [vmem:[%s13292_s0 + $0x2b0] sm:$0xff] }
  0x93   :  { %v6820_v42 = vpop.xlane.xlu1 %1022  ;;  %v6823_v45 = vpop.xlane.xlu0 %1016  ;;  %v851_v40 = vmul.f32 %v351_v35, %v101_v34  ;;  %v850_v44 = vmul.f32 %v350_v37, %v100_v36  ;;  %v110_v34 = vld [vmem:[%s13292_s0 + $0x300] sm:$0xff] }
  0x94   :  { %v360_v35 = vld [vmem:[%s13293_s1 + $0x300] sm:$0xff] }
  0x95   :  { %v1276_v51 = vsel %vm1014_vm0, %v851_v40, 0.0 }
  0x96   :  { %1235 = vadd.xlane.f32.xlu1 %v1234_v43  ;;  %1232 = vadd.xlane.f32.xlu0 %v1231_v46  ;;  %v1267_v43 = vsel %vm1014_vm0, %v848_v33, 0.0  ;;  %v103_v46 = vld [vmem:[%s13292_s0 + $0x2c8] sm:$0xff] }
  0x97   :  { %v6838_v52 = vpop.xlane.xlu1 %1025  ;;  %v6841_v55 = vpop.xlane.xlu0 %1019  ;;  %v361_v33 = vld [vmem:[%s13293_s1 + $0x308] sm:$0xff] }
  0x9a   :  { %1241 = vadd.xlane.f32.xlu1 %v1240_v53  ;;  %1238 = vadd.xlane.f32.xlu0 %v1237_v56  ;;  %v853_v53 = vmul.f32 %v353_v47, %v103_v46  ;;  %v1273_v56 = vsel %vm1014_vm0, %v850_v44, 0.0  ;;  %v860_v44 = vmul.f32 %v360_v35, %v110_v34  ;;  %v113_v46 = vld [vmem:[%s13292_s0 + $0x318] sm:$0xff] }
  0x9b   :  { %v6856_v62 = vpop.xlane.xlu1 %1031  ;;  %v6859_v1 = vpop.xlane.xlu0 %1028  ;;  %v363_v47 = vld [vmem:[%s13293_s1 + $0x318] sm:$0xff] }
  0x9c   :  { %v1282_v0 = vsel %vm1014_vm0, %v853_v53, 0.0 }
  0x9e   :  { %1247 = vadd.xlane.f32.xlu1 %v1246_v63  ;;  %1244 = vadd.xlane.f32.xlu0 %v1243_v2  ;;  %v855_v2 = vmul.f32 %v355_v59, %v105_v58  ;;  %v1303_v58 = vsel %vm1014_vm0, %v860_v44, 0.0  ;;  %v862_v59 = vmul.f32 %v362_v49, %v112_v48  ;;  %v120_v48 = vld [vmem:[%s13292_s0 + $0x350] sm:$0xff] }
  0x9f   :  { %v6874_v8 = vpop.xlane.xlu1 %1037  ;;  %v6877_v11 = vpop.xlane.xlu0 %1034  ;;  %v370_v49 = vld [vmem:[%s13293_s1 + $0x350] sm:$0xff] }
  0xa0   :  { %v1288_v13 = vsel %vm1014_vm0, %v855_v2, 0.0  ;;  %v364_v2 = vld [vmem:[%s13293_s1 + $0x320] sm:$0xff]  ;;  %v870_v61 = vmul.f32 %v370_v49, %v120_v48 }
  0xa2   :  { %1253 = vadd.xlane.f32.xlu1 %v1252_v9  ;;  %1250 = vadd.xlane.f32.xlu0 %v1249_v12  ;;  %v106_v9 = vld [vmem:[%s13292_s0 + $0x2e0] sm:$0xff] }
  0xa3   :  { %v6892_v18 = vpop.xlane.xlu1 %1043  ;;  %v6895_v21 = vpop.xlane.xlu0 %1040  ;;  %v856_v17 = vmul.f32 %v356_v10, %v106_v9  ;;  %v1309_v9 = vsel %vm1014_vm0, %v862_v59, 0.0 }
  0xa6   :  { %1259 = vadd.xlane.f32.xlu1 %v1258_v19  ;;  %1256 = vadd.xlane.f32.xlu0 %v1255_v22  ;;  %v109_v19 = vld [vmem:[%s13292_s0 + $0x2f8] sm:$0xff]  ;;  %v108_v22 = vld [vmem:[%s13292_s0 + $0x2f0] sm:$0xff] }
  0xa7   :  { %v6910_v28 = vpop.xlane.xlu1 %1049  ;;  %v6913_v31 = vpop.xlane.xlu0 %1046  ;;  %v859_v26 = vmul.f32 %v359_v20, %v109_v19  ;;  %v858_v30 = vmul.f32 %v358_v23, %v108_v22  ;;  %v1318_v20 = vsel %vm1014_vm0, %v865_v6, 0.0  ;;  %v372_v6 = vld [vmem:[%s13293_s1 + $0x360] sm:$0xff] }
  0xa9   :  { %v1300_v37 = vsel %vm1014_vm0, %v859_v26, 0.0 }
  0xaa   :  { %1265 = vadd.xlane.f32.xlu1 %v1264_v29  ;;  %1262 = vadd.xlane.f32.xlu0 %v1261_v32  ;;  %v1291_v29 = vsel %vm1014_vm0, %v856_v17, 0.0  ;;  %v111_v32 = vld [vmem:[%s13292_s0 + $0x308] sm:$0xff]  ;;  %v366_v17 = vld [vmem:[%s13293_s1 + $0x330] sm:$0xff] }
  0xab   :  { %v6928_v38 = vpop.xlane.xlu1 %1055  ;;  %v6931_v41 = vpop.xlane.xlu0 %1052 }
  0xae   :  { %1271 = vadd.xlane.f32.xlu1 %v1270_v39  ;;  %1268 = vadd.xlane.f32.xlu0 %v1267_v43  ;;  %v861_v39 = vmul.f32 %v361_v33, %v111_v32  ;;  %v1297_v43 = vsel %vm1014_vm0, %v858_v30, 0.0  ;;  %v369_v30 = vld [vmem:[%s13293_s1 + $0x348] sm:$0xff]  ;;  %v118_v32 = vld [vmem:[%s13292_s0 + $0x340] sm:$0xff] }
  0xaf   :  { %v6946_v50 = vpop.xlane.xlu1 %1061  ;;  %v6949_v54 = vpop.xlane.xlu0 %1058  ;;  %v368_v33 = vld [vmem:[%s13293_s1 + $0x340] sm:$0xff] }
  0xb0   :  { %v1306_v53 = vsel %vm1014_vm0, %v861_v39, 0.0  ;;  %v868_v44 = vmul.f32 %v368_v33, %v118_v32 }
  0xb2   :  { %1277 = vadd.xlane.f32.xlu1 %v1276_v51  ;;  %1274 = vadd.xlane.f32.xlu0 %v1273_v56  ;;  %v863_v56 = vmul.f32 %v363_v47, %v113_v46  ;;  %v121_v46 = vld [vmem:[%s13292_s0 + $0x358] sm:$0xff]  ;;  %v1327_v60 = vsel %vm1014_vm0, %v868_v44, 0.0  ;;  %v377_v44 = vld [vmem:[%s13293_s1 + $0x388] sm:$0xff] }
  0xb3   :  { %v6964_v63 = vpop.xlane.xlu1 %1067  ;;  %v6967_v3 = vpop.xlane.xlu0 %1064  ;;  %v371_v47 = vld [vmem:[%s13293_s1 + $0x358] sm:$0xff] }
  0xb4   :  { %v1312_v5 = vsel %vm1014_vm0, %v863_v56, 0.0 }
  0xb6   :  { %1283 = vadd.xlane.f32.xlu1 %v1282_v0  ;;  %1280 = vadd.xlane.f32.xlu0 %v1279_v4  ;;  %v114_v0 = vld [vmem:[%s13292_s0 + $0x320] sm:$0xff] }
  0xb7   :  { %v6982_v12 = vpop.xlane.xlu1 %1073  ;;  %v6985_v15 = vpop.xlane.xlu0 %1070  ;;  %v864_v10 = vmul.f32 %v364_v2, %v114_v0  ;;  %v123_v0 = vld [vmem:[%s13292_s0 + $0x368] sm:$0xff] }
  0xb8   :  { %v373_v2 = vld [vmem:[%s13293_s1 + $0x368] sm:$0xff] }
  0xba   :  { %1289 = vadd.xlane.f32.xlu1 %v1288_v13  ;;  %1286 = vadd.xlane.f32.xlu0 %v1285_v16  ;;  %v117_v13 = vld [vmem:[%s13292_s0 + $0x338] sm:$0xff]  ;;  %v116_v16 = vld [vmem:[%s13292_s0 + $0x330] sm:$0xff] }
  0xbb   :  { %v7000_v24 = vpop.xlane.xlu1 %1079  ;;  %v7003_v27 = vpop.xlane.xlu0 %1076  ;;  %v867_v22 = vmul.f32 %v367_v14, %v117_v13  ;;  %v866_v26 = vmul.f32 %v366_v17, %v116_v16  ;;  %v873_v13 = vmul.f32 %v373_v2, %v123_v0  ;;  %v1333_v16 = vsel %vm1014_vm0, %v870_v61, 0.0  ;;  %v129_v0 = vld [vmem:[%s13292_s0 + $0x398] sm:$0xff] }
  0xbc   :  { %v379_v2 = vld [vmem:[%s13293_s1 + $0x398] sm:$0xff] }
  0xbd   :  { %v1324_v35 = vsel %vm1014_vm0, %v867_v22, 0.0  ;;  %v375_v22 = vld [vmem:[%s13293_s1 + $0x378] sm:$0xff] }
  0xbe   :  { %1295 = vadd.xlane.f32.xlu1 %v1294_v25  ;;  %1292 = vadd.xlane.f32.xlu0 %v1291_v29  ;;  %v1315_v25 = vsel %vm1014_vm0, %v864_v10, 0.0  ;;  %v119_v29 = vld [vmem:[%s13292_s0 + $0x348] sm:$0xff] }
  0xbf   :  { %v7018_v36 = vpop.xlane.xlu1 %1085  ;;  %v7021_v40 = vpop.xlane.xlu0 %1082 }
  0xc2   :  { %1301 = vadd.xlane.f32.xlu1 %v1300_v37  ;;  %1298 = vadd.xlane.f32.xlu0 %v1297_v43  ;;  %v869_v37 = vmul.f32 %v369_v30, %v119_v29  ;;  %v1321_v43 = vsel %vm1014_vm0, %v866_v26, 0.0  ;;  %v374_v26 = vld [vmem:[%s13293_s1 + $0x370] sm:$0xff]  ;;  %v1342_v30 = vsel %vm1014_vm0, %v873_v13, 0.0 }
  0xc3   :  { %v7036_v51 = vpop.xlane.xlu1 %1091  ;;  %v7039_v57 = vpop.xlane.xlu0 %1088 }
  0xc4   :  { %13296 = vst [vmem:[#allocation2_spill] sm:$0xff] %v7036_v51  ;;  %v1330_v56 = vsel %vm1014_vm0, %v869_v37, 0.0  ;;  %v5872_v51 = vld [vmem:[%s13292_s0 + $0x320] sm:$0xff] }
  0xc6   :  { %1307 = vadd.xlane.f32.xlu1 %v1306_v53  ;;  %1304 = vadd.xlane.f32.xlu0 %v1303_v58  ;;  %v871_v58 = vmul.f32 %v371_v47, %v121_v46  ;;  %v126_v46 = vld [vmem:[%s13292_s0 + $0x380] sm:$0xff] }
  0xc7   :  { %v7054_v4 = vpop.xlane.xlu1 %1097  ;;  %v7057_v7 = vpop.xlane.xlu0 %1094  ;;  %v376_v47 = vld [vmem:[%s13293_s1 + $0x380] sm:$0xff] }
  0xc8   :  { %13297 = vst [vmem:[#allocation3_spill] sm:$0xff] %v7054_v4  ;;  %13298 = vst [vmem:[#allocation4_spill] sm:$0xff] %v7057_v7  ;;  %v1336_v10 = vsel %vm1014_vm0, %v871_v58, 0.0  ;;  %v876_v61 = vmul.f32 %v376_v47, %v126_v46  ;;  %v5870_v4 = vld [vmem:[%s13292_s0 + $0x310] sm:$0xff] }
  0xca   :  { %1313 = vadd.xlane.f32.xlu1 %v1312_v5  ;;  %1310 = vadd.xlane.f32.xlu0 %v1309_v9  ;;  %v122_v5 = vld [vmem:[%s13292_s0 + $0x360] sm:$0xff] }
  0xcb   :  { %v7072_v19 = vpop.xlane.xlu1 %1103  ;;  %v7075_v23 = vpop.xlane.xlu0 %1100  ;;  %v872_v17 = vmul.f32 %v372_v6, %v122_v5  ;;  %v128_v5 = vld [vmem:[%s13292_s0 + $0x390] sm:$0xff] }
  0xcc   :  { %13299 = vst [vmem:[#allocation5_spill] sm:$0xff] %v7072_v19  ;;  %13300 = vst [vmem:[#allocation6_spill] sm:$0xff] %v7075_v23  ;;  %v378_v6 = vld [vmem:[%s13293_s1 + $0x390] sm:$0xff]  ;;  %v5868_v19 = vld [vmem:[%s13292_s0 + $0x300] sm:$0xff] }
  0xce   :  { %1319 = vadd.xlane.f32.xlu1 %v1318_v20  ;;  %1316 = vadd.xlane.f32.xlu0 %v1315_v25  ;;  %v125_v20 = vld [vmem:[%s13292_s0 + $0x378] sm:$0xff]  ;;  %v124_v25 = vld [vmem:[%s13292_s0 + $0x370] sm:$0xff] }
  0xcf   :  { %v7090_v34 = vpop.xlane.xlu1 %1109  ;;  %v7093_v39 = vpop.xlane.xlu0 %1106  ;;  %v875_v32 = vmul.f32 %v375_v22, %v125_v20  ;;  %v874_v37 = vmul.f32 %v374_v26, %v124_v25  ;;  %v1351_v20 = vsel %vm1014_vm0, %v876_v61, 0.0  ;;  %v878_v22 = vmul.f32 %v378_v6, %v128_v5  ;;  %v131_v25 = vld [vmem:[%s13292_s0 + $0x3a8] sm:$0xff]  ;;  %v382_v61 = vld [vmem:[%s13293_s1 + $0x3b0] sm:$0xff] }
  0xd0   :  { %13301 = vst [vmem:[#allocation7_spill] sm:$0xff] %v7090_v34  ;;  %13302 = vst [vmem:[#allocation8_spill] sm:$0xff] %v7093_v39  ;;  %v381_v26 = vld [vmem:[%s13293_s1 + $0x3a8] sm:$0xff]  ;;  %v5866_v34 = vld [vmem:[%s13292_s0 + $0x2f0] sm:$0xff] }
  0xd1   :  { %v1348_v49 = vsel %vm1014_vm0, %v875_v32, 0.0  ;;  %v380_v32 = vld [vmem:[%s13293_s1 + $0x3a0] sm:$0xff]  ;;  %v1357_v46 = vsel %vm1014_vm0, %v878_v22, 0.0  ;;  %v385_v22 = vld [vmem:[%s13293_s1 + $0x3c8] sm:$0xff] }
  0xd2   :  { %1325 = vadd.xlane.f32.xlu1 %v1324_v35  ;;  %1322 = vadd.xlane.f32.xlu0 %v1321_v43  ;;  %v1339_v35 = vsel %vm1014_vm0, %v872_v17, 0.0  ;;  %v127_v43 = vld [vmem:[%s13292_s0 + $0x388] sm:$0xff] }
  0xd3   :  { %v7108_v53 = vpop.xlane.xlu1 %1115  ;;  %v7111_v59 = vpop.xlane.xlu0 %1112 }
  0xd4   :  { %13303 = vst [vmem:[#allocation9_spill] sm:$0xff] %v7108_v53  ;;  %13304 = vst [vmem:[#allocation10_spill] sm:$0xff] %v7111_v59  ;;  %v5864_v53 = vld [vmem:[%s13292_s0 + $0x2e0] sm:$0xff] }
  0xd6   :  { %1331 = vadd.xlane.f32.xlu1 %v1330_v56  ;;  %1328 = vadd.xlane.f32.xlu0 %v1327_v60  ;;  %v877_v56 = vmul.f32 %v377_v44, %v127_v43  ;;  %v1345_v60 = vsel %vm1014_vm0, %v874_v37, 0.0  ;;  %v881_v43 = vmul.f32 %v381_v26, %v131_v25  ;;  %v134_v25 = vld [vmem:[%s13292_s0 + $0x3c0] sm:$0xff] }
  0xd7   :  { %v7126_v9 = vpop.xlane.xlu1 %1121  ;;  %v7129_v14 = vpop.xlane.xlu0 %1118  ;;  %v384_v26 = vld [vmem:[%s13293_s1 + $0x3c0] sm:$0xff] }
  0xd8   :  { %13305 = vst [vmem:[#allocation11_spill] sm:$0xff] %v7126_v9  ;;  %13306 = vst [vmem:[#allocation12_spill] sm:$0xff] %v7129_v14  ;;  %v1354_v13 = vsel %vm1014_vm0, %v877_v56, 0.0  ;;  %v383_v56 = vld [vmem:[%s13293_s1 + $0x3b8] sm:$0xff]  ;;  %v5862_v9 = vld [vmem:[%s13292_s0 + $0x2d0] sm:$0xff] }
  0xda   :  { %1337 = vadd.xlane.f32.xlu1 %v1336_v10  ;;  %1334 = vadd.xlane.f32.xlu0 %v1333_v16  ;;  %v879_v16 = vmul.f32 %v379_v2, %v129_v0  ;;  %v1366_v2 = vsel %vm1014_vm0, %v881_v43, 0.0 }
  0xdb   :  { %v7144_v29 = vpop.xlane.xlu1 %1127  ;;  %v7147_v33 = vpop.xlane.xlu0 %1124 }
  0xdc   :  { %13307 = vst [vmem:[#allocation13_spill] sm:$0xff] %v7144_v29  ;;  %13308 = vst [vmem:[#allocation14_spill] sm:$0xff] %v7147_v33  ;;  %v1360_v37 = vsel %vm1014_vm0, %v879_v16, 0.0  ;;  %v5860_v29 = vld [vmem:[%s13292_s0 + $0x2c0] sm:$0xff] }
  0xde   :  { %1343 = vadd.xlane.f32.xlu1 %v1342_v30  ;;  %1340 = vadd.xlane.f32.xlu0 %v1339_v35  ;;  %v130_v30 = vld [vmem:[%s13292_s0 + $0x3a0] sm:$0xff] }
  0xdf   :  { %v7162_v48 = vpop.xlane.xlu1 %1133  ;;  %v7165_v58 = vpop.xlane.xlu0 %1130  ;;  %v880_v47 = vmul.f32 %v380_v32, %v130_v30 }
  0xe0   :  { %13309 = vst [vmem:[#allocation15_spill] sm:$0xff] %v7162_v48  ;;  %13310 = vst [vmem:[#allocation16_spill] sm:$0xff] %v7165_v58  ;;  %v5858_v48 = vld [vmem:[%s13292_s0 + $0x2b0] sm:$0xff] }
  0xe2   :  { %1349 = vadd.xlane.f32.xlu1 %v1348_v49  ;;  %1346 = vadd.xlane.f32.xlu0 %v1345_v60  ;;  %v133_v49 = vld [vmem:[%s13292_s0 + $0x3b8] sm:$0xff]  ;;  %v132_v60 = vld [vmem:[%s13292_s0 + $0x3b0] sm:$0xff] }
  0xe3   :  { %v7180_v10 = vpop.xlane.xlu1 %1139  ;;  %v7183_v17 = vpop.xlane.xlu0 %1136  ;;  %v883_v5 = vmul.f32 %v383_v56, %v133_v49  ;;  %v882_v16 = vmul.f32 %v382_v61, %v132_v60  ;;  %v137_v49 = vld [vmem:[%s13292_s0 + $0x3d8] sm:$0xff]  ;;  %v136_v60 = vld [vmem:[%s13292_s0 + $0x3d0] sm:$0xff] }
  0xe4   :  { %13311 = vst [vmem:[#allocation17_spill] sm:$0xff] %v7180_v10  ;;  %13312 = vst [vmem:[#allocation18_spill] sm:$0xff] %v7183_v17  ;;  %v387_v56 = vld [vmem:[%s13293_s1 + $0x3d8] sm:$0xff]  ;;  %v386_v61 = vld [vmem:[%s13293_s1 + $0x3d0] sm:$0xff] }
  0xe5   :  { %v1372_v32 = vsel %vm1014_vm0, %v883_v5, 0.0  ;;  %v5856_v10 = vld [vmem:[%s13292_s0 + $0x2a0] sm:$0xff] }
  0xe6   :  { %1355 = vadd.xlane.f32.xlu1 %v1354_v13  ;;  %1352 = vadd.xlane.f32.xlu0 %v1351_v20  ;;  %v1363_v13 = vsel %vm1014_vm0, %v880_v47, 0.0  ;;  %v135_v20 = vld [vmem:[%s13292_s0 + $0x3c8] sm:$0xff]  ;;  %v884_v47 = vmul.f32 %v384_v26, %v134_v25 }
  0xe7   :  { %v7198_v35 = vpop.xlane.xlu1 %1145  ;;  %v7201_v44 = vpop.xlane.xlu0 %1142  ;;  %v139_v25 = vld [vmem:[%s13292_s0 + $0x3e8] sm:$0xff] }
  0xe8   :  { %13313 = vst [vmem:[#allocation19_spill] sm:$0xff] %v7198_v35  ;;  %13314 = vst [vmem:[#allocation20_spill] sm:$0xff] %v7201_v44  ;;  %v389_v26 = vld [vmem:[%s13293_s1 + $0x3e8] sm:$0xff]  ;;  %v5854_v35 = vld [vmem:[%s13292_s0 + $0x290] sm:$0xff] }
  0xea   :  { %1361 = vadd.xlane.f32.xlu1 %v1360_v37  ;;  %1358 = vadd.xlane.f32.xlu0 %v1357_v46  ;;  %v885_v37 = vmul.f32 %v385_v22, %v135_v20  ;;  %v1369_v46 = vsel %vm1014_vm0, %v882_v16, 0.0  ;;  %v1375_v20 = vsel %vm1014_vm0, %v884_v47, 0.0  ;;  %v886_v22 = vmul.f32 %v386_v61, %v136_v60 }
  0xeb   :  { %v7216_v0 = vpop.xlane.xlu1 %1151  ;;  %v7219_v6 = vpop.xlane.xlu0 %1148 }
  0xec   :  { %13315 = vst [vmem:[#allocation21_spill] sm:$0xff] %v7216_v0  ;;  %13316 = vst [vmem:[#allocation22_spill] sm:$0xff] %v7219_v6  ;;  %v1378_v5 = vsel %vm1014_vm0, %v885_v37, 0.0  ;;  %v388_v37 = vld [vmem:[%s13293_s1 + $0x3e0] sm:$0xff]  ;;  %v1381_v60 = vsel %vm1014_vm0, %v886_v22, 0.0 }
  0xed   :  { %v5852_v0 = vld [vmem:[%s13292_s0 + $0x280] sm:$0xff] }
  0xee   :  { %1367 = vadd.xlane.f32.xlu1 %v1366_v2  ;;  %1364 = vadd.xlane.f32.xlu0 %v1363_v13  ;;  %v887_v13 = vmul.f32 %v387_v56, %v137_v49  ;;  %v889_v49 = vmul.f32 %v389_v26, %v139_v25 }
  0xef   :  { %v7234_v30 = vpop.xlane.xlu1 %1157  ;;  %v7237_v43 = vpop.xlane.xlu0 %1154 }
  0xf0   :  { %13317 = vst [vmem:[#allocation23_spill] sm:$0xff] %v7234_v30  ;;  %13318 = vst [vmem:[#allocation24_spill] sm:$0xff] %v7237_v43  ;;  %v1384_v47 = vsel %vm1014_vm0, %v887_v13, 0.0  ;;  %v390_v13 = vld [vmem:[%s13293_s1 + $0x3f0] sm:$0xff]  ;;  %v1390_v22 = vsel %vm1014_vm0, %v889_v49, 0.0 }
  0xf1   :  { %v5850_v30 = vld [vmem:[%s13292_s0 + $0x270] sm:$0xff] }
  0xf2   :  { %1373 = vadd.xlane.f32.xlu1 %v1372_v32  ;;  %1370 = vadd.xlane.f32.xlu0 %v1369_v46  ;;  %v138_v32 = vld [vmem:[%s13292_s0 + $0x3e0] sm:$0xff] }
  0xf3   :  { %v7252_v2 = vpop.xlane.xlu1 %1163  ;;  %v7255_v16 = vpop.xlane.xlu0 %1160  ;;  %v888_v61 = vmul.f32 %v388_v37, %v138_v32 }
  0xf4   :  { %13319 = vst [vmem:[#allocation25_spill] sm:$0xff] %v7252_v2  ;;  %13320 = vst [vmem:[#allocation26_spill] sm:$0xff] %v7255_v16  ;;  %v141_v2 = vld [vmem:[%s13292_s0 + $0x3f8] sm:$0xff] }
  0xf5   :  { %v391_v16 = vld [vmem:[%s13293_s1 + $0x3f8] sm:$0xff]  ;;  %v1387_v32 = vsel %vm1014_vm0, %v888_v61, 0.0 }
  0xf6   :  { %1379 = vadd.xlane.f32.xlu1 %v1378_v5  ;;  %1376 = vadd.xlane.f32.xlu0 %v1375_v20  ;;  %v140_v5 = vld [vmem:[%s13292_s0 + $0x3f0] sm:$0xff]  ;;  %v891_v25 = vmul.f32 %v391_v16, %v141_v2  ;;  %v392_v2 = vld [vmem:[%s13293_s1 + $0x400] sm:$0xff] }
  0xf7   :  { %v7270_v46 = vpop.xlane.xlu1 %1169  ;;  %v7273_v56 = vpop.xlane.xlu0 %1166  ;;  %v890_v37 = vmul.f32 %v390_v13, %v140_v5 }
  0xf8   :  { %13321 = vst [vmem:[#allocation27_spill] sm:$0xff] %v7270_v46  ;;  %13322 = vst [vmem:[#allocation28_spill] sm:$0xff] %v7273_v56  ;;  %v143_v46 = vld [vmem:[%s13292_s0 + $0x408] sm:$0xff]  ;;  %v1396_v49 = vsel %vm1014_vm0, %v891_v25, 0.0 }
  0xf9   :  { %v393_v56 = vld [vmem:[%s13293_s1 + $0x408] sm:$0xff]  ;;  %v1393_v5 = vsel %vm1014_vm0, %v890_v37, 0.0 }
  0xfa   :  { %1385 = vadd.xlane.f32.xlu1 %v1384_v47  ;;  %1382 = vadd.xlane.f32.xlu0 %v1381_v60  ;;  %v142_v47 = vld [vmem:[%s13292_s0 + $0x400] sm:$0xff]  ;;  %v893_v60 = vmul.f32 %v393_v56, %v143_v46  ;;  %v394_v46 = vld [vmem:[%s13293_s1 + $0x410] sm:$0xff] }
  0xfb   :  { %v7288_v20 = vpop.xlane.xlu1 %1175  ;;  %v7291_v26 = vpop.xlane.xlu0 %1172  ;;  %v892_v13 = vmul.f32 %v392_v2, %v142_v47 }
  0xfc   :  { %13323 = vst [vmem:[#allocation29_spill] sm:$0xff] %v7288_v20  ;;  %13324 = vst [vmem:[#allocation30_spill] sm:$0xff] %v7291_v26  ;;  %v145_v20 = vld [vmem:[%s13292_s0 + $0x418] sm:$0xff]  ;;  %v1402_v25 = vsel %vm1014_vm0, %v893_v60, 0.0 }
  0xfd   :  { %v395_v26 = vld [vmem:[%s13293_s1 + $0x418] sm:$0xff]  ;;  %v1399_v47 = vsel %vm1014_vm0, %v892_v13, 0.0 }
  0xfe   :  { %1391 = vadd.xlane.f32.xlu1 %v1390_v22  ;;  %1388 = vadd.xlane.f32.xlu0 %v1387_v32  ;;  %v144_v22 = vld [vmem:[%s13292_s0 + $0x410] sm:$0xff]  ;;  %v895_v32 = vmul.f32 %v395_v26, %v145_v20  ;;  %v396_v20 = vld [vmem:[%s13293_s1 + $0x420] sm:$0xff] }
  0xff   :  { %v7306_v16 = vpop.xlane.xlu1 %1181  ;;  %v7309_v61 = vpop.xlane.xlu0 %1178  ;;  %v894_v2 = vmul.f32 %v394_v46, %v144_v22 }
 0x100   :  { %13325 = vst [vmem:[#allocation31_spill] sm:$0xff] %v7306_v16  ;;  %13326 = vst [vmem:[#allocation32_spill] sm:$0xff] %v7309_v61  ;;  %v147_v16 = vld [vmem:[%s13292_s0 + $0x428] sm:$0xff]  ;;  %v1408_v60 = vsel %vm1014_vm0, %v895_v32, 0.0 }
 0x101   :  { %v397_v61 = vld [vmem:[%s13293_s1 + $0x428] sm:$0xff]  ;;  %v1405_v22 = vsel %vm1014_vm0, %v894_v2, 0.0 }
 0x102   :  { %1397 = vadd.xlane.f32.xlu1 %v1396_v49  ;;  %1394 = vadd.xlane.f32.xlu0 %v1393_v5  ;;  %v146_v49 = vld [vmem:[%s13292_s0 + $0x420] sm:$0xff]  ;;  %v897_v5 = vmul.f32 %v397_v61, %v147_v16  ;;  %v398_v16 = vld [vmem:[%s13293_s1 + $0x430] sm:$0xff] }
 0x103   :  { %v7324_v56 = vpop.xlane.xlu1 %1187  ;;  %v7327_v37 = vpop.xlane.xlu0 %1184  ;;  %v896_v46 = vmul.f32 %v396_v20, %v146_v49 }
 0x104   :  { %13327 = vst [vmem:[#allocation33_spill] sm:$0xff] %v7324_v56  ;;  %13328 = vst [vmem:[#allocation34_spill] sm:$0xff] %v7327_v37  ;;  %v149_v56 = vld [vmem:[%s13292_s0 + $0x438] sm:$0xff]  ;;  %v1414_v32 = vsel %vm1014_vm0, %v897_v5, 0.0 }
 0x105   :  { %v399_v37 = vld [vmem:[%s13293_s1 + $0x438] sm:$0xff]  ;;  %v1411_v49 = vsel %vm1014_vm0, %v896_v46, 0.0 }
 0x106   :  { %1403 = vadd.xlane.f32.xlu1 %v1402_v25  ;;  %1400 = vadd.xlane.f32.xlu0 %v1399_v47  ;;  %v148_v25 = vld [vmem:[%s13292_s0 + $0x430] sm:$0xff]  ;;  %v899_v47 = vmul.f32 %v399_v37, %v149_v56  ;;  %v400_v56 = vld [vmem:[%s13293_s1 + $0x440] sm:$0xff] }
 0x107   :  { %v7342_v26 = vpop.xlane.xlu1 %1193  ;;  %v7345_v13 = vpop.xlane.xlu0 %1190  ;;  %v898_v20 = vmul.f32 %v398_v16, %v148_v25 }
 0x108   :  { %13329 = vst [vmem:[#allocation35_spill] sm:$0xff] %v7342_v26  ;;  %13330 = vst [vmem:[#allocation36_spill] sm:$0xff] %v7345_v13  ;;  %v151_v26 = vld [vmem:[%s13292_s0 + $0x448] sm:$0xff]  ;;  %v1420_v5 = vsel %vm1014_vm0, %v899_v47, 0.0 }
 0x109   :  { %v401_v13 = vld [vmem:[%s13293_s1 + $0x448] sm:$0xff]  ;;  %v1417_v25 = vsel %vm1014_vm0, %v898_v20, 0.0 }
 0x10a   :  { %1409 = vadd.xlane.f32.xlu1 %v1408_v60  ;;  %1406 = vadd.xlane.f32.xlu0 %v1405_v22  ;;  %v150_v60 = vld [vmem:[%s13292_s0 + $0x440] sm:$0xff]  ;;  %v901_v22 = vmul.f32 %v401_v13, %v151_v26  ;;  %v402_v26 = vld [vmem:[%s13293_s1 + $0x450] sm:$0xff] }
 0x10b   :  { %v7360_v61 = vpop.xlane.xlu1 %1199  ;;  %v7363_v2 = vpop.xlane.xlu0 %1196  ;;  %v900_v16 = vmul.f32 %v400_v56, %v150_v60 }
 0x10c   :  { %13331 = vst [vmem:[#allocation37_spill] sm:$0xff] %v7360_v61  ;;  %13332 = vst [vmem:[#allocation38_spill] sm:$0xff] %v7363_v2  ;;  %v153_v61 = vld [vmem:[%s13292_s0 + $0x458] sm:$0xff]  ;;  %v1426_v47 = vsel %vm1014_vm0, %v901_v22, 0.0 }
 0x10d   :  { %v403_v2 = vld [vmem:[%s13293_s1 + $0x458] sm:$0xff]  ;;  %v1423_v60 = vsel %vm1014_vm0, %v900_v16, 0.0 }
 0x10e   :  { %1415 = vadd.xlane.f32.xlu1 %v1414_v32  ;;  %1412 = vadd.xlane.f32.xlu0 %v1411_v49  ;;  %v152_v32 = vld [vmem:[%s13292_s0 + $0x450] sm:$0xff]  ;;  %v903_v49 = vmul.f32 %v403_v2, %v153_v61  ;;  %v404_v61 = vld [vmem:[%s13293_s1 + $0x460] sm:$0xff] }
 0x10f   :  { %v7378_v37 = vpop.xlane.xlu1 %1205  ;;  %v7381_v46 = vpop.xlane.xlu0 %1202  ;;  %v902_v56 = vmul.f32 %v402_v26, %v152_v32 }
 0x110   :  { %13333 = vst [vmem:[#allocation39_spill] sm:$0xff] %v7378_v37  ;;  %13334 = vst [vmem:[#allocation40_spill] sm:$0xff] %v7381_v46  ;;  %v155_v37 = vld [vmem:[%s13292_s0 + $0x468] sm:$0xff]  ;;  %v1432_v22 = vsel %vm1014_vm0, %v903_v49, 0.0 }
 0x111   :  { %v405_v46 = vld [vmem:[%s13293_s1 + $0x468] sm:$0xff]  ;;  %v1429_v32 = vsel %vm1014_vm0, %v902_v56, 0.0 }
 0x112   :  { %1421 = vadd.xlane.f32.xlu1 %v1420_v5  ;;  %1418 = vadd.xlane.f32.xlu0 %v1417_v25  ;;  %v154_v5 = vld [vmem:[%s13292_s0 + $0x460] sm:$0xff]  ;;  %v905_v25 = vmul.f32 %v405_v46, %v155_v37  ;;  %v406_v37 = vld [vmem:[%s13293_s1 + $0x470] sm:$0xff] }
 0x113   :  { %v7396_v13 = vpop.xlane.xlu1 %1211  ;;  %v7399_v20 = vpop.xlane.xlu0 %1208  ;;  %v904_v26 = vmul.f32 %v404_v61, %v154_v5 }
 0x114   :  { %13335 = vst [vmem:[#allocation41_spill] sm:$0xff] %v7396_v13  ;;  %13336 = vst [vmem:[#allocation42_spill] sm:$0xff] %v7399_v20  ;;  %v157_v13 = vld [vmem:[%s13292_s0 + $0x478] sm:$0xff]  ;;  %v1438_v49 = vsel %vm1014_vm0, %v905_v25, 0.0 }
 0x115   :  { %v407_v20 = vld [vmem:[%s13293_s1 + $0x478] sm:$0xff]  ;;  %v1435_v5 = vsel %vm1014_vm0, %v904_v26, 0.0 }
 0x116   :  { %1427 = vadd.xlane.f32.xlu1 %v1426_v47  ;;  %1424 = vadd.xlane.f32.xlu0 %v1423_v60  ;;  %v156_v47 = vld [vmem:[%s13292_s0 + $0x470] sm:$0xff]  ;;  %v907_v60 = vmul.f32 %v407_v20, %v157_v13  ;;  %v408_v13 = vld [vmem:[%s13293_s1 + $0x480] sm:$0xff] }
 0x117   :  { %v7414_v2 = vpop.xlane.xlu1 %1217  ;;  %v7417_v16 = vpop.xlane.xlu0 %1214  ;;  %v906_v61 = vmul.f32 %v406_v37, %v156_v47 }
 0x118   :  { %13337 = vst [vmem:[#allocation43_spill] sm:$0xff] %v7414_v2  ;;  %13338 = vst [vmem:[#allocation44_spill] sm:$0xff] %v7417_v16  ;;  %v159_v2 = vld [vmem:[%s13292_s0 + $0x488] sm:$0xff]  ;;  %v1444_v25 = vsel %vm1014_vm0, %v907_v60, 0.0 }
 0x119   :  { %v409_v16 = vld [vmem:[%s13293_s1 + $0x488] sm:$0xff]  ;;  %v1441_v47 = vsel %vm1014_vm0, %v906_v61, 0.0 }
 0x11a   :  { %1433 = vadd.xlane.f32.xlu1 %v1432_v22  ;;  %1430 = vadd.xlane.f32.xlu0 %v1429_v32  ;;  %v158_v22 = vld [vmem:[%s13292_s0 + $0x480] sm:$0xff]  ;;  %v909_v32 = vmul.f32 %v409_v16, %v159_v2  ;;  %v410_v2 = vld [vmem:[%s13293_s1 + $0x490] sm:$0xff] }
 0x11b   :  { %v7432_v46 = vpop.xlane.xlu1 %1223  ;;  %v7435_v56 = vpop.xlane.xlu0 %1220  ;;  %v908_v37 = vmul.f32 %v408_v13, %v158_v22 }
 0x11c   :  { %13339 = vst [vmem:[#allocation45_spill] sm:$0xff] %v7432_v46  ;;  %13340 = vst [vmem:[#allocation46_spill] sm:$0xff] %v7435_v56  ;;  %v161_v46 = vld [vmem:[%s13292_s0 + $0x498] sm:$0xff]  ;;  %v1450_v60 = vsel %vm1014_vm0, %v909_v32, 0.0 }
 0x11d   :  { %v411_v56 = vld [vmem:[%s13293_s1 + $0x498] sm:$0xff]  ;;  %v1447_v22 = vsel %vm1014_vm0, %v908_v37, 0.0 }
 0x11e   :  { %1439 = vadd.xlane.f32.xlu1 %v1438_v49  ;;  %1436 = vadd.xlane.f32.xlu0 %v1435_v5  ;;  %v160_v49 = vld [vmem:[%s13292_s0 + $0x490] sm:$0xff]  ;;  %v911_v5 = vmul.f32 %v411_v56, %v161_v46  ;;  %v412_v46 = vld [vmem:[%s13293_s1 + $0x4a0] sm:$0xff] }
 0x11f   :  { %v7450_v20 = vpop.xlane.xlu1 %1229  ;;  %v7453_v26 = vpop.xlane.xlu0 %1226  ;;  %v910_v13 = vmul.f32 %v410_v2, %v160_v49 }
 0x120   :  { %13341 = vst [vmem:[#allocation47_spill] sm:$0xff] %v7450_v20  ;;  %13342 = vst [vmem:[#allocation48_spill] sm:$0xff] %v7453_v26  ;;  %v163_v20 = vld [vmem:[%s13292_s0 + $0x4a8] sm:$0xff]  ;;  %v1456_v32 = vsel %vm1014_vm0, %v911_v5, 0.0 }
 0x121   :  { %v413_v26 = vld [vmem:[%s13293_s1 + $0x4a8] sm:$0xff]  ;;  %v1453_v49 = vsel %vm1014_vm0, %v910_v13, 0.0 }
 0x122   :  { %1445 = vadd.xlane.f32.xlu1 %v1444_v25  ;;  %1442 = vadd.xlane.f32.xlu0 %v1441_v47  ;;  %v162_v25 = vld [vmem:[%s13292_s0 + $0x4a0] sm:$0xff]  ;;  %v913_v47 = vmul.f32 %v413_v26, %v163_v20  ;;  %v414_v20 = vld [vmem:[%s13293_s1 + $0x4b0] sm:$0xff] }
 0x123   :  { %v7468_v16 = vpop.xlane.xlu1 %1235  ;;  %v7471_v61 = vpop.xlane.xlu0 %1232  ;;  %v912_v2 = vmul.f32 %v412_v46, %v162_v25 }
 0x124   :  { %13343 = vst [vmem:[#allocation49_spill] sm:$0xff] %v7468_v16  ;;  %13344 = vst [vmem:[#allocation50_spill] sm:$0xff] %v7471_v61  ;;  %v165_v16 = vld [vmem:[%s13292_s0 + $0x4b8] sm:$0xff]  ;;  %v1462_v5 = vsel %vm1014_vm0, %v913_v47, 0.0 }
 0x125   :  { %v415_v61 = vld [vmem:[%s13293_s1 + $0x4b8] sm:$0xff]  ;;  %v1459_v25 = vsel %vm1014_vm0, %v912_v2, 0.0 }
 0x126   :  { %1451 = vadd.xlane.f32.xlu1 %v1450_v60  ;;  %1448 = vadd.xlane.f32.xlu0 %v1447_v22  ;;  %v164_v60 = vld [vmem:[%s13292_s0 + $0x4b0] sm:$0xff]  ;;  %v915_v22 = vmul.f32 %v415_v61, %v165_v16  ;;  %v416_v16 = vld [vmem:[%s13293_s1 + $0x4c0] sm:$0xff] }
 0x127   :  { %v7486_v56 = vpop.xlane.xlu1 %1241  ;;  %v7489_v37 = vpop.xlane.xlu0 %1238  ;;  %v914_v46 = vmul.f32 %v414_v20, %v164_v60 }
 0x128   :  { %13345 = vst [vmem:[#allocation51_spill] sm:$0xff] %v7486_v56  ;;  %13346 = vst [vmem:[#allocation52_spill] sm:$0xff] %v7489_v37  ;;  %v167_v56 = vld [vmem:[%s13292_s0 + $0x4c8] sm:$0xff]  ;;  %v1468_v47 = vsel %vm1014_vm0, %v915_v22, 0.0 }
 0x129   :  { %v417_v37 = vld [vmem:[%s13293_s1 + $0x4c8] sm:$0xff]  ;;  %v1465_v60 = vsel %vm1014_vm0, %v914_v46, 0.0 }
 0x12a   :  { %1457 = vadd.xlane.f32.xlu1 %v1456_v32  ;;  %1454 = vadd.xlane.f32.xlu0 %v1453_v49  ;;  %v166_v32 = vld [vmem:[%s13292_s0 + $0x4c0] sm:$0xff]  ;;  %v917_v49 = vmul.f32 %v417_v37, %v167_v56  ;;  %v418_v56 = vld [vmem:[%s13293_s1 + $0x4d0] sm:$0xff] }
 0x12b   :  { %v7504_v26 = vpop.xlane.xlu1 %1247  ;;  %v7507_v13 = vpop.xlane.xlu0 %1244  ;;  %v916_v20 = vmul.f32 %v416_v16, %v166_v32 }
 0x12c   :  { %13347 = vst [vmem:[#allocation53_spill] sm:$0xff] %v7504_v26  ;;  %13348 = vst [vmem:[#allocation54_spill] sm:$0xff] %v7507_v13  ;;  %v169_v26 = vld [vmem:[%s13292_s0 + $0x4d8] sm:$0xff]  ;;  %v1474_v22 = vsel %vm1014_vm0, %v917_v49, 0.0 }
 0x12d   :  { %v419_v13 = vld [vmem:[%s13293_s1 + $0x4d8] sm:$0xff]  ;;  %v1471_v32 = vsel %vm1014_vm0, %v916_v20, 0.0 }
 0x12e   :  { %1463 = vadd.xlane.f32.xlu1 %v1462_v5  ;;  %1460 = vadd.xlane.f32.xlu0 %v1459_v25  ;;  %v168_v5 = vld [vmem:[%s13292_s0 + $0x4d0] sm:$0xff]  ;;  %v919_v25 = vmul.f32 %v419_v13, %v169_v26  ;;  %v420_v26 = vld [vmem:[%s13293_s1 + $0x4e0] sm:$0xff] }
 0x12f   :  { %v7522_v61 = vpop.xlane.xlu1 %1253  ;;  %v7525_v2 = vpop.xlane.xlu0 %1250  ;;  %v918_v16 = vmul.f32 %v418_v56, %v168_v5 }
 0x130   :  { %13349 = vst [vmem:[#allocation55_spill] sm:$0xff] %v7522_v61  ;;  %13350 = vst [vmem:[#allocation56_spill] sm:$0xff] %v7525_v2  ;;  %v171_v61 = vld [vmem:[%s13292_s0 + $0x4e8] sm:$0xff]  ;;  %v1480_v49 = vsel %vm1014_vm0, %v919_v25, 0.0 }
 0x131   :  { %v421_v2 = vld [vmem:[%s13293_s1 + $0x4e8] sm:$0xff]  ;;  %v1477_v5 = vsel %vm1014_vm0, %v918_v16, 0.0 }
 0x132   :  { %1469 = vadd.xlane.f32.xlu1 %v1468_v47  ;;  %1466 = vadd.xlane.f32.xlu0 %v1465_v60  ;;  %v170_v47 = vld [vmem:[%s13292_s0 + $0x4e0] sm:$0xff]  ;;  %v921_v60 = vmul.f32 %v421_v2, %v171_v61  ;;  %v422_v61 = vld [vmem:[%s13293_s1 + $0x4f0] sm:$0xff] }
 0x133   :  { %v7540_v37 = vpop.xlane.xlu1 %1259  ;;  %v7543_v46 = vpop.xlane.xlu0 %1256  ;;  %v920_v56 = vmul.f32 %v420_v26, %v170_v47 }
 0x134   :  { %13351 = vst [vmem:[#allocation57_spill] sm:$0xff] %v7540_v37  ;;  %13352 = vst [vmem:[#allocation58_spill] sm:$0xff] %v7543_v46  ;;  %v173_v37 = vld [vmem:[%s13292_s0 + $0x4f8] sm:$0xff]  ;;  %v1486_v25 = vsel %vm1014_vm0, %v921_v60, 0.0 }
 0x135   :  { %v423_v46 = vld [vmem:[%s13293_s1 + $0x4f8] sm:$0xff]  ;;  %v1483_v47 = vsel %vm1014_vm0, %v920_v56, 0.0 }
 0x136   :  { %1475 = vadd.xlane.f32.xlu1 %v1474_v22  ;;  %1472 = vadd.xlane.f32.xlu0 %v1471_v32  ;;  %v172_v22 = vld [vmem:[%s13292_s0 + $0x4f0] sm:$0xff]  ;;  %v923_v32 = vmul.f32 %v423_v46, %v173_v37  ;;  %v424_v37 = vld [vmem:[%s13293_s1 + $0x500] sm:$0xff] }
 0x137   :  { %v7558_v13 = vpop.xlane.xlu1 %1265  ;;  %v7561_v20 = vpop.xlane.xlu0 %1262  ;;  %v922_v26 = vmul.f32 %v422_v61, %v172_v22 }
 0x138   :  { %13353 = vst [vmem:[#allocation59_spill] sm:$0xff] %v7558_v13  ;;  %13354 = vst [vmem:[#allocation60_spill] sm:$0xff] %v7561_v20  ;;  %v175_v13 = vld [vmem:[%s13292_s0 + $0x508] sm:$0xff]  ;;  %v1492_v60 = vsel %vm1014_vm0, %v923_v32, 0.0 }
 0x139   :  { %v425_v20 = vld [vmem:[%s13293_s1 + $0x508] sm:$0xff]  ;;  %v1489_v22 = vsel %vm1014_vm0, %v922_v26, 0.0 }
 0x13a   :  { %1481 = vadd.xlane.f32.xlu1 %v1480_v49  ;;  %1478 = vadd.xlane.f32.xlu0 %v1477_v5  ;;  %v174_v49 = vld [vmem:[%s13292_s0 + $0x500] sm:$0xff]  ;;  %v925_v5 = vmul.f32 %v425_v20, %v175_v13  ;;  %v426_v13 = vld [vmem:[%s13293_s1 + $0x510] sm:$0xff] }
 0x13b   :  { %v7576_v2 = vpop.xlane.xlu1 %1271  ;;  %v7579_v16 = vpop.xlane.xlu0 %1268  ;;  %v924_v61 = vmul.f32 %v424_v37, %v174_v49 }
 0x13c   :  { %13355 = vst [vmem:[#allocation61_spill] sm:$0xff] %v7576_v2  ;;  %13356 = vst [vmem:[#allocation62_spill] sm:$0xff] %v7579_v16  ;;  %v177_v2 = vld [vmem:[%s13292_s0 + $0x518] sm:$0xff]  ;;  %v1498_v32 = vsel %vm1014_vm0, %v925_v5, 0.0 }
 0x13d   :  { %v427_v16 = vld [vmem:[%s13293_s1 + $0x518] sm:$0xff]  ;;  %v1495_v49 = vsel %vm1014_vm0, %v924_v61, 0.0 }
 0x13e   :  { %1487 = vadd.xlane.f32.xlu1 %v1486_v25  ;;  %1484 = vadd.xlane.f32.xlu0 %v1483_v47  ;;  %v176_v25 = vld [vmem:[%s13292_s0 + $0x510] sm:$0xff]  ;;  %v927_v47 = vmul.f32 %v427_v16, %v177_v2  ;;  %v428_v2 = vld [vmem:[%s13293_s1 + $0x520] sm:$0xff] }
 0x13f   :  { %v7594_v46 = vpop.xlane.xlu1 %1277  ;;  %v7597_v56 = vpop.xlane.xlu0 %1274  ;;  %v926_v37 = vmul.f32 %v426_v13, %v176_v25 }
 0x140   :  { %13357 = vst [vmem:[#allocation63_spill] sm:$0xff] %v7594_v46  ;;  %13358 = vst [vmem:[#allocation64_spill] sm:$0xff] %v7597_v56  ;;  %v179_v46 = vld [vmem:[%s13292_s0 + $0x528] sm:$0xff]  ;;  %v1504_v5 = vsel %vm1014_vm0, %v927_v47, 0.0 }
 0x141   :  { %v429_v56 = vld [vmem:[%s13293_s1 + $0x528] sm:$0xff]  ;;  %v1501_v25 = vsel %vm1014_vm0, %v926_v37, 0.0 }
 0x142   :  { %1493 = vadd.xlane.f32.xlu1 %v1492_v60  ;;  %1490 = vadd.xlane.f32.xlu0 %v1489_v22  ;;  %v178_v60 = vld [vmem:[%s13292_s0 + $0x520] sm:$0xff]  ;;  %v929_v22 = vmul.f32 %v429_v56, %v179_v46  ;;  %v430_v46 = vld [vmem:[%s13293_s1 + $0x530] sm:$0xff] }
 0x143   :  { %v7612_v20 = vpop.xlane.xlu1 %1283  ;;  %v7615_v26 = vpop.xlane.xlu0 %1280  ;;  %v928_v13 = vmul.f32 %v428_v2, %v178_v60 }
 0x144   :  { %13359 = vst [vmem:[#allocation65_spill] sm:$0xff] %v7612_v20  ;;  %13360 = vst [vmem:[#allocation66_spill] sm:$0xff] %v7615_v26  ;;  %v181_v20 = vld [vmem:[%s13292_s0 + $0x538] sm:$0xff]  ;;  %v1510_v47 = vsel %vm1014_vm0, %v929_v22, 0.0 }
 0x145   :  { %v431_v26 = vld [vmem:[%s13293_s1 + $0x538] sm:$0xff]  ;;  %v1507_v60 = vsel %vm1014_vm0, %v928_v13, 0.0 }
 0x146   :  { %1499 = vadd.xlane.f32.xlu1 %v1498_v32  ;;  %1496 = vadd.xlane.f32.xlu0 %v1495_v49  ;;  %v180_v32 = vld [vmem:[%s13292_s0 + $0x530] sm:$0xff]  ;;  %v931_v49 = vmul.f32 %v431_v26, %v181_v20  ;;  %v432_v20 = vld [vmem:[%s13293_s1 + $0x540] sm:$0xff] }
 0x147   :  { %v7630_v16 = vpop.xlane.xlu1 %1289  ;;  %v7633_v61 = vpop.xlane.xlu0 %1286  ;;  %v930_v2 = vmul.f32 %v430_v46, %v180_v32 }
 0x148   :  { %13361 = vst [vmem:[#allocation67_spill] sm:$0xff] %v7630_v16  ;;  %13362 = vst [vmem:[#allocation68_spill] sm:$0xff] %v7633_v61  ;;  %v183_v16 = vld [vmem:[%s13292_s0 + $0x548] sm:$0xff]  ;;  %v1516_v22 = vsel %vm1014_vm0, %v931_v49, 0.0 }
 0x149   :  { %v433_v61 = vld [vmem:[%s13293_s1 + $0x548] sm:$0xff]  ;;  %v1513_v32 = vsel %vm1014_vm0, %v930_v2, 0.0 }
 0x14a   :  { %1505 = vadd.xlane.f32.xlu1 %v1504_v5  ;;  %1502 = vadd.xlane.f32.xlu0 %v1501_v25  ;;  %v182_v5 = vld [vmem:[%s13292_s0 + $0x540] sm:$0xff]  ;;  %v933_v25 = vmul.f32 %v433_v61, %v183_v16  ;;  %v434_v16 = vld [vmem:[%s13293_s1 + $0x550] sm:$0xff] }
 0x14b   :  { %v7648_v56 = vpop.xlane.xlu1 %1295  ;;  %v7651_v37 = vpop.xlane.xlu0 %1292  ;;  %v932_v46 = vmul.f32 %v432_v20, %v182_v5 }
 0x14c   :  { %13363 = vst [vmem:[#allocation69_spill] sm:$0xff] %v7648_v56  ;;  %13364 = vst [vmem:[#allocation70_spill] sm:$0xff] %v7651_v37  ;;  %v185_v56 = vld [vmem:[%s13292_s0 + $0x558] sm:$0xff]  ;;  %v1522_v49 = vsel %vm1014_vm0, %v933_v25, 0.0 }
 0x14d   :  { %v435_v37 = vld [vmem:[%s13293_s1 + $0x558] sm:$0xff]  ;;  %v1519_v5 = vsel %vm1014_vm0, %v932_v46, 0.0 }
 0x14e   :  { %1511 = vadd.xlane.f32.xlu1 %v1510_v47  ;;  %1508 = vadd.xlane.f32.xlu0 %v1507_v60  ;;  %v184_v47 = vld [vmem:[%s13292_s0 + $0x550] sm:$0xff]  ;;  %v935_v60 = vmul.f32 %v435_v37, %v185_v56  ;;  %v436_v56 = vld [vmem:[%s13293_s1 + $0x560] sm:$0xff] }
 0x14f   :  { %v7666_v26 = vpop.xlane.xlu1 %1301  ;;  %v7669_v13 = vpop.xlane.xlu0 %1298  ;;  %v934_v20 = vmul.f32 %v434_v16, %v184_v47 }
 0x150   :  { %13365 = vst [vmem:[#allocation71_spill] sm:$0xff] %v7666_v26  ;;  %13366 = vst [vmem:[#allocation72_spill] sm:$0xff] %v7669_v13  ;;  %v187_v26 = vld [vmem:[%s13292_s0 + $0x568] sm:$0xff]  ;;  %v1528_v25 = vsel %vm1014_vm0, %v935_v60, 0.0 }
 0x151   :  { %v437_v13 = vld [vmem:[%s13293_s1 + $0x568] sm:$0xff]  ;;  %v1525_v47 = vsel %vm1014_vm0, %v934_v20, 0.0 }
 0x152   :  { %1517 = vadd.xlane.f32.xlu1 %v1516_v22  ;;  %1514 = vadd.xlane.f32.xlu0 %v1513_v32  ;;  %v186_v22 = vld [vmem:[%s13292_s0 + $0x560] sm:$0xff]  ;;  %v937_v32 = vmul.f32 %v437_v13, %v187_v26  ;;  %v438_v26 = vld [vmem:[%s13293_s1 + $0x570] sm:$0xff] }
 0x153   :  { %v7684_v61 = vpop.xlane.xlu1 %1307  ;;  %v7687_v2 = vpop.xlane.xlu0 %1304  ;;  %v936_v16 = vmul.f32 %v436_v56, %v186_v22 }
 0x154   :  { %13367 = vst [vmem:[#allocation73_spill] sm:$0xff] %v7684_v61  ;;  %13368 = vst [vmem:[#allocation74_spill] sm:$0xff] %v7687_v2  ;;  %v189_v61 = vld [vmem:[%s13292_s0 + $0x578] sm:$0xff]  ;;  %v1534_v60 = vsel %vm1014_vm0, %v937_v32, 0.0 }
 0x155   :  { %v439_v2 = vld [vmem:[%s13293_s1 + $0x578] sm:$0xff]  ;;  %v1531_v22 = vsel %vm1014_vm0, %v936_v16, 0.0 }
 0x156   :  { %1523 = vadd.xlane.f32.xlu1 %v1522_v49  ;;  %1520 = vadd.xlane.f32.xlu0 %v1519_v5  ;;  %v188_v49 = vld [vmem:[%s13292_s0 + $0x570] sm:$0xff]  ;;  %v939_v5 = vmul.f32 %v439_v2, %v189_v61  ;;  %v440_v61 = vld [vmem:[%s13293_s1 + $0x580] sm:$0xff] }
 0x157   :  { %v7702_v37 = vpop.xlane.xlu1 %1313  ;;  %v7705_v46 = vpop.xlane.xlu0 %1310  ;;  %v938_v56 = vmul.f32 %v438_v26, %v188_v49 }
 0x158   :  { %13369 = vst [vmem:[#allocation75_spill] sm:$0xff] %v7702_v37  ;;  %13370 = vst [vmem:[#allocation76_spill] sm:$0xff] %v7705_v46  ;;  %v191_v37 = vld [vmem:[%s13292_s0 + $0x588] sm:$0xff]  ;;  %v1540_v32 = vsel %vm1014_vm0, %v939_v5, 0.0 }
 0x159   :  { %v441_v46 = vld [vmem:[%s13293_s1 + $0x588] sm:$0xff]  ;;  %v1537_v49 = vsel %vm1014_vm0, %v938_v56, 0.0 }
 0x15a   :  { %1529 = vadd.xlane.f32.xlu1 %v1528_v25  ;;  %1526 = vadd.xlane.f32.xlu0 %v1525_v47  ;;  %v190_v25 = vld [vmem:[%s13292_s0 + $0x580] sm:$0xff]  ;;  %v941_v47 = vmul.f32 %v441_v46, %v191_v37  ;;  %v442_v37 = vld [vmem:[%s13293_s1 + $0x590] sm:$0xff] }
 0x15b   :  { %v7720_v13 = vpop.xlane.xlu1 %1319  ;;  %v7723_v20 = vpop.xlane.xlu0 %1316  ;;  %v940_v26 = vmul.f32 %v440_v61, %v190_v25 }
 0x15c   :  { %13371 = vst [vmem:[#allocation77_spill] sm:$0xff] %v7720_v13  ;;  %13372 = vst [vmem:[#allocation78_spill] sm:$0xff] %v7723_v20  ;;  %v193_v13 = vld [vmem:[%s13292_s0 + $0x598] sm:$0xff]  ;;  %v1546_v5 = vsel %vm1014_vm0, %v941_v47, 0.0 }
 0x15d   :  { %v443_v20 = vld [vmem:[%s13293_s1 + $0x598] sm:$0xff]  ;;  %v1543_v25 = vsel %vm1014_vm0, %v940_v26, 0.0 }
 0x15e   :  { %1535 = vadd.xlane.f32.xlu1 %v1534_v60  ;;  %1532 = vadd.xlane.f32.xlu0 %v1531_v22  ;;  %v192_v60 = vld [vmem:[%s13292_s0 + $0x590] sm:$0xff]  ;;  %v943_v22 = vmul.f32 %v443_v20, %v193_v13  ;;  %v444_v13 = vld [vmem:[%s13293_s1 + $0x5a0] sm:$0xff] }
 0x15f   :  { %v7738_v2 = vpop.xlane.xlu1 %1325  ;;  %v7741_v16 = vpop.xlane.xlu0 %1322  ;;  %v942_v61 = vmul.f32 %v442_v37, %v192_v60 }
 0x160   :  { %13373 = vst [vmem:[#allocation79_spill] sm:$0xff] %v7738_v2  ;;  %13374 = vst [vmem:[#allocation80_spill] sm:$0xff] %v7741_v16  ;;  %v195_v2 = vld [vmem:[%s13292_s0 + $0x5a8] sm:$0xff]  ;;  %v1552_v47 = vsel %vm1014_vm0, %v943_v22, 0.0 }
 0x161   :  { %v445_v16 = vld [vmem:[%s13293_s1 + $0x5a8] sm:$0xff]  ;;  %v1549_v60 = vsel %vm1014_vm0, %v942_v61, 0.0 }
 0x162   :  { %1541 = vadd.xlane.f32.xlu1 %v1540_v32  ;;  %1538 = vadd.xlane.f32.xlu0 %v1537_v49  ;;  %v194_v32 = vld [vmem:[%s13292_s0 + $0x5a0] sm:$0xff]  ;;  %v945_v49 = vmul.f32 %v445_v16, %v195_v2  ;;  %v446_v2 = vld [vmem:[%s13293_s1 + $0x5b0] sm:$0xff] }
 0x163   :  { %v7756_v46 = vpop.xlane.xlu1 %1331  ;;  %v7759_v56 = vpop.xlane.xlu0 %1328  ;;  %v944_v37 = vmul.f32 %v444_v13, %v194_v32 }
 0x164   :  { %13375 = vst [vmem:[#allocation81_spill] sm:$0xff] %v7756_v46  ;;  %13376 = vst [vmem:[#allocation82_spill] sm:$0xff] %v7759_v56  ;;  %v197_v46 = vld [vmem:[%s13292_s0 + $0x5b8] sm:$0xff]  ;;  %v1558_v22 = vsel %vm1014_vm0, %v945_v49, 0.0 }
 0x165   :  { %v447_v56 = vld [vmem:[%s13293_s1 + $0x5b8] sm:$0xff]  ;;  %v1555_v32 = vsel %vm1014_vm0, %v944_v37, 0.0 }
 0x166   :  { %1547 = vadd.xlane.f32.xlu1 %v1546_v5  ;;  %1544 = vadd.xlane.f32.xlu0 %v1543_v25  ;;  %v196_v5 = vld [vmem:[%s13292_s0 + $0x5b0] sm:$0xff]  ;;  %v947_v25 = vmul.f32 %v447_v56, %v197_v46  ;;  %v448_v46 = vld [vmem:[%s13293_s1 + $0x5c0] sm:$0xff] }
 0x167   :  { %v7774_v20 = vpop.xlane.xlu1 %1337  ;;  %v7777_v26 = vpop.xlane.xlu0 %1334  ;;  %v946_v13 = vmul.f32 %v446_v2, %v196_v5 }
 0x168   :  { %13377 = vst [vmem:[#allocation83_spill] sm:$0xff] %v7774_v20  ;;  %13378 = vst [vmem:[#allocation84_spill] sm:$0xff] %v7777_v26  ;;  %v199_v20 = vld [vmem:[%s13292_s0 + $0x5c8] sm:$0xff]  ;;  %v1564_v49 = vsel %vm1014_vm0, %v947_v25, 0.0 }
 0x169   :  { %v449_v26 = vld [vmem:[%s13293_s1 + $0x5c8] sm:$0xff]  ;;  %v1561_v5 = vsel %vm1014_vm0, %v946_v13, 0.0 }
 0x16a   :  { %1553 = vadd.xlane.f32.xlu1 %v1552_v47  ;;  %1550 = vadd.xlane.f32.xlu0 %v1549_v60  ;;  %v198_v47 = vld [vmem:[%s13292_s0 + $0x5c0] sm:$0xff]  ;;  %v949_v60 = vmul.f32 %v449_v26, %v199_v20  ;;  %v450_v20 = vld [vmem:[%s13293_s1 + $0x5d0] sm:$0xff] }
 0x16b   :  { %v7792_v16 = vpop.xlane.xlu1 %1343  ;;  %v7795_v61 = vpop.xlane.xlu0 %1340  ;;  %v948_v2 = vmul.f32 %v448_v46, %v198_v47 }
 0x16c   :  { %13379 = vst [vmem:[#allocation85_spill] sm:$0xff] %v7792_v16  ;;  %13380 = vst [vmem:[#allocation86_spill] sm:$0xff] %v7795_v61  ;;  %v201_v16 = vld [vmem:[%s13292_s0 + $0x5d8] sm:$0xff]  ;;  %v1570_v25 = vsel %vm1014_vm0, %v949_v60, 0.0 }
 0x16d   :  { %v451_v61 = vld [vmem:[%s13293_s1 + $0x5d8] sm:$0xff]  ;;  %v1567_v47 = vsel %vm1014_vm0, %v948_v2, 0.0 }
 0x16e   :  { %1559 = vadd.xlane.f32.xlu1 %v1558_v22  ;;  %1556 = vadd.xlane.f32.xlu0 %v1555_v32  ;;  %v200_v22 = vld [vmem:[%s13292_s0 + $0x5d0] sm:$0xff]  ;;  %v951_v32 = vmul.f32 %v451_v61, %v201_v16  ;;  %v452_v16 = vld [vmem:[%s13293_s1 + $0x5e0] sm:$0xff] }
 0x16f   :  { %v7810_v56 = vpop.xlane.xlu1 %1349  ;;  %v7813_v37 = vpop.xlane.xlu0 %1346  ;;  %v950_v46 = vmul.f32 %v450_v20, %v200_v22 }
 0x170   :  { %13381 = vst [vmem:[#allocation87_spill] sm:$0xff] %v7810_v56  ;;  %13382 = vst [vmem:[#allocation88_spill] sm:$0xff] %v7813_v37  ;;  %v203_v56 = vld [vmem:[%s13292_s0 + $0x5e8] sm:$0xff]  ;;  %v1576_v60 = vsel %vm1014_vm0, %v951_v32, 0.0 }
 0x171   :  { %v453_v37 = vld [vmem:[%s13293_s1 + $0x5e8] sm:$0xff]  ;;  %v1573_v22 = vsel %vm1014_vm0, %v950_v46, 0.0 }
 0x172   :  { %1565 = vadd.xlane.f32.xlu1 %v1564_v49  ;;  %1562 = vadd.xlane.f32.xlu0 %v1561_v5  ;;  %v202_v49 = vld [vmem:[%s13292_s0 + $0x5e0] sm:$0xff]  ;;  %v953_v5 = vmul.f32 %v453_v37, %v203_v56  ;;  %v454_v56 = vld [vmem:[%s13293_s1 + $0x5f0] sm:$0xff] }
 0x173   :  { %v7828_v26 = vpop.xlane.xlu1 %1355  ;;  %v7831_v13 = vpop.xlane.xlu0 %1352  ;;  %v952_v20 = vmul.f32 %v452_v16, %v202_v49 }
 0x174   :  { %13383 = vst [vmem:[#allocation89_spill] sm:$0xff] %v7828_v26  ;;  %13384 = vst [vmem:[#allocation90_spill] sm:$0xff] %v7831_v13  ;;  %v205_v26 = vld [vmem:[%s13292_s0 + $0x5f8] sm:$0xff]  ;;  %v1582_v32 = vsel %vm1014_vm0, %v953_v5, 0.0 }
 0x175   :  { %v455_v13 = vld [vmem:[%s13293_s1 + $0x5f8] sm:$0xff]  ;;  %v1579_v49 = vsel %vm1014_vm0, %v952_v20, 0.0 }
 0x176   :  { %1571 = vadd.xlane.f32.xlu1 %v1570_v25  ;;  %1568 = vadd.xlane.f32.xlu0 %v1567_v47  ;;  %v204_v25 = vld [vmem:[%s13292_s0 + $0x5f0] sm:$0xff]  ;;  %v955_v47 = vmul.f32 %v455_v13, %v205_v26  ;;  %v456_v26 = vld [vmem:[%s13293_s1 + $0x600] sm:$0xff] }
 0x177   :  { %v7846_v61 = vpop.xlane.xlu1 %1361  ;;  %v7849_v2 = vpop.xlane.xlu0 %1358  ;;  %v954_v16 = vmul.f32 %v454_v56, %v204_v25 }
 0x178   :  { %13385 = vst [vmem:[#allocation91_spill] sm:$0xff] %v7846_v61  ;;  %13386 = vst [vmem:[#allocation92_spill] sm:$0xff] %v7849_v2  ;;  %v207_v61 = vld [vmem:[%s13292_s0 + $0x608] sm:$0xff]  ;;  %v1588_v5 = vsel %vm1014_vm0, %v955_v47, 0.0 }
 0x179   :  { %v457_v2 = vld [vmem:[%s13293_s1 + $0x608] sm:$0xff]  ;;  %v1585_v25 = vsel %vm1014_vm0, %v954_v16, 0.0 }
 0x17a   :  { %1577 = vadd.xlane.f32.xlu1 %v1576_v60  ;;  %1574 = vadd.xlane.f32.xlu0 %v1573_v22  ;;  %v206_v60 = vld [vmem:[%s13292_s0 + $0x600] sm:$0xff]  ;;  %v957_v22 = vmul.f32 %v457_v2, %v207_v61  ;;  %v458_v61 = vld [vmem:[%s13293_s1 + $0x610] sm:$0xff] }
 0x17b   :  { %v7864_v37 = vpop.xlane.xlu1 %1367  ;;  %v7867_v46 = vpop.xlane.xlu0 %1364  ;;  %v956_v56 = vmul.f32 %v456_v26, %v206_v60 }
 0x17c   :  { %13387 = vst [vmem:[#allocation93_spill] sm:$0xff] %v7864_v37  ;;  %13388 = vst [vmem:[#allocation94_spill] sm:$0xff] %v7867_v46  ;;  %v209_v37 = vld [vmem:[%s13292_s0 + $0x618] sm:$0xff]  ;;  %v1594_v47 = vsel %vm1014_vm0, %v957_v22, 0.0 }
 0x17d   :  { %v459_v46 = vld [vmem:[%s13293_s1 + $0x618] sm:$0xff]  ;;  %v1591_v60 = vsel %vm1014_vm0, %v956_v56, 0.0 }
 0x17e   :  { %1583 = vadd.xlane.f32.xlu1 %v1582_v32  ;;  %1580 = vadd.xlane.f32.xlu0 %v1579_v49  ;;  %v208_v32 = vld [vmem:[%s13292_s0 + $0x610] sm:$0xff]  ;;  %v959_v49 = vmul.f32 %v459_v46, %v209_v37  ;;  %v460_v37 = vld [vmem:[%s13293_s1 + $0x620] sm:$0xff] }
 0x17f   :  { %v7882_v13 = vpop.xlane.xlu1 %1373  ;;  %v7885_v20 = vpop.xlane.xlu0 %1370  ;;  %v958_v26 = vmul.f32 %v458_v61, %v208_v32 }
 0x180   :  { %13389 = vst [vmem:[#allocation95_spill] sm:$0xff] %v7882_v13  ;;  %13390 = vst [vmem:[#allocation96_spill] sm:$0xff] %v7885_v20  ;;  %v211_v13 = vld [vmem:[%s13292_s0 + $0x628] sm:$0xff]  ;;  %v1600_v22 = vsel %vm1014_vm0, %v959_v49, 0.0 }
 0x181   :  { %v461_v20 = vld [vmem:[%s13293_s1 + $0x628] sm:$0xff]  ;;  %v1597_v32 = vsel %vm1014_vm0, %v958_v26, 0.0 }
 0x182   :  { %1589 = vadd.xlane.f32.xlu1 %v1588_v5  ;;  %1586 = vadd.xlane.f32.xlu0 %v1585_v25  ;;  %v210_v5 = vld [vmem:[%s13292_s0 + $0x620] sm:$0xff]  ;;  %v961_v25 = vmul.f32 %v461_v20, %v211_v13  ;;  %v462_v13 = vld [vmem:[%s13293_s1 + $0x630] sm:$0xff] }
 0x183   :  { %v7900_v2 = vpop.xlane.xlu1 %1379  ;;  %v7903_v16 = vpop.xlane.xlu0 %1376  ;;  %v960_v61 = vmul.f32 %v460_v37, %v210_v5 }
 0x184   :  { %13391 = vst [vmem:[#allocation97_spill] sm:$0xff] %v7900_v2  ;;  %13392 = vst [vmem:[#allocation98_spill] sm:$0xff] %v7903_v16  ;;  %v213_v2 = vld [vmem:[%s13292_s0 + $0x638] sm:$0xff]  ;;  %v1606_v49 = vsel %vm1014_vm0, %v961_v25, 0.0 }
 0x185   :  { %v463_v16 = vld [vmem:[%s13293_s1 + $0x638] sm:$0xff]  ;;  %v1603_v5 = vsel %vm1014_vm0, %v960_v61, 0.0 }
 0x186   :  { %1595 = vadd.xlane.f32.xlu1 %v1594_v47  ;;  %1592 = vadd.xlane.f32.xlu0 %v1591_v60  ;;  %v212_v47 = vld [vmem:[%s13292_s0 + $0x630] sm:$0xff]  ;;  %v963_v60 = vmul.f32 %v463_v16, %v213_v2  ;;  %v464_v2 = vld [vmem:[%s13293_s1 + $0x640] sm:$0xff] }
 0x187   :  { %v7918_v46 = vpop.xlane.xlu1 %1385  ;;  %v7921_v56 = vpop.xlane.xlu0 %1382  ;;  %v962_v37 = vmul.f32 %v462_v13, %v212_v47 }
 0x188   :  { %13393 = vst [vmem:[#allocation99_spill] sm:$0xff] %v7918_v46  ;;  %13394 = vst [vmem:[#allocation100_spill] sm:$0xff] %v7921_v56  ;;  %v215_v46 = vld [vmem:[%s13292_s0 + $0x648] sm:$0xff]  ;;  %v1612_v25 = vsel %vm1014_vm0, %v963_v60, 0.0 }
 0x189   :  { %v465_v56 = vld [vmem:[%s13293_s1 + $0x648] sm:$0xff]  ;;  %v1609_v47 = vsel %vm1014_vm0, %v962_v37, 0.0 }
 0x18a   :  { %1601 = vadd.xlane.f32.xlu1 %v1600_v22  ;;  %1598 = vadd.xlane.f32.xlu0 %v1597_v32  ;;  %v214_v22 = vld [vmem:[%s13292_s0 + $0x640] sm:$0xff]  ;;  %v965_v32 = vmul.f32 %v465_v56, %v215_v46  ;;  %v466_v46 = vld [vmem:[%s13293_s1 + $0x650] sm:$0xff] }
 0x18b   :  { %v7936_v20 = vpop.xlane.xlu1 %1391  ;;  %v7939_v26 = vpop.xlane.xlu0 %1388  ;;  %v964_v13 = vmul.f32 %v464_v2, %v214_v22 }
 0x18c   :  { %13395 = vst [vmem:[#allocation101_spill] sm:$0xff] %v7936_v20  ;;  %13396 = vst [vmem:[#allocation102_spill] sm:$0xff] %v7939_v26  ;;  %v217_v20 = vld [vmem:[%s13292_s0 + $0x658] sm:$0xff]  ;;  %v1618_v60 = vsel %vm1014_vm0, %v965_v32, 0.0 }
 0x18d   :  { %v467_v26 = vld [vmem:[%s13293_s1 + $0x658] sm:$0xff]  ;;  %v1615_v22 = vsel %vm1014_vm0, %v964_v13, 0.0 }
 0x18e   :  { %1607 = vadd.xlane.f32.xlu1 %v1606_v49  ;;  %1604 = vadd.xlane.f32.xlu0 %v1603_v5  ;;  %v216_v49 = vld [vmem:[%s13292_s0 + $0x650] sm:$0xff]  ;;  %v967_v5 = vmul.f32 %v467_v26, %v217_v20  ;;  %v468_v20 = vld [vmem:[%s13293_s1 + $0x660] sm:$0xff] }
 0x18f   :  { %v7954_v16 = vpop.xlane.xlu1 %1397  ;;  %v7957_v61 = vpop.xlane.xlu0 %1394  ;;  %v966_v2 = vmul.f32 %v466_v46, %v216_v49 }
 0x190   :  { %13397 = vst [vmem:[#allocation103_spill] sm:$0xff] %v7954_v16  ;;  %13398 = vst [vmem:[#allocation104_spill] sm:$0xff] %v7957_v61  ;;  %v219_v16 = vld [vmem:[%s13292_s0 + $0x668] sm:$0xff]  ;;  %v1624_v32 = vsel %vm1014_vm0, %v967_v5, 0.0 }
 0x191   :  { %v469_v61 = vld [vmem:[%s13293_s1 + $0x668] sm:$0xff]  ;;  %v1621_v49 = vsel %vm1014_vm0, %v966_v2, 0.0 }
 0x192   :  { %1613 = vadd.xlane.f32.xlu1 %v1612_v25  ;;  %1610 = vadd.xlane.f32.xlu0 %v1609_v47  ;;  %v218_v25 = vld [vmem:[%s13292_s0 + $0x660] sm:$0xff]  ;;  %v969_v47 = vmul.f32 %v469_v61, %v219_v16  ;;  %v470_v16 = vld [vmem:[%s13293_s1 + $0x670] sm:$0xff] }
 0x193   :  { %v7972_v56 = vpop.xlane.xlu1 %1403  ;;  %v7975_v37 = vpop.xlane.xlu0 %1400  ;;  %v968_v46 = vmul.f32 %v468_v20, %v218_v25 }
 0x194   :  { %13399 = vst [vmem:[#allocation105_spill] sm:$0xff] %v7972_v56  ;;  %13400 = vst [vmem:[#allocation106_spill] sm:$0xff] %v7975_v37  ;;  %v221_v56 = vld [vmem:[%s13292_s0 + $0x678] sm:$0xff]  ;;  %v1630_v5 = vsel %vm1014_vm0, %v969_v47, 0.0 }
 0x195   :  { %v471_v37 = vld [vmem:[%s13293_s1 + $0x678] sm:$0xff]  ;;  %v1627_v25 = vsel %vm1014_vm0, %v968_v46, 0.0 }
 0x196   :  { %1619 = vadd.xlane.f32.xlu1 %v1618_v60  ;;  %1616 = vadd.xlane.f32.xlu0 %v1615_v22  ;;  %v220_v60 = vld [vmem:[%s13292_s0 + $0x670] sm:$0xff]  ;;  %v971_v22 = vmul.f32 %v471_v37, %v221_v56  ;;  %v472_v56 = vld [vmem:[%s13293_s1 + $0x680] sm:$0xff] }
 0x197   :  { %v7990_v26 = vpop.xlane.xlu1 %1409  ;;  %v7993_v13 = vpop.xlane.xlu0 %1406  ;;  %v970_v20 = vmul.f32 %v470_v16, %v220_v60 }
 0x198   :  { %13401 = vst [vmem:[#allocation107_spill] sm:$0xff] %v7990_v26  ;;  %13402 = vst [vmem:[#allocation108_spill] sm:$0xff] %v7993_v13  ;;  %v223_v26 = vld [vmem:[%s13292_s0 + $0x688] sm:$0xff]  ;;  %v1636_v47 = vsel %vm1014_vm0, %v971_v22, 0.0 }
 0x199   :  { %v473_v13 = vld [vmem:[%s13293_s1 + $0x688] sm:$0xff]  ;;  %v1633_v60 = vsel %vm1014_vm0, %v970_v20, 0.0 }
 0x19a   :  { %1625 = vadd.xlane.f32.xlu1 %v1624_v32  ;;  %1622 = vadd.xlane.f32.xlu0 %v1621_v49  ;;  %v222_v32 = vld [vmem:[%s13292_s0 + $0x680] sm:$0xff]  ;;  %v973_v49 = vmul.f32 %v473_v13, %v223_v26  ;;  %v474_v26 = vld [vmem:[%s13293_s1 + $0x690] sm:$0xff] }
 0x19b   :  { %v8008_v61 = vpop.xlane.xlu1 %1415  ;;  %v8011_v2 = vpop.xlane.xlu0 %1412  ;;  %v972_v16 = vmul.f32 %v472_v56, %v222_v32 }
 0x19c   :  { %13403 = vst [vmem:[#allocation109_spill] sm:$0xff] %v8008_v61  ;;  %13404 = vst [vmem:[#allocation110_spill] sm:$0xff] %v8011_v2  ;;  %v225_v61 = vld [vmem:[%s13292_s0 + $0x698] sm:$0xff]  ;;  %v1642_v22 = vsel %vm1014_vm0, %v973_v49, 0.0 }
 0x19d   :  { %v475_v2 = vld [vmem:[%s13293_s1 + $0x698] sm:$0xff]  ;;  %v1639_v32 = vsel %vm1014_vm0, %v972_v16, 0.0 }
 0x19e   :  { %1631 = vadd.xlane.f32.xlu1 %v1630_v5  ;;  %1628 = vadd.xlane.f32.xlu0 %v1627_v25  ;;  %v224_v5 = vld [vmem:[%s13292_s0 + $0x690] sm:$0xff]  ;;  %v975_v25 = vmul.f32 %v475_v2, %v225_v61  ;;  %v476_v61 = vld [vmem:[%s13293_s1 + $0x6a0] sm:$0xff] }
 0x19f   :  { %v8026_v37 = vpop.xlane.xlu1 %1421  ;;  %v8029_v46 = vpop.xlane.xlu0 %1418  ;;  %v974_v56 = vmul.f32 %v474_v26, %v224_v5 }
 0x1a0   :  { %13405 = vst [vmem:[#allocation111_spill] sm:$0xff] %v8026_v37  ;;  %13406 = vst [vmem:[#allocation112_spill] sm:$0xff] %v8029_v46  ;;  %v227_v37 = vld [vmem:[%s13292_s0 + $0x6a8] sm:$0xff]  ;;  %v1648_v49 = vsel %vm1014_vm0, %v975_v25, 0.0 }
 0x1a1   :  { %v477_v46 = vld [vmem:[%s13293_s1 + $0x6a8] sm:$0xff]  ;;  %v1645_v5 = vsel %vm1014_vm0, %v974_v56, 0.0 }
 0x1a2   :  { %1637 = vadd.xlane.f32.xlu1 %v1636_v47  ;;  %1634 = vadd.xlane.f32.xlu0 %v1633_v60  ;;  %v226_v47 = vld [vmem:[%s13292_s0 + $0x6a0] sm:$0xff]  ;;  %v977_v60 = vmul.f32 %v477_v46, %v227_v37  ;;  %v478_v37 = vld [vmem:[%s13293_s1 + $0x6b0] sm:$0xff] }
 0x1a3   :  { %v8044_v13 = vpop.xlane.xlu1 %1427  ;;  %v8047_v20 = vpop.xlane.xlu0 %1424  ;;  %v976_v26 = vmul.f32 %v476_v61, %v226_v47 }
 0x1a4   :  { %13407 = vst [vmem:[#allocation113_spill] sm:$0xff] %v8044_v13  ;;  %13408 = vst [vmem:[#allocation114_spill] sm:$0xff] %v8047_v20  ;;  %v229_v13 = vld [vmem:[%s13292_s0 + $0x6b8] sm:$0xff]  ;;  %v1654_v25 = vsel %vm1014_vm0, %v977_v60, 0.0 }
 0x1a5   :  { %v479_v20 = vld [vmem:[%s13293_s1 + $0x6b8] sm:$0xff]  ;;  %v1651_v47 = vsel %vm1014_vm0, %v976_v26, 0.0 }
 0x1a6   :  { %1643 = vadd.xlane.f32.xlu1 %v1642_v22  ;;  %1640 = vadd.xlane.f32.xlu0 %v1639_v32  ;;  %v228_v22 = vld [vmem:[%s13292_s0 + $0x6b0] sm:$0xff]  ;;  %v979_v32 = vmul.f32 %v479_v20, %v229_v13  ;;  %v480_v13 = vld [vmem:[%s13293_s1 + $0x6c0] sm:$0xff] }
 0x1a7   :  { %v8062_v2 = vpop.xlane.xlu1 %1433  ;;  %v8065_v16 = vpop.xlane.xlu0 %1430  ;;  %v978_v61 = vmul.f32 %v478_v37, %v228_v22 }
 0x1a8   :  { %13409 = vst [vmem:[#allocation115_spill] sm:$0xff] %v8062_v2  ;;  %13410 = vst [vmem:[#allocation116_spill] sm:$0xff] %v8065_v16  ;;  %v231_v2 = vld [vmem:[%s13292_s0 + $0x6c8] sm:$0xff]  ;;  %v1660_v60 = vsel %vm1014_vm0, %v979_v32, 0.0 }
 0x1a9   :  { %v481_v16 = vld [vmem:[%s13293_s1 + $0x6c8] sm:$0xff]  ;;  %v1657_v22 = vsel %vm1014_vm0, %v978_v61, 0.0 }
 0x1aa   :  { %1649 = vadd.xlane.f32.xlu1 %v1648_v49  ;;  %1646 = vadd.xlane.f32.xlu0 %v1645_v5  ;;  %v230_v49 = vld [vmem:[%s13292_s0 + $0x6c0] sm:$0xff]  ;;  %v981_v5 = vmul.f32 %v481_v16, %v231_v2  ;;  %v482_v2 = vld [vmem:[%s13293_s1 + $0x6d0] sm:$0xff] }
 0x1ab   :  { %v8080_v46 = vpop.xlane.xlu1 %1439  ;;  %v8083_v56 = vpop.xlane.xlu0 %1436  ;;  %v980_v37 = vmul.f32 %v480_v13, %v230_v49 }
 0x1ac   :  { %13411 = vst [vmem:[#allocation117_spill] sm:$0xff] %v8080_v46  ;;  %13412 = vst [vmem:[#allocation118_spill] sm:$0xff] %v8083_v56  ;;  %v233_v46 = vld [vmem:[%s13292_s0 + $0x6d8] sm:$0xff]  ;;  %v1666_v32 = vsel %vm1014_vm0, %v981_v5, 0.0 }
 0x1ad   :  { %v483_v56 = vld [vmem:[%s13293_s1 + $0x6d8] sm:$0xff]  ;;  %v1663_v49 = vsel %vm1014_vm0, %v980_v37, 0.0 }
 0x1ae   :  { %1655 = vadd.xlane.f32.xlu1 %v1654_v25  ;;  %1652 = vadd.xlane.f32.xlu0 %v1651_v47  ;;  %v232_v25 = vld [vmem:[%s13292_s0 + $0x6d0] sm:$0xff]  ;;  %v983_v47 = vmul.f32 %v483_v56, %v233_v46  ;;  %v484_v46 = vld [vmem:[%s13293_s1 + $0x6e0] sm:$0xff] }
 0x1af   :  { %v8098_v20 = vpop.xlane.xlu1 %1445  ;;  %v8101_v26 = vpop.xlane.xlu0 %1442  ;;  %v982_v13 = vmul.f32 %v482_v2, %v232_v25 }
 0x1b0   :  { %13413 = vst [vmem:[#allocation119_spill] sm:$0xff] %v8098_v20  ;;  %13414 = vst [vmem:[#allocation120_spill] sm:$0xff] %v8101_v26  ;;  %v235_v20 = vld [vmem:[%s13292_s0 + $0x6e8] sm:$0xff]  ;;  %v1672_v5 = vsel %vm1014_vm0, %v983_v47, 0.0 }
 0x1b1   :  { %v485_v26 = vld [vmem:[%s13293_s1 + $0x6e8] sm:$0xff]  ;;  %v1669_v25 = vsel %vm1014_vm0, %v982_v13, 0.0 }
 0x1b2   :  { %1661 = vadd.xlane.f32.xlu1 %v1660_v60  ;;  %1658 = vadd.xlane.f32.xlu0 %v1657_v22  ;;  %v234_v60 = vld [vmem:[%s13292_s0 + $0x6e0] sm:$0xff]  ;;  %v985_v22 = vmul.f32 %v485_v26, %v235_v20  ;;  %v486_v20 = vld [vmem:[%s13293_s1 + $0x6f0] sm:$0xff] }
 0x1b3   :  { %v8116_v16 = vpop.xlane.xlu1 %1451  ;;  %v8119_v61 = vpop.xlane.xlu0 %1448  ;;  %v984_v2 = vmul.f32 %v484_v46, %v234_v60 }
 0x1b4   :  { %13415 = vst [vmem:[#allocation121_spill] sm:$0xff] %v8116_v16  ;;  %13416 = vst [vmem:[#allocation122_spill] sm:$0xff] %v8119_v61  ;;  %v237_v16 = vld [vmem:[%s13292_s0 + $0x6f8] sm:$0xff]  ;;  %v1678_v47 = vsel %vm1014_vm0, %v985_v22, 0.0 }
 0x1b5   :  { %v487_v61 = vld [vmem:[%s13293_s1 + $0x6f8] sm:$0xff]  ;;  %v1675_v60 = vsel %vm1014_vm0, %v984_v2, 0.0 }
 0x1b6   :  { %1667 = vadd.xlane.f32.xlu1 %v1666_v32  ;;  %1664 = vadd.xlane.f32.xlu0 %v1663_v49  ;;  %v236_v32 = vld [vmem:[%s13292_s0 + $0x6f0] sm:$0xff]  ;;  %v987_v49 = vmul.f32 %v487_v61, %v237_v16  ;;  %v488_v16 = vld [vmem:[%s13293_s1 + $0x700] sm:$0xff] }
 0x1b7   :  { %v8134_v56 = vpop.xlane.xlu1 %1457  ;;  %v8137_v37 = vpop.xlane.xlu0 %1454  ;;  %v986_v46 = vmul.f32 %v486_v20, %v236_v32 }
 0x1b8   :  { %13417 = vst [vmem:[#allocation123_spill] sm:$0xff] %v8134_v56  ;;  %13418 = vst [vmem:[#allocation124_spill] sm:$0xff] %v8137_v37  ;;  %v239_v56 = vld [vmem:[%s13292_s0 + $0x708] sm:$0xff]  ;;  %v1684_v22 = vsel %vm1014_vm0, %v987_v49, 0.0 }
 0x1b9   :  { %v489_v37 = vld [vmem:[%s13293_s1 + $0x708] sm:$0xff]  ;;  %v1681_v32 = vsel %vm1014_vm0, %v986_v46, 0.0 }
 0x1ba   :  { %1673 = vadd.xlane.f32.xlu1 %v1672_v5  ;;  %1670 = vadd.xlane.f32.xlu0 %v1669_v25  ;;  %v238_v5 = vld [vmem:[%s13292_s0 + $0x700] sm:$0xff]  ;;  %v989_v25 = vmul.f32 %v489_v37, %v239_v56  ;;  %v490_v56 = vld [vmem:[%s13293_s1 + $0x710] sm:$0xff] }
 0x1bb   :  { %v8152_v26 = vpop.xlane.xlu1 %1463  ;;  %v8155_v13 = vpop.xlane.xlu0 %1460  ;;  %v988_v20 = vmul.f32 %v488_v16, %v238_v5 }
 0x1bc   :  { %13419 = vst [vmem:[#allocation125_spill] sm:$0xff] %v8152_v26  ;;  %13420 = vst [vmem:[#allocation126_spill] sm:$0xff] %v8155_v13  ;;  %v241_v26 = vld [vmem:[%s13292_s0 + $0x718] sm:$0xff]  ;;  %v1690_v49 = vsel %vm1014_vm0, %v989_v25, 0.0 }
 0x1bd   :  { %v491_v13 = vld [vmem:[%s13293_s1 + $0x718] sm:$0xff]  ;;  %v1687_v5 = vsel %vm1014_vm0, %v988_v20, 0.0 }
 0x1be   :  { %1679 = vadd.xlane.f32.xlu1 %v1678_v47  ;;  %1676 = vadd.xlane.f32.xlu0 %v1675_v60  ;;  %v240_v47 = vld [vmem:[%s13292_s0 + $0x710] sm:$0xff]  ;;  %v991_v60 = vmul.f32 %v491_v13, %v241_v26  ;;  %v492_v26 = vld [vmem:[%s13293_s1 + $0x720] sm:$0xff] }
 0x1bf   :  { %v8170_v61 = vpop.xlane.xlu1 %1469  ;;  %v8173_v2 = vpop.xlane.xlu0 %1466  ;;  %v990_v16 = vmul.f32 %v490_v56, %v240_v47 }
 0x1c0   :  { %13421 = vst [vmem:[#allocation127_spill] sm:$0xff] %v8170_v61  ;;  %13422 = vst [vmem:[#allocation128_spill] sm:$0xff] %v8173_v2  ;;  %v243_v61 = vld [vmem:[%s13292_s0 + $0x728] sm:$0xff]  ;;  %v1696_v25 = vsel %vm1014_vm0, %v991_v60, 0.0 }
 0x1c1   :  { %v493_v2 = vld [vmem:[%s13293_s1 + $0x728] sm:$0xff]  ;;  %v1693_v47 = vsel %vm1014_vm0, %v990_v16, 0.0 }
 0x1c2   :  { %1685 = vadd.xlane.f32.xlu1 %v1684_v22  ;;  %1682 = vadd.xlane.f32.xlu0 %v1681_v32  ;;  %v242_v22 = vld [vmem:[%s13292_s0 + $0x720] sm:$0xff]  ;;  %v993_v32 = vmul.f32 %v493_v2, %v243_v61  ;;  %v494_v61 = vld [vmem:[%s13293_s1 + $0x730] sm:$0xff] }
 0x1c3   :  { %v8188_v37 = vpop.xlane.xlu1 %1475  ;;  %v8191_v46 = vpop.xlane.xlu0 %1472  ;;  %v992_v56 = vmul.f32 %v492_v26, %v242_v22 }
 0x1c4   :  { %13423 = vst [vmem:[#allocation129_spill] sm:$0xff] %v8188_v37  ;;  %13424 = vst [vmem:[#allocation130_spill] sm:$0xff] %v8191_v46  ;;  %v245_v37 = vld [vmem:[%s13292_s0 + $0x738] sm:$0xff]  ;;  %v1702_v60 = vsel %vm1014_vm0, %v993_v32, 0.0 }
 0x1c5   :  { %v495_v46 = vld [vmem:[%s13293_s1 + $0x738] sm:$0xff]  ;;  %v1699_v22 = vsel %vm1014_vm0, %v992_v56, 0.0 }
 0x1c6   :  { %1691 = vadd.xlane.f32.xlu1 %v1690_v49  ;;  %1688 = vadd.xlane.f32.xlu0 %v1687_v5  ;;  %v244_v49 = vld [vmem:[%s13292_s0 + $0x730] sm:$0xff]  ;;  %v995_v5 = vmul.f32 %v495_v46, %v245_v37  ;;  %v496_v37 = vld [vmem:[%s13293_s1 + $0x740] sm:$0xff] }
 0x1c7   :  { %v8206_v13 = vpop.xlane.xlu1 %1481  ;;  %v8209_v20 = vpop.xlane.xlu0 %1478  ;;  %v994_v26 = vmul.f32 %v494_v61, %v244_v49 }
 0x1c8   :  { %13425 = vst [vmem:[#allocation131_spill] sm:$0xff] %v8206_v13  ;;  %13426 = vst [vmem:[#allocation132_spill] sm:$0xff] %v8209_v20  ;;  %v247_v13 = vld [vmem:[%s13292_s0 + $0x748] sm:$0xff]  ;;  %v1708_v32 = vsel %vm1014_vm0, %v995_v5, 0.0 }
 0x1c9   :  { %v497_v20 = vld [vmem:[%s13293_s1 + $0x748] sm:$0xff]  ;;  %v1705_v49 = vsel %vm1014_vm0, %v994_v26, 0.0 }
 0x1ca   :  { %1697 = vadd.xlane.f32.xlu1 %v1696_v25  ;;  %1694 = vadd.xlane.f32.xlu0 %v1693_v47  ;;  %v246_v25 = vld [vmem:[%s13292_s0 + $0x740] sm:$0xff]  ;;  %v997_v47 = vmul.f32 %v497_v20, %v247_v13  ;;  %v498_v13 = vld [vmem:[%s13293_s1 + $0x750] sm:$0xff] }
 0x1cb   :  { %v8224_v2 = vpop.xlane.xlu1 %1487  ;;  %v8227_v16 = vpop.xlane.xlu0 %1484  ;;  %v996_v61 = vmul.f32 %v496_v37, %v246_v25 }
 0x1cc   :  { %13427 = vst [vmem:[#allocation133_spill] sm:$0xff] %v8224_v2  ;;  %13428 = vst [vmem:[#allocation134_spill] sm:$0xff] %v8227_v16  ;;  %v249_v2 = vld [vmem:[%s13292_s0 + $0x758] sm:$0xff]  ;;  %v1714_v5 = vsel %vm1014_vm0, %v997_v47, 0.0 }
 0x1cd   :  { %v499_v16 = vld [vmem:[%s13293_s1 + $0x758] sm:$0xff]  ;;  %v1711_v25 = vsel %vm1014_vm0, %v996_v61, 0.0 }
 0x1ce   :  { %1703 = vadd.xlane.f32.xlu1 %v1702_v60  ;;  %1700 = vadd.xlane.f32.xlu0 %v1699_v22  ;;  %v248_v60 = vld [vmem:[%s13292_s0 + $0x750] sm:$0xff]  ;;  %v999_v22 = vmul.f32 %v499_v16, %v249_v2  ;;  %v500_v2 = vld [vmem:[%s13293_s1 + $0x760] sm:$0xff] }
 0x1cf   :  { %v8242_v46 = vpop.xlane.xlu1 %1493  ;;  %v8245_v56 = vpop.xlane.xlu0 %1490  ;;  %v998_v37 = vmul.f32 %v498_v13, %v248_v60 }
 0x1d0   :  { %13429 = vst [vmem:[#allocation135_spill] sm:$0xff] %v8242_v46  ;;  %13430 = vst [vmem:[#allocation136_spill] sm:$0xff] %v8245_v56  ;;  %v251_v46 = vld [vmem:[%s13292_s0 + $0x768] sm:$0xff]  ;;  %v1720_v47 = vsel %vm1014_vm0, %v999_v22, 0.0 }
 0x1d1   :  { %v501_v56 = vld [vmem:[%s13293_s1 + $0x768] sm:$0xff]  ;;  %v1717_v60 = vsel %vm1014_vm0, %v998_v37, 0.0 }
 0x1d2   :  { %1709 = vadd.xlane.f32.xlu1 %v1708_v32  ;;  %1706 = vadd.xlane.f32.xlu0 %v1705_v49  ;;  %v250_v32 = vld [vmem:[%s13292_s0 + $0x760] sm:$0xff]  ;;  %v1001_v49 = vmul.f32 %v501_v56, %v251_v46  ;;  %v502_v46 = vld [vmem:[%s13293_s1 + $0x770] sm:$0xff] }
 0x1d3   :  { %v8260_v20 = vpop.xlane.xlu1 %1499  ;;  %v8263_v26 = vpop.xlane.xlu0 %1496  ;;  %v1000_v13 = vmul.f32 %v500_v2, %v250_v32 }
 0x1d4   :  { %13431 = vst [vmem:[#allocation137_spill] sm:$0xff] %v8260_v20  ;;  %13432 = vst [vmem:[#allocation138_spill] sm:$0xff] %v8263_v26  ;;  %v253_v20 = vld [vmem:[%s13292_s0 + $0x778] sm:$0xff]  ;;  %v1726_v22 = vsel %vm1014_vm0, %v1001_v49, 0.0 }
 0x1d5   :  { %v503_v26 = vld [vmem:[%s13293_s1 + $0x778] sm:$0xff]  ;;  %v1723_v32 = vsel %vm1014_vm0, %v1000_v13, 0.0 }
 0x1d6   :  { %1715 = vadd.xlane.f32.xlu1 %v1714_v5  ;;  %1712 = vadd.xlane.f32.xlu0 %v1711_v25  ;;  %v252_v5 = vld [vmem:[%s13292_s0 + $0x770] sm:$0xff]  ;;  %v1003_v25 = vmul.f32 %v503_v26, %v253_v20  ;;  %v504_v20 = vld [vmem:[%s13293_s1 + $0x780] sm:$0xff] }
 0x1d7   :  { %v8278_v16 = vpop.xlane.xlu1 %1505  ;;  %v8281_v61 = vpop.xlane.xlu0 %1502  ;;  %v1002_v2 = vmul.f32 %v502_v46, %v252_v5 }
 0x1d8   :  { %13433 = vst [vmem:[#allocation139_spill] sm:$0xff] %v8278_v16  ;;  %13434 = vst [vmem:[#allocation140_spill] sm:$0xff] %v8281_v61  ;;  %v255_v16 = vld [vmem:[%s13292_s0 + $0x788] sm:$0xff]  ;;  %v1732_v49 = vsel %vm1014_vm0, %v1003_v25, 0.0 }
 0x1d9   :  { %v505_v61 = vld [vmem:[%s13293_s1 + $0x788] sm:$0xff]  ;;  %v1729_v5 = vsel %vm1014_vm0, %v1002_v2, 0.0 }
 0x1da   :  { %1721 = vadd.xlane.f32.xlu1 %v1720_v47  ;;  %1718 = vadd.xlane.f32.xlu0 %v1717_v60  ;;  %v254_v47 = vld [vmem:[%s13292_s0 + $0x780] sm:$0xff]  ;;  %v1005_v60 = vmul.f32 %v505_v61, %v255_v16  ;;  %v506_v16 = vld [vmem:[%s13293_s1 + $0x790] sm:$0xff] }
 0x1db   :  { %v8296_v56 = vpop.xlane.xlu1 %1511  ;;  %v8299_v37 = vpop.xlane.xlu0 %1508  ;;  %v1004_v46 = vmul.f32 %v504_v20, %v254_v47 }
 0x1dc   :  { %13435 = vst [vmem:[#allocation141_spill] sm:$0xff] %v8296_v56  ;;  %13436 = vst [vmem:[#allocation142_spill] sm:$0xff] %v8299_v37  ;;  %v257_v56 = vld [vmem:[%s13292_s0 + $0x798] sm:$0xff]  ;;  %v1738_v25 = vsel %vm1014_vm0, %v1005_v60, 0.0 }
 0x1dd   :  { %v507_v37 = vld [vmem:[%s13293_s1 + $0x798] sm:$0xff]  ;;  %v1735_v47 = vsel %vm1014_vm0, %v1004_v46, 0.0 }
 0x1de   :  { %1727 = vadd.xlane.f32.xlu1 %v1726_v22  ;;  %1724 = vadd.xlane.f32.xlu0 %v1723_v32  ;;  %v256_v22 = vld [vmem:[%s13292_s0 + $0x790] sm:$0xff]  ;;  %v1007_v32 = vmul.f32 %v507_v37, %v257_v56  ;;  %v508_v56 = vld [vmem:[%s13293_s1 + $0x7a0] sm:$0xff] }
 0x1df   :  { %v8314_v26 = vpop.xlane.xlu1 %1517  ;;  %v8317_v13 = vpop.xlane.xlu0 %1514  ;;  %v1006_v20 = vmul.f32 %v506_v16, %v256_v22 }
 0x1e0   :  { %13437 = vst [vmem:[#allocation143_spill] sm:$0xff] %v8314_v26  ;;  %13438 = vst [vmem:[#allocation144_spill] sm:$0xff] %v8317_v13  ;;  %v259_v26 = vld [vmem:[%s13292_s0 + $0x7a8] sm:$0xff]  ;;  %v1744_v60 = vsel %vm1014_vm0, %v1007_v32, 0.0 }
 0x1e1   :  { %v509_v13 = vld [vmem:[%s13293_s1 + $0x7a8] sm:$0xff]  ;;  %v1741_v22 = vsel %vm1014_vm0, %v1006_v20, 0.0 }
 0x1e2   :  { %1733 = vadd.xlane.f32.xlu1 %v1732_v49  ;;  %1730 = vadd.xlane.f32.xlu0 %v1729_v5  ;;  %v258_v49 = vld [vmem:[%s13292_s0 + $0x7a0] sm:$0xff]  ;;  %v1009_v5 = vmul.f32 %v509_v13, %v259_v26  ;;  %v510_v26 = vld [vmem:[%s13293_s1 + $0x7b0] sm:$0xff] }
 0x1e3   :  { %v8332_v61 = vpop.xlane.xlu1 %1523  ;;  %v8335_v2 = vpop.xlane.xlu0 %1520  ;;  %v1008_v16 = vmul.f32 %v508_v56, %v258_v49 }
 0x1e4   :  { %13439 = vst [vmem:[#allocation145_spill] sm:$0xff] %v8332_v61  ;;  %13440 = vst [vmem:[#allocation146_spill] sm:$0xff] %v8335_v2  ;;  %v261_v61 = vld [vmem:[%s13292_s0 + $0x7b8] sm:$0xff]  ;;  %v1750_v32 = vsel %vm1014_vm0, %v1009_v5, 0.0 }
 0x1e5   :  { %v511_v2 = vld [vmem:[%s13293_s1 + $0x7b8] sm:$0xff]  ;;  %v1747_v49 = vsel %vm1014_vm0, %v1008_v16, 0.0 }
 0x1e6   :  { %1739 = vadd.xlane.f32.xlu1 %v1738_v25  ;;  %1736 = vadd.xlane.f32.xlu0 %v1735_v47  ;;  %v260_v25 = vld [vmem:[%s13292_s0 + $0x7b0] sm:$0xff]  ;;  %v1011_v47 = vmul.f32 %v511_v2, %v261_v61  ;;  %v512_v61 = vld [vmem:[%s13293_s1 + $0x7c0] sm:$0xff] }
 0x1e7   :  { %v8350_v37 = vpop.xlane.xlu1 %1529  ;;  %v8353_v46 = vpop.xlane.xlu0 %1526  ;;  %v1010_v56 = vmul.f32 %v510_v26, %v260_v25 }
 0x1e8   :  { %13441 = vst [vmem:[#allocation147_spill] sm:$0xff] %v8350_v37  ;;  %13442 = vst [vmem:[#allocation148_spill] sm:$0xff] %v8353_v46  ;;  %v263_v37 = vld [vmem:[%s13292_s0 + $0x7c8] sm:$0xff]  ;;  %v1756_v5 = vsel %vm1014_vm0, %v1011_v47, 0.0 }
 0x1e9   :  { %v513_v46 = vld [vmem:[%s13293_s1 + $0x7c8] sm:$0xff]  ;;  %v1753_v25 = vsel %vm1014_vm0, %v1010_v56, 0.0 }
 0x1ea   :  { %1745 = vadd.xlane.f32.xlu1 %v1744_v60  ;;  %1742 = vadd.xlane.f32.xlu0 %v1741_v22  ;;  %v262_v60 = vld [vmem:[%s13292_s0 + $0x7c0] sm:$0xff]  ;;  %v1013_v22 = vmul.f32 %v513_v46, %v263_v37  ;;  %v5771_v37 = vld [vmem:[%s13292_s0 + $0x8] sm:$0xff] }
 0x1eb   :  { %v8368_v13 = vpop.xlane.xlu1 %1535  ;;  %v8371_v20 = vpop.xlane.xlu0 %1532  ;;  %v1012_v26 = vmul.f32 %v512_v61, %v262_v60  ;;  %v5772_v60 = vld [vmem:[%s13292_s0] sm:$0xff] }
 0x1ec   :  { %13443 = vst [vmem:[#allocation149_spill] sm:$0xff] %v8368_v13  ;;  %13444 = vst [vmem:[#allocation150_spill] sm:$0xff] %v8371_v20  ;;  %v515_v13 = vld [vmem:[%s13294_s2 + $0x8] sm:$0xff]  ;;  %v514_v20 = vld [vmem:[%s13294_s2] sm:$0xff]  ;;  %v1762_v47 = vsel %vm1014_vm0, %v1013_v22, 0.0 }
 0x1ed   :  { %v1766_v46 = vmul.f32 %v5771_v37, %v515_v13  ;;  %v1759_v56 = vsel %vm1014_vm0, %v1012_v26, 0.0  ;;  %v1765_v61 = vmul.f32 %v5772_v60, %v514_v20  ;;  %v516_v22 = vld [vmem:[%s13294_s2 + $0x10] sm:$0xff]  ;;  %v5773_v26 = vld [vmem:[%s13292_s0 + $0x18] sm:$0xff] }
 0x1ee   :  { %1751 = vadd.xlane.f32.xlu1 %v1750_v32  ;;  %1748 = vadd.xlane.f32.xlu0 %v1747_v49 }
 0x1ef   :  { %v8386_v2 = vpop.xlane.xlu1 %1541  ;;  %v8389_v16 = vpop.xlane.xlu0 %1538  ;;  %v2015_v60 = vsel %vm1014_vm0, %v1765_v61, 0.0  ;;  %v5775_v61 = vld [vmem:[%s13292_s0 + $0x28] sm:$0xff] }
 0x1f0   :  { %13445 = vst [vmem:[#allocation151_spill] sm:$0xff] %v8386_v2  ;;  %13446 = vst [vmem:[#allocation152_spill] sm:$0xff] %v8389_v16  ;;  %v5848_v2 = vld [vmem:[%s13292_s0 + $0x260] sm:$0xff] }
 0x1f2   :  { %1757 = vadd.xlane.f32.xlu1 %v1756_v5  ;;  %1754 = vadd.xlane.f32.xlu0 %v1753_v25  ;;  %v517_v5 = vld [vmem:[%s13294_s2 + $0x18] sm:$0xff]  ;;  %v2018_v25 = vsel %vm1014_vm0, %v1766_v46, 0.0  ;;  %v518_v46 = vld [vmem:[%s13294_s2 + $0x20] sm:$0xff] }
 0x1f3   :  { %v8398_v32 = vpop.xlane.xlu1 %1547  ;;  %v8404_v49 = vpop.xlane.xlu0 %1544  ;;  %v1768_v37 = vmul.f32 %v5773_v26, %v517_v5 }
 0x1f4   :  { %13447 = vst [vmem:[#allocation153_spill] sm:$0xff] %v8398_v32  ;;  %13448 = vst [vmem:[#allocation154_spill] sm:$0xff] %v8404_v49  ;;  %v5774_v32 = vld [vmem:[%s13292_s0 + $0x10] sm:$0xff] }
 0x1f5   :  { %v1767_v49 = vmul.f32 %v5774_v32, %v516_v22  ;;  %v2024_v5 = vsel %vm1014_vm0, %v1768_v37, 0.0  ;;  %v520_v37 = vld [vmem:[%s13294_s2 + $0x30] sm:$0xff] }
 0x1f6   :  { %1763 = vadd.xlane.f32.xlu1 %v1762_v47  ;;  %1760 = vadd.xlane.f32.xlu0 %v1759_v56  ;;  %v519_v47 = vld [vmem:[%s13294_s2 + $0x28] sm:$0xff] }
 0x1f7   :  { %v8416_v13 = vpop.xlane.xlu1 %1553  ;;  %v8422_v20 = vpop.xlane.xlu0 %1550  ;;  %v1770_v26 = vmul.f32 %v5775_v61, %v519_v47  ;;  %v2021_v22 = vsel %vm1014_vm0, %v1767_v49, 0.0  ;;  %v5777_v49 = vld [vmem:[%s13292_s0 + $0x38] sm:$0xff] }
 0x1f8   :  { %13449 = vst [vmem:[#allocation155_spill] sm:$0xff] %v8416_v13  ;;  %13450 = vst [vmem:[#allocation156_spill] sm:$0xff] %v8422_v20  ;;  %v5776_v13 = vld [vmem:[%s13292_s0 + $0x20] sm:$0xff] }
 0x1f9   :  { %v1769_v20 = vmul.f32 %v5776_v13, %v518_v46  ;;  %v2030_v47 = vsel %vm1014_vm0, %v1770_v26, 0.0  ;;  %v522_v26 = vld [vmem:[%s13294_s2 + $0x40] sm:$0xff] }
 0x1fa   :  { %2019 = vadd.xlane.f32.xlu1 %v2018_v25  ;;  %2016 = vadd.xlane.f32.xlu0 %v2015_v60  ;;  %v521_v25 = vld [vmem:[%s13294_s2 + $0x38] sm:$0xff] }
 0x1fb   :  { %v8434_v56 = vpop.xlane.xlu1 %1559  ;;  %v8440_v32 = vpop.xlane.xlu0 %1556  ;;  %v1772_v61 = vmul.f32 %v5777_v49, %v521_v25  ;;  %v2027_v46 = vsel %vm1014_vm0, %v1769_v20, 0.0  ;;  %v5779_v20 = vld [vmem:[%s13292_s0 + $0x48] sm:$0xff] }
 0x1fc   :  { %13451 = vst [vmem:[#allocation157_spill] sm:$0xff] %v8434_v56  ;;  %13452 = vst [vmem:[#allocation158_spill] sm:$0xff] %v8440_v32  ;;  %v5778_v56 = vld [vmem:[%s13292_s0 + $0x30] sm:$0xff] }
 0x1fd   :  { %v1771_v32 = vmul.f32 %v5778_v56, %v520_v37  ;;  %v2036_v25 = vsel %vm1014_vm0, %v1772_v61, 0.0  ;;  %v524_v61 = vld [vmem:[%s13294_s2 + $0x50] sm:$0xff] }
 0x1fe   :  { %2025 = vadd.xlane.f32.xlu1 %v2024_v5  ;;  %2022 = vadd.xlane.f32.xlu0 %v2021_v22  ;;  %v523_v5 = vld [vmem:[%s13294_s2 + $0x48] sm:$0xff] }
 0x1ff   :  { %v8452_v60 = vpop.xlane.xlu1 %1565  ;;  %v8458_v13 = vpop.xlane.xlu0 %1562  ;;  %v1774_v49 = vmul.f32 %v5779_v20, %v523_v5  ;;  %v2033_v37 = vsel %vm1014_vm0, %v1771_v32, 0.0  ;;  %v5781_v32 = vld [vmem:[%s13292_s0 + $0x58] sm:$0xff] }
 0x200   :  { %13453 = vst [vmem:[#allocation159_spill] sm:$0xff] %v8452_v60  ;;  %13454 = vst [vmem:[#allocation160_spill] sm:$0xff] %v8458_v13  ;;  %v5780_v60 = vld [vmem:[%s13292_s0 + $0x40] sm:$0xff] }
 0x201   :  { %v1773_v13 = vmul.f32 %v5780_v60, %v522_v26  ;;  %v2042_v5 = vsel %vm1014_vm0, %v1774_v49, 0.0  ;;  %v526_v49 = vld [vmem:[%s13294_s2 + $0x60] sm:$0xff] }
 0x202   :  { %2031 = vadd.xlane.f32.xlu1 %v2030_v47  ;;  %2028 = vadd.xlane.f32.xlu0 %v2027_v46  ;;  %v525_v47 = vld [vmem:[%s13294_s2 + $0x58] sm:$0xff] }
 0x203   :  { %v8470_v22 = vpop.xlane.xlu1 %1571  ;;  %v8476_v56 = vpop.xlane.xlu0 %1568  ;;  %v1776_v20 = vmul.f32 %v5781_v32, %v525_v47  ;;  %v2039_v26 = vsel %vm1014_vm0, %v1773_v13, 0.0  ;;  %v5783_v13 = vld [vmem:[%s13292_s0 + $0x68] sm:$0xff] }
 0x204   :  { %13455 = vst [vmem:[#allocation161_spill] sm:$0xff] %v8470_v22  ;;  %13456 = vst [vmem:[#allocation162_spill] sm:$0xff] %v8476_v56  ;;  %v5782_v22 = vld [vmem:[%s13292_s0 + $0x50] sm:$0xff] }
 0x205   :  { %v1775_v56 = vmul.f32 %v5782_v22, %v524_v61  ;;  %v2048_v47 = vsel %vm1014_vm0, %v1776_v20, 0.0  ;;  %v528_v20 = vld [vmem:[%s13294_s2 + $0x70] sm:$0xff] }
 0x206   :  { %2037 = vadd.xlane.f32.xlu1 %v2036_v25  ;;  %2034 = vadd.xlane.f32.xlu0 %v2033_v37  ;;  %v527_v25 = vld [vmem:[%s13294_s2 + $0x68] sm:$0xff] }
 0x207   :  { %v8488_v46 = vpop.xlane.xlu1 %1577  ;;  %v8494_v60 = vpop.xlane.xlu0 %1574  ;;  %v1778_v32 = vmul.f32 %v5783_v13, %v527_v25  ;;  %v2045_v61 = vsel %vm1014_vm0, %v1775_v56, 0.0  ;;  %v5785_v56 = vld [vmem:[%s13292_s0 + $0x78] sm:$0xff] }
 0x208   :  { %13457 = vst [vmem:[#allocation163_spill] sm:$0xff] %v8488_v46  ;;  %13458 = vst [vmem:[#allocation164_spill] sm:$0xff] %v8494_v60  ;;  %v5784_v46 = vld [vmem:[%s13292_s0 + $0x60] sm:$0xff] }
 0x209   :  { %v1777_v60 = vmul.f32 %v5784_v46, %v526_v49  ;;  %v2054_v25 = vsel %vm1014_vm0, %v1778_v32, 0.0  ;;  %v530_v32 = vld [vmem:[%s13294_s2 + $0x80] sm:$0xff] }
 0x20a   :  { %2043 = vadd.xlane.f32.xlu1 %v2042_v5  ;;  %2040 = vadd.xlane.f32.xlu0 %v2039_v26  ;;  %v529_v5 = vld [vmem:[%s13294_s2 + $0x78] sm:$0xff] }
 0x20b   :  { %v8506_v37 = vpop.xlane.xlu1 %1583  ;;  %v8512_v22 = vpop.xlane.xlu0 %1580  ;;  %v1780_v13 = vmul.f32 %v5785_v56, %v529_v5  ;;  %v2051_v49 = vsel %vm1014_vm0, %v1777_v60, 0.0  ;;  %v5787_v60 = vld [vmem:[%s13292_s0 + $0x88] sm:$0xff] }
 0x20c   :  { %13459 = vst [vmem:[#allocation165_spill] sm:$0xff] %v8506_v37  ;;  %13460 = vst [vmem:[#allocation166_spill] sm:$0xff] %v8512_v22  ;;  %v5786_v37 = vld [vmem:[%s13292_s0 + $0x70] sm:$0xff] }
 0x20d   :  { %v1779_v22 = vmul.f32 %v5786_v37, %v528_v20  ;;  %v2060_v5 = vsel %vm1014_vm0, %v1780_v13, 0.0  ;;  %v532_v13 = vld [vmem:[%s13294_s2 + $0x90] sm:$0xff] }
 0x20e   :  { %2049 = vadd.xlane.f32.xlu1 %v2048_v47  ;;  %2046 = vadd.xlane.f32.xlu0 %v2045_v61  ;;  %v531_v47 = vld [vmem:[%s13294_s2 + $0x88] sm:$0xff] }
 0x20f   :  { %v8524_v26 = vpop.xlane.xlu1 %1589  ;;  %v8530_v46 = vpop.xlane.xlu0 %1586  ;;  %v1782_v56 = vmul.f32 %v5787_v60, %v531_v47  ;;  %v2057_v20 = vsel %vm1014_vm0, %v1779_v22, 0.0  ;;  %v5789_v22 = vld [vmem:[%s13292_s0 + $0x98] sm:$0xff] }
 0x210   :  { %13461 = vst [vmem:[#allocation167_spill] sm:$0xff] %v8524_v26  ;;  %13462 = vst [vmem:[#allocation168_spill] sm:$0xff] %v8530_v46  ;;  %v5788_v26 = vld [vmem:[%s13292_s0 + $0x80] sm:$0xff] }
 0x211   :  { %v1781_v46 = vmul.f32 %v5788_v26, %v530_v32  ;;  %v2066_v47 = vsel %vm1014_vm0, %v1782_v56, 0.0  ;;  %v534_v56 = vld [vmem:[%s13294_s2 + $0xa0] sm:$0xff] }
 0x212   :  { %2055 = vadd.xlane.f32.xlu1 %v2054_v25  ;;  %2052 = vadd.xlane.f32.xlu0 %v2051_v49  ;;  %v533_v25 = vld [vmem:[%s13294_s2 + $0x98] sm:$0xff] }
 0x213   :  { %v8542_v61 = vpop.xlane.xlu1 %1595  ;;  %v8548_v37 = vpop.xlane.xlu0 %1592  ;;  %v1784_v60 = vmul.f32 %v5789_v22, %v533_v25  ;;  %v2063_v32 = vsel %vm1014_vm0, %v1781_v46, 0.0  ;;  %v5791_v46 = vld [vmem:[%s13292_s0 + $0xa8] sm:$0xff] }
 0x214   :  { %13463 = vst [vmem:[#allocation169_spill] sm:$0xff] %v8542_v61  ;;  %13464 = vst [vmem:[#allocation170_spill] sm:$0xff] %v8548_v37  ;;  %v5790_v61 = vld [vmem:[%s13292_s0 + $0x90] sm:$0xff] }
 0x215   :  { %v1783_v37 = vmul.f32 %v5790_v61, %v532_v13  ;;  %v2072_v25 = vsel %vm1014_vm0, %v1784_v60, 0.0  ;;  %v536_v60 = vld [vmem:[%s13294_s2 + $0xb0] sm:$0xff] }
 0x216   :  { %2061 = vadd.xlane.f32.xlu1 %v2060_v5  ;;  %2058 = vadd.xlane.f32.xlu0 %v2057_v20  ;;  %v535_v5 = vld [vmem:[%s13294_s2 + $0xa8] sm:$0xff] }
 0x217   :  { %v8560_v49 = vpop.xlane.xlu1 %1601  ;;  %v8566_v26 = vpop.xlane.xlu0 %1598  ;;  %v1786_v22 = vmul.f32 %v5791_v46, %v535_v5  ;;  %v2069_v13 = vsel %vm1014_vm0, %v1783_v37, 0.0  ;;  %v5793_v37 = vld [vmem:[%s13292_s0 + $0xb8] sm:$0xff] }
 0x218   :  { %13465 = vst [vmem:[#allocation171_spill] sm:$0xff] %v8560_v49  ;;  %13466 = vst [vmem:[#allocation172_spill] sm:$0xff] %v8566_v26  ;;  %v5792_v49 = vld [vmem:[%s13292_s0 + $0xa0] sm:$0xff] }
 0x219   :  { %v1785_v26 = vmul.f32 %v5792_v49, %v534_v56  ;;  %v2078_v5 = vsel %vm1014_vm0, %v1786_v22, 0.0  ;;  %v538_v22 = vld [vmem:[%s13294_s2 + $0xc0] sm:$0xff] }
 0x21a   :  { %2067 = vadd.xlane.f32.xlu1 %v2066_v47  ;;  %2064 = vadd.xlane.f32.xlu0 %v2063_v32  ;;  %v537_v47 = vld [vmem:[%s13294_s2 + $0xb8] sm:$0xff] }
 0x21b   :  { %v8578_v20 = vpop.xlane.xlu1 %1607  ;;  %v8584_v61 = vpop.xlane.xlu0 %1604  ;;  %v1788_v46 = vmul.f32 %v5793_v37, %v537_v47  ;;  %v2075_v56 = vsel %vm1014_vm0, %v1785_v26, 0.0  ;;  %v5795_v26 = vld [vmem:[%s13292_s0 + $0xc8] sm:$0xff] }
 0x21c   :  { %13467 = vst [vmem:[#allocation173_spill] sm:$0xff] %v8578_v20  ;;  %13468 = vst [vmem:[#allocation174_spill] sm:$0xff] %v8584_v61  ;;  %v5794_v20 = vld [vmem:[%s13292_s0 + $0xb0] sm:$0xff] }
 0x21d   :  { %v1787_v61 = vmul.f32 %v5794_v20, %v536_v60  ;;  %v2084_v47 = vsel %vm1014_vm0, %v1788_v46, 0.0  ;;  %v540_v46 = vld [vmem:[%s13294_s2 + $0xd0] sm:$0xff] }
 0x21e   :  { %2073 = vadd.xlane.f32.xlu1 %v2072_v25  ;;  %2070 = vadd.xlane.f32.xlu0 %v2069_v13  ;;  %v539_v25 = vld [vmem:[%s13294_s2 + $0xc8] sm:$0xff] }
 0x21f   :  { %v8596_v32 = vpop.xlane.xlu1 %1613  ;;  %v8602_v49 = vpop.xlane.xlu0 %1610  ;;  %v1790_v37 = vmul.f32 %v5795_v26, %v539_v25  ;;  %v2081_v60 = vsel %vm1014_vm0, %v1787_v61, 0.0  ;;  %v5797_v61 = vld [vmem:[%s13292_s0 + $0xd8] sm:$0xff] }
 0x220   :  { %13469 = vst [vmem:[#allocation175_spill] sm:$0xff] %v8596_v32  ;;  %13470 = vst [vmem:[#allocation176_spill] sm:$0xff] %v8602_v49  ;;  %v5796_v32 = vld [vmem:[%s13292_s0 + $0xc0] sm:$0xff] }
 0x221   :  { %v1789_v49 = vmul.f32 %v5796_v32, %v538_v22  ;;  %v2090_v25 = vsel %vm1014_vm0, %v1790_v37, 0.0  ;;  %v542_v37 = vld [vmem:[%s13294_s2 + $0xe0] sm:$0xff] }
 0x222   :  { %2079 = vadd.xlane.f32.xlu1 %v2078_v5  ;;  %2076 = vadd.xlane.f32.xlu0 %v2075_v56  ;;  %v541_v5 = vld [vmem:[%s13294_s2 + $0xd8] sm:$0xff] }
 0x223   :  { %v8614_v13 = vpop.xlane.xlu1 %1619  ;;  %v8620_v20 = vpop.xlane.xlu0 %1616  ;;  %v1792_v26 = vmul.f32 %v5797_v61, %v541_v5  ;;  %v2087_v22 = vsel %vm1014_vm0, %v1789_v49, 0.0  ;;  %v5799_v49 = vld [vmem:[%s13292_s0 + $0xe8] sm:$0xff] }
 0x224   :  { %13471 = vst [vmem:[#allocation177_spill] sm:$0xff] %v8614_v13  ;;  %13472 = vst [vmem:[#allocation178_spill] sm:$0xff] %v8620_v20  ;;  %v5798_v13 = vld [vmem:[%s13292_s0 + $0xd0] sm:$0xff] }
 0x225   :  { %v1791_v20 = vmul.f32 %v5798_v13, %v540_v46  ;;  %v2096_v5 = vsel %vm1014_vm0, %v1792_v26, 0.0  ;;  %v544_v26 = vld [vmem:[%s13294_s2 + $0xf0] sm:$0xff] }
 0x226   :  { %2085 = vadd.xlane.f32.xlu1 %v2084_v47  ;;  %2082 = vadd.xlane.f32.xlu0 %v2081_v60  ;;  %v543_v47 = vld [vmem:[%s13294_s2 + $0xe8] sm:$0xff] }
 0x227   :  { %v8632_v56 = vpop.xlane.xlu1 %1625  ;;  %v8638_v32 = vpop.xlane.xlu0 %1622  ;;  %v1794_v61 = vmul.f32 %v5799_v49, %v543_v47  ;;  %v2093_v46 = vsel %vm1014_vm0, %v1791_v20, 0.0  ;;  %v5801_v20 = vld [vmem:[%s13292_s0 + $0xf8] sm:$0xff] }
 0x228   :  { %13473 = vst [vmem:[#allocation179_spill] sm:$0xff] %v8632_v56  ;;  %13474 = vst [vmem:[#allocation180_spill] sm:$0xff] %v8638_v32  ;;  %v5800_v56 = vld [vmem:[%s13292_s0 + $0xe0] sm:$0xff] }
 0x229   :  { %v1793_v32 = vmul.f32 %v5800_v56, %v542_v37  ;;  %v2102_v47 = vsel %vm1014_vm0, %v1794_v61, 0.0  ;;  %v546_v61 = vld [vmem:[%s13294_s2 + $0x100] sm:$0xff] }
 0x22a   :  { %2091 = vadd.xlane.f32.xlu1 %v2090_v25  ;;  %2088 = vadd.xlane.f32.xlu0 %v2087_v22  ;;  %v545_v25 = vld [vmem:[%s13294_s2 + $0xf8] sm:$0xff] }
 0x22b   :  { %v8650_v60 = vpop.xlane.xlu1 %1631  ;;  %v8656_v13 = vpop.xlane.xlu0 %1628  ;;  %v1796_v49 = vmul.f32 %v5801_v20, %v545_v25  ;;  %v2099_v37 = vsel %vm1014_vm0, %v1793_v32, 0.0  ;;  %v5803_v32 = vld [vmem:[%s13292_s0 + $0x108] sm:$0xff] }
 0x22c   :  { %13475 = vst [vmem:[#allocation181_spill] sm:$0xff] %v8650_v60  ;;  %13476 = vst [vmem:[#allocation182_spill] sm:$0xff] %v8656_v13  ;;  %v5802_v60 = vld [vmem:[%s13292_s0 + $0xf0] sm:$0xff] }
 0x22d   :  { %v1795_v13 = vmul.f32 %v5802_v60, %v544_v26  ;;  %v2108_v25 = vsel %vm1014_vm0, %v1796_v49, 0.0  ;;  %v548_v49 = vld [vmem:[%s13294_s2 + $0x110] sm:$0xff] }
 0x22e   :  { %2097 = vadd.xlane.f32.xlu1 %v2096_v5  ;;  %2094 = vadd.xlane.f32.xlu0 %v2093_v46  ;;  %v547_v5 = vld [vmem:[%s13294_s2 + $0x108] sm:$0xff] }
 0x22f   :  { %v8668_v22 = vpop.xlane.xlu1 %1637  ;;  %v8674_v56 = vpop.xlane.xlu0 %1634  ;;  %v1798_v20 = vmul.f32 %v5803_v32, %v547_v5  ;;  %v2105_v26 = vsel %vm1014_vm0, %v1795_v13, 0.0  ;;  %v5805_v13 = vld [vmem:[%s13292_s0 + $0x118] sm:$0xff] }
 0x230   :  { %13477 = vst [vmem:[#allocation183_spill] sm:$0xff] %v8668_v22  ;;  %13478 = vst [vmem:[#allocation184_spill] sm:$0xff] %v8674_v56  ;;  %v5804_v22 = vld [vmem:[%s13292_s0 + $0x100] sm:$0xff] }
 0x231   :  { %v1797_v56 = vmul.f32 %v5804_v22, %v546_v61  ;;  %v2114_v5 = vsel %vm1014_vm0, %v1798_v20, 0.0  ;;  %v550_v20 = vld [vmem:[%s13294_s2 + $0x120] sm:$0xff] }
 0x232   :  { %2103 = vadd.xlane.f32.xlu1 %v2102_v47  ;;  %2100 = vadd.xlane.f32.xlu0 %v2099_v37  ;;  %v549_v47 = vld [vmem:[%s13294_s2 + $0x118] sm:$0xff] }
 0x233   :  { %v8686_v46 = vpop.xlane.xlu1 %1643  ;;  %v8692_v60 = vpop.xlane.xlu0 %1640  ;;  %v1800_v32 = vmul.f32 %v5805_v13, %v549_v47  ;;  %v2111_v61 = vsel %vm1014_vm0, %v1797_v56, 0.0  ;;  %v5807_v56 = vld [vmem:[%s13292_s0 + $0x128] sm:$0xff] }
 0x234   :  { %13479 = vst [vmem:[#allocation185_spill] sm:$0xff] %v8686_v46  ;;  %13480 = vst [vmem:[#allocation186_spill] sm:$0xff] %v8692_v60  ;;  %v5806_v46 = vld [vmem:[%s13292_s0 + $0x110] sm:$0xff] }
 0x235   :  { %v1799_v60 = vmul.f32 %v5806_v46, %v548_v49  ;;  %v2120_v47 = vsel %vm1014_vm0, %v1800_v32, 0.0  ;;  %v552_v32 = vld [vmem:[%s13294_s2 + $0x130] sm:$0xff] }
 0x236   :  { %2109 = vadd.xlane.f32.xlu1 %v2108_v25  ;;  %2106 = vadd.xlane.f32.xlu0 %v2105_v26  ;;  %v551_v25 = vld [vmem:[%s13294_s2 + $0x128] sm:$0xff] }
 0x237   :  { %v8704_v37 = vpop.xlane.xlu1 %1649  ;;  %v8710_v22 = vpop.xlane.xlu0 %1646  ;;  %v1802_v13 = vmul.f32 %v5807_v56, %v551_v25  ;;  %v2117_v49 = vsel %vm1014_vm0, %v1799_v60, 0.0  ;;  %v5809_v60 = vld [vmem:[%s13292_s0 + $0x138] sm:$0xff] }
 0x238   :  { %13481 = vst [vmem:[#allocation187_spill] sm:$0xff] %v8704_v37  ;;  %13482 = vst [vmem:[#allocation188_spill] sm:$0xff] %v8710_v22  ;;  %v5808_v37 = vld [vmem:[%s13292_s0 + $0x120] sm:$0xff] }
 0x239   :  { %v1801_v22 = vmul.f32 %v5808_v37, %v550_v20  ;;  %v2126_v25 = vsel %vm1014_vm0, %v1802_v13, 0.0  ;;  %v554_v13 = vld [vmem:[%s13294_s2 + $0x140] sm:$0xff] }
 0x23a   :  { %2115 = vadd.xlane.f32.xlu1 %v2114_v5  ;;  %2112 = vadd.xlane.f32.xlu0 %v2111_v61  ;;  %v553_v5 = vld [vmem:[%s13294_s2 + $0x138] sm:$0xff] }
 0x23b   :  { %v8722_v26 = vpop.xlane.xlu1 %1655  ;;  %v8728_v46 = vpop.xlane.xlu0 %1652  ;;  %v1804_v56 = vmul.f32 %v5809_v60, %v553_v5  ;;  %v2123_v20 = vsel %vm1014_vm0, %v1801_v22, 0.0  ;;  %v5811_v22 = vld [vmem:[%s13292_s0 + $0x148] sm:$0xff] }
 0x23c   :  { %13483 = vst [vmem:[#allocation189_spill] sm:$0xff] %v8722_v26  ;;  %13484 = vst [vmem:[#allocation190_spill] sm:$0xff] %v8728_v46  ;;  %v5810_v26 = vld [vmem:[%s13292_s0 + $0x130] sm:$0xff] }
 0x23d   :  { %v1803_v46 = vmul.f32 %v5810_v26, %v552_v32  ;;  %v2132_v5 = vsel %vm1014_vm0, %v1804_v56, 0.0  ;;  %v556_v56 = vld [vmem:[%s13294_s2 + $0x150] sm:$0xff] }
 0x23e   :  { %2121 = vadd.xlane.f32.xlu1 %v2120_v47  ;;  %2118 = vadd.xlane.f32.xlu0 %v2117_v49  ;;  %v555_v47 = vld [vmem:[%s13294_s2 + $0x148] sm:$0xff] }
 0x23f   :  { %v8740_v61 = vpop.xlane.xlu1 %1661  ;;  %v8746_v37 = vpop.xlane.xlu0 %1658  ;;  %v1806_v60 = vmul.f32 %v5811_v22, %v555_v47  ;;  %v2129_v32 = vsel %vm1014_vm0, %v1803_v46, 0.0  ;;  %v5813_v46 = vld [vmem:[%s13292_s0 + $0x158] sm:$0xff] }
 0x240   :  { %13485 = vst [vmem:[#allocation191_spill] sm:$0xff] %v8740_v61  ;;  %13486 = vst [vmem:[#allocation192_spill] sm:$0xff] %v8746_v37  ;;  %v5812_v61 = vld [vmem:[%s13292_s0 + $0x140] sm:$0xff] }
 0x241   :  { %v1805_v37 = vmul.f32 %v5812_v61, %v554_v13  ;;  %v2138_v47 = vsel %vm1014_vm0, %v1806_v60, 0.0  ;;  %v558_v60 = vld [vmem:[%s13294_s2 + $0x160] sm:$0xff] }
 0x242   :  { %2127 = vadd.xlane.f32.xlu1 %v2126_v25  ;;  %2124 = vadd.xlane.f32.xlu0 %v2123_v20  ;;  %v557_v25 = vld [vmem:[%s13294_s2 + $0x158] sm:$0xff] }
 0x243   :  { %v8758_v49 = vpop.xlane.xlu1 %1667  ;;  %v8764_v26 = vpop.xlane.xlu0 %1664  ;;  %v1808_v22 = vmul.f32 %v5813_v46, %v557_v25  ;;  %v2135_v13 = vsel %vm1014_vm0, %v1805_v37, 0.0  ;;  %v5815_v37 = vld [vmem:[%s13292_s0 + $0x168] sm:$0xff] }
 0x244   :  { %13487 = vst [vmem:[#allocation193_spill] sm:$0xff] %v8758_v49  ;;  %13488 = vst [vmem:[#allocation194_spill] sm:$0xff] %v8764_v26  ;;  %v5814_v49 = vld [vmem:[%s13292_s0 + $0x150] sm:$0xff] }
 0x245   :  { %v1807_v26 = vmul.f32 %v5814_v49, %v556_v56  ;;  %v2144_v25 = vsel %vm1014_vm0, %v1808_v22, 0.0  ;;  %v560_v22 = vld [vmem:[%s13294_s2 + $0x170] sm:$0xff] }
 0x246   :  { %2133 = vadd.xlane.f32.xlu1 %v2132_v5  ;;  %2130 = vadd.xlane.f32.xlu0 %v2129_v32  ;;  %v559_v5 = vld [vmem:[%s13294_s2 + $0x168] sm:$0xff] }
 0x247   :  { %v8776_v20 = vpop.xlane.xlu1 %1673  ;;  %v8782_v61 = vpop.xlane.xlu0 %1670  ;;  %v1810_v46 = vmul.f32 %v5815_v37, %v559_v5  ;;  %v2141_v56 = vsel %vm1014_vm0, %v1807_v26, 0.0  ;;  %v5817_v26 = vld [vmem:[%s13292_s0 + $0x178] sm:$0xff] }
 0x248   :  { %13489 = vst [vmem:[#allocation195_spill] sm:$0xff] %v8776_v20  ;;  %13490 = vst [vmem:[#allocation196_spill] sm:$0xff] %v8782_v61  ;;  %v5816_v20 = vld [vmem:[%s13292_s0 + $0x160] sm:$0xff] }
 0x249   :  { %v1809_v61 = vmul.f32 %v5816_v20, %v558_v60  ;;  %v2150_v5 = vsel %vm1014_vm0, %v1810_v46, 0.0  ;;  %v562_v46 = vld [vmem:[%s13294_s2 + $0x180] sm:$0xff] }
 0x24a   :  { %2139 = vadd.xlane.f32.xlu1 %v2138_v47  ;;  %2136 = vadd.xlane.f32.xlu0 %v2135_v13  ;;  %v561_v47 = vld [vmem:[%s13294_s2 + $0x178] sm:$0xff] }
 0x24b   :  { %v8794_v32 = vpop.xlane.xlu1 %1679  ;;  %v8800_v49 = vpop.xlane.xlu0 %1676  ;;  %v1812_v37 = vmul.f32 %v5817_v26, %v561_v47  ;;  %v2147_v60 = vsel %vm1014_vm0, %v1809_v61, 0.0  ;;  %v5819_v61 = vld [vmem:[%s13292_s0 + $0x188] sm:$0xff] }
 0x24c   :  { %13491 = vst [vmem:[#allocation197_spill] sm:$0xff] %v8794_v32  ;;  %13492 = vst [vmem:[#allocation198_spill] sm:$0xff] %v8800_v49  ;;  %v5818_v32 = vld [vmem:[%s13292_s0 + $0x170] sm:$0xff] }
 0x24d   :  { %v1811_v49 = vmul.f32 %v5818_v32, %v560_v22  ;;  %v2156_v47 = vsel %vm1014_vm0, %v1812_v37, 0.0  ;;  %v564_v37 = vld [vmem:[%s13294_s2 + $0x190] sm:$0xff] }
 0x24e   :  { %2145 = vadd.xlane.f32.xlu1 %v2144_v25  ;;  %2142 = vadd.xlane.f32.xlu0 %v2141_v56  ;;  %v563_v25 = vld [vmem:[%s13294_s2 + $0x188] sm:$0xff] }
 0x24f   :  { %v8812_v13 = vpop.xlane.xlu1 %1685  ;;  %v8818_v20 = vpop.xlane.xlu0 %1682  ;;  %v1814_v26 = vmul.f32 %v5819_v61, %v563_v25  ;;  %v2153_v22 = vsel %vm1014_vm0, %v1811_v49, 0.0  ;;  %v5821_v49 = vld [vmem:[%s13292_s0 + $0x198] sm:$0xff] }
 0x250   :  { %13493 = vst [vmem:[#allocation199_spill] sm:$0xff] %v8812_v13  ;;  %13494 = vst [vmem:[#allocation200_spill] sm:$0xff] %v8818_v20  ;;  %v5820_v13 = vld [vmem:[%s13292_s0 + $0x180] sm:$0xff] }
 0x251   :  { %v1813_v20 = vmul.f32 %v5820_v13, %v562_v46  ;;  %v2162_v25 = vsel %vm1014_vm0, %v1814_v26, 0.0  ;;  %v566_v26 = vld [vmem:[%s13294_s2 + $0x1a0] sm:$0xff] }
 0x252   :  { %2151 = vadd.xlane.f32.xlu1 %v2150_v5  ;;  %2148 = vadd.xlane.f32.xlu0 %v2147_v60  ;;  %v565_v5 = vld [vmem:[%s13294_s2 + $0x198] sm:$0xff] }
 0x253   :  { %v8830_v56 = vpop.xlane.xlu1 %1691  ;;  %v8836_v32 = vpop.xlane.xlu0 %1688  ;;  %v1816_v61 = vmul.f32 %v5821_v49, %v565_v5  ;;  %v2159_v46 = vsel %vm1014_vm0, %v1813_v20, 0.0  ;;  %v5823_v20 = vld [vmem:[%s13292_s0 + $0x1a8] sm:$0xff] }
 0x254   :  { %13495 = vst [vmem:[#allocation201_spill] sm:$0xff] %v8830_v56  ;;  %13496 = vst [vmem:[#allocation202_spill] sm:$0xff] %v8836_v32  ;;  %v5822_v56 = vld [vmem:[%s13292_s0 + $0x190] sm:$0xff] }
 0x255   :  { %v1815_v32 = vmul.f32 %v5822_v56, %v564_v37  ;;  %v2168_v5 = vsel %vm1014_vm0, %v1816_v61, 0.0  ;;  %v568_v61 = vld [vmem:[%s13294_s2 + $0x1b0] sm:$0xff] }
 0x256   :  { %2157 = vadd.xlane.f32.xlu1 %v2156_v47  ;;  %2154 = vadd.xlane.f32.xlu0 %v2153_v22  ;;  %v567_v47 = vld [vmem:[%s13294_s2 + $0x1a8] sm:$0xff] }
 0x257   :  { %v8848_v60 = vpop.xlane.xlu1 %1697  ;;  %v8854_v13 = vpop.xlane.xlu0 %1694  ;;  %v1818_v49 = vmul.f32 %v5823_v20, %v567_v47  ;;  %v2165_v37 = vsel %vm1014_vm0, %v1815_v32, 0.0  ;;  %v5825_v32 = vld [vmem:[%s13292_s0 + $0x1b8] sm:$0xff] }
 0x258   :  { %13497 = vst [vmem:[#allocation203_spill] sm:$0xff] %v8848_v60  ;;  %13498 = vst [vmem:[#allocation204_spill] sm:$0xff] %v8854_v13  ;;  %v5824_v60 = vld [vmem:[%s13292_s0 + $0x1a0] sm:$0xff] }
 0x259   :  { %v1817_v13 = vmul.f32 %v5824_v60, %v566_v26  ;;  %v2174_v47 = vsel %vm1014_vm0, %v1818_v49, 0.0  ;;  %v570_v49 = vld [vmem:[%s13294_s2 + $0x1c0] sm:$0xff] }
 0x25a   :  { %2163 = vadd.xlane.f32.xlu1 %v2162_v25  ;;  %2160 = vadd.xlane.f32.xlu0 %v2159_v46  ;;  %v569_v25 = vld [vmem:[%s13294_s2 + $0x1b8] sm:$0xff] }
 0x25b   :  { %v8866_v22 = vpop.xlane.xlu1 %1703  ;;  %v8872_v56 = vpop.xlane.xlu0 %1700  ;;  %v1820_v20 = vmul.f32 %v5825_v32, %v569_v25  ;;  %v2171_v26 = vsel %vm1014_vm0, %v1817_v13, 0.0  ;;  %v5827_v13 = vld [vmem:[%s13292_s0 + $0x1c8] sm:$0xff] }
 0x25c   :  { %13499 = vst [vmem:[#allocation205_spill] sm:$0xff] %v8866_v22  ;;  %13500 = vst [vmem:[#allocation206_spill] sm:$0xff] %v8872_v56  ;;  %v5826_v22 = vld [vmem:[%s13292_s0 + $0x1b0] sm:$0xff] }
 0x25d   :  { %v1819_v56 = vmul.f32 %v5826_v22, %v568_v61  ;;  %v2180_v25 = vsel %vm1014_vm0, %v1820_v20, 0.0  ;;  %v572_v20 = vld [vmem:[%s13294_s2 + $0x1d0] sm:$0xff] }
 0x25e   :  { %2169 = vadd.xlane.f32.xlu1 %v2168_v5  ;;  %2166 = vadd.xlane.f32.xlu0 %v2165_v37  ;;  %v571_v5 = vld [vmem:[%s13294_s2 + $0x1c8] sm:$0xff] }
 0x25f   :  { %v8884_v46 = vpop.xlane.xlu1 %1709  ;;  %v8890_v60 = vpop.xlane.xlu0 %1706  ;;  %v1822_v32 = vmul.f32 %v5827_v13, %v571_v5  ;;  %v2177_v61 = vsel %vm1014_vm0, %v1819_v56, 0.0  ;;  %v5829_v56 = vld [vmem:[%s13292_s0 + $0x1d8] sm:$0xff] }
 0x260   :  { %13501 = vst [vmem:[#allocation207_spill] sm:$0xff] %v8884_v46  ;;  %13502 = vst [vmem:[#allocation208_spill] sm:$0xff] %v8890_v60  ;;  %v5828_v46 = vld [vmem:[%s13292_s0 + $0x1c0] sm:$0xff] }
 0x261   :  { %v1821_v60 = vmul.f32 %v5828_v46, %v570_v49  ;;  %v2186_v5 = vsel %vm1014_vm0, %v1822_v32, 0.0  ;;  %v574_v32 = vld [vmem:[%s13294_s2 + $0x1e0] sm:$0xff] }
 0x262   :  { %2175 = vadd.xlane.f32.xlu1 %v2174_v47  ;;  %2172 = vadd.xlane.f32.xlu0 %v2171_v26  ;;  %v573_v47 = vld [vmem:[%s13294_s2 + $0x1d8] sm:$0xff] }
 0x263   :  { %v8902_v37 = vpop.xlane.xlu1 %1715  ;;  %v8908_v22 = vpop.xlane.xlu0 %1712  ;;  %v1824_v13 = vmul.f32 %v5829_v56, %v573_v47  ;;  %v2183_v49 = vsel %vm1014_vm0, %v1821_v60, 0.0  ;;  %v5831_v60 = vld [vmem:[%s13292_s0 + $0x1e8] sm:$0xff] }
 0x264   :  { %13503 = vst [vmem:[#allocation209_spill] sm:$0xff] %v8902_v37  ;;  %13504 = vst [vmem:[#allocation210_spill] sm:$0xff] %v8908_v22  ;;  %v5830_v37 = vld [vmem:[%s13292_s0 + $0x1d0] sm:$0xff] }
 0x265   :  { %v1823_v22 = vmul.f32 %v5830_v37, %v572_v20  ;;  %v2192_v47 = vsel %vm1014_vm0, %v1824_v13, 0.0  ;;  %v576_v13 = vld [vmem:[%s13294_s2 + $0x1f0] sm:$0xff] }
 0x266   :  { %2181 = vadd.xlane.f32.xlu1 %v2180_v25  ;;  %2178 = vadd.xlane.f32.xlu0 %v2177_v61  ;;  %v575_v25 = vld [vmem:[%s13294_s2 + $0x1e8] sm:$0xff] }
 0x267   :  { %v8920_v26 = vpop.xlane.xlu1 %1721  ;;  %v8926_v46 = vpop.xlane.xlu0 %1718  ;;  %v1826_v56 = vmul.f32 %v5831_v60, %v575_v25  ;;  %v2189_v20 = vsel %vm1014_vm0, %v1823_v22, 0.0  ;;  %v5833_v22 = vld [vmem:[%s13292_s0 + $0x1f8] sm:$0xff] }
 0x268   :  { %13505 = vst [vmem:[#allocation211_spill] sm:$0xff] %v8920_v26  ;;  %13506 = vst [vmem:[#allocation212_spill] sm:$0xff] %v8926_v46  ;;  %v5832_v26 = vld [vmem:[%s13292_s0 + $0x1e0] sm:$0xff] }
 0x269   :  { %v1825_v46 = vmul.f32 %v5832_v26, %v574_v32  ;;  %v2198_v25 = vsel %vm1014_vm0, %v1826_v56, 0.0  ;;  %v578_v56 = vld [vmem:[%s13294_s2 + $0x200] sm:$0xff] }
 0x26a   :  { %2187 = vadd.xlane.f32.xlu1 %v2186_v5  ;;  %2184 = vadd.xlane.f32.xlu0 %v2183_v49  ;;  %v577_v5 = vld [vmem:[%s13294_s2 + $0x1f8] sm:$0xff] }
 0x26b   :  { %v8938_v61 = vpop.xlane.xlu1 %1727  ;;  %v8944_v37 = vpop.xlane.xlu0 %1724  ;;  %v1828_v60 = vmul.f32 %v5833_v22, %v577_v5  ;;  %v2195_v32 = vsel %vm1014_vm0, %v1825_v46, 0.0  ;;  %v5835_v46 = vld [vmem:[%s13292_s0 + $0x208] sm:$0xff] }
 0x26c   :  { %13507 = vst [vmem:[#allocation213_spill] sm:$0xff] %v8938_v61  ;;  %13508 = vst [vmem:[#allocation214_spill] sm:$0xff] %v8944_v37  ;;  %v5834_v61 = vld [vmem:[%s13292_s0 + $0x1f0] sm:$0xff] }
 0x26d   :  { %v1827_v37 = vmul.f32 %v5834_v61, %v576_v13  ;;  %v2204_v5 = vsel %vm1014_vm0, %v1828_v60, 0.0  ;;  %v580_v60 = vld [vmem:[%s13294_s2 + $0x210] sm:$0xff] }
 0x26e   :  { %2193 = vadd.xlane.f32.xlu1 %v2192_v47  ;;  %2190 = vadd.xlane.f32.xlu0 %v2189_v20  ;;  %v579_v47 = vld [vmem:[%s13294_s2 + $0x208] sm:$0xff] }
 0x26f   :  { %v8956_v49 = vpop.xlane.xlu1 %1733  ;;  %v8962_v26 = vpop.xlane.xlu0 %1730  ;;  %v1830_v22 = vmul.f32 %v5835_v46, %v579_v47  ;;  %v2201_v13 = vsel %vm1014_vm0, %v1827_v37, 0.0  ;;  %v5837_v37 = vld [vmem:[%s13292_s0 + $0x218] sm:$0xff] }
 0x270   :  { %13509 = vst [vmem:[#allocation215_spill] sm:$0xff] %v8956_v49  ;;  %13510 = vst [vmem:[#allocation216_spill] sm:$0xff] %v8962_v26  ;;  %v5836_v49 = vld [vmem:[%s13292_s0 + $0x200] sm:$0xff] }
 0x271   :  { %v1829_v26 = vmul.f32 %v5836_v49, %v578_v56  ;;  %v2210_v47 = vsel %vm1014_vm0, %v1830_v22, 0.0  ;;  %v582_v22 = vld [vmem:[%s13294_s2 + $0x220] sm:$0xff] }
 0x272   :  { %2199 = vadd.xlane.f32.xlu1 %v2198_v25  ;;  %2196 = vadd.xlane.f32.xlu0 %v2195_v32  ;;  %v581_v25 = vld [vmem:[%s13294_s2 + $0x218] sm:$0xff] }
 0x273   :  { %v8974_v20 = vpop.xlane.xlu1 %1739  ;;  %v8980_v61 = vpop.xlane.xlu0 %1736  ;;  %v1832_v46 = vmul.f32 %v5837_v37, %v581_v25  ;;  %v2207_v56 = vsel %vm1014_vm0, %v1829_v26, 0.0  ;;  %v5839_v26 = vld [vmem:[%s13292_s0 + $0x228] sm:$0xff] }
 0x274   :  { %13511 = vst [vmem:[#allocation217_spill] sm:$0xff] %v8974_v20  ;;  %13512 = vst [vmem:[#allocation218_spill] sm:$0xff] %v8980_v61  ;;  %v5838_v20 = vld [vmem:[%s13292_s0 + $0x210] sm:$0xff] }
 0x275   :  { %v1831_v61 = vmul.f32 %v5838_v20, %v580_v60  ;;  %v2216_v25 = vsel %vm1014_vm0, %v1832_v46, 0.0  ;;  %v584_v46 = vld [vmem:[%s13294_s2 + $0x230] sm:$0xff] }
 0x276   :  { %2205 = vadd.xlane.f32.xlu1 %v2204_v5  ;;  %2202 = vadd.xlane.f32.xlu0 %v2201_v13  ;;  %v583_v5 = vld [vmem:[%s13294_s2 + $0x228] sm:$0xff] }
 0x277   :  { %v8992_v32 = vpop.xlane.xlu1 %1745  ;;  %v8998_v49 = vpop.xlane.xlu0 %1742  ;;  %v1834_v37 = vmul.f32 %v5839_v26, %v583_v5  ;;  %v2213_v60 = vsel %vm1014_vm0, %v1831_v61, 0.0  ;;  %v5841_v61 = vld [vmem:[%s13292_s0 + $0x238] sm:$0xff] }
 0x278   :  { %13513 = vst [vmem:[#allocation219_spill] sm:$0xff] %v8992_v32  ;;  %13514 = vst [vmem:[#allocation220_spill] sm:$0xff] %v8998_v49  ;;  %v5840_v32 = vld [vmem:[%s13292_s0 + $0x220] sm:$0xff] }
 0x279   :  { %v1833_v49 = vmul.f32 %v5840_v32, %v582_v22  ;;  %v2222_v5 = vsel %vm1014_vm0, %v1834_v37, 0.0  ;;  %v586_v37 = vld [vmem:[%s13294_s2 + $0x240] sm:$0xff] }
 0x27a   :  { %2211 = vadd.xlane.f32.xlu1 %v2210_v47  ;;  %2208 = vadd.xlane.f32.xlu0 %v2207_v56  ;;  %v585_v47 = vld [vmem:[%s13294_s2 + $0x238] sm:$0xff] }
 0x27b   :  { %v9010_v13 = vpop.xlane.xlu1 %1751  ;;  %v9016_v20 = vpop.xlane.xlu0 %1748  ;;  %v1836_v26 = vmul.f32 %v5841_v61, %v585_v47  ;;  %v2219_v22 = vsel %vm1014_vm0, %v1833_v49, 0.0  ;;  %v5843_v49 = vld [vmem:[%s13292_s0 + $0x248] sm:$0xff] }
 0x27c   :  { %13515 = vst [vmem:[#allocation221_spill] sm:$0xff] %v9010_v13  ;;  %13516 = vst [vmem:[#allocation222_spill] sm:$0xff] %v9016_v20  ;;  %v5842_v13 = vld [vmem:[%s13292_s0 + $0x230] sm:$0xff] }
 0x27d   :  { %v1835_v20 = vmul.f32 %v5842_v13, %v584_v46  ;;  %v2228_v47 = vsel %vm1014_vm0, %v1836_v26, 0.0  ;;  %v588_v26 = vld [vmem:[%s13294_s2 + $0x250] sm:$0xff] }
 0x27e   :  { %2217 = vadd.xlane.f32.xlu1 %v2216_v25  ;;  %2214 = vadd.xlane.f32.xlu0 %v2213_v60  ;;  %v587_v25 = vld [vmem:[%s13294_s2 + $0x248] sm:$0xff] }
 0x27f   :  { %v9028_v56 = vpop.xlane.xlu1 %1757  ;;  %v9034_v32 = vpop.xlane.xlu0 %1754  ;;  %v1838_v61 = vmul.f32 %v5843_v49, %v587_v25  ;;  %v2225_v46 = vsel %vm1014_vm0, %v1835_v20, 0.0  ;;  %v5845_v20 = vld [vmem:[%s13292_s0 + $0x258] sm:$0xff] }
 0x280   :  { %13517 = vst [vmem:[#allocation223_spill] sm:$0xff] %v9028_v56  ;;  %13518 = vst [vmem:[#allocation224_spill] sm:$0xff] %v9034_v32  ;;  %v5844_v56 = vld [vmem:[%s13292_s0 + $0x240] sm:$0xff] }
 0x281   :  { %v1837_v32 = vmul.f32 %v5844_v56, %v586_v37  ;;  %v2234_v25 = vsel %vm1014_vm0, %v1838_v61, 0.0  ;;  %v590_v61 = vld [vmem:[%s13294_s2 + $0x260] sm:$0xff] }
 0x282   :  { %2223 = vadd.xlane.f32.xlu1 %v2222_v5  ;;  %2220 = vadd.xlane.f32.xlu0 %v2219_v22  ;;  %v589_v5 = vld [vmem:[%s13294_s2 + $0x258] sm:$0xff]  ;;  %v1841_v16 = vmul.f32 %v5848_v2, %v590_v61 }
 0x283   :  { %v9046_v60 = vpop.xlane.xlu1 %1763  ;;  %v9052_v13 = vpop.xlane.xlu0 %1760  ;;  %v1840_v49 = vmul.f32 %v5845_v20, %v589_v5  ;;  %v2231_v37 = vsel %vm1014_vm0, %v1837_v32, 0.0  ;;  %v5847_v32 = vld [vmem:[%s13292_s0 + $0x268] sm:$0xff] }
 0x284   :  { %13519 = vst [vmem:[#allocation225_spill] sm:$0xff] %v9046_v60  ;;  %13520 = vst [vmem:[#allocation226_spill] sm:$0xff] %v9052_v13  ;;  %v5846_v60 = vld [vmem:[%s13292_s0 + $0x250] sm:$0xff]  ;;  %v2243_v61 = vsel %vm1014_vm0, %v1841_v16, 0.0  ;;  %v5851_v16 = vld [vmem:[%s13292_s0 + $0x288] sm:$0xff] }
 0x285   :  { %v1839_v13 = vmul.f32 %v5846_v60, %v588_v26  ;;  %v2240_v5 = vsel %vm1014_vm0, %v1840_v49, 0.0  ;;  %v592_v49 = vld [vmem:[%s13294_s2 + $0x270] sm:$0xff] }
 0x286   :  { %2229 = vadd.xlane.f32.xlu1 %v2228_v47  ;;  %2226 = vadd.xlane.f32.xlu0 %v2225_v46  ;;  %v591_v47 = vld [vmem:[%s13294_s2 + $0x268] sm:$0xff]  ;;  %v1843_v43 = vmul.f32 %v5850_v30, %v592_v49 }
 0x287   :  { %v9064_v22 = vpop.xlane.xlu1 %2019  ;;  %v9070_v56 = vpop.xlane.xlu0 %2016  ;;  %v1842_v20 = vmul.f32 %v5847_v32, %v591_v47  ;;  %v2237_v26 = vsel %vm1014_vm0, %v1839_v13, 0.0  ;;  %v5849_v13 = vld [vmem:[%s13292_s0 + $0x278] sm:$0xff] }
 0x288   :  { %v2249_v49 = vsel %vm1014_vm0, %v1843_v43, 0.0  ;;  %v5853_v43 = vld [vmem:[%s13292_s0 + $0x298] sm:$0xff] }
 0x289   :  { %v2246_v47 = vsel %vm1014_vm0, %v1842_v20, 0.0  ;;  %v594_v20 = vld [vmem:[%s13294_s2 + $0x280] sm:$0xff] }
 0x28a   :  { %2235 = vadd.xlane.f32.xlu1 %v2234_v25  ;;  %2232 = vadd.xlane.f32.xlu0 %v2231_v37  ;;  %v593_v25 = vld [vmem:[%s13294_s2 + $0x278] sm:$0xff]  ;;  %v1845_v6 = vmul.f32 %v5852_v0, %v594_v20 }
 0x28b   :  { %v9082_v46 = vpop.xlane.xlu1 %2025  ;;  %v9088_v60 = vpop.xlane.xlu0 %2022  ;;  %v1844_v32 = vmul.f32 %v5849_v13, %v593_v25 }
 0x28c   :  { %v2255_v20 = vsel %vm1014_vm0, %v1845_v6, 0.0  ;;  %v5855_v6 = vld [vmem:[%s13292_s0 + $0x2a8] sm:$0xff] }
 0x28d   :  { %v2252_v25 = vsel %vm1014_vm0, %v1844_v32, 0.0  ;;  %v596_v32 = vld [vmem:[%s13294_s2 + $0x290] sm:$0xff] }
 0x28e   :  { %2241 = vadd.xlane.f32.xlu1 %v2240_v5  ;;  %2238 = vadd.xlane.f32.xlu0 %v2237_v26  ;;  %v595_v5 = vld [vmem:[%s13294_s2 + $0x288] sm:$0xff]  ;;  %v1847_v44 = vmul.f32 %v5854_v35, %v596_v32 }
 0x28f   :  { %v9100_v37 = vpop.xlane.xlu1 %2031  ;;  %v9106_v2 = vpop.xlane.xlu0 %2028  ;;  %v1846_v13 = vmul.f32 %v5851_v16, %v595_v5 }
 0x290   :  { %v2261_v32 = vsel %vm1014_vm0, %v1847_v44, 0.0  ;;  %v5857_v44 = vld [vmem:[%s13292_s0 + $0x2b8] sm:$0xff] }
 0x291   :  { %v2258_v5 = vsel %vm1014_vm0, %v1846_v13, 0.0  ;;  %v598_v13 = vld [vmem:[%s13294_s2 + $0x2a0] sm:$0xff] }
 0x292   :  { %2247 = vadd.xlane.f32.xlu1 %v2246_v47  ;;  %2244 = vadd.xlane.f32.xlu0 %v2243_v61  ;;  %v597_v47 = vld [vmem:[%s13294_s2 + $0x298] sm:$0xff]  ;;  %v1849_v17 = vmul.f32 %v5856_v10, %v598_v13 }
 0x293   :  { %v9118_v26 = vpop.xlane.xlu1 %2037  ;;  %v9124_v30 = vpop.xlane.xlu0 %2034  ;;  %v1848_v16 = vmul.f32 %v5853_v43, %v597_v47 }
 0x294   :  { %v2267_v13 = vsel %vm1014_vm0, %v1849_v17, 0.0  ;;  %v5859_v17 = vld [vmem:[%s13292_s0 + $0x2c8] sm:$0xff] }
 0x295   :  { %v2264_v47 = vsel %vm1014_vm0, %v1848_v16, 0.0  ;;  %v600_v16 = vld [vmem:[%s13294_s2 + $0x2b0] sm:$0xff] }
 0x296   :  { %2253 = vadd.xlane.f32.xlu1 %v2252_v25  ;;  %2250 = vadd.xlane.f32.xlu0 %v2249_v49  ;;  %v599_v25 = vld [vmem:[%s13294_s2 + $0x2a8] sm:$0xff]  ;;  %v1851_v58 = vmul.f32 %v5858_v48, %v600_v16 }
 0x297   :  { %v9136_v61 = vpop.xlane.xlu1 %2043  ;;  %v9142_v0 = vpop.xlane.xlu0 %2040  ;;  %v1850_v43 = vmul.f32 %v5855_v6, %v599_v25 }
 0x298   :  { %v2273_v16 = vsel %vm1014_vm0, %v1851_v58, 0.0  ;;  %v5861_v58 = vld [vmem:[%s13292_s0 + $0x2d8] sm:$0xff] }
 0x299   :  { %v2270_v25 = vsel %vm1014_vm0, %v1850_v43, 0.0  ;;  %v602_v43 = vld [vmem:[%s13294_s2 + $0x2c0] sm:$0xff] }
 0x29a   :  { %2259 = vadd.xlane.f32.xlu1 %v2258_v5  ;;  %2256 = vadd.xlane.f32.xlu0 %v2255_v20  ;;  %v601_v5 = vld [vmem:[%s13294_s2 + $0x2b8] sm:$0xff]  ;;  %v1853_v33 = vmul.f32 %v5860_v29, %v602_v43 }
 0x29b   :  { %v9154_v49 = vpop.xlane.xlu1 %2049  ;;  %v9160_v35 = vpop.xlane.xlu0 %2046  ;;  %v1852_v6 = vmul.f32 %v5857_v44, %v601_v5 }
 0x29c   :  { %v2279_v43 = vsel %vm1014_vm0, %v1853_v33, 0.0  ;;  %v5863_v33 = vld [vmem:[%s13292_s0 + $0x2e8] sm:$0xff] }
 0x29d   :  { %v2276_v5 = vsel %vm1014_vm0, %v1852_v6, 0.0  ;;  %v604_v6 = vld [vmem:[%s13294_s2 + $0x2d0] sm:$0xff] }
 0x29e   :  { %2265 = vadd.xlane.f32.xlu1 %v2264_v47  ;;  %2262 = vadd.xlane.f32.xlu0 %v2261_v32  ;;  %v603_v47 = vld [vmem:[%s13294_s2 + $0x2c8] sm:$0xff]  ;;  %v1855_v14 = vmul.f32 %v5862_v9, %v604_v6 }
 0x29f   :  { %v9172_v20 = vpop.xlane.xlu1 %2055  ;;  %v9178_v10 = vpop.xlane.xlu0 %2052  ;;  %v1854_v44 = vmul.f32 %v5859_v17, %v603_v47 }
 0x2a0   :  { %v2285_v6 = vsel %vm1014_vm0, %v1855_v14, 0.0  ;;  %v5865_v14 = vld [vmem:[%s13292_s0 + $0x2f8] sm:$0xff] }
 0x2a1   :  { %v2282_v47 = vsel %vm1014_vm0, %v1854_v44, 0.0  ;;  %v606_v44 = vld [vmem:[%s13294_s2 + $0x2e0] sm:$0xff] }
 0x2a2   :  { %2271 = vadd.xlane.f32.xlu1 %v2270_v25  ;;  %2268 = vadd.xlane.f32.xlu0 %v2267_v13  ;;  %v605_v25 = vld [vmem:[%s13294_s2 + $0x2d8] sm:$0xff]  ;;  %v1857_v59 = vmul.f32 %v5864_v53, %v606_v44 }
 0x2a3   :  { %v9190_v32 = vpop.xlane.xlu1 %2061  ;;  %v9196_v48 = vpop.xlane.xlu0 %2058  ;;  %v1856_v17 = vmul.f32 %v5861_v58, %v605_v25 }
 0x2a4   :  { %v2291_v44 = vsel %vm1014_vm0, %v1857_v59, 0.0  ;;  %v5867_v59 = vld [vmem:[%s13292_s0 + $0x308] sm:$0xff] }
 0x2a5   :  { %v2288_v25 = vsel %vm1014_vm0, %v1856_v17, 0.0  ;;  %v608_v17 = vld [vmem:[%s13294_s2 + $0x2f0] sm:$0xff] }
 0x2a6   :  { %2277 = vadd.xlane.f32.xlu1 %v2276_v5  ;;  %2274 = vadd.xlane.f32.xlu0 %v2273_v16  ;;  %v607_v5 = vld [vmem:[%s13294_s2 + $0x2e8] sm:$0xff]  ;;  %v1859_v39 = vmul.f32 %v5866_v34, %v608_v17 }
 0x2a7   :  { %v9208_v13 = vpop.xlane.xlu1 %2067  ;;  %v9214_v29 = vpop.xlane.xlu0 %2064  ;;  %v1858_v58 = vmul.f32 %v5863_v33, %v607_v5 }
 0x2a8   :  { %v2297_v17 = vsel %vm1014_vm0, %v1859_v39, 0.0  ;;  %v5869_v39 = vld [vmem:[%s13292_s0 + $0x318] sm:$0xff] }
 0x2a9   :  { %v2294_v5 = vsel %vm1014_vm0, %v1858_v58, 0.0  ;;  %v610_v58 = vld [vmem:[%s13294_s2 + $0x300] sm:$0xff] }
 0x2aa   :  { %2283 = vadd.xlane.f32.xlu1 %v2282_v47  ;;  %2280 = vadd.xlane.f32.xlu0 %v2279_v43  ;;  %v609_v47 = vld [vmem:[%s13294_s2 + $0x2f8] sm:$0xff]  ;;  %v1861_v23 = vmul.f32 %v5868_v19, %v610_v58 }
 0x2ab   :  { %v9226_v16 = vpop.xlane.xlu1 %2073  ;;  %v9232_v9 = vpop.xlane.xlu0 %2070  ;;  %v1860_v33 = vmul.f32 %v5865_v14, %v609_v47 }
 0x2ac   :  { %v2303_v58 = vsel %vm1014_vm0, %v1861_v23, 0.0  ;;  %v5871_v23 = vld [vmem:[%s13292_s0 + $0x328] sm:$0xff] }
 0x2ad   :  { %v2300_v47 = vsel %vm1014_vm0, %v1860_v33, 0.0  ;;  %v612_v33 = vld [vmem:[%s13294_s2 + $0x310] sm:$0xff] }
 0x2ae   :  { %2289 = vadd.xlane.f32.xlu1 %v2288_v25  ;;  %2286 = vadd.xlane.f32.xlu0 %v2285_v6  ;;  %v611_v25 = vld [vmem:[%s13294_s2 + $0x308] sm:$0xff]  ;;  %v1863_v7 = vmul.f32 %v5870_v4, %v612_v33 }
 0x2af   :  { %v9244_v43 = vpop.xlane.xlu1 %2079  ;;  %v9250_v53 = vpop.xlane.xlu0 %2076  ;;  %v1862_v14 = vmul.f32 %v5867_v59, %v611_v25 }
 0x2b0   :  { %v2309_v33 = vsel %vm1014_vm0, %v1863_v7, 0.0  ;;  %v5873_v7 = vld [vmem:[%s13292_s0 + $0x338] sm:$0xff] }
 0x2b1   :  { %v2306_v25 = vsel %vm1014_vm0, %v1862_v14, 0.0  ;;  %v614_v14 = vld [vmem:[%s13294_s2 + $0x320] sm:$0xff] }
 0x2b2   :  { %2295 = vadd.xlane.f32.xlu1 %v2294_v5  ;;  %2292 = vadd.xlane.f32.xlu0 %v2291_v44  ;;  %v613_v5 = vld [vmem:[%s13294_s2 + $0x318] sm:$0xff] }
 0x2b3   :  { %v9262_v6 = vpop.xlane.xlu1 %2085  ;;  %v9268_v34 = vpop.xlane.xlu0 %2082  ;;  %v1864_v59 = vmul.f32 %v5869_v39, %v613_v5 }
 0x2b5   :  { %v2312_v5 = vsel %vm1014_vm0, %v1864_v59, 0.0  ;;  %v616_v59 = vld [vmem:[%s13294_s2 + $0x330] sm:$0xff] }
 0x2b6   :  { %2301 = vadd.xlane.f32.xlu1 %v2300_v47  ;;  %2298 = vadd.xlane.f32.xlu0 %v2297_v17  ;;  %v615_v47 = vld [vmem:[%s13294_s2 + $0x328] sm:$0xff] }
 0x2b7   :  { %v9280_v44 = vpop.xlane.xlu1 %2091  ;;  %v9286_v19 = vpop.xlane.xlu0 %2088  ;;  %v1866_v39 = vmul.f32 %v5871_v23, %v615_v47 }
 0x2b8   :  { %13521 = vst [vmem:[#allocation227_spill] sm:$0xff] %v9280_v44  ;;  %v1865_v44 = vmul.f32 %v5872_v51, %v614_v14 }
 0x2b9   :  { %v2318_v47 = vsel %vm1014_vm0, %v1866_v39, 0.0  ;;  %v618_v39 = vld [vmem:[%s13294_s2 + $0x340] sm:$0xff] }
 0x2ba   :  { %2307 = vadd.xlane.f32.xlu1 %v2306_v25  ;;  %2304 = vadd.xlane.f32.xlu0 %v2303_v58  ;;  %v617_v25 = vld [vmem:[%s13294_s2 + $0x338] sm:$0xff]  ;;  %v2315_v14 = vsel %vm1014_vm0, %v1865_v44, 0.0  ;;  %v5875_v44 = vld [vmem:[%s13292_s0 + $0x348] sm:$0xff] }
 0x2bb   :  { %v9298_v17 = vpop.xlane.xlu1 %2097  ;;  %v9304_v4 = vpop.xlane.xlu0 %2094  ;;  %v1868_v23 = vmul.f32 %v5873_v7, %v617_v25 }
 0x2bc   :  { %13522 = vst [vmem:[#allocation228_spill] sm:$0xff] %v9298_v17  ;;  %13523 = vst [vmem:[#allocation229_spill] sm:$0xff] %v9304_v4  ;;  %v5874_v17 = vld [vmem:[%s13292_s0 + $0x330] sm:$0xff] }
 0x2bd   :  { %v1867_v4 = vmul.f32 %v5874_v17, %v616_v59  ;;  %v2324_v25 = vsel %vm1014_vm0, %v1868_v23, 0.0  ;;  %v620_v23 = vld [vmem:[%s13294_s2 + $0x350] sm:$0xff] }
 0x2be   :  { %2313 = vadd.xlane.f32.xlu1 %v2312_v5  ;;  %2310 = vadd.xlane.f32.xlu0 %v2309_v33  ;;  %v619_v5 = vld [vmem:[%s13294_s2 + $0x348] sm:$0xff] }
 0x2bf   :  { %v9316_v58 = vpop.xlane.xlu1 %2103  ;;  %v9322_v51 = vpop.xlane.xlu0 %2100  ;;  %v1870_v7 = vmul.f32 %v5875_v44, %v619_v5  ;;  %v2321_v59 = vsel %vm1014_vm0, %v1867_v4, 0.0  ;;  %v5877_v4 = vld [vmem:[%s13292_s0 + $0x358] sm:$0xff] }
 0x2c0   :  { %13524 = vst [vmem:[#allocation230_spill] sm:$0xff] %v9316_v58  ;;  %13525 = vst [vmem:[#allocation231_spill] sm:$0xff] %v9322_v51  ;;  %v5876_v58 = vld [vmem:[%s13292_s0 + $0x340] sm:$0xff] }
 0x2c1   :  { %v1869_v51 = vmul.f32 %v5876_v58, %v618_v39  ;;  %v2330_v5 = vsel %vm1014_vm0, %v1870_v7, 0.0  ;;  %v622_v7 = vld [vmem:[%s13294_s2 + $0x360] sm:$0xff] }
 0x2c2   :  { %2319 = vadd.xlane.f32.xlu1 %v2318_v47  ;;  %2316 = vadd.xlane.f32.xlu0 %v2315_v14  ;;  %v621_v47 = vld [vmem:[%s13294_s2 + $0x358] sm:$0xff] }
 0x2c3   :  { %v9334_v33 = vpop.xlane.xlu1 %2109  ;;  %v9340_v17 = vpop.xlane.xlu0 %2106  ;;  %v1872_v44 = vmul.f32 %v5877_v4, %v621_v47  ;;  %v2327_v39 = vsel %vm1014_vm0, %v1869_v51, 0.0  ;;  %v5879_v51 = vld [vmem:[%s13292_s0 + $0x368] sm:$0xff] }
 0x2c4   :  { %13526 = vst [vmem:[#allocation232_spill] sm:$0xff] %v9334_v33  ;;  %13527 = vst [vmem:[#allocation233_spill] sm:$0xff] %v9340_v17  ;;  %v5878_v33 = vld [vmem:[%s13292_s0 + $0x350] sm:$0xff] }
 0x2c5   :  { %v1871_v17 = vmul.f32 %v5878_v33, %v620_v23  ;;  %v2336_v47 = vsel %vm1014_vm0, %v1872_v44, 0.0  ;;  %v624_v44 = vld [vmem:[%s13294_s2 + $0x370] sm:$0xff] }
 0x2c6   :  { %2325 = vadd.xlane.f32.xlu1 %v2324_v25  ;;  %2322 = vadd.xlane.f32.xlu0 %v2321_v59  ;;  %v623_v25 = vld [vmem:[%s13294_s2 + $0x368] sm:$0xff] }
 0x2c7   :  { %v9352_v14 = vpop.xlane.xlu1 %2115  ;;  %v9358_v58 = vpop.xlane.xlu0 %2112  ;;  %v1874_v4 = vmul.f32 %v5879_v51, %v623_v25  ;;  %v2333_v23 = vsel %vm1014_vm0, %v1871_v17, 0.0  ;;  %v5881_v17 = vld [vmem:[%s13292_s0 + $0x378] sm:$0xff] }
 0x2c8   :  { %13528 = vst [vmem:[#allocation234_spill] sm:$0xff] %v9352_v14  ;;  %13529 = vst [vmem:[#allocation235_spill] sm:$0xff] %v9358_v58  ;;  %v5880_v14 = vld [vmem:[%s13292_s0 + $0x360] sm:$0xff] }
 0x2c9   :  { %v1873_v58 = vmul.f32 %v5880_v14, %v622_v7  ;;  %v2342_v25 = vsel %vm1014_vm0, %v1874_v4, 0.0  ;;  %v626_v4 = vld [vmem:[%s13294_s2 + $0x380] sm:$0xff] }
 0x2ca   :  { %2331 = vadd.xlane.f32.xlu1 %v2330_v5  ;;  %2328 = vadd.xlane.f32.xlu0 %v2327_v39  ;;  %v625_v5 = vld [vmem:[%s13294_s2 + $0x378] sm:$0xff] }
 0x2cb   :  { %v9370_v59 = vpop.xlane.xlu1 %2121  ;;  %v9376_v33 = vpop.xlane.xlu0 %2118  ;;  %v1876_v51 = vmul.f32 %v5881_v17, %v625_v5  ;;  %v2339_v7 = vsel %vm1014_vm0, %v1873_v58, 0.0  ;;  %v5883_v58 = vld [vmem:[%s13292_s0 + $0x388] sm:$0xff] }
 0x2cc   :  { %13530 = vst [vmem:[#allocation236_spill] sm:$0xff] %v9370_v59  ;;  %13531 = vst [vmem:[#allocation237_spill] sm:$0xff] %v9376_v33  ;;  %v5882_v59 = vld [vmem:[%s13292_s0 + $0x370] sm:$0xff] }
 0x2cd   :  { %v1875_v33 = vmul.f32 %v5882_v59, %v624_v44  ;;  %v2348_v5 = vsel %vm1014_vm0, %v1876_v51, 0.0  ;;  %v628_v51 = vld [vmem:[%s13294_s2 + $0x390] sm:$0xff] }
 0x2ce   :  { %2337 = vadd.xlane.f32.xlu1 %v2336_v47  ;;  %2334 = vadd.xlane.f32.xlu0 %v2333_v23  ;;  %v627_v47 = vld [vmem:[%s13294_s2 + $0x388] sm:$0xff] }
 0x2cf   :  { %v9388_v39 = vpop.xlane.xlu1 %2127  ;;  %v9394_v14 = vpop.xlane.xlu0 %2124  ;;  %v1878_v17 = vmul.f32 %v5883_v58, %v627_v47  ;;  %v2345_v44 = vsel %vm1014_vm0, %v1875_v33, 0.0  ;;  %v5885_v33 = vld [vmem:[%s13292_s0 + $0x398] sm:$0xff] }
 0x2d0   :  { %13532 = vst [vmem:[#allocation238_spill] sm:$0xff] %v9388_v39  ;;  %13533 = vst [vmem:[#allocation239_spill] sm:$0xff] %v9394_v14  ;;  %v5884_v39 = vld [vmem:[%s13292_s0 + $0x380] sm:$0xff] }
 0x2d1   :  { %v1877_v14 = vmul.f32 %v5884_v39, %v626_v4  ;;  %v2354_v47 = vsel %vm1014_vm0, %v1878_v17, 0.0  ;;  %v630_v17 = vld [vmem:[%s13294_s2 + $0x3a0] sm:$0xff] }
 0x2d2   :  { %2343 = vadd.xlane.f32.xlu1 %v2342_v25  ;;  %2340 = vadd.xlane.f32.xlu0 %v2339_v7  ;;  %v629_v25 = vld [vmem:[%s13294_s2 + $0x398] sm:$0xff] }
 0x2d3   :  { %v9406_v23 = vpop.xlane.xlu1 %2133  ;;  %v9412_v59 = vpop.xlane.xlu0 %2130  ;;  %v1880_v58 = vmul.f32 %v5885_v33, %v629_v25  ;;  %v2351_v4 = vsel %vm1014_vm0, %v1877_v14, 0.0  ;;  %v5887_v14 = vld [vmem:[%s13292_s0 + $0x3a8] sm:$0xff] }
 0x2d4   :  { %13534 = vst [vmem:[#allocation240_spill] sm:$0xff] %v9406_v23  ;;  %13535 = vst [vmem:[#allocation241_spill] sm:$0xff] %v9412_v59  ;;  %v5886_v23 = vld [vmem:[%s13292_s0 + $0x390] sm:$0xff] }
 0x2d5   :  { %v1879_v59 = vmul.f32 %v5886_v23, %v628_v51  ;;  %v2360_v25 = vsel %vm1014_vm0, %v1880_v58, 0.0  ;;  %v632_v58 = vld [vmem:[%s13294_s2 + $0x3b0] sm:$0xff] }
 0x2d6   :  { %2349 = vadd.xlane.f32.xlu1 %v2348_v5  ;;  %2346 = vadd.xlane.f32.xlu0 %v2345_v44  ;;  %v631_v5 = vld [vmem:[%s13294_s2 + $0x3a8] sm:$0xff] }
 0x2d7   :  { %v9424_v7 = vpop.xlane.xlu1 %2139  ;;  %v9430_v39 = vpop.xlane.xlu0 %2136  ;;  %v1882_v33 = vmul.f32 %v5887_v14, %v631_v5  ;;  %v2357_v51 = vsel %vm1014_vm0, %v1879_v59, 0.0  ;;  %v5889_v59 = vld [vmem:[%s13292_s0 + $0x3b8] sm:$0xff] }
 0x2d8   :  { %13536 = vst [vmem:[#allocation242_spill] sm:$0xff] %v9424_v7  ;;  %13537 = vst [vmem:[#allocation243_spill] sm:$0xff] %v9430_v39  ;;  %v5888_v7 = vld [vmem:[%s13292_s0 + $0x3a0] sm:$0xff] }
 0x2d9   :  { %v1881_v39 = vmul.f32 %v5888_v7, %v630_v17  ;;  %v2366_v5 = vsel %vm1014_vm0, %v1882_v33, 0.0  ;;  %v634_v33 = vld [vmem:[%s13294_s2 + $0x3c0] sm:$0xff] }
 0x2da   :  { %2355 = vadd.xlane.f32.xlu1 %v2354_v47  ;;  %2352 = vadd.xlane.f32.xlu0 %v2351_v4  ;;  %v633_v47 = vld [vmem:[%s13294_s2 + $0x3b8] sm:$0xff] }
 0x2db   :  { %v9442_v44 = vpop.xlane.xlu1 %2145  ;;  %v9448_v23 = vpop.xlane.xlu0 %2142  ;;  %v1884_v14 = vmul.f32 %v5889_v59, %v633_v47  ;;  %v2363_v17 = vsel %vm1014_vm0, %v1881_v39, 0.0  ;;  %v5891_v39 = vld [vmem:[%s13292_s0 + $0x3c8] sm:$0xff] }
 0x2dc   :  { %13538 = vst [vmem:[#allocation244_spill] sm:$0xff] %v9442_v44  ;;  %13539 = vst [vmem:[#allocation245_spill] sm:$0xff] %v9448_v23  ;;  %v5890_v44 = vld [vmem:[%s13292_s0 + $0x3b0] sm:$0xff] }
 0x2dd   :  { %v1883_v23 = vmul.f32 %v5890_v44, %v632_v58  ;;  %v2372_v47 = vsel %vm1014_vm0, %v1884_v14, 0.0  ;;  %v636_v14 = vld [vmem:[%s13294_s2 + $0x3d0] sm:$0xff] }
 0x2de   :  { %2361 = vadd.xlane.f32.xlu1 %v2360_v25  ;;  %2358 = vadd.xlane.f32.xlu0 %v2357_v51  ;;  %v635_v25 = vld [vmem:[%s13294_s2 + $0x3c8] sm:$0xff] }
 0x2df   :  { %v9460_v4 = vpop.xlane.xlu1 %2151  ;;  %v9466_v7 = vpop.xlane.xlu0 %2148  ;;  %v1886_v59 = vmul.f32 %v5891_v39, %v635_v25  ;;  %v2369_v58 = vsel %vm1014_vm0, %v1883_v23, 0.0  ;;  %v5893_v23 = vld [vmem:[%s13292_s0 + $0x3d8] sm:$0xff] }
 0x2e0   :  { %13540 = vst [vmem:[#allocation246_spill] sm:$0xff] %v9460_v4  ;;  %13541 = vst [vmem:[#allocation247_spill] sm:$0xff] %v9466_v7  ;;  %v5892_v4 = vld [vmem:[%s13292_s0 + $0x3c0] sm:$0xff] }
 0x2e1   :  { %v1885_v7 = vmul.f32 %v5892_v4, %v634_v33  ;;  %v2378_v25 = vsel %vm1014_vm0, %v1886_v59, 0.0  ;;  %v638_v59 = vld [vmem:[%s13294_s2 + $0x3e0] sm:$0xff] }
 0x2e2   :  { %2367 = vadd.xlane.f32.xlu1 %v2366_v5  ;;  %2364 = vadd.xlane.f32.xlu0 %v2363_v17  ;;  %v637_v5 = vld [vmem:[%s13294_s2 + $0x3d8] sm:$0xff] }
 0x2e3   :  { %v9478_v51 = vpop.xlane.xlu1 %2157  ;;  %v9484_v44 = vpop.xlane.xlu0 %2154  ;;  %v1888_v39 = vmul.f32 %v5893_v23, %v637_v5  ;;  %v2375_v33 = vsel %vm1014_vm0, %v1885_v7, 0.0  ;;  %v5895_v7 = vld [vmem:[%s13292_s0 + $0x3e8] sm:$0xff] }
 0x2e4   :  { %13542 = vst [vmem:[#allocation248_spill] sm:$0xff] %v9478_v51  ;;  %13543 = vst [vmem:[#allocation249_spill] sm:$0xff] %v9484_v44  ;;  %v5894_v51 = vld [vmem:[%s13292_s0 + $0x3d0] sm:$0xff] }
 0x2e5   :  { %v1887_v44 = vmul.f32 %v5894_v51, %v636_v14  ;;  %v2384_v5 = vsel %vm1014_vm0, %v1888_v39, 0.0  ;;  %v640_v39 = vld [vmem:[%s13294_s2 + $0x3f0] sm:$0xff] }
 0x2e6   :  { %2373 = vadd.xlane.f32.xlu1 %v2372_v47  ;;  %2370 = vadd.xlane.f32.xlu0 %v2369_v58  ;;  %v639_v47 = vld [vmem:[%s13294_s2 + $0x3e8] sm:$0xff] }
 0x2e7   :  { %v9496_v17 = vpop.xlane.xlu1 %2163  ;;  %v9502_v4 = vpop.xlane.xlu0 %2160  ;;  %v1890_v23 = vmul.f32 %v5895_v7, %v639_v47  ;;  %v2381_v14 = vsel %vm1014_vm0, %v1887_v44, 0.0  ;;  %v5897_v44 = vld [vmem:[%s13292_s0 + $0x3f8] sm:$0xff] }
 0x2e8   :  { %13544 = vst [vmem:[#allocation250_spill] sm:$0xff] %v9496_v17  ;;  %13545 = vst [vmem:[#allocation251_spill] sm:$0xff] %v9502_v4  ;;  %v5896_v17 = vld [vmem:[%s13292_s0 + $0x3e0] sm:$0xff] }
 0x2e9   :  { %v1889_v4 = vmul.f32 %v5896_v17, %v638_v59  ;;  %v2390_v47 = vsel %vm1014_vm0, %v1890_v23, 0.0  ;;  %v642_v23 = vld [vmem:[%s13294_s2 + $0x400] sm:$0xff] }
 0x2ea   :  { %2379 = vadd.xlane.f32.xlu1 %v2378_v25  ;;  %2376 = vadd.xlane.f32.xlu0 %v2375_v33  ;;  %v641_v25 = vld [vmem:[%s13294_s2 + $0x3f8] sm:$0xff] }
 0x2eb   :  { %v9514_v58 = vpop.xlane.xlu1 %2169  ;;  %v9520_v51 = vpop.xlane.xlu0 %2166  ;;  %v1892_v7 = vmul.f32 %v5897_v44, %v641_v25  ;;  %v2387_v59 = vsel %vm1014_vm0, %v1889_v4, 0.0  ;;  %v5899_v4 = vld [vmem:[%s13292_s0 + $0x408] sm:$0xff] }
 0x2ec   :  { %13546 = vst [vmem:[#allocation252_spill] sm:$0xff] %v9514_v58  ;;  %13547 = vst [vmem:[#allocation253_spill] sm:$0xff] %v9520_v51  ;;  %v5898_v58 = vld [vmem:[%s13292_s0 + $0x3f0] sm:$0xff] }
 0x2ed   :  { %v1891_v51 = vmul.f32 %v5898_v58, %v640_v39  ;;  %v2396_v25 = vsel %vm1014_vm0, %v1892_v7, 0.0  ;;  %v644_v7 = vld [vmem:[%s13294_s2 + $0x410] sm:$0xff] }
 0x2ee   :  { %2385 = vadd.xlane.f32.xlu1 %v2384_v5  ;;  %2382 = vadd.xlane.f32.xlu0 %v2381_v14  ;;  %v643_v5 = vld [vmem:[%s13294_s2 + $0x408] sm:$0xff] }
 0x2ef   :  { %v9532_v33 = vpop.xlane.xlu1 %2175  ;;  %v9538_v17 = vpop.xlane.xlu0 %2172  ;;  %v1894_v44 = vmul.f32 %v5899_v4, %v643_v5  ;;  %v2393_v39 = vsel %vm1014_vm0, %v1891_v51, 0.0  ;;  %v5901_v51 = vld [vmem:[%s13292_s0 + $0x418] sm:$0xff] }
 0x2f0   :  { %13548 = vst [vmem:[#allocation254_spill] sm:$0xff] %v9532_v33  ;;  %13549 = vst [vmem:[#allocation255_spill] sm:$0xff] %v9538_v17  ;;  %v5900_v33 = vld [vmem:[%s13292_s0 + $0x400] sm:$0xff] }
 0x2f1   :  { %v1893_v17 = vmul.f32 %v5900_v33, %v642_v23  ;;  %v2402_v5 = vsel %vm1014_vm0, %v1894_v44, 0.0  ;;  %v646_v44 = vld [vmem:[%s13294_s2 + $0x420] sm:$0xff] }
 0x2f2   :  { %2391 = vadd.xlane.f32.xlu1 %v2390_v47  ;;  %2388 = vadd.xlane.f32.xlu0 %v2387_v59  ;;  %v645_v47 = vld [vmem:[%s13294_s2 + $0x418] sm:$0xff] }
 0x2f3   :  { %v9550_v14 = vpop.xlane.xlu1 %2181  ;;  %v9556_v58 = vpop.xlane.xlu0 %2178  ;;  %v1896_v4 = vmul.f32 %v5901_v51, %v645_v47  ;;  %v2399_v23 = vsel %vm1014_vm0, %v1893_v17, 0.0  ;;  %v5903_v17 = vld [vmem:[%s13292_s0 + $0x428] sm:$0xff] }
 0x2f4   :  { %13550 = vst [vmem:[#allocation256_spill] sm:$0xff] %v9550_v14  ;;  %13551 = vst [vmem:[#allocation257_spill] sm:$0xff] %v9556_v58  ;;  %v5902_v14 = vld [vmem:[%s13292_s0 + $0x410] sm:$0xff] }
 0x2f5   :  { %v1895_v58 = vmul.f32 %v5902_v14, %v644_v7  ;;  %v2408_v47 = vsel %vm1014_vm0, %v1896_v4, 0.0  ;;  %v648_v4 = vld [vmem:[%s13294_s2 + $0x430] sm:$0xff] }
 0x2f6   :  { %2397 = vadd.xlane.f32.xlu1 %v2396_v25  ;;  %2394 = vadd.xlane.f32.xlu0 %v2393_v39  ;;  %v647_v25 = vld [vmem:[%s13294_s2 + $0x428] sm:$0xff] }
 0x2f7   :  { %v9568_v59 = vpop.xlane.xlu1 %2187  ;;  %v9574_v33 = vpop.xlane.xlu0 %2184  ;;  %v1898_v51 = vmul.f32 %v5903_v17, %v647_v25  ;;  %v2405_v7 = vsel %vm1014_vm0, %v1895_v58, 0.0  ;;  %v5905_v58 = vld [vmem:[%s13292_s0 + $0x438] sm:$0xff] }
 0x2f8   :  { %13552 = vst [vmem:[#allocation258_spill] sm:$0xff] %v9568_v59  ;;  %13553 = vst [vmem:[#allocation259_spill] sm:$0xff] %v9574_v33  ;;  %v5904_v59 = vld [vmem:[%s13292_s0 + $0x420] sm:$0xff] }
 0x2f9   :  { %v1897_v33 = vmul.f32 %v5904_v59, %v646_v44  ;;  %v2414_v25 = vsel %vm1014_vm0, %v1898_v51, 0.0  ;;  %v650_v51 = vld [vmem:[%s13294_s2 + $0x440] sm:$0xff] }
 0x2fa   :  { %2403 = vadd.xlane.f32.xlu1 %v2402_v5  ;;  %2400 = vadd.xlane.f32.xlu0 %v2399_v23  ;;  %v649_v5 = vld [vmem:[%s13294_s2 + $0x438] sm:$0xff] }
 0x2fb   :  { %v9586_v39 = vpop.xlane.xlu1 %2193  ;;  %v9592_v14 = vpop.xlane.xlu0 %2190  ;;  %v1900_v17 = vmul.f32 %v5905_v58, %v649_v5  ;;  %v2411_v44 = vsel %vm1014_vm0, %v1897_v33, 0.0  ;;  %v5907_v33 = vld [vmem:[%s13292_s0 + $0x448] sm:$0xff] }
 0x2fc   :  { %13554 = vst [vmem:[#allocation260_spill] sm:$0xff] %v9586_v39  ;;  %13555 = vst [vmem:[#allocation261_spill] sm:$0xff] %v9592_v14  ;;  %v5906_v39 = vld [vmem:[%s13292_s0 + $0x430] sm:$0xff] }
 0x2fd   :  { %v1899_v14 = vmul.f32 %v5906_v39, %v648_v4  ;;  %v2420_v5 = vsel %vm1014_vm0, %v1900_v17, 0.0  ;;  %v652_v17 = vld [vmem:[%s13294_s2 + $0x450] sm:$0xff] }
 0x2fe   :  { %2409 = vadd.xlane.f32.xlu1 %v2408_v47  ;;  %2406 = vadd.xlane.f32.xlu0 %v2405_v7  ;;  %v651_v47 = vld [vmem:[%s13294_s2 + $0x448] sm:$0xff] }
 0x2ff   :  { %v9604_v23 = vpop.xlane.xlu1 %2199  ;;  %v9610_v59 = vpop.xlane.xlu0 %2196  ;;  %v1902_v58 = vmul.f32 %v5907_v33, %v651_v47  ;;  %v2417_v4 = vsel %vm1014_vm0, %v1899_v14, 0.0  ;;  %v5909_v14 = vld [vmem:[%s13292_s0 + $0x458] sm:$0xff] }
 0x300   :  { %13556 = vst [vmem:[#allocation262_spill] sm:$0xff] %v9604_v23  ;;  %13557 = vst [vmem:[#allocation263_spill] sm:$0xff] %v9610_v59  ;;  %v5908_v23 = vld [vmem:[%s13292_s0 + $0x440] sm:$0xff] }
 0x301   :  { %v1901_v59 = vmul.f32 %v5908_v23, %v650_v51  ;;  %v2426_v47 = vsel %vm1014_vm0, %v1902_v58, 0.0  ;;  %v654_v58 = vld [vmem:[%s13294_s2 + $0x460] sm:$0xff] }
 0x302   :  { %2415 = vadd.xlane.f32.xlu1 %v2414_v25  ;;  %2412 = vadd.xlane.f32.xlu0 %v2411_v44  ;;  %v653_v25 = vld [vmem:[%s13294_s2 + $0x458] sm:$0xff] }
 0x303   :  { %v9622_v7 = vpop.xlane.xlu1 %2205  ;;  %v9628_v39 = vpop.xlane.xlu0 %2202  ;;  %v1904_v33 = vmul.f32 %v5909_v14, %v653_v25  ;;  %v2423_v51 = vsel %vm1014_vm0, %v1901_v59, 0.0  ;;  %v5911_v59 = vld [vmem:[%s13292_s0 + $0x468] sm:$0xff] }
 0x304   :  { %13558 = vst [vmem:[#allocation264_spill] sm:$0xff] %v9622_v7  ;;  %13559 = vst [vmem:[#allocation265_spill] sm:$0xff] %v9628_v39  ;;  %v5910_v7 = vld [vmem:[%s13292_s0 + $0x450] sm:$0xff] }
 0x305   :  { %v1903_v39 = vmul.f32 %v5910_v7, %v652_v17  ;;  %v2432_v25 = vsel %vm1014_vm0, %v1904_v33, 0.0  ;;  %v656_v33 = vld [vmem:[%s13294_s2 + $0x470] sm:$0xff] }
 0x306   :  { %2421 = vadd.xlane.f32.xlu1 %v2420_v5  ;;  %2418 = vadd.xlane.f32.xlu0 %v2417_v4  ;;  %v655_v5 = vld [vmem:[%s13294_s2 + $0x468] sm:$0xff] }
 0x307   :  { %v9640_v44 = vpop.xlane.xlu1 %2211  ;;  %v9646_v23 = vpop.xlane.xlu0 %2208  ;;  %v1906_v14 = vmul.f32 %v5911_v59, %v655_v5  ;;  %v2429_v17 = vsel %vm1014_vm0, %v1903_v39, 0.0  ;;  %v5913_v39 = vld [vmem:[%s13292_s0 + $0x478] sm:$0xff] }
 0x308   :  { %13560 = vst [vmem:[#allocation266_spill] sm:$0xff] %v9640_v44  ;;  %13561 = vst [vmem:[#allocation267_spill] sm:$0xff] %v9646_v23  ;;  %v5912_v44 = vld [vmem:[%s13292_s0 + $0x460] sm:$0xff] }
 0x309   :  { %v1905_v23 = vmul.f32 %v5912_v44, %v654_v58  ;;  %v2438_v5 = vsel %vm1014_vm0, %v1906_v14, 0.0  ;;  %v658_v14 = vld [vmem:[%s13294_s2 + $0x480] sm:$0xff] }
 0x30a   :  { %2427 = vadd.xlane.f32.xlu1 %v2426_v47  ;;  %2424 = vadd.xlane.f32.xlu0 %v2423_v51  ;;  %v657_v47 = vld [vmem:[%s13294_s2 + $0x478] sm:$0xff] }
 0x30b   :  { %v9658_v4 = vpop.xlane.xlu1 %2217  ;;  %v9664_v7 = vpop.xlane.xlu0 %2214  ;;  %v1908_v59 = vmul.f32 %v5913_v39, %v657_v47  ;;  %v2435_v58 = vsel %vm1014_vm0, %v1905_v23, 0.0  ;;  %v5915_v23 = vld [vmem:[%s13292_s0 + $0x488] sm:$0xff] }
 0x30c   :  { %13562 = vst [vmem:[#allocation268_spill] sm:$0xff] %v9658_v4  ;;  %13563 = vst [vmem:[#allocation269_spill] sm:$0xff] %v9664_v7  ;;  %v5914_v4 = vld [vmem:[%s13292_s0 + $0x470] sm:$0xff] }
 0x30d   :  { %v1907_v7 = vmul.f32 %v5914_v4, %v656_v33  ;;  %v2444_v47 = vsel %vm1014_vm0, %v1908_v59, 0.0  ;;  %v660_v59 = vld [vmem:[%s13294_s2 + $0x490] sm:$0xff] }
 0x30e   :  { %2433 = vadd.xlane.f32.xlu1 %v2432_v25  ;;  %2430 = vadd.xlane.f32.xlu0 %v2429_v17  ;;  %v659_v25 = vld [vmem:[%s13294_s2 + $0x488] sm:$0xff] }
 0x30f   :  { %v9676_v51 = vpop.xlane.xlu1 %2223  ;;  %v9682_v44 = vpop.xlane.xlu0 %2220  ;;  %v1910_v39 = vmul.f32 %v5915_v23, %v659_v25  ;;  %v2441_v33 = vsel %vm1014_vm0, %v1907_v7, 0.0  ;;  %v5917_v7 = vld [vmem:[%s13292_s0 + $0x498] sm:$0xff] }
 0x310   :  { %13564 = vst [vmem:[#allocation270_spill] sm:$0xff] %v9676_v51  ;;  %13565 = vst [vmem:[#allocation271_spill] sm:$0xff] %v9682_v44  ;;  %v5916_v51 = vld [vmem:[%s13292_s0 + $0x480] sm:$0xff] }
 0x311   :  { %v1909_v44 = vmul.f32 %v5916_v51, %v658_v14  ;;  %v2450_v25 = vsel %vm1014_vm0, %v1910_v39, 0.0  ;;  %v662_v39 = vld [vmem:[%s13294_s2 + $0x4a0] sm:$0xff] }
 0x312   :  { %2439 = vadd.xlane.f32.xlu1 %v2438_v5  ;;  %2436 = vadd.xlane.f32.xlu0 %v2435_v58  ;;  %v661_v5 = vld [vmem:[%s13294_s2 + $0x498] sm:$0xff] }
 0x313   :  { %v9694_v17 = vpop.xlane.xlu1 %2229  ;;  %v9700_v4 = vpop.xlane.xlu0 %2226  ;;  %v1912_v23 = vmul.f32 %v5917_v7, %v661_v5  ;;  %v2447_v14 = vsel %vm1014_vm0, %v1909_v44, 0.0  ;;  %v5919_v44 = vld [vmem:[%s13292_s0 + $0x4a8] sm:$0xff] }
 0x314   :  { %13566 = vst [vmem:[#allocation272_spill] sm:$0xff] %v9694_v17  ;;  %13567 = vst [vmem:[#allocation273_spill] sm:$0xff] %v9700_v4  ;;  %v5918_v17 = vld [vmem:[%s13292_s0 + $0x490] sm:$0xff] }
 0x315   :  { %v1911_v4 = vmul.f32 %v5918_v17, %v660_v59  ;;  %v2456_v5 = vsel %vm1014_vm0, %v1912_v23, 0.0  ;;  %v664_v23 = vld [vmem:[%s13294_s2 + $0x4b0] sm:$0xff] }
 0x316   :  { %2445 = vadd.xlane.f32.xlu1 %v2444_v47  ;;  %2442 = vadd.xlane.f32.xlu0 %v2441_v33  ;;  %v663_v47 = vld [vmem:[%s13294_s2 + $0x4a8] sm:$0xff] }
 0x317   :  { %v9712_v58 = vpop.xlane.xlu1 %2235  ;;  %v9718_v51 = vpop.xlane.xlu0 %2232  ;;  %v1914_v7 = vmul.f32 %v5919_v44, %v663_v47  ;;  %v2453_v59 = vsel %vm1014_vm0, %v1911_v4, 0.0  ;;  %v5921_v4 = vld [vmem:[%s13292_s0 + $0x4b8] sm:$0xff] }
 0x318   :  { %13568 = vst [vmem:[#allocation274_spill] sm:$0xff] %v9712_v58  ;;  %13569 = vst [vmem:[#allocation275_spill] sm:$0xff] %v9718_v51  ;;  %v5920_v58 = vld [vmem:[%s13292_s0 + $0x4a0] sm:$0xff] }
 0x319   :  { %v1913_v51 = vmul.f32 %v5920_v58, %v662_v39  ;;  %v2462_v47 = vsel %vm1014_vm0, %v1914_v7, 0.0  ;;  %v666_v7 = vld [vmem:[%s13294_s2 + $0x4c0] sm:$0xff] }
 0x31a   :  { %2451 = vadd.xlane.f32.xlu1 %v2450_v25  ;;  %2448 = vadd.xlane.f32.xlu0 %v2447_v14  ;;  %v665_v25 = vld [vmem:[%s13294_s2 + $0x4b8] sm:$0xff] }
 0x31b   :  { %v9730_v33 = vpop.xlane.xlu1 %2241  ;;  %v9736_v17 = vpop.xlane.xlu0 %2238  ;;  %v1916_v44 = vmul.f32 %v5921_v4, %v665_v25  ;;  %v2459_v39 = vsel %vm1014_vm0, %v1913_v51, 0.0  ;;  %v5923_v51 = vld [vmem:[%s13292_s0 + $0x4c8] sm:$0xff] }
 0x31c   :  { %13570 = vst [vmem:[#allocation276_spill] sm:$0xff] %v9730_v33  ;;  %13571 = vst [vmem:[#allocation277_spill] sm:$0xff] %v9736_v17  ;;  %v5922_v33 = vld [vmem:[%s13292_s0 + $0x4b0] sm:$0xff] }
 0x31d   :  { %v1915_v17 = vmul.f32 %v5922_v33, %v664_v23  ;;  %v2468_v25 = vsel %vm1014_vm0, %v1916_v44, 0.0  ;;  %v668_v44 = vld [vmem:[%s13294_s2 + $0x4d0] sm:$0xff] }
 0x31e   :  { %2457 = vadd.xlane.f32.xlu1 %v2456_v5  ;;  %2454 = vadd.xlane.f32.xlu0 %v2453_v59  ;;  %v667_v5 = vld [vmem:[%s13294_s2 + $0x4c8] sm:$0xff] }
 0x31f   :  { %v9748_v14 = vpop.xlane.xlu1 %2247  ;;  %v9754_v58 = vpop.xlane.xlu0 %2244  ;;  %v1918_v4 = vmul.f32 %v5923_v51, %v667_v5  ;;  %v2465_v23 = vsel %vm1014_vm0, %v1915_v17, 0.0  ;;  %v5925_v17 = vld [vmem:[%s13292_s0 + $0x4d8] sm:$0xff] }
 0x320   :  { %13572 = vst [vmem:[#allocation278_spill] sm:$0xff] %v9748_v14  ;;  %13573 = vst [vmem:[#allocation279_spill] sm:$0xff] %v9754_v58  ;;  %v5924_v14 = vld [vmem:[%s13292_s0 + $0x4c0] sm:$0xff] }
 0x321   :  { %v1917_v58 = vmul.f32 %v5924_v14, %v666_v7  ;;  %v2474_v5 = vsel %vm1014_vm0, %v1918_v4, 0.0  ;;  %v670_v4 = vld [vmem:[%s13294_s2 + $0x4e0] sm:$0xff] }
 0x322   :  { %2463 = vadd.xlane.f32.xlu1 %v2462_v47  ;;  %2460 = vadd.xlane.f32.xlu0 %v2459_v39  ;;  %v669_v47 = vld [vmem:[%s13294_s2 + $0x4d8] sm:$0xff] }
 0x323   :  { %v9766_v59 = vpop.xlane.xlu1 %2253  ;;  %v9772_v33 = vpop.xlane.xlu0 %2250  ;;  %v1920_v51 = vmul.f32 %v5925_v17, %v669_v47  ;;  %v2471_v7 = vsel %vm1014_vm0, %v1917_v58, 0.0  ;;  %v5927_v58 = vld [vmem:[%s13292_s0 + $0x4e8] sm:$0xff] }
 0x324   :  { %13574 = vst [vmem:[#allocation280_spill] sm:$0xff] %v9766_v59  ;;  %13575 = vst [vmem:[#allocation281_spill] sm:$0xff] %v9772_v33  ;;  %v5926_v59 = vld [vmem:[%s13292_s0 + $0x4d0] sm:$0xff] }
 0x325   :  { %v1919_v33 = vmul.f32 %v5926_v59, %v668_v44  ;;  %v2480_v47 = vsel %vm1014_vm0, %v1920_v51, 0.0  ;;  %v672_v51 = vld [vmem:[%s13294_s2 + $0x4f0] sm:$0xff] }
 0x326   :  { %2469 = vadd.xlane.f32.xlu1 %v2468_v25  ;;  %2466 = vadd.xlane.f32.xlu0 %v2465_v23  ;;  %v671_v25 = vld [vmem:[%s13294_s2 + $0x4e8] sm:$0xff] }
 0x327   :  { %v9784_v39 = vpop.xlane.xlu1 %2259  ;;  %v9790_v14 = vpop.xlane.xlu0 %2256  ;;  %v1922_v17 = vmul.f32 %v5927_v58, %v671_v25  ;;  %v2477_v44 = vsel %vm1014_vm0, %v1919_v33, 0.0  ;;  %v5929_v33 = vld [vmem:[%s13292_s0 + $0x4f8] sm:$0xff] }
 0x328   :  { %13576 = vst [vmem:[#allocation282_spill] sm:$0xff] %v9784_v39  ;;  %13577 = vst [vmem:[#allocation283_spill] sm:$0xff] %v9790_v14  ;;  %v5928_v39 = vld [vmem:[%s13292_s0 + $0x4e0] sm:$0xff] }
 0x329   :  { %v1921_v14 = vmul.f32 %v5928_v39, %v670_v4  ;;  %v2486_v25 = vsel %vm1014_vm0, %v1922_v17, 0.0  ;;  %v674_v17 = vld [vmem:[%s13294_s2 + $0x500] sm:$0xff] }
 0x32a   :  { %2475 = vadd.xlane.f32.xlu1 %v2474_v5  ;;  %2472 = vadd.xlane.f32.xlu0 %v2471_v7  ;;  %v673_v5 = vld [vmem:[%s13294_s2 + $0x4f8] sm:$0xff] }
 0x32b   :  { %v9802_v23 = vpop.xlane.xlu1 %2265  ;;  %v9808_v59 = vpop.xlane.xlu0 %2262  ;;  %v1924_v58 = vmul.f32 %v5929_v33, %v673_v5  ;;  %v2483_v4 = vsel %vm1014_vm0, %v1921_v14, 0.0  ;;  %v5931_v14 = vld [vmem:[%s13292_s0 + $0x508] sm:$0xff] }
 0x32c   :  { %13578 = vst [vmem:[#allocation284_spill] sm:$0xff] %v9802_v23  ;;  %13579 = vst [vmem:[#allocation285_spill] sm:$0xff] %v9808_v59  ;;  %v5930_v23 = vld [vmem:[%s13292_s0 + $0x4f0] sm:$0xff] }
 0x32d   :  { %v1923_v59 = vmul.f32 %v5930_v23, %v672_v51  ;;  %v2492_v5 = vsel %vm1014_vm0, %v1924_v58, 0.0  ;;  %v676_v58 = vld [vmem:[%s13294_s2 + $0x510] sm:$0xff] }
 0x32e   :  { %2481 = vadd.xlane.f32.xlu1 %v2480_v47  ;;  %2478 = vadd.xlane.f32.xlu0 %v2477_v44  ;;  %v675_v47 = vld [vmem:[%s13294_s2 + $0x508] sm:$0xff] }
 0x32f   :  { %v9820_v7 = vpop.xlane.xlu1 %2271  ;;  %v9826_v39 = vpop.xlane.xlu0 %2268  ;;  %v1926_v33 = vmul.f32 %v5931_v14, %v675_v47  ;;  %v2489_v51 = vsel %vm1014_vm0, %v1923_v59, 0.0  ;;  %v5933_v59 = vld [vmem:[%s13292_s0 + $0x518] sm:$0xff] }
 0x330   :  { %13580 = vst [vmem:[#allocation286_spill] sm:$0xff] %v9820_v7  ;;  %13581 = vst [vmem:[#allocation287_spill] sm:$0xff] %v9826_v39  ;;  %v5932_v7 = vld [vmem:[%s13292_s0 + $0x500] sm:$0xff] }
 0x331   :  { %v1925_v39 = vmul.f32 %v5932_v7, %v674_v17  ;;  %v2498_v47 = vsel %vm1014_vm0, %v1926_v33, 0.0  ;;  %v678_v33 = vld [vmem:[%s13294_s2 + $0x520] sm:$0xff] }
 0x332   :  { %2487 = vadd.xlane.f32.xlu1 %v2486_v25  ;;  %2484 = vadd.xlane.f32.xlu0 %v2483_v4  ;;  %v677_v25 = vld [vmem:[%s13294_s2 + $0x518] sm:$0xff] }
 0x333   :  { %v9838_v44 = vpop.xlane.xlu1 %2277  ;;  %v9844_v23 = vpop.xlane.xlu0 %2274  ;;  %v1928_v14 = vmul.f32 %v5933_v59, %v677_v25  ;;  %v2495_v17 = vsel %vm1014_vm0, %v1925_v39, 0.0  ;;  %v5935_v39 = vld [vmem:[%s13292_s0 + $0x528] sm:$0xff] }
 0x334   :  { %13582 = vst [vmem:[#allocation288_spill] sm:$0xff] %v9838_v44  ;;  %13583 = vst [vmem:[#allocation289_spill] sm:$0xff] %v9844_v23  ;;  %v5934_v44 = vld [vmem:[%s13292_s0 + $0x510] sm:$0xff] }
 0x335   :  { %v1927_v23 = vmul.f32 %v5934_v44, %v676_v58  ;;  %v2504_v25 = vsel %vm1014_vm0, %v1928_v14, 0.0  ;;  %v680_v14 = vld [vmem:[%s13294_s2 + $0x530] sm:$0xff] }
 0x336   :  { %2493 = vadd.xlane.f32.xlu1 %v2492_v5  ;;  %2490 = vadd.xlane.f32.xlu0 %v2489_v51  ;;  %v679_v5 = vld [vmem:[%s13294_s2 + $0x528] sm:$0xff] }
 0x337   :  { %v9856_v4 = vpop.xlane.xlu1 %2283  ;;  %v9862_v7 = vpop.xlane.xlu0 %2280  ;;  %v1930_v59 = vmul.f32 %v5935_v39, %v679_v5  ;;  %v2501_v58 = vsel %vm1014_vm0, %v1927_v23, 0.0  ;;  %v5937_v23 = vld [vmem:[%s13292_s0 + $0x538] sm:$0xff] }
 0x338   :  { %13584 = vst [vmem:[#allocation290_spill] sm:$0xff] %v9856_v4  ;;  %13585 = vst [vmem:[#allocation291_spill] sm:$0xff] %v9862_v7  ;;  %v5936_v4 = vld [vmem:[%s13292_s0 + $0x520] sm:$0xff] }
 0x339   :  { %v1929_v7 = vmul.f32 %v5936_v4, %v678_v33  ;;  %v2510_v5 = vsel %vm1014_vm0, %v1930_v59, 0.0  ;;  %v682_v59 = vld [vmem:[%s13294_s2 + $0x540] sm:$0xff] }
 0x33a   :  { %2499 = vadd.xlane.f32.xlu1 %v2498_v47  ;;  %2496 = vadd.xlane.f32.xlu0 %v2495_v17  ;;  %v681_v47 = vld [vmem:[%s13294_s2 + $0x538] sm:$0xff] }
 0x33b   :  { %v9874_v51 = vpop.xlane.xlu1 %2289  ;;  %v9880_v44 = vpop.xlane.xlu0 %2286  ;;  %v1932_v39 = vmul.f32 %v5937_v23, %v681_v47  ;;  %v2507_v33 = vsel %vm1014_vm0, %v1929_v7, 0.0  ;;  %v5939_v7 = vld [vmem:[%s13292_s0 + $0x548] sm:$0xff] }
 0x33c   :  { %13586 = vst [vmem:[#allocation292_spill] sm:$0xff] %v9874_v51  ;;  %13587 = vst [vmem:[#allocation293_spill] sm:$0xff] %v9880_v44  ;;  %v5938_v51 = vld [vmem:[%s13292_s0 + $0x530] sm:$0xff] }
 0x33d   :  { %v1931_v44 = vmul.f32 %v5938_v51, %v680_v14  ;;  %v2516_v47 = vsel %vm1014_vm0, %v1932_v39, 0.0  ;;  %v684_v39 = vld [vmem:[%s13294_s2 + $0x550] sm:$0xff] }
 0x33e   :  { %2505 = vadd.xlane.f32.xlu1 %v2504_v25  ;;  %2502 = vadd.xlane.f32.xlu0 %v2501_v58  ;;  %v683_v25 = vld [vmem:[%s13294_s2 + $0x548] sm:$0xff] }
 0x33f   :  { %v9892_v17 = vpop.xlane.xlu1 %2295  ;;  %v9898_v4 = vpop.xlane.xlu0 %2292  ;;  %v1934_v23 = vmul.f32 %v5939_v7, %v683_v25  ;;  %v2513_v14 = vsel %vm1014_vm0, %v1931_v44, 0.0  ;;  %v5941_v44 = vld [vmem:[%s13292_s0 + $0x558] sm:$0xff] }
 0x340   :  { %13588 = vst [vmem:[#allocation294_spill] sm:$0xff] %v9892_v17  ;;  %13589 = vst [vmem:[#allocation295_spill] sm:$0xff] %v9898_v4  ;;  %v5940_v17 = vld [vmem:[%s13292_s0 + $0x540] sm:$0xff] }
 0x341   :  { %v1933_v4 = vmul.f32 %v5940_v17, %v682_v59  ;;  %v2522_v25 = vsel %vm1014_vm0, %v1934_v23, 0.0  ;;  %v686_v23 = vld [vmem:[%s13294_s2 + $0x560] sm:$0xff] }
 0x342   :  { %2511 = vadd.xlane.f32.xlu1 %v2510_v5  ;;  %2508 = vadd.xlane.f32.xlu0 %v2507_v33  ;;  %v685_v5 = vld [vmem:[%s13294_s2 + $0x558] sm:$0xff] }
 0x343   :  { %v9910_v58 = vpop.xlane.xlu1 %2301  ;;  %v9916_v51 = vpop.xlane.xlu0 %2298  ;;  %v1936_v7 = vmul.f32 %v5941_v44, %v685_v5  ;;  %v2519_v59 = vsel %vm1014_vm0, %v1933_v4, 0.0  ;;  %v5943_v4 = vld [vmem:[%s13292_s0 + $0x568] sm:$0xff] }
 0x344   :  { %13590 = vst [vmem:[#allocation296_spill] sm:$0xff] %v9910_v58  ;;  %13591 = vst [vmem:[#allocation297_spill] sm:$0xff] %v9916_v51  ;;  %v5942_v58 = vld [vmem:[%s13292_s0 + $0x550] sm:$0xff] }
 0x345   :  { %v1935_v51 = vmul.f32 %v5942_v58, %v684_v39  ;;  %v2528_v5 = vsel %vm1014_vm0, %v1936_v7, 0.0  ;;  %v688_v7 = vld [vmem:[%s13294_s2 + $0x570] sm:$0xff] }
 0x346   :  { %2517 = vadd.xlane.f32.xlu1 %v2516_v47  ;;  %2514 = vadd.xlane.f32.xlu0 %v2513_v14  ;;  %v687_v47 = vld [vmem:[%s13294_s2 + $0x568] sm:$0xff] }
 0x347   :  { %v9928_v33 = vpop.xlane.xlu1 %2307  ;;  %v9934_v17 = vpop.xlane.xlu0 %2304  ;;  %v1938_v44 = vmul.f32 %v5943_v4, %v687_v47  ;;  %v2525_v39 = vsel %vm1014_vm0, %v1935_v51, 0.0  ;;  %v5945_v51 = vld [vmem:[%s13292_s0 + $0x578] sm:$0xff] }
 0x348   :  { %13592 = vst [vmem:[#allocation298_spill] sm:$0xff] %v9928_v33  ;;  %13593 = vst [vmem:[#allocation299_spill] sm:$0xff] %v9934_v17  ;;  %v5944_v33 = vld [vmem:[%s13292_s0 + $0x560] sm:$0xff] }
 0x349   :  { %v1937_v17 = vmul.f32 %v5944_v33, %v686_v23  ;;  %v2534_v47 = vsel %vm1014_vm0, %v1938_v44, 0.0  ;;  %v690_v44 = vld [vmem:[%s13294_s2 + $0x580] sm:$0xff] }
 0x34a   :  { %2523 = vadd.xlane.f32.xlu1 %v2522_v25  ;;  %2520 = vadd.xlane.f32.xlu0 %v2519_v59  ;;  %v689_v25 = vld [vmem:[%s13294_s2 + $0x578] sm:$0xff] }
 0x34b   :  { %v9946_v14 = vpop.xlane.xlu1 %2313  ;;  %v9952_v58 = vpop.xlane.xlu0 %2310  ;;  %v1940_v4 = vmul.f32 %v5945_v51, %v689_v25  ;;  %v2531_v23 = vsel %vm1014_vm0, %v1937_v17, 0.0  ;;  %v5947_v17 = vld [vmem:[%s13292_s0 + $0x588] sm:$0xff] }
 0x34c   :  { %13594 = vst [vmem:[#allocation300_spill] sm:$0xff] %v9946_v14  ;;  %13595 = vst [vmem:[#allocation301_spill] sm:$0xff] %v9952_v58  ;;  %v5946_v14 = vld [vmem:[%s13292_s0 + $0x570] sm:$0xff] }
 0x34d   :  { %v1939_v58 = vmul.f32 %v5946_v14, %v688_v7  ;;  %v2540_v25 = vsel %vm1014_vm0, %v1940_v4, 0.0  ;;  %v692_v4 = vld [vmem:[%s13294_s2 + $0x590] sm:$0xff] }
 0x34e   :  { %2529 = vadd.xlane.f32.xlu1 %v2528_v5  ;;  %2526 = vadd.xlane.f32.xlu0 %v2525_v39  ;;  %v691_v5 = vld [vmem:[%s13294_s2 + $0x588] sm:$0xff] }
 0x34f   :  { %v9964_v59 = vpop.xlane.xlu1 %2319  ;;  %v9970_v33 = vpop.xlane.xlu0 %2316  ;;  %v1942_v51 = vmul.f32 %v5947_v17, %v691_v5  ;;  %v2537_v7 = vsel %vm1014_vm0, %v1939_v58, 0.0  ;;  %v5949_v58 = vld [vmem:[%s13292_s0 + $0x598] sm:$0xff] }
 0x350   :  { %13596 = vst [vmem:[#allocation302_spill] sm:$0xff] %v9964_v59  ;;  %13597 = vst [vmem:[#allocation303_spill] sm:$0xff] %v9970_v33  ;;  %v5948_v59 = vld [vmem:[%s13292_s0 + $0x580] sm:$0xff] }
 0x351   :  { %v1941_v33 = vmul.f32 %v5948_v59, %v690_v44  ;;  %v2546_v5 = vsel %vm1014_vm0, %v1942_v51, 0.0  ;;  %v694_v51 = vld [vmem:[%s13294_s2 + $0x5a0] sm:$0xff] }
 0x352   :  { %2535 = vadd.xlane.f32.xlu1 %v2534_v47  ;;  %2532 = vadd.xlane.f32.xlu0 %v2531_v23  ;;  %v693_v47 = vld [vmem:[%s13294_s2 + $0x598] sm:$0xff] }
 0x353   :  { %v9982_v39 = vpop.xlane.xlu1 %2325  ;;  %v9988_v14 = vpop.xlane.xlu0 %2322  ;;  %v1944_v17 = vmul.f32 %v5949_v58, %v693_v47  ;;  %v2543_v44 = vsel %vm1014_vm0, %v1941_v33, 0.0  ;;  %v5951_v33 = vld [vmem:[%s13292_s0 + $0x5a8] sm:$0xff] }
 0x354   :  { %13598 = vst [vmem:[#allocation304_spill] sm:$0xff] %v9982_v39  ;;  %13599 = vst [vmem:[#allocation305_spill] sm:$0xff] %v9988_v14  ;;  %v5950_v39 = vld [vmem:[%s13292_s0 + $0x590] sm:$0xff] }
 0x355   :  { %v1943_v14 = vmul.f32 %v5950_v39, %v692_v4  ;;  %v2552_v47 = vsel %vm1014_vm0, %v1944_v17, 0.0  ;;  %v696_v17 = vld [vmem:[%s13294_s2 + $0x5b0] sm:$0xff] }
 0x356   :  { %2541 = vadd.xlane.f32.xlu1 %v2540_v25  ;;  %2538 = vadd.xlane.f32.xlu0 %v2537_v7  ;;  %v695_v25 = vld [vmem:[%s13294_s2 + $0x5a8] sm:$0xff] }
 0x357   :  { %v10000_v23 = vpop.xlane.xlu1 %2331  ;;  %v10006_v59 = vpop.xlane.xlu0 %2328  ;;  %v1946_v58 = vmul.f32 %v5951_v33, %v695_v25  ;;  %v2549_v4 = vsel %vm1014_vm0, %v1943_v14, 0.0  ;;  %v5953_v14 = vld [vmem:[%s13292_s0 + $0x5b8] sm:$0xff] }
 0x358   :  { %13600 = vst [vmem:[#allocation306_spill] sm:$0xff] %v10000_v23  ;;  %13601 = vst [vmem:[#allocation307_spill] sm:$0xff] %v10006_v59  ;;  %v5952_v23 = vld [vmem:[%s13292_s0 + $0x5a0] sm:$0xff] }
 0x359   :  { %v1945_v59 = vmul.f32 %v5952_v23, %v694_v51  ;;  %v2558_v25 = vsel %vm1014_vm0, %v1946_v58, 0.0  ;;  %v698_v58 = vld [vmem:[%s13294_s2 + $0x5c0] sm:$0xff] }
 0x35a   :  { %2547 = vadd.xlane.f32.xlu1 %v2546_v5  ;;  %2544 = vadd.xlane.f32.xlu0 %v2543_v44  ;;  %v697_v5 = vld [vmem:[%s13294_s2 + $0x5b8] sm:$0xff] }
 0x35b   :  { %v10018_v7 = vpop.xlane.xlu1 %2337  ;;  %v10024_v39 = vpop.xlane.xlu0 %2334  ;;  %v1948_v33 = vmul.f32 %v5953_v14, %v697_v5  ;;  %v2555_v51 = vsel %vm1014_vm0, %v1945_v59, 0.0  ;;  %v5955_v59 = vld [vmem:[%s13292_s0 + $0x5c8] sm:$0xff] }
 0x35c   :  { %13602 = vst [vmem:[#allocation308_spill] sm:$0xff] %v10018_v7  ;;  %13603 = vst [vmem:[#allocation309_spill] sm:$0xff] %v10024_v39  ;;  %v5954_v7 = vld [vmem:[%s13292_s0 + $0x5b0] sm:$0xff] }
 0x35d   :  { %v1947_v39 = vmul.f32 %v5954_v7, %v696_v17  ;;  %v2564_v5 = vsel %vm1014_vm0, %v1948_v33, 0.0  ;;  %v700_v33 = vld [vmem:[%s13294_s2 + $0x5d0] sm:$0xff] }
 0x35e   :  { %2553 = vadd.xlane.f32.xlu1 %v2552_v47  ;;  %2550 = vadd.xlane.f32.xlu0 %v2549_v4  ;;  %v699_v47 = vld [vmem:[%s13294_s2 + $0x5c8] sm:$0xff] }
 0x35f   :  { %v10036_v44 = vpop.xlane.xlu1 %2343  ;;  %v10042_v23 = vpop.xlane.xlu0 %2340  ;;  %v1950_v14 = vmul.f32 %v5955_v59, %v699_v47  ;;  %v2561_v17 = vsel %vm1014_vm0, %v1947_v39, 0.0  ;;  %v5957_v39 = vld [vmem:[%s13292_s0 + $0x5d8] sm:$0xff] }
 0x360   :  { %13604 = vst [vmem:[#allocation310_spill] sm:$0xff] %v10036_v44  ;;  %13605 = vst [vmem:[#allocation311_spill] sm:$0xff] %v10042_v23  ;;  %v5956_v44 = vld [vmem:[%s13292_s0 + $0x5c0] sm:$0xff] }
 0x361   :  { %v1949_v23 = vmul.f32 %v5956_v44, %v698_v58  ;;  %v2570_v47 = vsel %vm1014_vm0, %v1950_v14, 0.0  ;;  %v702_v14 = vld [vmem:[%s13294_s2 + $0x5e0] sm:$0xff] }
 0x362   :  { %2559 = vadd.xlane.f32.xlu1 %v2558_v25  ;;  %2556 = vadd.xlane.f32.xlu0 %v2555_v51  ;;  %v701_v25 = vld [vmem:[%s13294_s2 + $0x5d8] sm:$0xff] }
 0x363   :  { %v10054_v4 = vpop.xlane.xlu1 %2349  ;;  %v10060_v7 = vpop.xlane.xlu0 %2346  ;;  %v1952_v59 = vmul.f32 %v5957_v39, %v701_v25  ;;  %v2567_v58 = vsel %vm1014_vm0, %v1949_v23, 0.0  ;;  %v5959_v23 = vld [vmem:[%s13292_s0 + $0x5e8] sm:$0xff] }
 0x364   :  { %13606 = vst [vmem:[#allocation312_spill] sm:$0xff] %v10054_v4  ;;  %13607 = vst [vmem:[#allocation313_spill] sm:$0xff] %v10060_v7  ;;  %v5958_v4 = vld [vmem:[%s13292_s0 + $0x5d0] sm:$0xff] }
 0x365   :  { %v1951_v7 = vmul.f32 %v5958_v4, %v700_v33  ;;  %v2576_v25 = vsel %vm1014_vm0, %v1952_v59, 0.0  ;;  %v704_v59 = vld [vmem:[%s13294_s2 + $0x5f0] sm:$0xff] }
 0x366   :  { %2565 = vadd.xlane.f32.xlu1 %v2564_v5  ;;  %2562 = vadd.xlane.f32.xlu0 %v2561_v17  ;;  %v703_v5 = vld [vmem:[%s13294_s2 + $0x5e8] sm:$0xff] }
 0x367   :  { %v10072_v51 = vpop.xlane.xlu1 %2355  ;;  %v10078_v44 = vpop.xlane.xlu0 %2352  ;;  %v1954_v39 = vmul.f32 %v5959_v23, %v703_v5  ;;  %v2573_v33 = vsel %vm1014_vm0, %v1951_v7, 0.0  ;;  %v5961_v7 = vld [vmem:[%s13292_s0 + $0x5f8] sm:$0xff] }
 0x368   :  { %13608 = vst [vmem:[#allocation314_spill] sm:$0xff] %v10072_v51  ;;  %13609 = vst [vmem:[#allocation315_spill] sm:$0xff] %v10078_v44  ;;  %v5960_v51 = vld [vmem:[%s13292_s0 + $0x5e0] sm:$0xff] }
 0x369   :  { %v1953_v44 = vmul.f32 %v5960_v51, %v702_v14  ;;  %v2582_v5 = vsel %vm1014_vm0, %v1954_v39, 0.0  ;;  %v706_v39 = vld [vmem:[%s13294_s2 + $0x600] sm:$0xff] }
 0x36a   :  { %2571 = vadd.xlane.f32.xlu1 %v2570_v47  ;;  %2568 = vadd.xlane.f32.xlu0 %v2567_v58  ;;  %v705_v47 = vld [vmem:[%s13294_s2 + $0x5f8] sm:$0xff] }
 0x36b   :  { %v10090_v17 = vpop.xlane.xlu1 %2361  ;;  %v10096_v4 = vpop.xlane.xlu0 %2358  ;;  %v1956_v23 = vmul.f32 %v5961_v7, %v705_v47  ;;  %v2579_v14 = vsel %vm1014_vm0, %v1953_v44, 0.0  ;;  %v5963_v44 = vld [vmem:[%s13292_s0 + $0x608] sm:$0xff] }
 0x36c   :  { %13610 = vst [vmem:[#allocation316_spill] sm:$0xff] %v10090_v17  ;;  %13611 = vst [vmem:[#allocation317_spill] sm:$0xff] %v10096_v4  ;;  %v5962_v17 = vld [vmem:[%s13292_s0 + $0x5f0] sm:$0xff] }
 0x36d   :  { %v1955_v4 = vmul.f32 %v5962_v17, %v704_v59  ;;  %v2588_v47 = vsel %vm1014_vm0, %v1956_v23, 0.0  ;;  %v708_v23 = vld [vmem:[%s13294_s2 + $0x610] sm:$0xff] }
 0x36e   :  { %2577 = vadd.xlane.f32.xlu1 %v2576_v25  ;;  %2574 = vadd.xlane.f32.xlu0 %v2573_v33  ;;  %v707_v25 = vld [vmem:[%s13294_s2 + $0x608] sm:$0xff] }
 0x36f   :  { %v10108_v58 = vpop.xlane.xlu1 %2367  ;;  %v10114_v51 = vpop.xlane.xlu0 %2364  ;;  %v1958_v7 = vmul.f32 %v5963_v44, %v707_v25  ;;  %v2585_v59 = vsel %vm1014_vm0, %v1955_v4, 0.0  ;;  %v5965_v4 = vld [vmem:[%s13292_s0 + $0x618] sm:$0xff] }
 0x370   :  { %13612 = vst [vmem:[#allocation318_spill] sm:$0xff] %v10108_v58  ;;  %13613 = vst [vmem:[#allocation319_spill] sm:$0xff] %v10114_v51  ;;  %v5964_v58 = vld [vmem:[%s13292_s0 + $0x600] sm:$0xff] }
 0x371   :  { %v1957_v51 = vmul.f32 %v5964_v58, %v706_v39  ;;  %v2594_v25 = vsel %vm1014_vm0, %v1958_v7, 0.0  ;;  %v710_v7 = vld [vmem:[%s13294_s2 + $0x620] sm:$0xff] }
 0x372   :  { %2583 = vadd.xlane.f32.xlu1 %v2582_v5  ;;  %2580 = vadd.xlane.f32.xlu0 %v2579_v14  ;;  %v709_v5 = vld [vmem:[%s13294_s2 + $0x618] sm:$0xff] }
 0x373   :  { %v10126_v33 = vpop.xlane.xlu1 %2373  ;;  %v10132_v17 = vpop.xlane.xlu0 %2370  ;;  %v1960_v44 = vmul.f32 %v5965_v4, %v709_v5  ;;  %v2591_v39 = vsel %vm1014_vm0, %v1957_v51, 0.0  ;;  %v5967_v51 = vld [vmem:[%s13292_s0 + $0x628] sm:$0xff] }
 0x374   :  { %13614 = vst [vmem:[#allocation320_spill] sm:$0xff] %v10126_v33  ;;  %13615 = vst [vmem:[#allocation321_spill] sm:$0xff] %v10132_v17  ;;  %v5966_v33 = vld [vmem:[%s13292_s0 + $0x610] sm:$0xff] }
 0x375   :  { %v1959_v17 = vmul.f32 %v5966_v33, %v708_v23  ;;  %v2600_v5 = vsel %vm1014_vm0, %v1960_v44, 0.0  ;;  %v712_v44 = vld [vmem:[%s13294_s2 + $0x630] sm:$0xff] }
 0x376   :  { %2589 = vadd.xlane.f32.xlu1 %v2588_v47  ;;  %2586 = vadd.xlane.f32.xlu0 %v2585_v59  ;;  %v711_v47 = vld [vmem:[%s13294_s2 + $0x628] sm:$0xff] }
 0x377   :  { %v10144_v14 = vpop.xlane.xlu1 %2379  ;;  %v10150_v58 = vpop.xlane.xlu0 %2376  ;;  %v1962_v4 = vmul.f32 %v5967_v51, %v711_v47  ;;  %v2597_v23 = vsel %vm1014_vm0, %v1959_v17, 0.0  ;;  %v5969_v17 = vld [vmem:[%s13292_s0 + $0x638] sm:$0xff] }
 0x378   :  { %13616 = vst [vmem:[#allocation322_spill] sm:$0xff] %v10144_v14  ;;  %13617 = vst [vmem:[#allocation323_spill] sm:$0xff] %v10150_v58  ;;  %v5968_v14 = vld [vmem:[%s13292_s0 + $0x620] sm:$0xff] }
 0x379   :  { %v1961_v58 = vmul.f32 %v5968_v14, %v710_v7  ;;  %v2606_v47 = vsel %vm1014_vm0, %v1962_v4, 0.0  ;;  %v714_v4 = vld [vmem:[%s13294_s2 + $0x640] sm:$0xff] }
 0x37a   :  { %2595 = vadd.xlane.f32.xlu1 %v2594_v25  ;;  %2592 = vadd.xlane.f32.xlu0 %v2591_v39  ;;  %v713_v25 = vld [vmem:[%s13294_s2 + $0x638] sm:$0xff] }
 0x37b   :  { %v10162_v59 = vpop.xlane.xlu1 %2385  ;;  %v10168_v33 = vpop.xlane.xlu0 %2382  ;;  %v1964_v51 = vmul.f32 %v5969_v17, %v713_v25  ;;  %v2603_v7 = vsel %vm1014_vm0, %v1961_v58, 0.0  ;;  %v5971_v58 = vld [vmem:[%s13292_s0 + $0x648] sm:$0xff] }
 0x37c   :  { %13618 = vst [vmem:[#allocation324_spill] sm:$0xff] %v10162_v59  ;;  %13619 = vst [vmem:[#allocation325_spill] sm:$0xff] %v10168_v33  ;;  %v5970_v59 = vld [vmem:[%s13292_s0 + $0x630] sm:$0xff] }
 0x37d   :  { %v1963_v33 = vmul.f32 %v5970_v59, %v712_v44  ;;  %v2612_v25 = vsel %vm1014_vm0, %v1964_v51, 0.0  ;;  %v716_v51 = vld [vmem:[%s13294_s2 + $0x650] sm:$0xff] }
 0x37e   :  { %2601 = vadd.xlane.f32.xlu1 %v2600_v5  ;;  %2598 = vadd.xlane.f32.xlu0 %v2597_v23  ;;  %v715_v5 = vld [vmem:[%s13294_s2 + $0x648] sm:$0xff] }
 0x37f   :  { %v10180_v39 = vpop.xlane.xlu1 %2391  ;;  %v10186_v14 = vpop.xlane.xlu0 %2388  ;;  %v1966_v17 = vmul.f32 %v5971_v58, %v715_v5  ;;  %v2609_v44 = vsel %vm1014_vm0, %v1963_v33, 0.0  ;;  %v5973_v33 = vld [vmem:[%s13292_s0 + $0x658] sm:$0xff] }
 0x380   :  { %13620 = vst [vmem:[#allocation326_spill] sm:$0xff] %v10180_v39  ;;  %13621 = vst [vmem:[#allocation327_spill] sm:$0xff] %v10186_v14  ;;  %v5972_v39 = vld [vmem:[%s13292_s0 + $0x640] sm:$0xff] }
 0x381   :  { %v1965_v14 = vmul.f32 %v5972_v39, %v714_v4  ;;  %v2618_v5 = vsel %vm1014_vm0, %v1966_v17, 0.0  ;;  %v718_v17 = vld [vmem:[%s13294_s2 + $0x660] sm:$0xff] }
 0x382   :  { %2607 = vadd.xlane.f32.xlu1 %v2606_v47  ;;  %2604 = vadd.xlane.f32.xlu0 %v2603_v7  ;;  %v717_v47 = vld [vmem:[%s13294_s2 + $0x658] sm:$0xff] }
 0x383   :  { %v10198_v23 = vpop.xlane.xlu1 %2397  ;;  %v10204_v59 = vpop.xlane.xlu0 %2394  ;;  %v1968_v58 = vmul.f32 %v5973_v33, %v717_v47  ;;  %v2615_v4 = vsel %vm1014_vm0, %v1965_v14, 0.0  ;;  %v5975_v14 = vld [vmem:[%s13292_s0 + $0x668] sm:$0xff] }
 0x384   :  { %13622 = vst [vmem:[#allocation328_spill] sm:$0xff] %v10198_v23  ;;  %13623 = vst [vmem:[#allocation329_spill] sm:$0xff] %v10204_v59  ;;  %v5974_v23 = vld [vmem:[%s13292_s0 + $0x650] sm:$0xff] }
 0x385   :  { %v1967_v59 = vmul.f32 %v5974_v23, %v716_v51  ;;  %v2624_v47 = vsel %vm1014_vm0, %v1968_v58, 0.0  ;;  %v720_v58 = vld [vmem:[%s13294_s2 + $0x670] sm:$0xff] }
 0x386   :  { %2613 = vadd.xlane.f32.xlu1 %v2612_v25  ;;  %2610 = vadd.xlane.f32.xlu0 %v2609_v44  ;;  %v719_v25 = vld [vmem:[%s13294_s2 + $0x668] sm:$0xff] }
 0x387   :  { %v10216_v7 = vpop.xlane.xlu1 %2403  ;;  %v10222_v39 = vpop.xlane.xlu0 %2400  ;;  %v1970_v33 = vmul.f32 %v5975_v14, %v719_v25  ;;  %v2621_v51 = vsel %vm1014_vm0, %v1967_v59, 0.0  ;;  %v5977_v59 = vld [vmem:[%s13292_s0 + $0x678] sm:$0xff] }
 0x388   :  { %13624 = vst [vmem:[#allocation330_spill] sm:$0xff] %v10216_v7  ;;  %13625 = vst [vmem:[#allocation331_spill] sm:$0xff] %v10222_v39  ;;  %v5976_v7 = vld [vmem:[%s13292_s0 + $0x660] sm:$0xff] }
 0x389   :  { %v1969_v39 = vmul.f32 %v5976_v7, %v718_v17  ;;  %v2630_v25 = vsel %vm1014_vm0, %v1970_v33, 0.0  ;;  %v722_v33 = vld [vmem:[%s13294_s2 + $0x680] sm:$0xff] }
 0x38a   :  { %2619 = vadd.xlane.f32.xlu1 %v2618_v5  ;;  %2616 = vadd.xlane.f32.xlu0 %v2615_v4  ;;  %v721_v5 = vld [vmem:[%s13294_s2 + $0x678] sm:$0xff] }
 0x38b   :  { %v10234_v44 = vpop.xlane.xlu1 %2409  ;;  %v10240_v23 = vpop.xlane.xlu0 %2406  ;;  %v1972_v14 = vmul.f32 %v5977_v59, %v721_v5  ;;  %v2627_v17 = vsel %vm1014_vm0, %v1969_v39, 0.0  ;;  %v5979_v39 = vld [vmem:[%s13292_s0 + $0x688] sm:$0xff] }
 0x38c   :  { %13626 = vst [vmem:[#allocation332_spill] sm:$0xff] %v10234_v44  ;;  %13627 = vst [vmem:[#allocation333_spill] sm:$0xff] %v10240_v23  ;;  %v5978_v44 = vld [vmem:[%s13292_s0 + $0x670] sm:$0xff] }
 0x38d   :  { %v1971_v23 = vmul.f32 %v5978_v44, %v720_v58  ;;  %v2636_v5 = vsel %vm1014_vm0, %v1972_v14, 0.0  ;;  %v724_v14 = vld [vmem:[%s13294_s2 + $0x690] sm:$0xff] }
 0x38e   :  { %2625 = vadd.xlane.f32.xlu1 %v2624_v47  ;;  %2622 = vadd.xlane.f32.xlu0 %v2621_v51  ;;  %v723_v47 = vld [vmem:[%s13294_s2 + $0x688] sm:$0xff] }
 0x38f   :  { %v10252_v4 = vpop.xlane.xlu1 %2415  ;;  %v10258_v7 = vpop.xlane.xlu0 %2412  ;;  %v1974_v59 = vmul.f32 %v5979_v39, %v723_v47  ;;  %v2633_v58 = vsel %vm1014_vm0, %v1971_v23, 0.0  ;;  %v5981_v23 = vld [vmem:[%s13292_s0 + $0x698] sm:$0xff] }
 0x390   :  { %13628 = vst [vmem:[#allocation334_spill] sm:$0xff] %v10252_v4  ;;  %13629 = vst [vmem:[#allocation335_spill] sm:$0xff] %v10258_v7  ;;  %v5980_v4 = vld [vmem:[%s13292_s0 + $0x680] sm:$0xff] }
 0x391   :  { %v1973_v7 = vmul.f32 %v5980_v4, %v722_v33  ;;  %v2642_v47 = vsel %vm1014_vm0, %v1974_v59, 0.0  ;;  %v726_v59 = vld [vmem:[%s13294_s2 + $0x6a0] sm:$0xff] }
 0x392   :  { %2631 = vadd.xlane.f32.xlu1 %v2630_v25  ;;  %2628 = vadd.xlane.f32.xlu0 %v2627_v17  ;;  %v725_v25 = vld [vmem:[%s13294_s2 + $0x698] sm:$0xff] }
 0x393   :  { %v10270_v51 = vpop.xlane.xlu1 %2421  ;;  %v10276_v44 = vpop.xlane.xlu0 %2418  ;;  %v1976_v39 = vmul.f32 %v5981_v23, %v725_v25  ;;  %v2639_v33 = vsel %vm1014_vm0, %v1973_v7, 0.0  ;;  %v5983_v7 = vld [vmem:[%s13292_s0 + $0x6a8] sm:$0xff] }
 0x394   :  { %13630 = vst [vmem:[#allocation336_spill] sm:$0xff] %v10270_v51  ;;  %13631 = vst [vmem:[#allocation337_spill] sm:$0xff] %v10276_v44  ;;  %v5982_v51 = vld [vmem:[%s13292_s0 + $0x690] sm:$0xff] }
 0x395   :  { %v1975_v44 = vmul.f32 %v5982_v51, %v724_v14  ;;  %v2648_v25 = vsel %vm1014_vm0, %v1976_v39, 0.0  ;;  %v728_v39 = vld [vmem:[%s13294_s2 + $0x6b0] sm:$0xff] }
 0x396   :  { %2637 = vadd.xlane.f32.xlu1 %v2636_v5  ;;  %2634 = vadd.xlane.f32.xlu0 %v2633_v58  ;;  %v727_v5 = vld [vmem:[%s13294_s2 + $0x6a8] sm:$0xff] }
 0x397   :  { %v10288_v17 = vpop.xlane.xlu1 %2427  ;;  %v10294_v4 = vpop.xlane.xlu0 %2424  ;;  %v1978_v23 = vmul.f32 %v5983_v7, %v727_v5  ;;  %v2645_v14 = vsel %vm1014_vm0, %v1975_v44, 0.0  ;;  %v5985_v44 = vld [vmem:[%s13292_s0 + $0x6b8] sm:$0xff] }
 0x398   :  { %13632 = vst [vmem:[#allocation338_spill] sm:$0xff] %v10288_v17  ;;  %13633 = vst [vmem:[#allocation339_spill] sm:$0xff] %v10294_v4  ;;  %v5984_v17 = vld [vmem:[%s13292_s0 + $0x6a0] sm:$0xff] }
 0x399   :  { %v1977_v4 = vmul.f32 %v5984_v17, %v726_v59  ;;  %v2654_v5 = vsel %vm1014_vm0, %v1978_v23, 0.0  ;;  %v730_v23 = vld [vmem:[%s13294_s2 + $0x6c0] sm:$0xff] }
 0x39a   :  { %2643 = vadd.xlane.f32.xlu1 %v2642_v47  ;;  %2640 = vadd.xlane.f32.xlu0 %v2639_v33  ;;  %v729_v47 = vld [vmem:[%s13294_s2 + $0x6b8] sm:$0xff] }
 0x39b   :  { %v10306_v58 = vpop.xlane.xlu1 %2433  ;;  %v10312_v51 = vpop.xlane.xlu0 %2430  ;;  %v1980_v7 = vmul.f32 %v5985_v44, %v729_v47  ;;  %v2651_v59 = vsel %vm1014_vm0, %v1977_v4, 0.0  ;;  %v5987_v4 = vld [vmem:[%s13292_s0 + $0x6c8] sm:$0xff] }
 0x39c   :  { %13634 = vst [vmem:[#allocation340_spill] sm:$0xff] %v10306_v58  ;;  %13635 = vst [vmem:[#allocation341_spill] sm:$0xff] %v10312_v51  ;;  %v5986_v58 = vld [vmem:[%s13292_s0 + $0x6b0] sm:$0xff] }
 0x39d   :  { %v1979_v51 = vmul.f32 %v5986_v58, %v728_v39  ;;  %v2660_v47 = vsel %vm1014_vm0, %v1980_v7, 0.0  ;;  %v732_v7 = vld [vmem:[%s13294_s2 + $0x6d0] sm:$0xff] }
 0x39e   :  { %2649 = vadd.xlane.f32.xlu1 %v2648_v25  ;;  %2646 = vadd.xlane.f32.xlu0 %v2645_v14  ;;  %v731_v25 = vld [vmem:[%s13294_s2 + $0x6c8] sm:$0xff] }
 0x39f   :  { %v10324_v33 = vpop.xlane.xlu1 %2439  ;;  %v10330_v17 = vpop.xlane.xlu0 %2436  ;;  %v1982_v44 = vmul.f32 %v5987_v4, %v731_v25  ;;  %v2657_v39 = vsel %vm1014_vm0, %v1979_v51, 0.0  ;;  %v5989_v51 = vld [vmem:[%s13292_s0 + $0x6d8] sm:$0xff] }
 0x3a0   :  { %13636 = vst [vmem:[#allocation342_spill] sm:$0xff] %v10324_v33  ;;  %13637 = vst [vmem:[#allocation343_spill] sm:$0xff] %v10330_v17  ;;  %v5988_v33 = vld [vmem:[%s13292_s0 + $0x6c0] sm:$0xff] }
 0x3a1   :  { %v1981_v17 = vmul.f32 %v5988_v33, %v730_v23  ;;  %v2666_v25 = vsel %vm1014_vm0, %v1982_v44, 0.0  ;;  %v734_v44 = vld [vmem:[%s13294_s2 + $0x6e0] sm:$0xff] }
 0x3a2   :  { %2655 = vadd.xlane.f32.xlu1 %v2654_v5  ;;  %2652 = vadd.xlane.f32.xlu0 %v2651_v59  ;;  %v733_v5 = vld [vmem:[%s13294_s2 + $0x6d8] sm:$0xff] }
 0x3a3   :  { %v10342_v14 = vpop.xlane.xlu1 %2445  ;;  %v10348_v58 = vpop.xlane.xlu0 %2442  ;;  %v1984_v4 = vmul.f32 %v5989_v51, %v733_v5  ;;  %v2663_v23 = vsel %vm1014_vm0, %v1981_v17, 0.0  ;;  %v5991_v17 = vld [vmem:[%s13292_s0 + $0x6e8] sm:$0xff] }
 0x3a4   :  { %13638 = vst [vmem:[#allocation344_spill] sm:$0xff] %v10342_v14  ;;  %13639 = vst [vmem:[#allocation345_spill] sm:$0xff] %v10348_v58  ;;  %v5990_v14 = vld [vmem:[%s13292_s0 + $0x6d0] sm:$0xff] }
 0x3a5   :  { %v1983_v58 = vmul.f32 %v5990_v14, %v732_v7  ;;  %v2672_v5 = vsel %vm1014_vm0, %v1984_v4, 0.0  ;;  %v736_v4 = vld [vmem:[%s13294_s2 + $0x6f0] sm:$0xff] }
 0x3a6   :  { %2661 = vadd.xlane.f32.xlu1 %v2660_v47  ;;  %2658 = vadd.xlane.f32.xlu0 %v2657_v39  ;;  %v735_v47 = vld [vmem:[%s13294_s2 + $0x6e8] sm:$0xff] }
 0x3a7   :  { %v10360_v59 = vpop.xlane.xlu1 %2451  ;;  %v10366_v33 = vpop.xlane.xlu0 %2448  ;;  %v1986_v51 = vmul.f32 %v5991_v17, %v735_v47  ;;  %v2669_v7 = vsel %vm1014_vm0, %v1983_v58, 0.0  ;;  %v5993_v58 = vld [vmem:[%s13292_s0 + $0x6f8] sm:$0xff] }
 0x3a8   :  { %13640 = vst [vmem:[#allocation346_spill] sm:$0xff] %v10360_v59  ;;  %13641 = vst [vmem:[#allocation347_spill] sm:$0xff] %v10366_v33  ;;  %v5992_v59 = vld [vmem:[%s13292_s0 + $0x6e0] sm:$0xff] }
 0x3a9   :  { %v1985_v33 = vmul.f32 %v5992_v59, %v734_v44  ;;  %v2678_v47 = vsel %vm1014_vm0, %v1986_v51, 0.0  ;;  %v738_v51 = vld [vmem:[%s13294_s2 + $0x700] sm:$0xff] }
 0x3aa   :  { %2667 = vadd.xlane.f32.xlu1 %v2666_v25  ;;  %2664 = vadd.xlane.f32.xlu0 %v2663_v23  ;;  %v737_v25 = vld [vmem:[%s13294_s2 + $0x6f8] sm:$0xff] }
 0x3ab   :  { %v10378_v39 = vpop.xlane.xlu1 %2457  ;;  %v10384_v14 = vpop.xlane.xlu0 %2454  ;;  %v1988_v17 = vmul.f32 %v5993_v58, %v737_v25  ;;  %v2675_v44 = vsel %vm1014_vm0, %v1985_v33, 0.0  ;;  %v5995_v33 = vld [vmem:[%s13292_s0 + $0x708] sm:$0xff] }
 0x3ac   :  { %13642 = vst [vmem:[#allocation348_spill] sm:$0xff] %v10378_v39  ;;  %13643 = vst [vmem:[#allocation349_spill] sm:$0xff] %v10384_v14  ;;  %v5994_v39 = vld [vmem:[%s13292_s0 + $0x6f0] sm:$0xff] }
 0x3ad   :  { %v1987_v14 = vmul.f32 %v5994_v39, %v736_v4  ;;  %v2684_v25 = vsel %vm1014_vm0, %v1988_v17, 0.0  ;;  %v740_v17 = vld [vmem:[%s13294_s2 + $0x710] sm:$0xff] }
 0x3ae   :  { %2673 = vadd.xlane.f32.xlu1 %v2672_v5  ;;  %2670 = vadd.xlane.f32.xlu0 %v2669_v7  ;;  %v739_v5 = vld [vmem:[%s13294_s2 + $0x708] sm:$0xff] }
 0x3af   :  { %v10396_v23 = vpop.xlane.xlu1 %2463  ;;  %v10402_v59 = vpop.xlane.xlu0 %2460  ;;  %v1990_v58 = vmul.f32 %v5995_v33, %v739_v5  ;;  %v2681_v4 = vsel %vm1014_vm0, %v1987_v14, 0.0  ;;  %v5997_v14 = vld [vmem:[%s13292_s0 + $0x718] sm:$0xff] }
 0x3b0   :  { %13644 = vst [vmem:[#allocation350_spill] sm:$0xff] %v10396_v23  ;;  %13645 = vst [vmem:[#allocation351_spill] sm:$0xff] %v10402_v59  ;;  %v5996_v23 = vld [vmem:[%s13292_s0 + $0x700] sm:$0xff] }
 0x3b1   :  { %v1989_v59 = vmul.f32 %v5996_v23, %v738_v51  ;;  %v2690_v5 = vsel %vm1014_vm0, %v1990_v58, 0.0  ;;  %v742_v58 = vld [vmem:[%s13294_s2 + $0x720] sm:$0xff] }
 0x3b2   :  { %2679 = vadd.xlane.f32.xlu1 %v2678_v47  ;;  %2676 = vadd.xlane.f32.xlu0 %v2675_v44  ;;  %v741_v47 = vld [vmem:[%s13294_s2 + $0x718] sm:$0xff] }
 0x3b3   :  { %v10414_v7 = vpop.xlane.xlu1 %2469  ;;  %v10420_v39 = vpop.xlane.xlu0 %2466  ;;  %v1992_v33 = vmul.f32 %v5997_v14, %v741_v47  ;;  %v2687_v51 = vsel %vm1014_vm0, %v1989_v59, 0.0  ;;  %v5999_v59 = vld [vmem:[%s13292_s0 + $0x728] sm:$0xff] }
 0x3b4   :  { %13646 = vst [vmem:[#allocation352_spill] sm:$0xff] %v10414_v7  ;;  %13647 = vst [vmem:[#allocation353_spill] sm:$0xff] %v10420_v39  ;;  %v5998_v7 = vld [vmem:[%s13292_s0 + $0x710] sm:$0xff] }
 0x3b5   :  { %v1991_v39 = vmul.f32 %v5998_v7, %v740_v17  ;;  %v2696_v47 = vsel %vm1014_vm0, %v1992_v33, 0.0  ;;  %v744_v33 = vld [vmem:[%s13294_s2 + $0x730] sm:$0xff] }
 0x3b6   :  { %2685 = vadd.xlane.f32.xlu1 %v2684_v25  ;;  %2682 = vadd.xlane.f32.xlu0 %v2681_v4  ;;  %v743_v25 = vld [vmem:[%s13294_s2 + $0x728] sm:$0xff] }
 0x3b7   :  { %v10432_v44 = vpop.xlane.xlu1 %2475  ;;  %v10438_v23 = vpop.xlane.xlu0 %2472  ;;  %v1994_v14 = vmul.f32 %v5999_v59, %v743_v25  ;;  %v2693_v17 = vsel %vm1014_vm0, %v1991_v39, 0.0  ;;  %v6001_v39 = vld [vmem:[%s13292_s0 + $0x738] sm:$0xff] }
 0x3b8   :  { %13648 = vst [vmem:[#allocation354_spill] sm:$0xff] %v10432_v44  ;;  %13649 = vst [vmem:[#allocation355_spill] sm:$0xff] %v10438_v23  ;;  %v6000_v44 = vld [vmem:[%s13292_s0 + $0x720] sm:$0xff] }
 0x3b9   :  { %v1993_v23 = vmul.f32 %v6000_v44, %v742_v58  ;;  %v2702_v25 = vsel %vm1014_vm0, %v1994_v14, 0.0  ;;  %v746_v14 = vld [vmem:[%s13294_s2 + $0x740] sm:$0xff] }
 0x3ba   :  { %2691 = vadd.xlane.f32.xlu1 %v2690_v5  ;;  %2688 = vadd.xlane.f32.xlu0 %v2687_v51  ;;  %v745_v5 = vld [vmem:[%s13294_s2 + $0x738] sm:$0xff] }
 0x3bb   :  { %v10450_v4 = vpop.xlane.xlu1 %2481  ;;  %v10456_v7 = vpop.xlane.xlu0 %2478  ;;  %v1996_v59 = vmul.f32 %v6001_v39, %v745_v5  ;;  %v2699_v58 = vsel %vm1014_vm0, %v1993_v23, 0.0  ;;  %v6003_v23 = vld [vmem:[%s13292_s0 + $0x748] sm:$0xff] }
 0x3bc   :  { %13650 = vst [vmem:[#allocation356_spill] sm:$0xff] %v10450_v4  ;;  %13651 = vst [vmem:[#allocation357_spill] sm:$0xff] %v10456_v7  ;;  %v6002_v4 = vld [vmem:[%s13292_s0 + $0x730] sm:$0xff] }
 0x3bd   :  { %v1995_v7 = vmul.f32 %v6002_v4, %v744_v33  ;;  %v2708_v5 = vsel %vm1014_vm0, %v1996_v59, 0.0  ;;  %v748_v59 = vld [vmem:[%s13294_s2 + $0x750] sm:$0xff] }
 0x3be   :  { %2697 = vadd.xlane.f32.xlu1 %v2696_v47  ;;  %2694 = vadd.xlane.f32.xlu0 %v2693_v17  ;;  %v747_v47 = vld [vmem:[%s13294_s2 + $0x748] sm:$0xff] }
 0x3bf   :  { %v10468_v51 = vpop.xlane.xlu1 %2487  ;;  %v10474_v44 = vpop.xlane.xlu0 %2484  ;;  %v1998_v39 = vmul.f32 %v6003_v23, %v747_v47  ;;  %v2705_v33 = vsel %vm1014_vm0, %v1995_v7, 0.0  ;;  %v6005_v7 = vld [vmem:[%s13292_s0 + $0x758] sm:$0xff] }
 0x3c0   :  { %13652 = vst [vmem:[#allocation358_spill] sm:$0xff] %v10468_v51  ;;  %13653 = vst [vmem:[#allocation359_spill] sm:$0xff] %v10474_v44  ;;  %v6004_v51 = vld [vmem:[%s13292_s0 + $0x740] sm:$0xff] }
 0x3c1   :  { %v1997_v44 = vmul.f32 %v6004_v51, %v746_v14  ;;  %v2714_v47 = vsel %vm1014_vm0, %v1998_v39, 0.0  ;;  %v750_v39 = vld [vmem:[%s13294_s2 + $0x760] sm:$0xff] }
 0x3c2   :  { %2703 = vadd.xlane.f32.xlu1 %v2702_v25  ;;  %2700 = vadd.xlane.f32.xlu0 %v2699_v58  ;;  %v749_v25 = vld [vmem:[%s13294_s2 + $0x758] sm:$0xff] }
 0x3c3   :  { %v10486_v17 = vpop.xlane.xlu1 %2493  ;;  %v10492_v4 = vpop.xlane.xlu0 %2490  ;;  %v2000_v23 = vmul.f32 %v6005_v7, %v749_v25  ;;  %v2711_v14 = vsel %vm1014_vm0, %v1997_v44, 0.0  ;;  %v6007_v44 = vld [vmem:[%s13292_s0 + $0x768] sm:$0xff] }
 0x3c4   :  { %13654 = vst [vmem:[#allocation360_spill] sm:$0xff] %v10486_v17  ;;  %13655 = vst [vmem:[#allocation361_spill] sm:$0xff] %v10492_v4  ;;  %v6006_v17 = vld [vmem:[%s13292_s0 + $0x750] sm:$0xff] }
 0x3c5   :  { %v1999_v4 = vmul.f32 %v6006_v17, %v748_v59  ;;  %v2720_v25 = vsel %vm1014_vm0, %v2000_v23, 0.0  ;;  %v752_v23 = vld [vmem:[%s13294_s2 + $0x770] sm:$0xff] }
 0x3c6   :  { %2709 = vadd.xlane.f32.xlu1 %v2708_v5  ;;  %2706 = vadd.xlane.f32.xlu0 %v2705_v33  ;;  %v751_v5 = vld [vmem:[%s13294_s2 + $0x768] sm:$0xff] }
 0x3c7   :  { %v10504_v58 = vpop.xlane.xlu1 %2499  ;;  %v10510_v51 = vpop.xlane.xlu0 %2496  ;;  %v2002_v7 = vmul.f32 %v6007_v44, %v751_v5  ;;  %v2717_v59 = vsel %vm1014_vm0, %v1999_v4, 0.0  ;;  %v6009_v4 = vld [vmem:[%s13292_s0 + $0x778] sm:$0xff] }
 0x3c8   :  { %13656 = vst [vmem:[#allocation362_spill] sm:$0xff] %v10504_v58  ;;  %13657 = vst [vmem:[#allocation363_spill] sm:$0xff] %v10510_v51  ;;  %v6008_v58 = vld [vmem:[%s13292_s0 + $0x760] sm:$0xff] }
 0x3c9   :  { %v2001_v51 = vmul.f32 %v6008_v58, %v750_v39  ;;  %v2726_v5 = vsel %vm1014_vm0, %v2002_v7, 0.0  ;;  %v754_v7 = vld [vmem:[%s13294_s2 + $0x780] sm:$0xff] }
 0x3ca   :  { %2715 = vadd.xlane.f32.xlu1 %v2714_v47  ;;  %2712 = vadd.xlane.f32.xlu0 %v2711_v14  ;;  %v753_v47 = vld [vmem:[%s13294_s2 + $0x778] sm:$0xff] }
 0x3cb   :  { %v10522_v33 = vpop.xlane.xlu1 %2505  ;;  %v10528_v17 = vpop.xlane.xlu0 %2502  ;;  %v2004_v44 = vmul.f32 %v6009_v4, %v753_v47  ;;  %v2723_v39 = vsel %vm1014_vm0, %v2001_v51, 0.0  ;;  %v6011_v51 = vld [vmem:[%s13292_s0 + $0x788] sm:$0xff] }
 0x3cc   :  { %13658 = vst [vmem:[#allocation364_spill] sm:$0xff] %v10522_v33  ;;  %13659 = vst [vmem:[#allocation365_spill] sm:$0xff] %v10528_v17  ;;  %v6010_v33 = vld [vmem:[%s13292_s0 + $0x770] sm:$0xff] }
 0x3cd   :  { %v2003_v17 = vmul.f32 %v6010_v33, %v752_v23  ;;  %v2732_v47 = vsel %vm1014_vm0, %v2004_v44, 0.0  ;;  %v756_v44 = vld [vmem:[%s13294_s2 + $0x790] sm:$0xff] }
 0x3ce   :  { %2721 = vadd.xlane.f32.xlu1 %v2720_v25  ;;  %2718 = vadd.xlane.f32.xlu0 %v2717_v59  ;;  %v755_v25 = vld [vmem:[%s13294_s2 + $0x788] sm:$0xff] }
 0x3cf   :  { %v10540_v14 = vpop.xlane.xlu1 %2511  ;;  %v10546_v58 = vpop.xlane.xlu0 %2508  ;;  %v2006_v4 = vmul.f32 %v6011_v51, %v755_v25  ;;  %v2729_v23 = vsel %vm1014_vm0, %v2003_v17, 0.0  ;;  %v6013_v17 = vld [vmem:[%s13292_s0 + $0x798] sm:$0xff] }
 0x3d0   :  { %13660 = vst [vmem:[#allocation366_spill] sm:$0xff] %v10540_v14  ;;  %13661 = vst [vmem:[#allocation367_spill] sm:$0xff] %v10546_v58  ;;  %v6012_v14 = vld [vmem:[%s13292_s0 + $0x780] sm:$0xff] }
 0x3d1   :  { %v2005_v58 = vmul.f32 %v6012_v14, %v754_v7  ;;  %v2738_v25 = vsel %vm1014_vm0, %v2006_v4, 0.0  ;;  %v758_v4 = vld [vmem:[%s13294_s2 + $0x7a0] sm:$0xff] }
 0x3d2   :  { %2727 = vadd.xlane.f32.xlu1 %v2726_v5  ;;  %2724 = vadd.xlane.f32.xlu0 %v2723_v39  ;;  %v757_v5 = vld [vmem:[%s13294_s2 + $0x798] sm:$0xff] }
 0x3d3   :  { %v10558_v59 = vpop.xlane.xlu1 %2517  ;;  %v10564_v33 = vpop.xlane.xlu0 %2514  ;;  %v2008_v51 = vmul.f32 %v6013_v17, %v757_v5  ;;  %v2735_v7 = vsel %vm1014_vm0, %v2005_v58, 0.0  ;;  %v6015_v58 = vld [vmem:[%s13292_s0 + $0x7a8] sm:$0xff] }
 0x3d4   :  { %13662 = vst [vmem:[#allocation368_spill] sm:$0xff] %v10558_v59  ;;  %13663 = vst [vmem:[#allocation369_spill] sm:$0xff] %v10564_v33  ;;  %v6014_v59 = vld [vmem:[%s13292_s0 + $0x790] sm:$0xff] }
 0x3d5   :  { %v2007_v33 = vmul.f32 %v6014_v59, %v756_v44  ;;  %v2744_v5 = vsel %vm1014_vm0, %v2008_v51, 0.0  ;;  %v760_v51 = vld [vmem:[%s13294_s2 + $0x7b0] sm:$0xff] }
 0x3d6   :  { %2733 = vadd.xlane.f32.xlu1 %v2732_v47  ;;  %2730 = vadd.xlane.f32.xlu0 %v2729_v23  ;;  %v759_v47 = vld [vmem:[%s13294_s2 + $0x7a8] sm:$0xff] }
 0x3d7   :  { %v10576_v39 = vpop.xlane.xlu1 %2523  ;;  %v10582_v14 = vpop.xlane.xlu0 %2520  ;;  %v2010_v17 = vmul.f32 %v6015_v58, %v759_v47  ;;  %v2741_v44 = vsel %vm1014_vm0, %v2007_v33, 0.0  ;;  %v6017_v33 = vld [vmem:[%s13292_s0 + $0x7b8] sm:$0xff] }
 0x3d8   :  { %13664 = vst [vmem:[#allocation370_spill] sm:$0xff] %v10576_v39  ;;  %13665 = vst [vmem:[#allocation371_spill] sm:$0xff] %v10582_v14  ;;  %v6016_v39 = vld [vmem:[%s13292_s0 + $0x7a0] sm:$0xff] }
 0x3d9   :  { %v2009_v14 = vmul.f32 %v6016_v39, %v758_v4  ;;  %v2750_v47 = vsel %vm1014_vm0, %v2010_v17, 0.0  ;;  %v762_v17 = vld [vmem:[%s13294_s2 + $0x7c0] sm:$0xff] }
 0x3da   :  { %2739 = vadd.xlane.f32.xlu1 %v2738_v25  ;;  %2736 = vadd.xlane.f32.xlu0 %v2735_v7  ;;  %v761_v25 = vld [vmem:[%s13294_s2 + $0x7b8] sm:$0xff] }
 0x3db   :  { %v10594_v23 = vpop.xlane.xlu1 %2529  ;;  %v10600_v59 = vpop.xlane.xlu0 %2526  ;;  %v2012_v58 = vmul.f32 %v6017_v33, %v761_v25  ;;  %v2747_v4 = vsel %vm1014_vm0, %v2009_v14, 0.0  ;;  %v6019_v14 = vld [vmem:[%s13292_s0 + $0x7c8] sm:$0xff] }
 0x3dc   :  { %13666 = vst [vmem:[#allocation372_spill] sm:$0xff] %v10594_v23  ;;  %13667 = vst [vmem:[#allocation373_spill] sm:$0xff] %v10600_v59  ;;  %v6018_v23 = vld [vmem:[%s13292_s0 + $0x7b0] sm:$0xff] }
 0x3dd   :  { %v2011_v59 = vmul.f32 %v6018_v23, %v760_v51  ;;  %v2756_v25 = vsel %vm1014_vm0, %v2012_v58, 0.0  ;;  %v6020_v23 = vld [vmem:[%s13292_s0 + $0x8] sm:$0xff] }
 0x3de   :  { %2745 = vadd.xlane.f32.xlu1 %v2744_v5  ;;  %2742 = vadd.xlane.f32.xlu0 %v2741_v44  ;;  %v763_v5 = vld [vmem:[%s13294_s2 + $0x7c8] sm:$0xff]  ;;  %v2766_v51 = vmul.f32 -0.071428575, %v6020_v23 }
 0x3df   :  { %v10612_v7 = vpop.xlane.xlu1 %2535  ;;  %v10618_v39 = vpop.xlane.xlu0 %2532  ;;  %v2014_v33 = vmul.f32 %v6019_v14, %v763_v5  ;;  %v6022_v14 = vld [vmem:[%s13292_s0 + $0x10] sm:$0xff] }
 0x3e0   :  { %13668 = vst [vmem:[#allocation374_spill] sm:$0xff] %v10612_v7  ;;  %13669 = vst [vmem:[#allocation375_spill] sm:$0xff] %v10618_v39  ;;  %v2753_v39 = vsel %vm1014_vm0, %v2011_v59, 0.0  ;;  %v2767_v23 = vmul.f32 -0.071428575, %v6022_v14 }
 0x3e1   :  { %v2762_v5 = vsel %vm1014_vm0, %v2014_v33, 0.0 }
 0x3e2   :  { %2751 = vadd.xlane.f32.xlu1 %v2750_v47  ;;  %2748 = vadd.xlane.f32.xlu0 %v2747_v4  ;;  %v6021_v47 = vld [vmem:[%s13292_s0 + $0x7c0] sm:$0xff]  ;;  %v3019_v33 = vmul.f32 1.442695, %v2767_v23  ;;  %v6026_v23 = vld [vmem:[%s13292_s0 + $0x28] sm:$0xff] }
 0x3e3   :  { %v10630_v44 = vpop.xlane.xlu1 %2541  ;;  %v10639_v7 = vpop.xlane.xlu0 %2538  ;;  %v2013_v4 = vmul.f32 %v6021_v47, %v762_v17  ;;  %v6023_v17 = vld [vmem:[%s13292_s0] sm:$0xff]  ;;  %v6024_v47 = vld [vmem:[%s13292_s0 + $0x18] sm:$0xff] }
 0x3e4   :  { %13670 = vst [vmem:[#allocation376_spill] sm:$0xff] %v10630_v44  ;;  %13671 = vst [vmem:[#allocation377_spill] sm:$0xff] %v10639_v7  ;;  %v3017_v44 = vmul.f32 1.442695, %v2766_v51  ;;  %v2768_v14 = vmul.f32 -0.071428575, %v6024_v47 }
 0x3e5   :  { %v2759_v59 = vsel %vm1014_vm0, %v2013_v4, 0.0  ;;  %v6025_v4 = vld [vmem:[%s13292_s0 + $0x20] sm:$0xff] }
 0x3e6   :  { %2757 = vadd.xlane.f32.xlu1 %v2756_v25  ;;  %2754 = vadd.xlane.f32.xlu0 %v2753_v39  ;;  %v2765_v25 = vmul.f32 -0.071428575, %v6023_v17  ;;  %5271 = vpow2.f32 %v3017_v44 }
 0x3e7   :  { %v10645_v58 = vpop.xlane.xlu1 %2547  ;;  %v10651_v7 = vpop.xlane.xlu0 %2544  ;;  %5273 = vpow2.f32 %v3019_v33  ;;  %v6028_v33 = vld [vmem:[%s13292_s0 + $0x38] sm:$0xff] }
 0x3e8   :  { %13672 = vst [vmem:[#allocation378_spill] sm:$0xff] %v10645_v58  ;;  %13673 = vst [vmem:[#allocation379_spill] sm:$0xff] %v10651_v7  ;;  %v3015_v58 = vmul.f32 1.442695, %v2765_v25  ;;  %v2769_v7 = vmul.f32 -0.071428575, %v6025_v4 }
 0x3e9   :  { %v6027_v25 = vld [vmem:[%s13292_s0 + $0x30] sm:$0xff] }
 0x3ea   :  { %2763 = vadd.xlane.f32.xlu1 %v2762_v5  ;;  %2760 = vadd.xlane.f32.xlu0 %v2759_v59  ;;  %v3021_v5 = vmul.f32 1.442695, %v2768_v14  ;;  %v2770_v59 = vmul.f32 -0.071428575, %v6026_v23  ;;  %5275 = vpow2.f32 %v3015_v58  ;;  %v3023_v44 = vmul.f32 1.442695, %v2769_v7 }
 0x3eb   :  { %v10657_v39 = vpop.xlane.xlu1 %2553  ;;  %v10662_v51 = vpop.xlane.xlu0 %2550  ;;  %v2771_v47 = vmul.f32 -0.071428575, %v6027_v25  ;;  %v2772_v14 = vmul.f32 -0.071428575, %v6028_v33  ;;  %v3516_v58 = vmin.f32 %v6841_v55, %v9064_v22  ;;  %v6029_v25 = vld [vmem:[%s13292_s0 + $0x40] sm:$0xff]  ;;  %v6030_v33 = vld [vmem:[%s13292_s0 + $0x48] sm:$0xff]  ;;  %v3517_v22 = vmin.f32 %v6820_v42, %v9088_v60 }
 0x3ec   :  { %13674 = vst [vmem:[#allocation380_spill] sm:$0xff] %v10657_v39  ;;  %13675 = vst [vmem:[#allocation381_spill] sm:$0xff] %v10662_v51  ;;  %5277 = vpow2.f32 %v3021_v5  ;;  %v3025_v4 = vmul.f32 1.442695, %v2770_v59  ;;  %v6032_v42 = vld [vmem:[%s13292_s0 + $0x58] sm:$0xff] }
 0x3ed   :  { %5279 = vpow2.f32 %v3023_v44  ;;  %v3027_v23 = vmul.f32 1.442695, %v2771_v47  ;;  %v3029_v59 = vmul.f32 1.442695, %v2772_v14  ;;  %v3515_v14 = vmin.f32 %v6823_v45, %v9070_v56 }
 0x3ee   :  { %5281 = vpow2.f32 %v3025_v4  ;;  %v2776_v60 = vmul.f32 -0.071428575, %v6032_v42 }
 0x3ef   :  { %v10667_v17 = vpop.xlane.xlu1 %2559  ;;  %v10672_v39 = vpop.xlane.xlu0 %2556  ;;  %5283 = vpow2.f32 %v3027_v23  ;;  %v3518_v23 = vmin.f32 %v6838_v52, %v9082_v46  ;;  %v6034_v46 = vld [vmem:[%s13292_s0 + $0x68] sm:$0xff] }
 0x3f0   :  { %13676 = vst [vmem:[#allocation382_spill] sm:$0xff] %v10667_v17  ;;  %13677 = vst [vmem:[#allocation383_spill] sm:$0xff] %v10672_v39  ;;  %v5272_v7 = vpop.eup %5271  ;;  %5285 = vpow2.f32 %v3029_v59  ;;  %v3037_v52 = vmul.f32 1.442695, %v2776_v60  ;;  %v3521_v60 = vmin.f32 %v6877_v11, %v9124_v30 }
 0x3f1   :  { %v3766_v55 = vmul.f32 %v5272_v7, %v3516_v58  ;;  %v5274_v44 = vpop.eup %5273 }
 0x3f3   :  { %v10677_v51 = vpop.xlane.xlu1 %2565  ;;  %v10682_v17 = vpop.xlane.xlu0 %2562 }
 0x3f4   :  { %13678 = vst [vmem:[#allocation384_spill] sm:$0xff] %v10677_v51  ;;  %13679 = vst [vmem:[#allocation385_spill] sm:$0xff] %v10682_v17  ;;  %v2773_v51 = vmul.f32 -0.071428575, %v6029_v25  ;;  %v2774_v17 = vmul.f32 -0.071428575, %v6030_v33  ;;  %v5276_v58 = vpop.eup %5275  ;;  %v3767_v33 = vmul.f32 %v5274_v44, %v3517_v22 }
 0x3f5   :  { %v6031_v25 = vld [vmem:[%s13292_s0 + $0x50] sm:$0xff]  ;;  %v2778_v22 = vmul.f32 -0.071428575, %v6034_v46 }
 0x3f6   :  { %v3031_v47 = vmul.f32 1.442695, %v2773_v51  ;;  %v2775_v4 = vmul.f32 -0.071428575, %v6031_v25  ;;  %v3033_v7 = vmul.f32 1.442695, %v2774_v17  ;;  %v5278_v45 = vpop.eup %5277  ;;  %v3765_v17 = vmul.f32 %v5276_v58, %v3515_v14 }
 0x3f7   :  { %v10689_v5 = vpop.xlane.xlu1 %2571  ;;  %v10694_v39 = vpop.xlane.xlu0 %2568  ;;  %v3519_v25 = vmin.f32 %v6859_v1, %v9106_v2  ;;  %v6035_v14 = vld [vmem:[%s13292_s0 + $0x70] sm:$0xff] }
 0x3f8   :  { %13680 = vst [vmem:[#allocation386_spill] sm:$0xff] %v10689_v5  ;;  %5287 = vpow2.f32 %v3031_v47  ;;  %v3035_v56 = vmul.f32 1.442695, %v2775_v4  ;;  %v5280_v42 = vpop.eup %5279  ;;  %v3768_v47 = vmul.f32 %v5278_v45, %v3518_v23  ;;  %v3520_v4 = vmin.f32 %v6856_v62, %v9100_v37  ;;  %v6036_v37 = vld [vmem:[%s13292_s0 + $0x78] sm:$0xff] }
 0x3f9   :  { %5289 = vpow2.f32 %v3033_v7  ;;  %v5282_v1 = vpop.eup %5281  ;;  %v2779_v58 = vmul.f32 -0.071428575, %v6035_v14  ;;  %v3769_v7 = vmul.f32 %v5280_v42, %v3519_v25  ;;  %v3041_v62 = vmul.f32 1.442695, %v2778_v22  ;;  %v6039_v14 = vld [vmem:[%s13292_s0 + $0x90] sm:$0xff] }
 0x3fa   :  { %5291 = vpow2.f32 %v3035_v56  ;;  %v5284_v23 = vpop.eup %5283  ;;  %v2780_v45 = vmul.f32 -0.071428575, %v6036_v37 }
 0x3fb   :  { %v10703_v5 = vpop.xlane.xlu1 %2577  ;;  %4267 = vrot.lane.b32.xlu1 %v3766_v55, %s6271_s25  ;;  %v10709_v51 = vpop.xlane.xlu0 %2574  ;;  %v6033_v55 = vld [vmem:[%s13292_s0 + $0x60] sm:$0xff]  ;;  %5293 = vpow2.f32 %v3037_v52  ;;  %v3043_v30 = vmul.f32 1.442695, %v2779_v58  ;;  %v3771_v42 = vmul.f32 %v5284_v23, %v3521_v60  ;;  %v3523_v52 = vmin.f32 %v6895_v21, %v9142_v0 }
 0x3fc   :  { %13681 = vst [vmem:[#allocation387_spill] sm:$0xff] %v10703_v5  ;;  %v2777_v59 = vmul.f32 -0.071428575, %v6033_v55  ;;  %v3770_v55 = vmul.f32 %v5282_v1, %v3520_v4  ;;  %v5286_v11 = vpop.eup %5285  ;;  %v2783_v58 = vmul.f32 -0.071428575, %v6039_v14  ;;  %v3525_v60 = vmin.f32 %v6913_v31, %v9160_v35 }
 0x3fe   :  { %v3039_v2 = vmul.f32 1.442695, %v2777_v59  ;;  %v3522_v59 = vmin.f32 %v6874_v8, %v9118_v26  ;;  %v3045_v8 = vmul.f32 1.442695, %v2780_v45  ;;  %v6038_v26 = vld [vmem:[%s13292_s0 + $0x88] sm:$0xff] }
 0x3ff   :  { %v10718_v5 = vpop.xlane.xlu1 %2583  ;;  %4269 = vrot.lane.b32.xlu1 %v3767_v33, %s6271_s25  ;;  %v10724_v44 = vpop.xlane.xlu0 %2580  ;;  %v3051_v35 = vmul.f32 1.442695, %v2783_v58 }
 0x400   :  { %4265 = vrot.lane.b32.xlu0 %v3765_v17, %s6271_s25  ;;  %5295 = vpow2.f32 %v3039_v2  ;;  %v6037_v17 = vld [vmem:[%s13292_s0 + $0x80] sm:$0xff]  ;;  %v3772_v1 = vmul.f32 %v5286_v11, %v3522_v59  ;;  %v3524_v2 = vmin.f32 %v6892_v18, %v9136_v61  ;;  %v6040_v61 = vld [vmem:[%s13292_s0 + $0x98] sm:$0xff]  ;;  %v3526_v59 = vmin.f32 %v6910_v28, %v9154_v49  ;;  %v6042_v49 = vld [vmem:[%s13292_s0 + $0xa8] sm:$0xff] }
 0x401   :  { %v2781_v25 = vmul.f32 -0.071428575, %v6037_v17  ;;  %5297 = vpow2.f32 %v3041_v62  ;;  %v2784_v37 = vmul.f32 -0.071428575, %v6040_v61  ;;  %v6041_v11 = vld [vmem:[%s13292_s0 + $0xa0] sm:$0xff] }
 0x402   :  { %v5288_v22 = vpop.eup %5287  ;;  %5299 = vpow2.f32 %v3043_v30  ;;  %v2785_v30 = vmul.f32 -0.071428575, %v6041_v11  ;;  %v6045_v61 = vld [vmem:[%s13292_s0 + $0xc0] sm:$0xff] }
 0x403   :  { %v10734_v33 = vpop.xlane.xlu1 %2589  ;;  %4271 = vrot.lane.b32.xlu1 %v3768_v47, %s6271_s25  ;;  %v10740_v56 = vpop.xlane.xlu0 %2586  ;;  %v2782_v47 = vmul.f32 -0.071428575, %v6038_v26  ;;  %v3047_v0 = vmul.f32 1.442695, %v2781_v25  ;;  %5301 = vpow2.f32 %v3045_v8  ;;  %v3527_v25 = vmin.f32 %v6931_v41, %v9178_v10 }
 0x404   :  { %4273 = vrot.lane.b32.xlu0 %v3769_v7, %s6271_s25  ;;  %v5290_v21 = vpop.eup %5289  ;;  %v3773_v7 = vmul.f32 %v5288_v22, %v3523_v52  ;;  %v3053_v28 = vmul.f32 1.442695, %v2784_v37  ;;  %v2786_v22 = vmul.f32 -0.071428575, %v6042_v49  ;;  %v3055_v10 = vmul.f32 1.442695, %v2785_v30 }
 0x405   :  { %v5292_v62 = vpop.eup %5291  ;;  %v3049_v18 = vmul.f32 1.442695, %v2782_v47  ;;  %5303 = vpow2.f32 %v3047_v0  ;;  %v3528_v47 = vmin.f32 %v6928_v38, %v9172_v20  ;;  %v3529_v0 = vmin.f32 %v6949_v54, %v9196_v48  ;;  %v6044_v20 = vld [vmem:[%s13292_s0 + $0xb8] sm:$0xff] }
 0x406   :  { %v5294_v31 = vpop.eup %5293  ;;  %v3775_v17 = vmul.f32 %v5292_v62, %v3525_v60  ;;  %v3057_v38 = vmul.f32 1.442695, %v2786_v22  ;;  %v2789_v37 = vmul.f32 -0.071428575, %v6045_v61  ;;  %v3533_v22 = vmin.f32 %v6985_v15, %v9232_v9  ;;  %v6051_v61 = vld [vmem:[%s13292_s0 + $0xf0] sm:$0xff] }
 0x407   :  { %v10750_v46 = vpop.xlane.xlu1 %2595  ;;  %4275 = vrot.lane.b32.xlu1 %v3770_v55, %s6271_s25  ;;  %v10756_v4 = vpop.xlane.xlu0 %2592  ;;  %v3774_v55 = vmul.f32 %v5290_v21, %v3524_v2  ;;  %5305 = vpow2.f32 %v3049_v18  ;;  %v3776_v26 = vmul.f32 %v5294_v31, %v3526_v59  ;;  %v3530_v18 = vmin.f32 %v6946_v50, %v9190_v32  ;;  %v6046_v32 = vld [vmem:[%s13292_s0 + $0xc8] sm:$0xff] }
 0x408   :  { %4277 = vrot.lane.b32.xlu0 %v3771_v42, %s6271_s25  ;;  %5307 = vpow2.f32 %v3051_v35  ;;  %v3531_v59 = vmin.f32 %v6967_v3, %v9214_v29  ;;  %v2790_v11 = vmul.f32 -0.071428575, %v6046_v32  ;;  %v3063_v29 = vmul.f32 1.442695, %v2789_v37 }
 0x409   :  { %5309 = vpow2.f32 %v3053_v28  ;;  %v2795_v37 = vmul.f32 -0.071428575, %v6051_v61  ;;  %v13687_v61 = vld [vmem:[#allocation3_spill] sm:$0xff] }
 0x40a   :  { %v5296_v52 = vpop.eup %5295  ;;  %5311 = vpow2.f32 %v3055_v10 }
 0x40b   :  { %v10766_v23 = vpop.xlane.xlu1 %2601  ;;  %4279 = vrot.lane.b32.xlu1 %v3772_v1, %s6271_s25  ;;  %v10772_v45 = vpop.xlane.xlu0 %2598  ;;  %v6043_v1 = vld [vmem:[%s13292_s0 + $0xb0] sm:$0xff]  ;;  %v3777_v21 = vmul.f32 %v5296_v52, %v3527_v25  ;;  %5313 = vpow2.f32 %v3057_v38  ;;  %v3532_v25 = vmin.f32 %v6964_v63, %v9208_v13  ;;  %v3065_v63 = vmul.f32 1.442695, %v2790_v11  ;;  %v6048_v13 = vld [vmem:[%s13292_s0 + $0xd8] sm:$0xff] }
 0x40c   :  { %4281 = vrot.lane.b32.xlu0 %v3773_v7, %s6271_s25  ;;  %v5298_v41 = vpop.eup %5297  ;;  %v2787_v2 = vmul.f32 -0.071428575, %v6043_v1  ;;  %v2788_v7 = vmul.f32 -0.071428575, %v6044_v20  ;;  %v6047_v52 = vld [vmem:[%s13292_s0 + $0xd0] sm:$0xff]  ;;  %v3535_v38 = vmin.f32 %v7003_v27, %v9250_v53 }
 0x40d   :  { %v5300_v58 = vpop.eup %5299  ;;  %v3778_v62 = vmul.f32 %v5298_v41, %v3528_v47  ;;  %v2791_v28 = vmul.f32 -0.071428575, %v6047_v52  ;;  %v2792_v41 = vmul.f32 -0.071428575, %v6048_v13 }
 0x40e   :  { %v5302_v54 = vpop.eup %5301  ;;  %v3059_v48 = vmul.f32 1.442695, %v2787_v2  ;;  %v3061_v50 = vmul.f32 1.442695, %v2788_v7  ;;  %v3534_v2 = vmin.f32 %v6982_v12, %v9226_v16  ;;  %v6050_v16 = vld [vmem:[%s13292_s0 + $0xe8] sm:$0xff] }
 0x40f   :  { %v10782_v42 = vpop.xlane.xlu1 %2607  ;;  %4283 = vrot.lane.b32.xlu1 %v3774_v55, %s6271_s25  ;;  %v10788_v8 = vpop.xlane.xlu0 %2604  ;;  %v3779_v55 = vmul.f32 %v5300_v58, %v3529_v0  ;;  %v3067_v9 = vmul.f32 1.442695, %v2791_v28  ;;  %v3069_v12 = vmul.f32 1.442695, %v2792_v41  ;;  %v3539_v28 = vmin.f32 %v7039_v57, %v9286_v19  ;;  %v13682_v41 = vld [vmem:[#allocation227_spill] sm:$0xff] }
 0x410   :  { %4285 = vrot.lane.b32.xlu0 %v3775_v17, %s6271_s25  ;;  %v5304_v35 = vpop.eup %5303  ;;  %v3780_v17 = vmul.f32 %v5302_v54, %v3530_v18  ;;  %5315 = vpow2.f32 %v3059_v48  ;;  %v3536_v48 = vmin.f32 %v7000_v24, %v9244_v43  ;;  %v6052_v43 = vld [vmem:[%s13292_s0 + $0xf8] sm:$0xff] }
 0x411   :  { %v5306_v3 = vpop.eup %5305  ;;  %v3781_v49 = vmul.f32 %v5304_v35, %v3531_v59  ;;  %5317 = vpow2.f32 %v3061_v50  ;;  %v3537_v59 = vmin.f32 %v7021_v40, %v9268_v34  ;;  %v2796_v32 = vmul.f32 -0.071428575, %v6052_v43 }
 0x412   :  { %v5308_v47 = vpop.eup %5307  ;;  %v3782_v1 = vmul.f32 %v5306_v3, %v3532_v25  ;;  %5319 = vpow2.f32 %v3063_v29  ;;  %v3538_v25 = vmin.f32 %v7018_v36, %v9262_v6  ;;  %v3075_v34 = vmul.f32 1.442695, %v2795_v37  ;;  %v6053_v3 = vld [vmem:[%s13292_s0 + $0x100] sm:$0xff]  ;;  %v6054_v6 = vld [vmem:[%s13292_s0 + $0x108] sm:$0xff] }
 0x413   :  { %v10798_v14 = vpop.xlane.xlu1 %2613  ;;  %4287 = vrot.lane.b32.xlu1 %v3776_v26, %s6271_s25  ;;  %v10804_v60 = vpop.xlane.xlu0 %2610  ;;  %v3783_v58 = vmul.f32 %v5308_v47, %v3533_v22  ;;  %5321 = vpow2.f32 %v3065_v63  ;;  %v2797_v29 = vmul.f32 -0.071428575, %v6053_v3  ;;  %v3077_v36 = vmul.f32 1.442695, %v2796_v32  ;;  %v13688_v32 = vld [vmem:[#allocation231_spill] sm:$0xff] }
 0x414   :  { %4289 = vrot.lane.b32.xlu0 %v3777_v21, %s6271_s25  ;;  %v5310_v15 = vpop.eup %5309  ;;  %v6049_v21 = vld [vmem:[%s13292_s0 + $0xe0] sm:$0xff]  ;;  %5323 = vpow2.f32 %v3067_v9  ;;  %v2798_v47 = vmul.f32 -0.071428575, %v6054_v6  ;;  %v13691_v6 = vld [vmem:[#allocation5_spill] sm:$0xff] }
 0x415   :  { %v2793_v0 = vmul.f32 -0.071428575, %v6049_v21  ;;  %v5312_v7 = vpop.eup %5311  ;;  %v3784_v54 = vmul.f32 %v5310_v15, %v3534_v2  ;;  %5325 = vpow2.f32 %v3069_v12  ;;  %v3079_v19 = vmul.f32 1.442695, %v2797_v29  ;;  %v6055_v15 = vld [vmem:[%s13292_s0 + $0x110] sm:$0xff]  ;;  %v6058_v29 = vld [vmem:[%s13292_s0 + $0x128] sm:$0xff] }
 0x416   :  { %v5314_v27 = vpop.eup %5313  ;;  %v2799_v9 = vmul.f32 -0.071428575, %v6055_v15  ;;  %v13693_v15 = vld [vmem:[#allocation8_spill] sm:$0xff] }
 0x417   :  { %v10814_v31 = vpop.xlane.xlu1 %2619  ;;  %4291 = vrot.lane.b32.xlu1 %v3778_v62, %s6271_s25  ;;  %v10820_v30 = vpop.xlane.xlu0 %2616  ;;  %v2794_v62 = vmul.f32 -0.071428575, %v6050_v16  ;;  %v3071_v53 = vmul.f32 1.442695, %v2793_v0  ;;  %v13684_v0 = vld [vmem:[#allocation229_spill] sm:$0xff] }
 0x418   :  { %4293 = vrot.lane.b32.xlu0 %v3779_v55, %s6271_s25  ;;  %v3785_v55 = vmul.f32 %v5312_v7, %v3535_v38  ;;  %v3081_v16 = vmul.f32 1.442695, %v2798_v47 }
 0x419   :  { %v3073_v24 = vmul.f32 1.442695, %v2794_v62  ;;  %5327 = vpow2.f32 %v3071_v53  ;;  %v6056_v62 = vld [vmem:[%s13292_s0 + $0x118] sm:$0xff]  ;;  %v13686_v53 = vld [vmem:[#allocation228_spill] sm:$0xff] }
 0x41a   :  { %v5316_v50 = vpop.eup %5315  ;;  %v3542_v37 = vmin.f32 %v13687_v61, %v13686_v53 }
 0x41b   :  { %v10830_v26 = vpop.xlane.xlu1 %2625  ;;  %4295 = vrot.lane.b32.xlu1 %v3780_v17, %s6271_s25  ;;  %v10836_v10 = vpop.xlane.xlu0 %2622  ;;  %v3786_v17 = vmul.f32 %v5314_v27, %v3536_v48  ;;  %v3787_v52 = vmul.f32 %v5316_v50, %v3537_v59  ;;  %5329 = vpow2.f32 %v3073_v24  ;;  %v3083_v59 = vmul.f32 1.442695, %v2799_v9  ;;  %v6057_v50 = vld [vmem:[%s13292_s0 + $0x120] sm:$0xff] }
 0x41c   :  { %4297 = vrot.lane.b32.xlu0 %v3781_v49, %s6271_s25  ;;  %v5318_v40 = vpop.eup %5317  ;;  %5331 = vpow2.f32 %v3075_v34  ;;  %v2801_v24 = vmul.f32 -0.071428575, %v6057_v50 }
 0x41d   :  { %v5320_v22 = vpop.eup %5319  ;;  %v3788_v13 = vmul.f32 %v5318_v40, %v3538_v25  ;;  %5333 = vpow2.f32 %v3077_v36  ;;  %v13690_v36 = vld [vmem:[#allocation230_spill] sm:$0xff] }
 0x41e   :  { %v5322_v57 = vpop.eup %5321  ;;  %v3789_v21 = vmul.f32 %v5320_v22, %v3539_v28  ;;  %5335 = vpow2.f32 %v3079_v19  ;;  %v3544_v47 = vmin.f32 %v13691_v6, %v13690_v36  ;;  %v13692_v19 = vld [vmem:[#allocation233_spill] sm:$0xff]  ;;  %v13698_v36 = vld [vmem:[#allocation234_spill] sm:$0xff] }
 0x41f   :  { %v10846_v20 = vpop.xlane.xlu1 %2631  ;;  %4299 = vrot.lane.b32.xlu1 %v3782_v1, %s6271_s25  ;;  %v10852_v18 = vpop.xlane.xlu0 %2628  ;;  %v13683_v1 = vld [vmem:[#allocation2_spill] sm:$0xff]  ;;  %5337 = vpow2.f32 %v3081_v16  ;;  %v3545_v9 = vmin.f32 %v13693_v15, %v13692_v19  ;;  %v13699_v6 = vld [vmem:[#allocation9_spill] sm:$0xff]  ;;  %v13701_v15 = vld [vmem:[#allocation12_spill] sm:$0xff] }
 0x420   :  { %4301 = vrot.lane.b32.xlu0 %v3783_v58, %s6271_s25  ;;  %v3540_v2 = vmin.f32 %v13683_v1, %v13682_v41  ;;  %v13685_v58 = vld [vmem:[#allocation4_spill] sm:$0xff]  ;;  %v5324_v12 = vpop.eup %5323  ;;  %5339 = vpow2.f32 %v3083_v59  ;;  %v3087_v41 = vmul.f32 1.442695, %v2801_v24  ;;  %v13696_v24 = vld [vmem:[#allocation235_spill] sm:$0xff]  ;;  %v13700_v19 = vld [vmem:[#allocation237_spill] sm:$0xff] }
 0x421   :  { %v3541_v38 = vmin.f32 %v13685_v58, %v13684_v0  ;;  %v6059_v1 = vld [vmem:[%s13292_s0 + $0x130] sm:$0xff] }
 0x422   :  { %v3790_v27 = vmul.f32 %v5322_v57, %v3540_v2  ;;  %v2803_v2 = vmul.f32 -0.071428575, %v6059_v1  ;;  %v6063_v1 = vld [vmem:[%s13292_s0 + $0x150] sm:$0xff] }
 0x423   :  { %v10862_v35 = vpop.xlane.xlu1 %2637  ;;  %4303 = vrot.lane.b32.xlu1 %v3784_v54, %s6271_s25  ;;  %v10868_v11 = vpop.xlane.xlu0 %2634  ;;  %v2800_v54 = vmul.f32 -0.071428575, %v6056_v62  ;;  %v3791_v43 = vmul.f32 %v5324_v12, %v3541_v38  ;;  %v6060_v38 = vld [vmem:[%s13292_s0 + $0x138] sm:$0xff] }
 0x424   :  { %4305 = vrot.lane.b32.xlu0 %v3785_v55, %s6271_s25  ;;  %v5326_v55 = vpop.eup %5325  ;;  %v2804_v12 = vmul.f32 -0.071428575, %v6060_v38 }
 0x425   :  { %v5328_v34 = vpop.eup %5327  ;;  %v3085_v3 = vmul.f32 1.442695, %v2800_v54  ;;  %v3792_v22 = vmul.f32 %v5326_v55, %v3542_v37  ;;  %v13694_v54 = vld [vmem:[#allocation232_spill] sm:$0xff]  ;;  %v3091_v37 = vmul.f32 1.442695, %v2803_v2  ;;  %v6061_v55 = vld [vmem:[%s13292_s0 + $0x140] sm:$0xff] }
 0x426   :  { %v2805_v59 = vmul.f32 -0.071428575, %v6061_v55  ;;  %v2807_v2 = vmul.f32 -0.071428575, %v6063_v1  ;;  %v13707_v1 = vld [vmem:[#allocation13_spill] sm:$0xff] }
 0x427   :  { %v10878_v49 = vpop.xlane.xlu1 %2643  ;;  %4307 = vrot.lane.b32.xlu1 %v3786_v17, %s6271_s25  ;;  %v10884_v63 = vpop.xlane.xlu0 %2640  ;;  %v13689_v17 = vld [vmem:[#allocation6_spill] sm:$0xff]  ;;  %5341 = vpow2.f32 %v3085_v3  ;;  %v6062_v3 = vld [vmem:[%s13292_s0 + $0x148] sm:$0xff] }
 0x428   :  { %4309 = vrot.lane.b32.xlu0 %v3787_v52, %s6271_s25  ;;  %v3543_v25 = vmin.f32 %v13689_v17, %v13688_v32  ;;  %v2802_v52 = vmul.f32 -0.071428575, %v6058_v29  ;;  %5343 = vpow2.f32 %v3087_v41  ;;  %v2806_v29 = vmul.f32 -0.071428575, %v6062_v3 }
 0x429   :  { %v3095_v41 = vmul.f32 1.442695, %v2805_v59  ;;  %v3099_v59 = vmul.f32 1.442695, %v2807_v2 }
 0x42a   :  { %v3793_v57 = vmul.f32 %v5328_v34, %v3543_v25  ;;  %v3089_v58 = vmul.f32 1.442695, %v2802_v52  ;;  %v3093_v34 = vmul.f32 1.442695, %v2804_v12  ;;  %v3097_v38 = vmul.f32 1.442695, %v2806_v29 }
 0x42b   :  { %v10894_v7 = vpop.xlane.xlu1 %2649  ;;  %4311 = vrot.lane.b32.xlu1 %v3788_v13, %s6271_s25  ;;  %v10900_v48 = vpop.xlane.xlu0 %2646  ;;  %v6064_v12 = vld [vmem:[%s13292_s0 + $0x158] sm:$0xff] }
 0x42c   :  { %4313 = vrot.lane.b32.xlu0 %v3789_v21, %s6271_s25  ;;  %v5330_v13 = vpop.eup %5329  ;;  %5345 = vpow2.f32 %v3089_v58 }
 0x42d   :  { %v5332_v0 = vpop.eup %5331  ;;  %v3794_v62 = vmul.f32 %v5330_v13, %v3544_v47  ;;  %v3548_v47 = vmin.f32 %v13699_v6, %v13698_v36  ;;  %5347 = vpow2.f32 %v3091_v37  ;;  %v6066_v36 = vld [vmem:[%s13292_s0 + $0x168] sm:$0xff] }
 0x42e   :  { %v5334_v61 = vpop.eup %5333  ;;  %v3795_v50 = vmul.f32 %v5332_v0, %v3545_v9  ;;  %v3549_v9 = vmin.f32 %v13701_v15, %v13700_v19  ;;  %5349 = vpow2.f32 %v3093_v34  ;;  %v2810_v6 = vmul.f32 -0.071428575, %v6066_v36  ;;  %v6067_v15 = vld [vmem:[%s13292_s0 + $0x170] sm:$0xff] }
 0x42f   :  { %v10910_v40 = vpop.xlane.xlu1 %2655  ;;  %4315 = vrot.lane.b32.xlu1 %v3790_v27, %s6271_s25  ;;  %v10916_v28 = vpop.xlane.xlu0 %2652  ;;  %v13695_v27 = vld [vmem:[#allocation7_spill] sm:$0xff]  ;;  %5351 = vpow2.f32 %v3095_v41  ;;  %v13706_v41 = vld [vmem:[#allocation238_spill] sm:$0xff] }
 0x430   :  { %4317 = vrot.lane.b32.xlu0 %v3791_v43, %s6271_s25  ;;  %v3546_v53 = vmin.f32 %v13695_v27, %v13694_v54  ;;  %v13697_v43 = vld [vmem:[#allocation10_spill] sm:$0xff]  ;;  %v5336_v25 = vpop.eup %5335  ;;  %5353 = vpow2.f32 %v3097_v38  ;;  %v3552_v2 = vmin.f32 %v13707_v1, %v13706_v41  ;;  %v13708_v38 = vld [vmem:[#allocation241_spill] sm:$0xff] }
 0x431   :  { %v3547_v32 = vmin.f32 %v13697_v43, %v13696_v24  ;;  %v5338_v13 = vpop.eup %5337  ;;  %5355 = vpow2.f32 %v3099_v59 }
 0x432   :  { %v5340_v58 = vpop.eup %5339  ;;  %v3798_v27 = vmul.f32 %v5338_v13, %v3548_v47 }
 0x433   :  { %v10926_v21 = vpop.xlane.xlu1 %2661  ;;  %4319 = vrot.lane.b32.xlu1 %v3792_v22, %s6271_s25  ;;  %v10932_v16 = vpop.xlane.xlu0 %2658  ;;  %v3796_v22 = vmul.f32 %v5334_v61, %v3546_v53  ;;  %v13702_v53 = vld [vmem:[#allocation236_spill] sm:$0xff]  ;;  %v13703_v61 = vld [vmem:[#allocation11_spill] sm:$0xff]  ;;  %v3799_v43 = vmul.f32 %v5340_v58, %v3549_v9  ;;  %v2811_v9 = vmul.f32 -0.071428575, %v6067_v15 }
 0x434   :  { %4321 = vrot.lane.b32.xlu0 %v3793_v57, %s6271_s25  ;;  %v3797_v57 = vmul.f32 %v5336_v25, %v3547_v32  ;;  %v3550_v37 = vmin.f32 %v13703_v61, %v13702_v53  ;;  %v5342_v55 = vpop.eup %5341  ;;  %v13704_v32 = vld [vmem:[#allocation239_spill] sm:$0xff]  ;;  %v13705_v25 = vld [vmem:[#allocation14_spill] sm:$0xff]  ;;  %v3105_v61 = vmul.f32 1.442695, %v2810_v6 }
 0x435   :  { %v3551_v34 = vmin.f32 %v13705_v25, %v13704_v32  ;;  %v5344_v29 = vpop.eup %5343  ;;  %v13712_v6 = vld [vmem:[#allocation243_spill] sm:$0xff] }
 0x436   :  { %v3800_v13 = vmul.f32 %v5342_v55, %v3550_v37  ;;  %v6068_v37 = vld [vmem:[%s13292_s0 + $0x178] sm:$0xff] }
 0x437   :  { %v10942_v17 = vpop.xlane.xlu1 %2667  ;;  %4323 = vrot.lane.b32.xlu1 %v3794_v62, %s6271_s25  ;;  %v10948_v52 = vpop.xlane.xlu0 %2664  ;;  %v2808_v62 = vmul.f32 -0.071428575, %v6064_v12  ;;  %v3801_v58 = vmul.f32 %v5344_v29, %v3551_v34  ;;  %v13709_v12 = vld [vmem:[#allocation16_spill] sm:$0xff]  ;;  %v2812_v55 = vmul.f32 -0.071428575, %v6068_v37  ;;  %v6069_v29 = vld [vmem:[%s13292_s0 + $0x180] sm:$0xff] }
 0x438   :  { %4325 = vrot.lane.b32.xlu0 %v3795_v50, %s6271_s25  ;;  %v6065_v50 = vld [vmem:[%s13292_s0 + $0x160] sm:$0xff]  ;;  %v3107_v34 = vmul.f32 1.442695, %v2811_v9 }
 0x439   :  { %v2809_v24 = vmul.f32 -0.071428575, %v6065_v50 }
 0x43b   :  { %v10958_v0 = vpop.xlane.xlu1 %2673  ;;  %4327 = vrot.lane.b32.xlu1 %v3796_v22, %s6271_s25  ;;  %v10964_v54 = vpop.xlane.xlu0 %2670  ;;  %v3101_v22 = vmul.f32 1.442695, %v2808_v62  ;;  %v3103_v19 = vmul.f32 1.442695, %v2809_v24  ;;  %v3553_v62 = vmin.f32 %v13709_v12, %v13708_v38  ;;  %v13710_v24 = vld [vmem:[#allocation240_spill] sm:$0xff]  ;;  %v13714_v38 = vld [vmem:[#allocation242_spill] sm:$0xff] }
 0x43c   :  { %4329 = vrot.lane.b32.xlu0 %v3797_v57, %s6271_s25  ;;  %v5346_v57 = vpop.eup %5345  ;;  %v13715_v12 = vld [vmem:[#allocation17_spill] sm:$0xff] }
 0x43d   :  { %v5348_v53 = vpop.eup %5347  ;;  %5357 = vpow2.f32 %v3101_v22  ;;  %v3802_v50 = vmul.f32 %v5346_v57, %v3552_v2  ;;  %v2813_v22 = vmul.f32 -0.071428575, %v6069_v29  ;;  %v3109_v57 = vmul.f32 1.442695, %v2812_v55 }
 0x43e   :  { %v5350_v25 = vpop.eup %5349  ;;  %5359 = vpow2.f32 %v3103_v19  ;;  %v3803_v36 = vmul.f32 %v5348_v53, %v3553_v62  ;;  %v6070_v19 = vld [vmem:[%s13292_s0 + $0x188] sm:$0xff]  ;;  %v3556_v62 = vmin.f32 %v13715_v12, %v13714_v38 }
 0x43f   :  { %v10974_v3 = vpop.xlane.xlu1 %2679  ;;  %4331 = vrot.lane.b32.xlu1 %v3798_v27, %s6271_s25  ;;  %v10980_v47 = vpop.xlane.xlu0 %2676  ;;  %5361 = vpow2.f32 %v3105_v61  ;;  %v2814_v15 = vmul.f32 -0.071428575, %v6070_v19  ;;  %v3111_v37 = vmul.f32 1.442695, %v2813_v22  ;;  %v6071_v61 = vld [vmem:[%s13292_s0 + $0x190] sm:$0xff] }
 0x440   :  { %4333 = vrot.lane.b32.xlu0 %v3799_v43, %s6271_s25  ;;  %v13711_v43 = vld [vmem:[#allocation15_spill] sm:$0xff]  ;;  %v5352_v2 = vpop.eup %5351  ;;  %5363 = vpow2.f32 %v3107_v34  ;;  %v2815_v55 = vmul.f32 -0.071428575, %v6071_v61  ;;  %v6072_v34 = vld [vmem:[%s13292_s0 + $0x198] sm:$0xff]  ;;  %v13719_v19 = vld [vmem:[#allocation244_spill] sm:$0xff] }
 0x441   :  { %v3554_v32 = vmin.f32 %v13711_v43, %v13710_v24  ;;  %v5354_v53 = vpop.eup %5353  ;;  %v13716_v24 = vld [vmem:[#allocation245_spill] sm:$0xff]  ;;  %v13717_v43 = vld [vmem:[#allocation20_spill] sm:$0xff]  ;;  %5365 = vpow2.f32 %v3109_v57  ;;  %v2816_v22 = vmul.f32 -0.071428575, %v6072_v34  ;;  %v6073_v57 = vld [vmem:[%s13292_s0 + $0x1a0] sm:$0xff] }
 0x442   :  { %v3557_v29 = vmin.f32 %v13717_v43, %v13716_v24  ;;  %5367 = vpow2.f32 %v3111_v37  ;;  %v3115_v12 = vmul.f32 1.442695, %v2815_v55  ;;  %v13721_v61 = vld [vmem:[#allocation247_spill] sm:$0xff]  ;;  %v13722_v24 = vld [vmem:[#allocation22_spill] sm:$0xff] }
 0x443   :  { %v10990_v27 = vpop.xlane.xlu1 %2685  ;;  %4335 = vrot.lane.b32.xlu1 %v3800_v13, %s6271_s25  ;;  %v10996_v59 = vpop.xlane.xlu0 %2682  ;;  %v13713_v13 = vld [vmem:[#allocation18_spill] sm:$0xff]  ;;  %v3559_v43 = vmin.f32 %v13722_v24, %v13721_v61  ;;  %v6074_v37 = vld [vmem:[%s13292_s0 + $0x1a8] sm:$0xff]  ;;  %v13727_v24 = vld [vmem:[#allocation249_spill] sm:$0xff] }
 0x444   :  { %4337 = vrot.lane.b32.xlu0 %v3801_v58, %s6271_s25  ;;  %v3555_v41 = vmin.f32 %v13713_v13, %v13712_v6  ;;  %v3804_v58 = vmul.f32 %v5350_v25, %v3554_v32  ;;  %v5356_v32 = vpop.eup %5355  ;;  %v3113_v25 = vmul.f32 1.442695, %v2814_v15  ;;  %v3806_v13 = vmul.f32 %v5354_v53, %v3556_v62 }
 0x445   :  { %v2817_v15 = vmul.f32 -0.071428575, %v6073_v57  ;;  %v3117_v53 = vmul.f32 1.442695, %v2816_v22  ;;  %v2818_v55 = vmul.f32 -0.071428575, %v6074_v37 }
 0x446   :  { %5369 = vpow2.f32 %v3113_v25  ;;  %v6075_v25 = vld [vmem:[%s13292_s0 + $0x1b0] sm:$0xff] }
 0x447   :  { %v11006_v1 = vpop.xlane.xlu1 %2691  ;;  %4339 = vrot.lane.b32.xlu1 %v3802_v50, %s6271_s25  ;;  %v11012_v9 = vpop.xlane.xlu0 %2688  ;;  %v3805_v50 = vmul.f32 %v5352_v2, %v3555_v41  ;;  %v13720_v41 = vld [vmem:[#allocation19_spill] sm:$0xff]  ;;  %5371 = vpow2.f32 %v3115_v12  ;;  %v3119_v61 = vmul.f32 1.442695, %v2817_v15  ;;  %v2819_v22 = vmul.f32 -0.071428575, %v6075_v25  ;;  %v6076_v12 = vld [vmem:[%s13292_s0 + $0x1b8] sm:$0xff] }
 0x448   :  { %4341 = vrot.lane.b32.xlu0 %v3803_v36, %s6271_s25  ;;  %v3558_v2 = vmin.f32 %v13720_v41, %v13719_v19  ;;  %v5358_v38 = vpop.eup %5357  ;;  %v13725_v41 = vld [vmem:[#allocation246_spill] sm:$0xff]  ;;  %5373 = vpow2.f32 %v3117_v53  ;;  %v2820_v15 = vmul.f32 -0.071428575, %v6076_v12 }
 0x449   :  { %v5360_v62 = vpop.eup %5359  ;;  %5375 = vpow2.f32 %v3119_v61  ;;  %v3123_v25 = vmul.f32 1.442695, %v2819_v22  ;;  %v6077_v53 = vld [vmem:[%s13292_s0 + $0x1c0] sm:$0xff]  ;;  %v6078_v61 = vld [vmem:[%s13292_s0 + $0x1c8] sm:$0xff] }
 0x44a   :  { %v3808_v19 = vmul.f32 %v5358_v38, %v3558_v2  ;;  %v5362_v57 = vpop.eup %5361  ;;  %v3121_v38 = vmul.f32 1.442695, %v2818_v55  ;;  %v2821_v55 = vmul.f32 -0.071428575, %v6077_v53  ;;  %v2822_v22 = vmul.f32 -0.071428575, %v6078_v61 }
 0x44b   :  { %v11022_v6 = vpop.xlane.xlu1 %2697  ;;  %4343 = vrot.lane.b32.xlu1 %v3804_v58, %s6271_s25  ;;  %v11028_v36 = vpop.xlane.xlu0 %2694  ;;  %v3807_v58 = vmul.f32 %v5356_v32, %v3557_v29  ;;  %v13726_v29 = vld [vmem:[#allocation21_spill] sm:$0xff] }
 0x44c   :  { %13718 = vst [vmem:[#allocation227_spill] sm:$0xff] %v11022_v6  ;;  %4345 = vrot.lane.b32.xlu0 %v3805_v50, %s6271_s25  ;;  %v3560_v32 = vmin.f32 %v13726_v29, %v13725_v41  ;;  %v5364_v2 = vpop.eup %5363  ;;  %v13731_v29 = vld [vmem:[#allocation248_spill] sm:$0xff]  ;;  %5377 = vpow2.f32 %v3121_v38  ;;  %v3127_v53 = vmul.f32 1.442695, %v2821_v55 }
 0x44d   :  { %5379 = vpow2.f32 %v3123_v25  ;;  %v6079_v38 = vld [vmem:[%s13292_s0 + $0x1d0] sm:$0xff]  ;;  %v6080_v25 = vld [vmem:[%s13292_s0 + $0x1d8] sm:$0xff] }
 0x44e   :  { %v3810_v41 = vmul.f32 %v5362_v57, %v3560_v32  ;;  %v3125_v57 = vmul.f32 1.442695, %v2820_v15  ;;  %v2823_v15 = vmul.f32 -0.071428575, %v6079_v38  ;;  %v2824_v55 = vmul.f32 -0.071428575, %v6080_v25 }
 0x44f   :  { %v11038_v34 = vpop.xlane.xlu1 %2703  ;;  %4347 = vrot.lane.b32.xlu1 %v3806_v13, %s6271_s25  ;;  %v11044_v50 = vpop.xlane.xlu0 %2700  ;;  %v3809_v13 = vmul.f32 %v5360_v62, %v3559_v43  ;;  %v13732_v43 = vld [vmem:[#allocation23_spill] sm:$0xff] }
 0x450   :  { %13723 = vst [vmem:[#allocation2_spill] sm:$0xff] %v11038_v34  ;;  %13724 = vst [vmem:[#allocation229_spill] sm:$0xff] %v11044_v50  ;;  %4349 = vrot.lane.b32.xlu0 %v3807_v58, %s6271_s25  ;;  %v13728_v34 = vld [vmem:[#allocation24_spill] sm:$0xff]  ;;  %v3562_v62 = vmin.f32 %v13732_v43, %v13731_v29  ;;  %v13737_v43 = vld [vmem:[#allocation250_spill] sm:$0xff]  ;;  %5381 = vpow2.f32 %v3125_v57  ;;  %v3131_v38 = vmul.f32 1.442695, %v2823_v15 }
 0x451   :  { %v3561_v37 = vmin.f32 %v13728_v34, %v13727_v24  ;;  %v5366_v34 = vpop.eup %5365  ;;  %v13733_v24 = vld [vmem:[#allocation251_spill] sm:$0xff]  ;;  %5383 = vpow2.f32 %v3127_v53  ;;  %v6081_v57 = vld [vmem:[%s13292_s0 + $0x1e0] sm:$0xff] }
 0x452   :  { %v5368_v32 = vpop.eup %5367  ;;  %v3812_v29 = vmul.f32 %v5366_v34, %v3562_v62  ;;  %v3129_v34 = vmul.f32 1.442695, %v2822_v22  ;;  %v2825_v22 = vmul.f32 -0.071428575, %v6081_v57  ;;  %v6082_v53 = vld [vmem:[%s13292_s0 + $0x1e8] sm:$0xff] }
 0x453   :  { %v11054_v6 = vpop.xlane.xlu1 %2709  ;;  %4351 = vrot.lane.b32.xlu1 %v3808_v19, %s6271_s25  ;;  %v11060_v58 = vpop.xlane.xlu0 %2706  ;;  %v3811_v19 = vmul.f32 %v5364_v2, %v3561_v37  ;;  %v13738_v37 = vld [vmem:[#allocation25_spill] sm:$0xff]  ;;  %v2826_v15 = vmul.f32 -0.071428575, %v6082_v53 }
 0x454   :  { %13729 = vst [vmem:[#allocation4_spill] sm:$0xff] %v11054_v6  ;;  %13730 = vst [vmem:[#allocation228_spill] sm:$0xff] %v11060_v58  ;;  %4353 = vrot.lane.b32.xlu0 %v3809_v13, %s6271_s25  ;;  %v13734_v6 = vld [vmem:[#allocation26_spill] sm:$0xff]  ;;  %v3564_v2 = vmin.f32 %v13738_v37, %v13737_v43  ;;  %v13743_v37 = vld [vmem:[#allocation252_spill] sm:$0xff]  ;;  %5385 = vpow2.f32 %v3129_v34  ;;  %v3135_v57 = vmul.f32 1.442695, %v2825_v22 }
 0x455   :  { %v3563_v12 = vmin.f32 %v13734_v6, %v13733_v24  ;;  %v5370_v6 = vpop.eup %5369  ;;  %v13739_v24 = vld [vmem:[#allocation253_spill] sm:$0xff]  ;;  %5387 = vpow2.f32 %v3131_v38  ;;  %v6083_v34 = vld [vmem:[%s13292_s0 + $0x1f0] sm:$0xff] }
 0x456   :  { %v5372_v62 = vpop.eup %5371  ;;  %v3814_v43 = vmul.f32 %v5370_v6, %v3564_v2  ;;  %v3133_v6 = vmul.f32 1.442695, %v2824_v55  ;;  %v2827_v55 = vmul.f32 -0.071428575, %v6083_v34  ;;  %v6084_v38 = vld [vmem:[%s13292_s0 + $0x1f8] sm:$0xff] }
 0x457   :  { %v11070_v50 = vpop.xlane.xlu1 %2715  ;;  %4355 = vrot.lane.b32.xlu1 %v3810_v41, %s6271_s25  ;;  %v11076_v13 = vpop.xlane.xlu0 %2712  ;;  %v3813_v41 = vmul.f32 %v5368_v32, %v3563_v12  ;;  %v13744_v12 = vld [vmem:[#allocation27_spill] sm:$0xff]  ;;  %v2828_v22 = vmul.f32 -0.071428575, %v6084_v38 }
 0x458   :  { %13735 = vst [vmem:[#allocation3_spill] sm:$0xff] %v11070_v50  ;;  %13736 = vst [vmem:[#allocation231_spill] sm:$0xff] %v11076_v13  ;;  %4357 = vrot.lane.b32.xlu0 %v3811_v19, %s6271_s25  ;;  %v13740_v50 = vld [vmem:[#allocation28_spill] sm:$0xff]  ;;  %v3566_v32 = vmin.f32 %v13744_v12, %v13743_v37  ;;  %v13749_v12 = vld [vmem:[#allocation254_spill] sm:$0xff]  ;;  %5389 = vpow2.f32 %v3133_v6  ;;  %v3139_v34 = vmul.f32 1.442695, %v2827_v55 }
 0x459   :  { %v3565_v61 = vmin.f32 %v13740_v50, %v13739_v24  ;;  %v5374_v50 = vpop.eup %5373  ;;  %v13745_v24 = vld [vmem:[#allocation255_spill] sm:$0xff]  ;;  %5391 = vpow2.f32 %v3135_v57  ;;  %v6085_v6 = vld [vmem:[%s13292_s0 + $0x200] sm:$0xff] }
 0x45a   :  { %v5376_v2 = vpop.eup %5375  ;;  %v3816_v37 = vmul.f32 %v5374_v50, %v3566_v32  ;;  %v3137_v50 = vmul.f32 1.442695, %v2826_v15  ;;  %v2829_v15 = vmul.f32 -0.071428575, %v6085_v6  ;;  %v6086_v57 = vld [vmem:[%s13292_s0 + $0x208] sm:$0xff] }
 0x45b   :  { %v11086_v58 = vpop.xlane.xlu1 %2721  ;;  %4359 = vrot.lane.b32.xlu1 %v3812_v29, %s6271_s25  ;;  %v11092_v19 = vpop.xlane.xlu0 %2718  ;;  %v3815_v29 = vmul.f32 %v5372_v62, %v3565_v61  ;;  %v13750_v61 = vld [vmem:[#allocation29_spill] sm:$0xff]  ;;  %v2830_v55 = vmul.f32 -0.071428575, %v6086_v57 }
 0x45c   :  { %13741 = vst [vmem:[#allocation6_spill] sm:$0xff] %v11086_v58  ;;  %13742 = vst [vmem:[#allocation230_spill] sm:$0xff] %v11092_v19  ;;  %4361 = vrot.lane.b32.xlu0 %v3813_v41, %s6271_s25  ;;  %v13746_v58 = vld [vmem:[#allocation30_spill] sm:$0xff]  ;;  %v3568_v62 = vmin.f32 %v13750_v61, %v13749_v12  ;;  %v13755_v61 = vld [vmem:[#allocation256_spill] sm:$0xff]  ;;  %5393 = vpow2.f32 %v3137_v50  ;;  %v3143_v6 = vmul.f32 1.442695, %v2829_v15 }
 0x45d   :  { %v3567_v25 = vmin.f32 %v13746_v58, %v13745_v24  ;;  %v5378_v58 = vpop.eup %5377  ;;  %v13751_v24 = vld [vmem:[#allocation257_spill] sm:$0xff]  ;;  %5395 = vpow2.f32 %v3139_v34  ;;  %v6087_v50 = vld [vmem:[%s13292_s0 + $0x210] sm:$0xff] }
 0x45e   :  { %v5380_v32 = vpop.eup %5379  ;;  %v3818_v12 = vmul.f32 %v5378_v58, %v3568_v62  ;;  %v3141_v58 = vmul.f32 1.442695, %v2828_v22  ;;  %v2831_v22 = vmul.f32 -0.071428575, %v6087_v50  ;;  %v6088_v34 = vld [vmem:[%s13292_s0 + $0x218] sm:$0xff] }
 0x45f   :  { %v11102_v13 = vpop.xlane.xlu1 %2727  ;;  %4363 = vrot.lane.b32.xlu1 %v3814_v43, %s6271_s25  ;;  %v11108_v41 = vpop.xlane.xlu0 %2724  ;;  %v3817_v43 = vmul.f32 %v5376_v2, %v3567_v25  ;;  %v13756_v25 = vld [vmem:[#allocation31_spill] sm:$0xff]  ;;  %v2832_v15 = vmul.f32 -0.071428575, %v6088_v34 }
 0x460   :  { %13747 = vst [vmem:[#allocation5_spill] sm:$0xff] %v11102_v13  ;;  %13748 = vst [vmem:[#allocation233_spill] sm:$0xff] %v11108_v41  ;;  %4365 = vrot.lane.b32.xlu0 %v3815_v29, %s6271_s25  ;;  %v13752_v13 = vld [vmem:[#allocation32_spill] sm:$0xff]  ;;  %v3570_v2 = vmin.f32 %v13756_v25, %v13755_v61  ;;  %v13761_v25 = vld [vmem:[#allocation258_spill] sm:$0xff]  ;;  %5397 = vpow2.f32 %v3141_v58  ;;  %v3147_v50 = vmul.f32 1.442695, %v2831_v22 }
 0x461   :  { %v3569_v53 = vmin.f32 %v13752_v13, %v13751_v24  ;;  %v5382_v13 = vpop.eup %5381  ;;  %v13757_v24 = vld [vmem:[#allocation259_spill] sm:$0xff]  ;;  %5399 = vpow2.f32 %v3143_v6  ;;  %v6089_v58 = vld [vmem:[%s13292_s0 + $0x220] sm:$0xff] }
 0x462   :  { %v5384_v62 = vpop.eup %5383  ;;  %v3820_v61 = vmul.f32 %v5382_v13, %v3570_v2  ;;  %v3145_v13 = vmul.f32 1.442695, %v2830_v55  ;;  %v2833_v55 = vmul.f32 -0.071428575, %v6089_v58  ;;  %v6090_v6 = vld [vmem:[%s13292_s0 + $0x228] sm:$0xff] }
 0x463   :  { %v11118_v19 = vpop.xlane.xlu1 %2733  ;;  %4367 = vrot.lane.b32.xlu1 %v3816_v37, %s6271_s25  ;;  %v11124_v29 = vpop.xlane.xlu0 %2730  ;;  %v3819_v37 = vmul.f32 %v5380_v32, %v3569_v53  ;;  %v13762_v53 = vld [vmem:[#allocation33_spill] sm:$0xff]  ;;  %v2834_v22 = vmul.f32 -0.071428575, %v6090_v6 }
 0x464   :  { %13753 = vst [vmem:[#allocation8_spill] sm:$0xff] %v11118_v19  ;;  %13754 = vst [vmem:[#allocation232_spill] sm:$0xff] %v11124_v29  ;;  %4369 = vrot.lane.b32.xlu0 %v3817_v43, %s6271_s25  ;;  %v13758_v19 = vld [vmem:[#allocation34_spill] sm:$0xff]  ;;  %v3572_v32 = vmin.f32 %v13762_v53, %v13761_v25  ;;  %v13767_v53 = vld [vmem:[#allocation260_spill] sm:$0xff]  ;;  %5401 = vpow2.f32 %v3145_v13  ;;  %v3151_v58 = vmul.f32 1.442695, %v2833_v55 }
 0x465   :  { %v3571_v38 = vmin.f32 %v13758_v19, %v13757_v24  ;;  %v5386_v19 = vpop.eup %5385  ;;  %v13763_v24 = vld [vmem:[#allocation261_spill] sm:$0xff]  ;;  %5403 = vpow2.f32 %v3147_v50  ;;  %v6091_v13 = vld [vmem:[%s13292_s0 + $0x230] sm:$0xff] }
 0x466   :  { %v5388_v2 = vpop.eup %5387  ;;  %v3822_v25 = vmul.f32 %v5386_v19, %v3572_v32  ;;  %v3149_v19 = vmul.f32 1.442695, %v2832_v15  ;;  %v2835_v15 = vmul.f32 -0.071428575, %v6091_v13  ;;  %v6092_v50 = vld [vmem:[%s13292_s0 + $0x238] sm:$0xff] }
 0x467   :  { %v11134_v41 = vpop.xlane.xlu1 %2739  ;;  %4371 = vrot.lane.b32.xlu1 %v3818_v12, %s6271_s25  ;;  %v11140_v43 = vpop.xlane.xlu0 %2736  ;;  %v3821_v12 = vmul.f32 %v5384_v62, %v3571_v38  ;;  %v13768_v38 = vld [vmem:[#allocation35_spill] sm:$0xff]  ;;  %v2836_v55 = vmul.f32 -0.071428575, %v6092_v50 }
 0x468   :  { %13759 = vst [vmem:[#allocation7_spill] sm:$0xff] %v11134_v41  ;;  %13760 = vst [vmem:[#allocation235_spill] sm:$0xff] %v11140_v43  ;;  %4373 = vrot.lane.b32.xlu0 %v3819_v37, %s6271_s25  ;;  %v13764_v41 = vld [vmem:[#allocation36_spill] sm:$0xff]  ;;  %v3574_v62 = vmin.f32 %v13768_v38, %v13767_v53  ;;  %v13773_v38 = vld [vmem:[#allocation262_spill] sm:$0xff]  ;;  %5405 = vpow2.f32 %v3149_v19  ;;  %v3155_v13 = vmul.f32 1.442695, %v2835_v15 }
 0x469   :  { %v3573_v57 = vmin.f32 %v13764_v41, %v13763_v24  ;;  %v5390_v41 = vpop.eup %5389  ;;  %v13769_v24 = vld [vmem:[#allocation263_spill] sm:$0xff]  ;;  %5407 = vpow2.f32 %v3151_v58  ;;  %v6093_v19 = vld [vmem:[%s13292_s0 + $0x240] sm:$0xff] }
 0x46a   :  { %v5392_v32 = vpop.eup %5391  ;;  %v3824_v53 = vmul.f32 %v5390_v41, %v3574_v62  ;;  %v3153_v41 = vmul.f32 1.442695, %v2834_v22  ;;  %v2837_v22 = vmul.f32 -0.071428575, %v6093_v19  ;;  %v6094_v58 = vld [vmem:[%s13292_s0 + $0x248] sm:$0xff] }
 0x46b   :  { %v11150_v29 = vpop.xlane.xlu1 %2745  ;;  %4375 = vrot.lane.b32.xlu1 %v3820_v61, %s6271_s25  ;;  %v11156_v37 = vpop.xlane.xlu0 %2742  ;;  %v3823_v61 = vmul.f32 %v5388_v2, %v3573_v57  ;;  %v13774_v57 = vld [vmem:[#allocation37_spill] sm:$0xff]  ;;  %v2838_v15 = vmul.f32 -0.071428575, %v6094_v58  ;;  %v13787_v58 = vld [vmem:[#allocation44_spill] sm:$0xff] }
 0x46c   :  { %13765 = vst [vmem:[#allocation10_spill] sm:$0xff] %v11150_v29  ;;  %13766 = vst [vmem:[#allocation234_spill] sm:$0xff] %v11156_v37  ;;  %4377 = vrot.lane.b32.xlu0 %v3821_v12, %s6271_s25  ;;  %v13770_v29 = vld [vmem:[#allocation38_spill] sm:$0xff]  ;;  %v3576_v2 = vmin.f32 %v13774_v57, %v13773_v38  ;;  %v13778_v57 = vld [vmem:[#allocation264_spill] sm:$0xff]  ;;  %5409 = vpow2.f32 %v3153_v41 }
 0x46d   :  { %v3575_v34 = vmin.f32 %v13770_v29, %v13769_v24  ;;  %v5394_v29 = vpop.eup %5393  ;;  %v13775_v24 = vld [vmem:[#allocation265_spill] sm:$0xff]  ;;  %5411 = vpow2.f32 %v3155_v13  ;;  %v6095_v41 = vld [vmem:[%s13292_s0 + $0x250] sm:$0xff] }
 0x46e   :  { %v5396_v62 = vpop.eup %5395  ;;  %v3826_v38 = vmul.f32 %v5394_v29, %v3576_v2  ;;  %v3157_v29 = vmul.f32 1.442695, %v2836_v55  ;;  %v2839_v55 = vmul.f32 -0.071428575, %v6095_v41  ;;  %v6096_v13 = vld [vmem:[%s13292_s0 + $0x258] sm:$0xff] }
 0x46f   :  { %v11166_v43 = vpop.xlane.xlu1 %2751  ;;  %4379 = vrot.lane.b32.xlu1 %v3822_v25, %s6271_s25  ;;  %v11172_v12 = vpop.xlane.xlu0 %2748  ;;  %v3825_v25 = vmul.f32 %v5392_v32, %v3575_v34  ;;  %v13779_v34 = vld [vmem:[#allocation39_spill] sm:$0xff] }
 0x470   :  { %13771 = vst [vmem:[#allocation9_spill] sm:$0xff] %v11166_v43  ;;  %13772 = vst [vmem:[#allocation237_spill] sm:$0xff] %v11172_v12  ;;  %4381 = vrot.lane.b32.xlu0 %v3823_v61, %s6271_s25  ;;  %v13776_v43 = vld [vmem:[#allocation40_spill] sm:$0xff]  ;;  %v3578_v32 = vmin.f32 %v13779_v34, %v13778_v57  ;;  %v13784_v34 = vld [vmem:[#allocation266_spill] sm:$0xff]  ;;  %5413 = vpow2.f32 %v3157_v29 }
 0x471   :  { %v3577_v6 = vmin.f32 %v13776_v43, %v13775_v24  ;;  %v5398_v43 = vpop.eup %5397  ;;  %v13780_v24 = vld [vmem:[#allocation267_spill] sm:$0xff] }
 0x472   :  { %v5400_v2 = vpop.eup %5399  ;;  %v3828_v57 = vmul.f32 %v5398_v43, %v3578_v32  ;;  %v3161_v43 = vmul.f32 1.442695, %v2838_v15  ;;  %v3163_v15 = vmul.f32 1.442695, %v2839_v55 }
 0x473   :  { %v11182_v37 = vpop.xlane.xlu1 %2757  ;;  %4383 = vrot.lane.b32.xlu1 %v3824_v53, %s6271_s25  ;;  %v11188_v61 = vpop.xlane.xlu0 %2754  ;;  %v3827_v53 = vmul.f32 %v5396_v62, %v3577_v6  ;;  %v13785_v6 = vld [vmem:[#allocation41_spill] sm:$0xff] }
 0x474   :  { %13777 = vst [vmem:[#allocation12_spill] sm:$0xff] %v11182_v37  ;;  %4385 = vrot.lane.b32.xlu0 %v3825_v25, %s6271_s25  ;;  %v13781_v37 = vld [vmem:[#allocation42_spill] sm:$0xff]  ;;  %v3580_v62 = vmin.f32 %v13785_v6, %v13784_v34  ;;  %v13789_v34 = vld [vmem:[#allocation43_spill] sm:$0xff] }
 0x475   :  { %v3579_v50 = vmin.f32 %v13781_v37, %v13780_v24  ;;  %v5402_v37 = vpop.eup %5401  ;;  %v13786_v24 = vld [vmem:[#allocation269_spill] sm:$0xff] }
 0x476   :  { %v5404_v32 = vpop.eup %5403 }
 0x477   :  { %v11198_v12 = vpop.xlane.xlu1 %2763  ;;  %4387 = vrot.lane.b32.xlu1 %v3826_v38, %s6271_s25  ;;  %v11204_v25 = vpop.xlane.xlu0 %2760  ;;  %v3159_v38 = vmul.f32 1.442695, %v2837_v22  ;;  %v3829_v19 = vmul.f32 %v5400_v2, %v3579_v50  ;;  %v2840_v22 = vmul.f32 -0.071428575, %v6096_v13  ;;  %v3830_v50 = vmul.f32 %v5402_v37, %v3580_v62  ;;  %v13788_v2 = vld [vmem:[#allocation268_spill] sm:$0xff]  ;;  %v13790_v62 = vld [vmem:[#allocation271_spill] sm:$0xff] }
 0x478   :  { %13782 = vst [vmem:[#allocation236_spill] sm:$0xff] %v11198_v12  ;;  %13783 = vst [vmem:[#allocation11_spill] sm:$0xff] %v11204_v25  ;;  %4389 = vrot.lane.b32.xlu0 %v3827_v53, %s6271_s25  ;;  %v3581_v12 = vmin.f32 %v13787_v58, %v13786_v24  ;;  %v3582_v6 = vmin.f32 %v13789_v34, %v13788_v2  ;;  %v5406_v29 = vpop.eup %5405  ;;  %v13791_v37 = vld [vmem:[#allocation46_spill] sm:$0xff]  ;;  %v13793_v2 = vld [vmem:[#allocation45_spill] sm:$0xff] }
 0x479   :  { %5415 = vpow2.f32 %v3159_v38  ;;  %v3583_v24 = vmin.f32 %v13791_v37, %v13790_v62  ;;  %v5408_v13 = vpop.eup %5407  ;;  %v6098_v38 = vld [vmem:[%s13292_s0 + $0x268] sm:$0xff] }
 0x47a   :  { %v3831_v41 = vmul.f32 %v5404_v32, %v3581_v12  ;;  %5417 = vpow2.f32 %v3161_v43  ;;  %v2842_v55 = vmul.f32 -0.071428575, %v6098_v38  ;;  %v13792_v32 = vld [vmem:[#allocation270_spill] sm:$0xff]  ;;  %v5410_v43 = vpop.eup %5409 }
 0x47b   :  { %v4268_v25 = vpop.permute.xlu1 %4267  ;;  %4391 = vrot.lane.b32.xlu1 %v3828_v57, %s6271_s25  ;;  %v4266_v53 = vpop.permute.xlu0 %4265  ;;  %v6097_v57 = vld [vmem:[%s13292_s0 + $0x260] sm:$0xff]  ;;  %v3584_v34 = vmin.f32 %v13793_v2, %v13792_v32  ;;  %5419 = vpow2.f32 %v3163_v15  ;;  %v3833_v62 = vmul.f32 %v5408_v13, %v3583_v24  ;;  %v6100_v15 = vld [vmem:[%s13292_s0 + $0x278] sm:$0xff]  ;;  %v13796_v13 = vld [vmem:[#allocation272_spill] sm:$0xff] }
 0x47c   :  { %5017 = vst.msk [vmem:[%s13295_s3 + $0x8] sm:$0xff] %vm5015_vm1, %v4268_v25  ;;  %5016 = vst.msk [vmem:[%s13295_s3] sm:$0xff] %vm5015_vm1, %v4266_v53  ;;  %4393 = vrot.lane.b32.xlu0 %v3829_v19, %s6271_s25  ;;  %v2841_v25 = vmul.f32 -0.071428575, %v6097_v57  ;;  %v3165_v53 = vmul.f32 1.442695, %v2840_v22  ;;  %v3832_v19 = vmul.f32 %v5406_v29, %v3582_v6  ;;  %v5412_v38 = vpop.eup %5411 }
 0x47d   :  { %v13794_v6 = vld [vmem:[#allocation273_spill] sm:$0xff]  ;;  %v13795_v29 = vld [vmem:[#allocation48_spill] sm:$0xff]  ;;  %v3834_v24 = vmul.f32 %v5410_v43, %v3584_v34  ;;  %v13797_v32 = vld [vmem:[#allocation47_spill] sm:$0xff] }
 0x47e   :  { %v3167_v22 = vmul.f32 1.442695, %v2841_v25  ;;  %v3585_v37 = vmin.f32 %v13795_v29, %v13794_v6  ;;  %5421 = vpow2.f32 %v3165_v53  ;;  %v2844_v25 = vmul.f32 -0.071428575, %v6100_v15  ;;  %v5414_v53 = vpop.eup %5413  ;;  %v13798_v34 = vld [vmem:[#allocation275_spill] sm:$0xff]  ;;  %v13799_v43 = vld [vmem:[#allocation50_spill] sm:$0xff] }
 0x47f   :  { %4395 = vrot.lane.b32.xlu1 %v3830_v50, %s6271_s25  ;;  %v4270_v58 = vpop.permute.xlu1 %4269  ;;  %v4274_v12 = vpop.permute.xlu0 %4273  ;;  %v6099_v50 = vld [vmem:[%s13292_s0 + $0x270] sm:$0xff]  ;;  %v3586_v2 = vmin.f32 %v13797_v32, %v13796_v13  ;;  %v3587_v29 = vmin.f32 %v13799_v43, %v13798_v34  ;;  %v13801_v13 = vld [vmem:[#allocation49_spill] sm:$0xff] }
 0x480   :  { %5018 = vst.msk [vmem:[%s13295_s3 + $0x10] sm:$0xff] %vm5015_vm1, %v4270_v58  ;;  %5020 = vst.msk [vmem:[%s13295_s3 + $0x20] sm:$0xff] %vm5015_vm1, %v4274_v12  ;;  %4397 = vrot.lane.b32.xlu0 %v3831_v41, %s6271_s25  ;;  %v2843_v57 = vmul.f32 -0.071428575, %v6099_v50  ;;  %v3169_v12 = vmul.f32 1.442695, %v2842_v55  ;;  %5423 = vpow2.f32 %v3167_v22  ;;  %v3835_v6 = vmul.f32 %v5412_v38, %v3585_v37 }
 0x481   :  { %v6102_v22 = vld [vmem:[%s13292_s0 + $0x288] sm:$0xff]  ;;  %v3836_v37 = vmul.f32 %v5414_v53, %v3586_v2  ;;  %v13800_v38 = vld [vmem:[#allocation274_spill] sm:$0xff]  ;;  %v13802_v2 = vld [vmem:[#allocation277_spill] sm:$0xff] }
 0x482   :  { %v3171_v55 = vmul.f32 1.442695, %v2843_v57  ;;  %5425 = vpow2.f32 %v3169_v12  ;;  %v2846_v57 = vmul.f32 -0.071428575, %v6102_v22  ;;  %v3588_v32 = vmin.f32 %v13801_v13, %v13800_v38  ;;  %v13803_v53 = vld [vmem:[#allocation52_spill] sm:$0xff]  ;;  %v13805_v38 = vld [vmem:[#allocation51_spill] sm:$0xff] }
 0x483   :  { %4399 = vrot.lane.b32.xlu1 %v3832_v19, %s6271_s25  ;;  %v4272_v58 = vpop.permute.xlu1 %4271  ;;  %v4278_v41 = vpop.permute.xlu0 %4277  ;;  %v6101_v19 = vld [vmem:[%s13292_s0 + $0x280] sm:$0xff]  ;;  %v3589_v43 = vmin.f32 %v13803_v53, %v13802_v2 }
 0x484   :  { %5019 = vst.msk [vmem:[%s13295_s3 + $0x18] sm:$0xff] %vm5015_vm1, %v4272_v58  ;;  %5022 = vst.msk [vmem:[%s13295_s3 + $0x30] sm:$0xff] %vm5015_vm1, %v4278_v41  ;;  %4401 = vrot.lane.b32.xlu0 %v3833_v62, %s6271_s25  ;;  %v2845_v50 = vmul.f32 -0.071428575, %v6101_v19  ;;  %v5416_v15 = vpop.eup %5415  ;;  %v3173_v41 = vmul.f32 1.442695, %v2844_v25  ;;  %5427 = vpow2.f32 %v3171_v55 }
 0x485   :  { %v5418_v12 = vpop.eup %5417  ;;  %v3837_v34 = vmul.f32 %v5416_v15, %v3587_v29  ;;  %v6104_v55 = vld [vmem:[%s13292_s0 + $0x298] sm:$0xff]  ;;  %v13804_v15 = vld [vmem:[#allocation276_spill] sm:$0xff] }
 0x486   :  { %v3175_v25 = vmul.f32 1.442695, %v2845_v50  ;;  %v5420_v22 = vpop.eup %5419  ;;  %5429 = vpow2.f32 %v3173_v41  ;;  %v2848_v50 = vmul.f32 -0.071428575, %v6104_v55  ;;  %v3838_v29 = vmul.f32 %v5418_v12, %v3588_v32  ;;  %v13806_v32 = vld [vmem:[#allocation279_spill] sm:$0xff]  ;;  %v13807_v12 = vld [vmem:[#allocation54_spill] sm:$0xff] }
 0x487   :  { %4403 = vrot.lane.b32.xlu1 %v3834_v24, %s6271_s25  ;;  %v4276_v58 = vpop.permute.xlu1 %4275  ;;  %v4282_v62 = vpop.permute.xlu0 %4281  ;;  %v6103_v24 = vld [vmem:[%s13292_s0 + $0x290] sm:$0xff]  ;;  %v3590_v13 = vmin.f32 %v13805_v38, %v13804_v15  ;;  %v3839_v2 = vmul.f32 %v5420_v22, %v3589_v43  ;;  %v3591_v53 = vmin.f32 %v13807_v12, %v13806_v32  ;;  %v13808_v22 = vld [vmem:[#allocation278_spill] sm:$0xff]  ;;  %v13809_v15 = vld [vmem:[#allocation53_spill] sm:$0xff] }
 0x488   :  { %5021 = vst.msk [vmem:[%s13295_s3 + $0x28] sm:$0xff] %vm5015_vm1, %v4276_v58  ;;  %5024 = vst.msk [vmem:[%s13295_s3 + $0x40] sm:$0xff] %vm5015_vm1, %v4282_v62  ;;  %4405 = vrot.lane.b32.xlu0 %v3835_v6, %s6271_s25  ;;  %v2847_v19 = vmul.f32 -0.071428575, %v6103_v24  ;;  %v3177_v62 = vmul.f32 1.442695, %v2846_v57  ;;  %v5422_v41 = vpop.eup %5421  ;;  %5431 = vpow2.f32 %v3175_v25  ;;  %v3592_v38 = vmin.f32 %v13809_v15, %v13808_v22 }
 0x489   :  { %v6106_v25 = vld [vmem:[%s13292_s0 + $0x2a8] sm:$0xff]  ;;  %v3840_v43 = vmul.f32 %v5422_v41, %v3590_v13  ;;  %v13810_v13 = vld [vmem:[#allocation281_spill] sm:$0xff]  ;;  %v13811_v41 = vld [vmem:[#allocation56_spill] sm:$0xff] }
 0x48a   :  { %v3179_v57 = vmul.f32 1.442695, %v2847_v19  ;;  %v5424_v55 = vpop.eup %5423  ;;  %5433 = vpow2.f32 %v3177_v62  ;;  %v2850_v19 = vmul.f32 -0.071428575, %v6106_v25  ;;  %v3593_v12 = vmin.f32 %v13811_v41, %v13810_v13  ;;  %v13813_v22 = vld [vmem:[#allocation55_spill] sm:$0xff] }
 0x48b   :  { %4407 = vrot.lane.b32.xlu1 %v3836_v37, %s6271_s25  ;;  %v4280_v58 = vpop.permute.xlu1 %4279  ;;  %v4286_v6 = vpop.permute.xlu0 %4285  ;;  %v6105_v37 = vld [vmem:[%s13292_s0 + $0x2a0] sm:$0xff]  ;;  %v3841_v32 = vmul.f32 %v5424_v55, %v3591_v53  ;;  %v13812_v55 = vld [vmem:[#allocation280_spill] sm:$0xff] }
 0x48c   :  { %5023 = vst.msk [vmem:[%s13295_s3 + $0x38] sm:$0xff] %vm5015_vm1, %v4280_v58  ;;  %5026 = vst.msk [vmem:[%s13295_s3 + $0x50] sm:$0xff] %vm5015_vm1, %v4286_v6  ;;  %4409 = vrot.lane.b32.xlu0 %v3837_v34, %s6271_s25  ;;  %v2849_v24 = vmul.f32 -0.071428575, %v6105_v37  ;;  %v3181_v6 = vmul.f32 1.442695, %v2848_v50  ;;  %v5426_v62 = vpop.eup %5425  ;;  %5435 = vpow2.f32 %v3179_v57  ;;  %v3594_v15 = vmin.f32 %v13813_v22, %v13812_v55 }
 0x48d   :  { %v6108_v57 = vld [vmem:[%s13292_s0 + $0x2b8] sm:$0xff]  ;;  %v3842_v53 = vmul.f32 %v5426_v62, %v3592_v38  ;;  %v13814_v38 = vld [vmem:[#allocation283_spill] sm:$0xff]  ;;  %v13815_v62 = vld [vmem:[#allocation58_spill] sm:$0xff] }
 0x48e   :  { %v3183_v50 = vmul.f32 1.442695, %v2849_v24  ;;  %v5428_v25 = vpop.eup %5427  ;;  %5437 = vpow2.f32 %v3181_v6  ;;  %v2852_v24 = vmul.f32 -0.071428575, %v6108_v57  ;;  %v3595_v41 = vmin.f32 %v13815_v62, %v13814_v38  ;;  %v13817_v55 = vld [vmem:[#allocation57_spill] sm:$0xff] }
 0x48f   :  { %4411 = vrot.lane.b32.xlu1 %v3838_v29, %s6271_s25  ;;  %v4284_v58 = vpop.permute.xlu1 %4283  ;;  %v4290_v34 = vpop.permute.xlu0 %4289  ;;  %v6107_v29 = vld [vmem:[%s13292_s0 + $0x2b0] sm:$0xff]  ;;  %v3843_v13 = vmul.f32 %v5428_v25, %v3593_v12  ;;  %v13816_v25 = vld [vmem:[#allocation282_spill] sm:$0xff] }
 0x490   :  { %5025 = vst.msk [vmem:[%s13295_s3 + $0x48] sm:$0xff] %vm5015_vm1, %v4284_v58  ;;  %5028 = vst.msk [vmem:[%s13295_s3 + $0x60] sm:$0xff] %vm5015_vm1, %v4290_v34  ;;  %4413 = vrot.lane.b32.xlu0 %v3839_v2, %s6271_s25  ;;  %v2851_v37 = vmul.f32 -0.071428575, %v6107_v29  ;;  %v3185_v34 = vmul.f32 1.442695, %v2850_v19  ;;  %v5430_v6 = vpop.eup %5429  ;;  %5439 = vpow2.f32 %v3183_v50  ;;  %v3596_v22 = vmin.f32 %v13817_v55, %v13816_v25 }
 0x491   :  { %v6110_v50 = vld [vmem:[%s13292_s0 + $0x2c8] sm:$0xff]  ;;  %v3844_v12 = vmul.f32 %v5430_v6, %v3594_v15  ;;  %v13818_v15 = vld [vmem:[#allocation285_spill] sm:$0xff]  ;;  %v13819_v6 = vld [vmem:[#allocation60_spill] sm:$0xff] }
 0x492   :  { %v3187_v19 = vmul.f32 1.442695, %v2851_v37  ;;  %v5432_v57 = vpop.eup %5431  ;;  %5441 = vpow2.f32 %v3185_v34  ;;  %v2854_v37 = vmul.f32 -0.071428575, %v6110_v50  ;;  %v3597_v62 = vmin.f32 %v13819_v6, %v13818_v15  ;;  %v13821_v25 = vld [vmem:[#allocation59_spill] sm:$0xff] }
 0x493   :  { %4415 = vrot.lane.b32.xlu1 %v3840_v43, %s6271_s25  ;;  %v4288_v58 = vpop.permute.xlu1 %4287  ;;  %v4294_v2 = vpop.permute.xlu0 %4293  ;;  %v6109_v43 = vld [vmem:[%s13292_s0 + $0x2c0] sm:$0xff]  ;;  %v3845_v38 = vmul.f32 %v5432_v57, %v3595_v41  ;;  %v13820_v57 = vld [vmem:[#allocation284_spill] sm:$0xff] }
 0x494   :  { %5027 = vst.msk [vmem:[%s13295_s3 + $0x58] sm:$0xff] %vm5015_vm1, %v4288_v58  ;;  %5030 = vst.msk [vmem:[%s13295_s3 + $0x70] sm:$0xff] %vm5015_vm1, %v4294_v2  ;;  %4417 = vrot.lane.b32.xlu0 %v3841_v32, %s6271_s25  ;;  %v2853_v29 = vmul.f32 -0.071428575, %v6109_v43  ;;  %v3189_v2 = vmul.f32 1.442695, %v2852_v24  ;;  %v5434_v34 = vpop.eup %5433  ;;  %5443 = vpow2.f32 %v3187_v19  ;;  %v3598_v55 = vmin.f32 %v13821_v25, %v13820_v57 }
 0x495   :  { %v6112_v19 = vld [vmem:[%s13292_s0 + $0x2d8] sm:$0xff]  ;;  %v3846_v41 = vmul.f32 %v5434_v34, %v3596_v22  ;;  %v13822_v22 = vld [vmem:[#allocation287_spill] sm:$0xff]  ;;  %v13823_v34 = vld [vmem:[#allocation62_spill] sm:$0xff] }
 0x496   :  { %v3191_v24 = vmul.f32 1.442695, %v2853_v29  ;;  %v5436_v50 = vpop.eup %5435  ;;  %5445 = vpow2.f32 %v3189_v2  ;;  %v2856_v29 = vmul.f32 -0.071428575, %v6112_v19  ;;  %v3599_v6 = vmin.f32 %v13823_v34, %v13822_v22  ;;  %v13825_v57 = vld [vmem:[#allocation61_spill] sm:$0xff] }
 0x497   :  { %4419 = vrot.lane.b32.xlu1 %v3842_v53, %s6271_s25  ;;  %v4292_v58 = vpop.permute.xlu1 %4291  ;;  %v4298_v32 = vpop.permute.xlu0 %4297  ;;  %v6111_v53 = vld [vmem:[%s13292_s0 + $0x2d0] sm:$0xff]  ;;  %v3847_v15 = vmul.f32 %v5436_v50, %v3597_v62  ;;  %v13824_v50 = vld [vmem:[#allocation286_spill] sm:$0xff] }
 0x498   :  { %5029 = vst.msk [vmem:[%s13295_s3 + $0x68] sm:$0xff] %vm5015_vm1, %v4292_v58  ;;  %5032 = vst.msk [vmem:[%s13295_s3 + $0x80] sm:$0xff] %vm5015_vm1, %v4298_v32  ;;  %4421 = vrot.lane.b32.xlu0 %v3843_v13, %s6271_s25  ;;  %v2855_v43 = vmul.f32 -0.071428575, %v6111_v53  ;;  %v3193_v32 = vmul.f32 1.442695, %v2854_v37  ;;  %v5438_v2 = vpop.eup %5437  ;;  %5447 = vpow2.f32 %v3191_v24  ;;  %v3600_v25 = vmin.f32 %v13825_v57, %v13824_v50 }
 0x499   :  { %v6114_v24 = vld [vmem:[%s13292_s0 + $0x2e8] sm:$0xff]  ;;  %v3848_v62 = vmul.f32 %v5438_v2, %v3598_v55  ;;  %v13826_v55 = vld [vmem:[#allocation289_spill] sm:$0xff]  ;;  %v13827_v2 = vld [vmem:[#allocation64_spill] sm:$0xff] }
 0x49a   :  { %v3195_v37 = vmul.f32 1.442695, %v2855_v43  ;;  %v5440_v19 = vpop.eup %5439  ;;  %5449 = vpow2.f32 %v3193_v32  ;;  %v2858_v43 = vmul.f32 -0.071428575, %v6114_v24  ;;  %v3601_v34 = vmin.f32 %v13827_v2, %v13826_v55  ;;  %v13829_v50 = vld [vmem:[#allocation63_spill] sm:$0xff] }
 0x49b   :  { %4423 = vrot.lane.b32.xlu1 %v3844_v12, %s6271_s25  ;;  %v4296_v58 = vpop.permute.xlu1 %4295  ;;  %v4302_v13 = vpop.permute.xlu0 %4301  ;;  %v6113_v12 = vld [vmem:[%s13292_s0 + $0x2e0] sm:$0xff]  ;;  %v3849_v22 = vmul.f32 %v5440_v19, %v3599_v6  ;;  %v13828_v19 = vld [vmem:[#allocation288_spill] sm:$0xff] }
 0x49c   :  { %5031 = vst.msk [vmem:[%s13295_s3 + $0x78] sm:$0xff] %vm5015_vm1, %v4296_v58  ;;  %5034 = vst.msk [vmem:[%s13295_s3 + $0x90] sm:$0xff] %vm5015_vm1, %v4302_v13  ;;  %4425 = vrot.lane.b32.xlu0 %v3845_v38, %s6271_s25  ;;  %v2857_v53 = vmul.f32 -0.071428575, %v6113_v12  ;;  %v3197_v13 = vmul.f32 1.442695, %v2856_v29  ;;  %v5442_v32 = vpop.eup %5441  ;;  %5451 = vpow2.f32 %v3195_v37  ;;  %v3602_v57 = vmin.f32 %v13829_v50, %v13828_v19 }
 0x49d   :  { %v6116_v37 = vld [vmem:[%s13292_s0 + $0x2f8] sm:$0xff]  ;;  %v3850_v6 = vmul.f32 %v5442_v32, %v3600_v25  ;;  %v13830_v25 = vld [vmem:[#allocation291_spill] sm:$0xff]  ;;  %v13831_v32 = vld [vmem:[#allocation66_spill] sm:$0xff] }
 0x49e   :  { %v3199_v29 = vmul.f32 1.442695, %v2857_v53  ;;  %v5444_v24 = vpop.eup %5443  ;;  %5453 = vpow2.f32 %v3197_v13  ;;  %v2860_v53 = vmul.f32 -0.071428575, %v6116_v37  ;;  %v3603_v2 = vmin.f32 %v13831_v32, %v13830_v25  ;;  %v13833_v19 = vld [vmem:[#allocation65_spill] sm:$0xff] }
 0x49f   :  { %4427 = vrot.lane.b32.xlu1 %v3846_v41, %s6271_s25  ;;  %v4300_v58 = vpop.permute.xlu1 %4299  ;;  %v4306_v38 = vpop.permute.xlu0 %4305  ;;  %v6115_v41 = vld [vmem:[%s13292_s0 + $0x2f0] sm:$0xff]  ;;  %v3851_v55 = vmul.f32 %v5444_v24, %v3601_v34  ;;  %v13832_v24 = vld [vmem:[#allocation290_spill] sm:$0xff] }
 0x4a0   :  { %5033 = vst.msk [vmem:[%s13295_s3 + $0x88] sm:$0xff] %vm5015_vm1, %v4300_v58  ;;  %5036 = vst.msk [vmem:[%s13295_s3 + $0xa0] sm:$0xff] %vm5015_vm1, %v4306_v38  ;;  %4429 = vrot.lane.b32.xlu0 %v3847_v15, %s6271_s25  ;;  %v2859_v12 = vmul.f32 -0.071428575, %v6115_v41  ;;  %v3201_v38 = vmul.f32 1.442695, %v2858_v43  ;;  %v5446_v13 = vpop.eup %5445  ;;  %5455 = vpow2.f32 %v3199_v29  ;;  %v3604_v50 = vmin.f32 %v13833_v19, %v13832_v24 }
 0x4a1   :  { %v6118_v29 = vld [vmem:[%s13292_s0 + $0x308] sm:$0xff]  ;;  %v3852_v34 = vmul.f32 %v5446_v13, %v3602_v57  ;;  %v13834_v57 = vld [vmem:[#allocation293_spill] sm:$0xff]  ;;  %v13835_v13 = vld [vmem:[#allocation68_spill] sm:$0xff] }
 0x4a2   :  { %v3203_v43 = vmul.f32 1.442695, %v2859_v12  ;;  %v5448_v37 = vpop.eup %5447  ;;  %5457 = vpow2.f32 %v3201_v38  ;;  %v2862_v12 = vmul.f32 -0.071428575, %v6118_v29  ;;  %v3605_v32 = vmin.f32 %v13835_v13, %v13834_v57  ;;  %v13837_v24 = vld [vmem:[#allocation67_spill] sm:$0xff] }
 0x4a3   :  { %4431 = vrot.lane.b32.xlu1 %v3848_v62, %s6271_s25  ;;  %v4304_v58 = vpop.permute.xlu1 %4303  ;;  %v4310_v15 = vpop.permute.xlu0 %4309  ;;  %v6117_v62 = vld [vmem:[%s13292_s0 + $0x300] sm:$0xff]  ;;  %v3853_v25 = vmul.f32 %v5448_v37, %v3603_v2  ;;  %v13836_v37 = vld [vmem:[#allocation292_spill] sm:$0xff] }
 0x4a4   :  { %5035 = vst.msk [vmem:[%s13295_s3 + $0x98] sm:$0xff] %vm5015_vm1, %v4304_v58  ;;  %5038 = vst.msk [vmem:[%s13295_s3 + $0xb0] sm:$0xff] %vm5015_vm1, %v4310_v15  ;;  %4433 = vrot.lane.b32.xlu0 %v3849_v22, %s6271_s25  ;;  %v2861_v41 = vmul.f32 -0.071428575, %v6117_v62  ;;  %v3205_v15 = vmul.f32 1.442695, %v2860_v53  ;;  %v5450_v38 = vpop.eup %5449  ;;  %5459 = vpow2.f32 %v3203_v43  ;;  %v3606_v19 = vmin.f32 %v13837_v24, %v13836_v37 }
 0x4a5   :  { %v6120_v43 = vld [vmem:[%s13292_s0 + $0x318] sm:$0xff]  ;;  %v3854_v2 = vmul.f32 %v5450_v38, %v3604_v50  ;;  %v13838_v50 = vld [vmem:[#allocation295_spill] sm:$0xff]  ;;  %v13839_v38 = vld [vmem:[#allocation70_spill] sm:$0xff] }
 0x4a6   :  { %v3207_v53 = vmul.f32 1.442695, %v2861_v41  ;;  %v5452_v29 = vpop.eup %5451  ;;  %5461 = vpow2.f32 %v3205_v15  ;;  %v2864_v41 = vmul.f32 -0.071428575, %v6120_v43  ;;  %v3607_v13 = vmin.f32 %v13839_v38, %v13838_v50  ;;  %v13841_v37 = vld [vmem:[#allocation69_spill] sm:$0xff] }
 0x4a7   :  { %4435 = vrot.lane.b32.xlu1 %v3850_v6, %s6271_s25  ;;  %v4308_v58 = vpop.permute.xlu1 %4307  ;;  %v4314_v22 = vpop.permute.xlu0 %4313  ;;  %v6119_v6 = vld [vmem:[%s13292_s0 + $0x310] sm:$0xff]  ;;  %v3855_v57 = vmul.f32 %v5452_v29, %v3605_v32  ;;  %v13840_v29 = vld [vmem:[#allocation294_spill] sm:$0xff] }
 0x4a8   :  { %5037 = vst.msk [vmem:[%s13295_s3 + $0xa8] sm:$0xff] %vm5015_vm1, %v4308_v58  ;;  %5040 = vst.msk [vmem:[%s13295_s3 + $0xc0] sm:$0xff] %vm5015_vm1, %v4314_v22  ;;  %4437 = vrot.lane.b32.xlu0 %v3851_v55, %s6271_s25  ;;  %v2863_v62 = vmul.f32 -0.071428575, %v6119_v6  ;;  %v3209_v22 = vmul.f32 1.442695, %v2862_v12  ;;  %v5454_v15 = vpop.eup %5453  ;;  %5463 = vpow2.f32 %v3207_v53  ;;  %v3608_v24 = vmin.f32 %v13841_v37, %v13840_v29 }
 0x4a9   :  { %v6122_v53 = vld [vmem:[%s13292_s0 + $0x328] sm:$0xff]  ;;  %v3856_v32 = vmul.f32 %v5454_v15, %v3606_v19  ;;  %v13842_v19 = vld [vmem:[#allocation297_spill] sm:$0xff]  ;;  %v13843_v15 = vld [vmem:[#allocation72_spill] sm:$0xff] }
 0x4aa   :  { %v3211_v12 = vmul.f32 1.442695, %v2863_v62  ;;  %v5456_v43 = vpop.eup %5455  ;;  %5465 = vpow2.f32 %v3209_v22  ;;  %v2866_v62 = vmul.f32 -0.071428575, %v6122_v53  ;;  %v3609_v38 = vmin.f32 %v13843_v15, %v13842_v19  ;;  %v13845_v29 = vld [vmem:[#allocation71_spill] sm:$0xff] }
 0x4ab   :  { %4439 = vrot.lane.b32.xlu1 %v3852_v34, %s6271_s25  ;;  %v4312_v58 = vpop.permute.xlu1 %4311  ;;  %v4318_v55 = vpop.permute.xlu0 %4317  ;;  %v6121_v34 = vld [vmem:[%s13292_s0 + $0x320] sm:$0xff]  ;;  %v3857_v50 = vmul.f32 %v5456_v43, %v3607_v13  ;;  %v13844_v43 = vld [vmem:[#allocation296_spill] sm:$0xff] }
 0x4ac   :  { %5039 = vst.msk [vmem:[%s13295_s3 + $0xb8] sm:$0xff] %vm5015_vm1, %v4312_v58  ;;  %5042 = vst.msk [vmem:[%s13295_s3 + $0xd0] sm:$0xff] %vm5015_vm1, %v4318_v55  ;;  %4441 = vrot.lane.b32.xlu0 %v3853_v25, %s6271_s25  ;;  %v2865_v6 = vmul.f32 -0.071428575, %v6121_v34  ;;  %v3213_v55 = vmul.f32 1.442695, %v2864_v41  ;;  %v5458_v22 = vpop.eup %5457  ;;  %5467 = vpow2.f32 %v3211_v12  ;;  %v3610_v37 = vmin.f32 %v13845_v29, %v13844_v43 }
 0x4ad   :  { %v6124_v12 = vld [vmem:[%s13292_s0 + $0x338] sm:$0xff]  ;;  %v3858_v13 = vmul.f32 %v5458_v22, %v3608_v24  ;;  %v13846_v24 = vld [vmem:[#allocation299_spill] sm:$0xff]  ;;  %v13847_v22 = vld [vmem:[#allocation74_spill] sm:$0xff] }
 0x4ae   :  { %v3215_v41 = vmul.f32 1.442695, %v2865_v6  ;;  %v5460_v53 = vpop.eup %5459  ;;  %5469 = vpow2.f32 %v3213_v55  ;;  %v2868_v6 = vmul.f32 -0.071428575, %v6124_v12  ;;  %v3611_v15 = vmin.f32 %v13847_v22, %v13846_v24  ;;  %v13849_v43 = vld [vmem:[#allocation73_spill] sm:$0xff] }
 0x4af   :  { %4443 = vrot.lane.b32.xlu1 %v3854_v2, %s6271_s25  ;;  %v4316_v58 = vpop.permute.xlu1 %4315  ;;  %v4322_v25 = vpop.permute.xlu0 %4321  ;;  %v6123_v2 = vld [vmem:[%s13292_s0 + $0x330] sm:$0xff]  ;;  %v3859_v19 = vmul.f32 %v5460_v53, %v3609_v38  ;;  %v13848_v53 = vld [vmem:[#allocation298_spill] sm:$0xff] }
 0x4b0   :  { %5041 = vst.msk [vmem:[%s13295_s3 + $0xc8] sm:$0xff] %vm5015_vm1, %v4316_v58  ;;  %5044 = vst.msk [vmem:[%s13295_s3 + $0xe0] sm:$0xff] %vm5015_vm1, %v4322_v25  ;;  %4445 = vrot.lane.b32.xlu0 %v3855_v57, %s6271_s25  ;;  %v2867_v34 = vmul.f32 -0.071428575, %v6123_v2  ;;  %v3217_v25 = vmul.f32 1.442695, %v2866_v62  ;;  %v5462_v55 = vpop.eup %5461  ;;  %5471 = vpow2.f32 %v3215_v41  ;;  %v3612_v29 = vmin.f32 %v13849_v43, %v13848_v53 }
 0x4b1   :  { %v6126_v41 = vld [vmem:[%s13292_s0 + $0x348] sm:$0xff]  ;;  %v3860_v38 = vmul.f32 %v5462_v55, %v3610_v37  ;;  %v13850_v37 = vld [vmem:[#allocation301_spill] sm:$0xff]  ;;  %v13851_v55 = vld [vmem:[#allocation76_spill] sm:$0xff] }
 0x4b2   :  { %v3219_v62 = vmul.f32 1.442695, %v2867_v34  ;;  %v5464_v12 = vpop.eup %5463  ;;  %5473 = vpow2.f32 %v3217_v25  ;;  %v2870_v34 = vmul.f32 -0.071428575, %v6126_v41  ;;  %v3613_v22 = vmin.f32 %v13851_v55, %v13850_v37  ;;  %v13853_v53 = vld [vmem:[#allocation75_spill] sm:$0xff] }
 0x4b3   :  { %4447 = vrot.lane.b32.xlu1 %v3856_v32, %s6271_s25  ;;  %v4320_v58 = vpop.permute.xlu1 %4319  ;;  %v4326_v57 = vpop.permute.xlu0 %4325  ;;  %v6125_v32 = vld [vmem:[%s13292_s0 + $0x340] sm:$0xff]  ;;  %v3861_v24 = vmul.f32 %v5464_v12, %v3611_v15  ;;  %v13852_v12 = vld [vmem:[#allocation300_spill] sm:$0xff] }
 0x4b4   :  { %5043 = vst.msk [vmem:[%s13295_s3 + $0xd8] sm:$0xff] %vm5015_vm1, %v4320_v58  ;;  %5046 = vst.msk [vmem:[%s13295_s3 + $0xf0] sm:$0xff] %vm5015_vm1, %v4326_v57  ;;  %4449 = vrot.lane.b32.xlu0 %v3857_v50, %s6271_s25  ;;  %v2869_v2 = vmul.f32 -0.071428575, %v6125_v32  ;;  %v3221_v57 = vmul.f32 1.442695, %v2868_v6  ;;  %v5466_v25 = vpop.eup %5465  ;;  %5475 = vpow2.f32 %v3219_v62  ;;  %v3614_v43 = vmin.f32 %v13853_v53, %v13852_v12 }
 0x4b5   :  { %v6128_v62 = vld [vmem:[%s13292_s0 + $0x358] sm:$0xff]  ;;  %v3862_v15 = vmul.f32 %v5466_v25, %v3612_v29  ;;  %v13854_v29 = vld [vmem:[#allocation303_spill] sm:$0xff]  ;;  %v13855_v25 = vld [vmem:[#allocation78_spill] sm:$0xff] }
 0x4b6   :  { %v3223_v6 = vmul.f32 1.442695, %v2869_v2  ;;  %v5468_v41 = vpop.eup %5467  ;;  %5477 = vpow2.f32 %v3221_v57  ;;  %v2872_v2 = vmul.f32 -0.071428575, %v6128_v62  ;;  %v3615_v55 = vmin.f32 %v13855_v25, %v13854_v29  ;;  %v13857_v12 = vld [vmem:[#allocation77_spill] sm:$0xff] }
 0x4b7   :  { %4451 = vrot.lane.b32.xlu1 %v3858_v13, %s6271_s25  ;;  %v4324_v58 = vpop.permute.xlu1 %4323  ;;  %v4330_v50 = vpop.permute.xlu0 %4329  ;;  %v6127_v13 = vld [vmem:[%s13292_s0 + $0x350] sm:$0xff]  ;;  %v3863_v37 = vmul.f32 %v5468_v41, %v3613_v22  ;;  %v13856_v41 = vld [vmem:[#allocation302_spill] sm:$0xff] }
 0x4b8   :  { %5045 = vst.msk [vmem:[%s13295_s3 + $0xe8] sm:$0xff] %vm5015_vm1, %v4324_v58  ;;  %5048 = vst.msk [vmem:[%s13295_s3 + $0x100] sm:$0xff] %vm5015_vm1, %v4330_v50  ;;  %4453 = vrot.lane.b32.xlu0 %v3859_v19, %s6271_s25  ;;  %v2871_v32 = vmul.f32 -0.071428575, %v6127_v13  ;;  %v3225_v50 = vmul.f32 1.442695, %v2870_v34  ;;  %v5470_v57 = vpop.eup %5469  ;;  %5479 = vpow2.f32 %v3223_v6  ;;  %v3616_v53 = vmin.f32 %v13857_v12, %v13856_v41 }
 0x4b9   :  { %v6130_v6 = vld [vmem:[%s13292_s0 + $0x368] sm:$0xff]  ;;  %v3864_v22 = vmul.f32 %v5470_v57, %v3614_v43  ;;  %v13858_v43 = vld [vmem:[#allocation305_spill] sm:$0xff]  ;;  %v13859_v57 = vld [vmem:[#allocation80_spill] sm:$0xff] }
 0x4ba   :  { %v3227_v34 = vmul.f32 1.442695, %v2871_v32  ;;  %v5472_v62 = vpop.eup %5471  ;;  %5481 = vpow2.f32 %v3225_v50  ;;  %v2874_v32 = vmul.f32 -0.071428575, %v6130_v6  ;;  %v3617_v25 = vmin.f32 %v13859_v57, %v13858_v43  ;;  %v13861_v41 = vld [vmem:[#allocation79_spill] sm:$0xff] }
 0x4bb   :  { %4455 = vrot.lane.b32.xlu1 %v3860_v38, %s6271_s25  ;;  %v4328_v58 = vpop.permute.xlu1 %4327  ;;  %v4334_v19 = vpop.permute.xlu0 %4333  ;;  %v6129_v38 = vld [vmem:[%s13292_s0 + $0x360] sm:$0xff]  ;;  %v3865_v29 = vmul.f32 %v5472_v62, %v3615_v55  ;;  %v13860_v62 = vld [vmem:[#allocation304_spill] sm:$0xff] }
 0x4bc   :  { %5047 = vst.msk [vmem:[%s13295_s3 + $0xf8] sm:$0xff] %vm5015_vm1, %v4328_v58  ;;  %5050 = vst.msk [vmem:[%s13295_s3 + $0x110] sm:$0xff] %vm5015_vm1, %v4334_v19  ;;  %4457 = vrot.lane.b32.xlu0 %v3861_v24, %s6271_s25  ;;  %v2873_v13 = vmul.f32 -0.071428575, %v6129_v38  ;;  %v3229_v19 = vmul.f32 1.442695, %v2872_v2  ;;  %v5474_v50 = vpop.eup %5473  ;;  %5483 = vpow2.f32 %v3227_v34  ;;  %v3618_v12 = vmin.f32 %v13861_v41, %v13860_v62 }
 0x4bd   :  { %v6132_v34 = vld [vmem:[%s13292_s0 + $0x378] sm:$0xff]  ;;  %v3866_v55 = vmul.f32 %v5474_v50, %v3616_v53  ;;  %v13862_v53 = vld [vmem:[#allocation307_spill] sm:$0xff]  ;;  %v13863_v50 = vld [vmem:[#allocation82_spill] sm:$0xff] }
 0x4be   :  { %v3231_v2 = vmul.f32 1.442695, %v2873_v13  ;;  %v5476_v6 = vpop.eup %5475  ;;  %5485 = vpow2.f32 %v3229_v19  ;;  %v2876_v13 = vmul.f32 -0.071428575, %v6132_v34  ;;  %v3619_v57 = vmin.f32 %v13863_v50, %v13862_v53  ;;  %v13865_v62 = vld [vmem:[#allocation81_spill] sm:$0xff] }
 0x4bf   :  { %4459 = vrot.lane.b32.xlu1 %v3862_v15, %s6271_s25  ;;  %v4332_v58 = vpop.permute.xlu1 %4331  ;;  %v4338_v24 = vpop.permute.xlu0 %4337  ;;  %v6131_v15 = vld [vmem:[%s13292_s0 + $0x370] sm:$0xff]  ;;  %v3867_v43 = vmul.f32 %v5476_v6, %v3617_v25  ;;  %v13864_v6 = vld [vmem:[#allocation306_spill] sm:$0xff] }
 0x4c0   :  { %5049 = vst.msk [vmem:[%s13295_s3 + $0x108] sm:$0xff] %vm5015_vm1, %v4332_v58  ;;  %5052 = vst.msk [vmem:[%s13295_s3 + $0x120] sm:$0xff] %vm5015_vm1, %v4338_v24  ;;  %4461 = vrot.lane.b32.xlu0 %v3863_v37, %s6271_s25  ;;  %v2875_v38 = vmul.f32 -0.071428575, %v6131_v15  ;;  %v3233_v24 = vmul.f32 1.442695, %v2874_v32  ;;  %v5478_v19 = vpop.eup %5477  ;;  %5487 = vpow2.f32 %v3231_v2  ;;  %v3620_v41 = vmin.f32 %v13865_v62, %v13864_v6 }
 0x4c1   :  { %v6134_v2 = vld [vmem:[%s13292_s0 + $0x388] sm:$0xff]  ;;  %v3868_v25 = vmul.f32 %v5478_v19, %v3618_v12  ;;  %v13866_v12 = vld [vmem:[#allocation309_spill] sm:$0xff]  ;;  %v13867_v19 = vld [vmem:[#allocation84_spill] sm:$0xff] }
 0x4c2   :  { %v3235_v32 = vmul.f32 1.442695, %v2875_v38  ;;  %v5480_v34 = vpop.eup %5479  ;;  %5489 = vpow2.f32 %v3233_v24  ;;  %v2878_v38 = vmul.f32 -0.071428575, %v6134_v2  ;;  %v3621_v50 = vmin.f32 %v13867_v19, %v13866_v12  ;;  %v13869_v6 = vld [vmem:[#allocation83_spill] sm:$0xff] }
 0x4c3   :  { %4463 = vrot.lane.b32.xlu1 %v3864_v22, %s6271_s25  ;;  %v4336_v58 = vpop.permute.xlu1 %4335  ;;  %v4342_v37 = vpop.permute.xlu0 %4341  ;;  %v6133_v22 = vld [vmem:[%s13292_s0 + $0x380] sm:$0xff]  ;;  %v3869_v53 = vmul.f32 %v5480_v34, %v3619_v57  ;;  %v13868_v34 = vld [vmem:[#allocation308_spill] sm:$0xff] }
 0x4c4   :  { %5051 = vst.msk [vmem:[%s13295_s3 + $0x118] sm:$0xff] %vm5015_vm1, %v4336_v58  ;;  %5054 = vst.msk [vmem:[%s13295_s3 + $0x130] sm:$0xff] %vm5015_vm1, %v4342_v37  ;;  %4465 = vrot.lane.b32.xlu0 %v3865_v29, %s6271_s25  ;;  %v2877_v15 = vmul.f32 -0.071428575, %v6133_v22  ;;  %v3237_v37 = vmul.f32 1.442695, %v2876_v13  ;;  %v5482_v24 = vpop.eup %5481  ;;  %5491 = vpow2.f32 %v3235_v32  ;;  %v3622_v62 = vmin.f32 %v13869_v6, %v13868_v34 }
 0x4c5   :  { %v6136_v32 = vld [vmem:[%s13292_s0 + $0x398] sm:$0xff]  ;;  %v3870_v57 = vmul.f32 %v5482_v24, %v3620_v41  ;;  %v13870_v41 = vld [vmem:[#allocation311_spill] sm:$0xff]  ;;  %v13871_v24 = vld [vmem:[#allocation86_spill] sm:$0xff] }
 0x4c6   :  { %v3239_v13 = vmul.f32 1.442695, %v2877_v15  ;;  %v5484_v2 = vpop.eup %5483  ;;  %5493 = vpow2.f32 %v3237_v37  ;;  %v2880_v15 = vmul.f32 -0.071428575, %v6136_v32  ;;  %v3623_v19 = vmin.f32 %v13871_v24, %v13870_v41  ;;  %v13873_v34 = vld [vmem:[#allocation85_spill] sm:$0xff] }
 0x4c7   :  { %4467 = vrot.lane.b32.xlu1 %v3866_v55, %s6271_s25  ;;  %v4340_v58 = vpop.permute.xlu1 %4339  ;;  %v4346_v29 = vpop.permute.xlu0 %4345  ;;  %v6135_v55 = vld [vmem:[%s13292_s0 + $0x390] sm:$0xff]  ;;  %v3871_v12 = vmul.f32 %v5484_v2, %v3621_v50  ;;  %v13872_v2 = vld [vmem:[#allocation310_spill] sm:$0xff] }
 0x4c8   :  { %5053 = vst.msk [vmem:[%s13295_s3 + $0x128] sm:$0xff] %vm5015_vm1, %v4340_v58  ;;  %5056 = vst.msk [vmem:[%s13295_s3 + $0x140] sm:$0xff] %vm5015_vm1, %v4346_v29  ;;  %4469 = vrot.lane.b32.xlu0 %v3867_v43, %s6271_s25  ;;  %v2879_v22 = vmul.f32 -0.071428575, %v6135_v55  ;;  %v3241_v29 = vmul.f32 1.442695, %v2878_v38  ;;  %v5486_v37 = vpop.eup %5485  ;;  %5495 = vpow2.f32 %v3239_v13  ;;  %v3624_v6 = vmin.f32 %v13873_v34, %v13872_v2 }
 0x4c9   :  { %v6138_v13 = vld [vmem:[%s13292_s0 + $0x3a8] sm:$0xff]  ;;  %v3872_v50 = vmul.f32 %v5486_v37, %v3622_v62  ;;  %v13874_v62 = vld [vmem:[#allocation313_spill] sm:$0xff]  ;;  %v13875_v37 = vld [vmem:[#allocation88_spill] sm:$0xff] }
 0x4ca   :  { %v3243_v38 = vmul.f32 1.442695, %v2879_v22  ;;  %v5488_v32 = vpop.eup %5487  ;;  %5497 = vpow2.f32 %v3241_v29  ;;  %v2882_v22 = vmul.f32 -0.071428575, %v6138_v13  ;;  %v3625_v24 = vmin.f32 %v13875_v37, %v13874_v62  ;;  %v13877_v2 = vld [vmem:[#allocation87_spill] sm:$0xff] }
 0x4cb   :  { %4471 = vrot.lane.b32.xlu1 %v3868_v25, %s6271_s25  ;;  %v4344_v58 = vpop.permute.xlu1 %4343  ;;  %v4350_v43 = vpop.permute.xlu0 %4349  ;;  %v6137_v25 = vld [vmem:[%s13292_s0 + $0x3a0] sm:$0xff]  ;;  %v3873_v41 = vmul.f32 %v5488_v32, %v3623_v19  ;;  %v13876_v32 = vld [vmem:[#allocation312_spill] sm:$0xff] }
 0x4cc   :  { %5055 = vst.msk [vmem:[%s13295_s3 + $0x138] sm:$0xff] %vm5015_vm1, %v4344_v58  ;;  %5058 = vst.msk [vmem:[%s13295_s3 + $0x150] sm:$0xff] %vm5015_vm1, %v4350_v43  ;;  %4473 = vrot.lane.b32.xlu0 %v3869_v53, %s6271_s25  ;;  %v2881_v55 = vmul.f32 -0.071428575, %v6137_v25  ;;  %v3245_v43 = vmul.f32 1.442695, %v2880_v15  ;;  %v5490_v29 = vpop.eup %5489  ;;  %5499 = vpow2.f32 %v3243_v38  ;;  %v3626_v34 = vmin.f32 %v13877_v2, %v13876_v32 }
 0x4cd   :  { %v6140_v38 = vld [vmem:[%s13292_s0 + $0x3b8] sm:$0xff]  ;;  %v3874_v19 = vmul.f32 %v5490_v29, %v3624_v6  ;;  %v13878_v6 = vld [vmem:[#allocation315_spill] sm:$0xff]  ;;  %v13879_v29 = vld [vmem:[#allocation90_spill] sm:$0xff] }
 0x4ce   :  { %v3247_v15 = vmul.f32 1.442695, %v2881_v55  ;;  %v5492_v13 = vpop.eup %5491  ;;  %5501 = vpow2.f32 %v3245_v43  ;;  %v2884_v55 = vmul.f32 -0.071428575, %v6140_v38  ;;  %v3627_v37 = vmin.f32 %v13879_v29, %v13878_v6  ;;  %v13881_v32 = vld [vmem:[#allocation89_spill] sm:$0xff] }
 0x4cf   :  { %4475 = vrot.lane.b32.xlu1 %v3870_v57, %s6271_s25  ;;  %v4348_v58 = vpop.permute.xlu1 %4347  ;;  %v4354_v53 = vpop.permute.xlu0 %4353  ;;  %v6139_v57 = vld [vmem:[%s13292_s0 + $0x3b0] sm:$0xff]  ;;  %v3875_v62 = vmul.f32 %v5492_v13, %v3625_v24  ;;  %v13880_v13 = vld [vmem:[#allocation314_spill] sm:$0xff] }
 0x4d0   :  { %5057 = vst.msk [vmem:[%s13295_s3 + $0x148] sm:$0xff] %vm5015_vm1, %v4348_v58  ;;  %5060 = vst.msk [vmem:[%s13295_s3 + $0x160] sm:$0xff] %vm5015_vm1, %v4354_v53  ;;  %4477 = vrot.lane.b32.xlu0 %v3871_v12, %s6271_s25  ;;  %v2883_v25 = vmul.f32 -0.071428575, %v6139_v57  ;;  %v3249_v53 = vmul.f32 1.442695, %v2882_v22  ;;  %v5494_v43 = vpop.eup %5493  ;;  %5503 = vpow2.f32 %v3247_v15  ;;  %v3628_v2 = vmin.f32 %v13881_v32, %v13880_v13 }
 0x4d1   :  { %v6142_v15 = vld [vmem:[%s13292_s0 + $0x3c8] sm:$0xff]  ;;  %v3876_v24 = vmul.f32 %v5494_v43, %v3626_v34  ;;  %v13882_v34 = vld [vmem:[#allocation317_spill] sm:$0xff]  ;;  %v13883_v43 = vld [vmem:[#allocation92_spill] sm:$0xff] }
 0x4d2   :  { %v3251_v22 = vmul.f32 1.442695, %v2883_v25  ;;  %v5496_v38 = vpop.eup %5495  ;;  %5505 = vpow2.f32 %v3249_v53  ;;  %v2886_v25 = vmul.f32 -0.071428575, %v6142_v15  ;;  %v3629_v29 = vmin.f32 %v13883_v43, %v13882_v34  ;;  %v13885_v13 = vld [vmem:[#allocation91_spill] sm:$0xff] }
 0x4d3   :  { %4479 = vrot.lane.b32.xlu1 %v3872_v50, %s6271_s25  ;;  %v4352_v58 = vpop.permute.xlu1 %4351  ;;  %v4358_v12 = vpop.permute.xlu0 %4357  ;;  %v6141_v50 = vld [vmem:[%s13292_s0 + $0x3c0] sm:$0xff]  ;;  %v3877_v6 = vmul.f32 %v5496_v38, %v3627_v37  ;;  %v13884_v38 = vld [vmem:[#allocation316_spill] sm:$0xff] }
 0x4d4   :  { %5059 = vst.msk [vmem:[%s13295_s3 + $0x158] sm:$0xff] %vm5015_vm1, %v4352_v58  ;;  %5062 = vst.msk [vmem:[%s13295_s3 + $0x170] sm:$0xff] %vm5015_vm1, %v4358_v12  ;;  %4481 = vrot.lane.b32.xlu0 %v3873_v41, %s6271_s25  ;;  %v2885_v57 = vmul.f32 -0.071428575, %v6141_v50  ;;  %v3253_v12 = vmul.f32 1.442695, %v2884_v55  ;;  %v5498_v53 = vpop.eup %5497  ;;  %5507 = vpow2.f32 %v3251_v22  ;;  %v3630_v32 = vmin.f32 %v13885_v13, %v13884_v38 }
 0x4d5   :  { %v6144_v22 = vld [vmem:[%s13292_s0 + $0x3d8] sm:$0xff]  ;;  %v3878_v37 = vmul.f32 %v5498_v53, %v3628_v2  ;;  %v13886_v2 = vld [vmem:[#allocation319_spill] sm:$0xff]  ;;  %v13887_v53 = vld [vmem:[#allocation94_spill] sm:$0xff] }
 0x4d6   :  { %v3255_v55 = vmul.f32 1.442695, %v2885_v57  ;;  %v5500_v15 = vpop.eup %5499  ;;  %5509 = vpow2.f32 %v3253_v12  ;;  %v2888_v57 = vmul.f32 -0.071428575, %v6144_v22  ;;  %v3631_v43 = vmin.f32 %v13887_v53, %v13886_v2  ;;  %v13889_v38 = vld [vmem:[#allocation93_spill] sm:$0xff] }
 0x4d7   :  { %4483 = vrot.lane.b32.xlu1 %v3874_v19, %s6271_s25  ;;  %v4356_v58 = vpop.permute.xlu1 %4355  ;;  %v4362_v41 = vpop.permute.xlu0 %4361  ;;  %v6143_v19 = vld [vmem:[%s13292_s0 + $0x3d0] sm:$0xff]  ;;  %v3879_v34 = vmul.f32 %v5500_v15, %v3629_v29  ;;  %v13888_v15 = vld [vmem:[#allocation318_spill] sm:$0xff] }
 0x4d8   :  { %5061 = vst.msk [vmem:[%s13295_s3 + $0x168] sm:$0xff] %vm5015_vm1, %v4356_v58  ;;  %5064 = vst.msk [vmem:[%s13295_s3 + $0x180] sm:$0xff] %vm5015_vm1, %v4362_v41  ;;  %4485 = vrot.lane.b32.xlu0 %v3875_v62, %s6271_s25  ;;  %v2887_v50 = vmul.f32 -0.071428575, %v6143_v19  ;;  %v3257_v41 = vmul.f32 1.442695, %v2886_v25  ;;  %v5502_v12 = vpop.eup %5501  ;;  %5511 = vpow2.f32 %v3255_v55  ;;  %v3632_v13 = vmin.f32 %v13889_v38, %v13888_v15 }
 0x4d9   :  { %v6146_v55 = vld [vmem:[%s13292_s0 + $0x3e8] sm:$0xff]  ;;  %v3880_v29 = vmul.f32 %v5502_v12, %v3630_v32  ;;  %v13890_v32 = vld [vmem:[#allocation321_spill] sm:$0xff]  ;;  %v13891_v12 = vld [vmem:[#allocation96_spill] sm:$0xff] }
 0x4da   :  { %v3259_v25 = vmul.f32 1.442695, %v2887_v50  ;;  %v5504_v22 = vpop.eup %5503  ;;  %5513 = vpow2.f32 %v3257_v41  ;;  %v2890_v50 = vmul.f32 -0.071428575, %v6146_v55  ;;  %v3633_v53 = vmin.f32 %v13891_v12, %v13890_v32  ;;  %v13893_v15 = vld [vmem:[#allocation95_spill] sm:$0xff] }
 0x4db   :  { %4487 = vrot.lane.b32.xlu1 %v3876_v24, %s6271_s25  ;;  %v4360_v58 = vpop.permute.xlu1 %4359  ;;  %v4366_v62 = vpop.permute.xlu0 %4365  ;;  %v6145_v24 = vld [vmem:[%s13292_s0 + $0x3e0] sm:$0xff]  ;;  %v3881_v2 = vmul.f32 %v5504_v22, %v3631_v43  ;;  %v13892_v22 = vld [vmem:[#allocation320_spill] sm:$0xff] }
 0x4dc   :  { %5063 = vst.msk [vmem:[%s13295_s3 + $0x178] sm:$0xff] %vm5015_vm1, %v4360_v58  ;;  %5066 = vst.msk [vmem:[%s13295_s3 + $0x190] sm:$0xff] %vm5015_vm1, %v4366_v62  ;;  %4489 = vrot.lane.b32.xlu0 %v3877_v6, %s6271_s25  ;;  %v2889_v19 = vmul.f32 -0.071428575, %v6145_v24  ;;  %v3261_v62 = vmul.f32 1.442695, %v2888_v57  ;;  %v5506_v41 = vpop.eup %5505  ;;  %5515 = vpow2.f32 %v3259_v25  ;;  %v3634_v38 = vmin.f32 %v13893_v15, %v13892_v22 }
 0x4dd   :  { %v6148_v25 = vld [vmem:[%s13292_s0 + $0x3f8] sm:$0xff]  ;;  %v3882_v43 = vmul.f32 %v5506_v41, %v3632_v13  ;;  %v13894_v13 = vld [vmem:[#allocation323_spill] sm:$0xff]  ;;  %v13895_v41 = vld [vmem:[#allocation98_spill] sm:$0xff] }
 0x4de   :  { %v3263_v57 = vmul.f32 1.442695, %v2889_v19  ;;  %v5508_v55 = vpop.eup %5507  ;;  %5517 = vpow2.f32 %v3261_v62  ;;  %v2892_v19 = vmul.f32 -0.071428575, %v6148_v25  ;;  %v3635_v12 = vmin.f32 %v13895_v41, %v13894_v13  ;;  %v13897_v22 = vld [vmem:[#allocation97_spill] sm:$0xff] }
 0x4df   :  { %4491 = vrot.lane.b32.xlu1 %v3878_v37, %s6271_s25  ;;  %v4364_v58 = vpop.permute.xlu1 %4363  ;;  %v4370_v6 = vpop.permute.xlu0 %4369  ;;  %v6147_v37 = vld [vmem:[%s13292_s0 + $0x3f0] sm:$0xff]  ;;  %v3883_v32 = vmul.f32 %v5508_v55, %v3633_v53  ;;  %v13896_v55 = vld [vmem:[#allocation322_spill] sm:$0xff] }
 0x4e0   :  { %5065 = vst.msk [vmem:[%s13295_s3 + $0x188] sm:$0xff] %vm5015_vm1, %v4364_v58  ;;  %5068 = vst.msk [vmem:[%s13295_s3 + $0x1a0] sm:$0xff] %vm5015_vm1, %v4370_v6  ;;  %4493 = vrot.lane.b32.xlu0 %v3879_v34, %s6271_s25  ;;  %v2891_v24 = vmul.f32 -0.071428575, %v6147_v37  ;;  %v3265_v6 = vmul.f32 1.442695, %v2890_v50  ;;  %v5510_v62 = vpop.eup %5509  ;;  %5519 = vpow2.f32 %v3263_v57  ;;  %v3636_v15 = vmin.f32 %v13897_v22, %v13896_v55 }
 0x4e1   :  { %v6150_v57 = vld [vmem:[%s13292_s0 + $0x408] sm:$0xff]  ;;  %v3884_v53 = vmul.f32 %v5510_v62, %v3634_v38  ;;  %v13898_v38 = vld [vmem:[#allocation325_spill] sm:$0xff]  ;;  %v13899_v62 = vld [vmem:[#allocation100_spill] sm:$0xff] }
 0x4e2   :  { %v3267_v50 = vmul.f32 1.442695, %v2891_v24  ;;  %v5512_v25 = vpop.eup %5511  ;;  %5521 = vpow2.f32 %v3265_v6  ;;  %v2894_v24 = vmul.f32 -0.071428575, %v6150_v57  ;;  %v3637_v41 = vmin.f32 %v13899_v62, %v13898_v38  ;;  %v13901_v55 = vld [vmem:[#allocation99_spill] sm:$0xff] }
 0x4e3   :  { %4495 = vrot.lane.b32.xlu1 %v3880_v29, %s6271_s25  ;;  %v4368_v58 = vpop.permute.xlu1 %4367  ;;  %v4374_v34 = vpop.permute.xlu0 %4373  ;;  %v6149_v29 = vld [vmem:[%s13292_s0 + $0x400] sm:$0xff]  ;;  %v3885_v13 = vmul.f32 %v5512_v25, %v3635_v12  ;;  %v13900_v25 = vld [vmem:[#allocation324_spill] sm:$0xff] }
 0x4e4   :  { %5067 = vst.msk [vmem:[%s13295_s3 + $0x198] sm:$0xff] %vm5015_vm1, %v4368_v58  ;;  %5070 = vst.msk [vmem:[%s13295_s3 + $0x1b0] sm:$0xff] %vm5015_vm1, %v4374_v34  ;;  %4497 = vrot.lane.b32.xlu0 %v3881_v2, %s6271_s25  ;;  %v2893_v37 = vmul.f32 -0.071428575, %v6149_v29  ;;  %v3269_v34 = vmul.f32 1.442695, %v2892_v19  ;;  %v5514_v6 = vpop.eup %5513  ;;  %5523 = vpow2.f32 %v3267_v50  ;;  %v3638_v22 = vmin.f32 %v13901_v55, %v13900_v25 }
 0x4e5   :  { %v6152_v50 = vld [vmem:[%s13292_s0 + $0x418] sm:$0xff]  ;;  %v3886_v12 = vmul.f32 %v5514_v6, %v3636_v15  ;;  %v13902_v15 = vld [vmem:[#allocation327_spill] sm:$0xff]  ;;  %v13903_v6 = vld [vmem:[#allocation102_spill] sm:$0xff] }
 0x4e6   :  { %v3271_v19 = vmul.f32 1.442695, %v2893_v37  ;;  %v5516_v57 = vpop.eup %5515  ;;  %5525 = vpow2.f32 %v3269_v34  ;;  %v2896_v37 = vmul.f32 -0.071428575, %v6152_v50  ;;  %v3639_v62 = vmin.f32 %v13903_v6, %v13902_v15  ;;  %v13905_v25 = vld [vmem:[#allocation101_spill] sm:$0xff] }
 0x4e7   :  { %4499 = vrot.lane.b32.xlu1 %v3882_v43, %s6271_s25  ;;  %v4372_v58 = vpop.permute.xlu1 %4371  ;;  %v4378_v2 = vpop.permute.xlu0 %4377  ;;  %v6151_v43 = vld [vmem:[%s13292_s0 + $0x410] sm:$0xff]  ;;  %v3887_v38 = vmul.f32 %v5516_v57, %v3637_v41  ;;  %v13904_v57 = vld [vmem:[#allocation326_spill] sm:$0xff] }
 0x4e8   :  { %5069 = vst.msk [vmem:[%s13295_s3 + $0x1a8] sm:$0xff] %vm5015_vm1, %v4372_v58  ;;  %5072 = vst.msk [vmem:[%s13295_s3 + $0x1c0] sm:$0xff] %vm5015_vm1, %v4378_v2  ;;  %4501 = vrot.lane.b32.xlu0 %v3883_v32, %s6271_s25  ;;  %v2895_v29 = vmul.f32 -0.071428575, %v6151_v43  ;;  %v3273_v2 = vmul.f32 1.442695, %v2894_v24  ;;  %v5518_v34 = vpop.eup %5517  ;;  %5527 = vpow2.f32 %v3271_v19  ;;  %v3640_v55 = vmin.f32 %v13905_v25, %v13904_v57 }
 0x4e9   :  { %v6154_v19 = vld [vmem:[%s13292_s0 + $0x428] sm:$0xff]  ;;  %v3888_v41 = vmul.f32 %v5518_v34, %v3638_v22  ;;  %v13906_v22 = vld [vmem:[#allocation329_spill] sm:$0xff]  ;;  %v13907_v34 = vld [vmem:[#allocation104_spill] sm:$0xff] }
 0x4ea   :  { %v3275_v24 = vmul.f32 1.442695, %v2895_v29  ;;  %v5520_v50 = vpop.eup %5519  ;;  %5529 = vpow2.f32 %v3273_v2  ;;  %v2898_v29 = vmul.f32 -0.071428575, %v6154_v19  ;;  %v3641_v6 = vmin.f32 %v13907_v34, %v13906_v22  ;;  %v13909_v57 = vld [vmem:[#allocation103_spill] sm:$0xff] }
 0x4eb   :  { %4503 = vrot.lane.b32.xlu1 %v3884_v53, %s6271_s25  ;;  %v4376_v58 = vpop.permute.xlu1 %4375  ;;  %v4382_v32 = vpop.permute.xlu0 %4381  ;;  %v6153_v53 = vld [vmem:[%s13292_s0 + $0x420] sm:$0xff]  ;;  %v3889_v15 = vmul.f32 %v5520_v50, %v3639_v62  ;;  %v13908_v50 = vld [vmem:[#allocation328_spill] sm:$0xff] }
 0x4ec   :  { %5071 = vst.msk [vmem:[%s13295_s3 + $0x1b8] sm:$0xff] %vm5015_vm1, %v4376_v58  ;;  %5074 = vst.msk [vmem:[%s13295_s3 + $0x1d0] sm:$0xff] %vm5015_vm1, %v4382_v32  ;;  %4505 = vrot.lane.b32.xlu0 %v3885_v13, %s6271_s25  ;;  %v2897_v43 = vmul.f32 -0.071428575, %v6153_v53  ;;  %v3277_v32 = vmul.f32 1.442695, %v2896_v37  ;;  %v5522_v2 = vpop.eup %5521  ;;  %5531 = vpow2.f32 %v3275_v24  ;;  %v3642_v25 = vmin.f32 %v13909_v57, %v13908_v50 }
 0x4ed   :  { %v6156_v24 = vld [vmem:[%s13292_s0 + $0x438] sm:$0xff]  ;;  %v3890_v62 = vmul.f32 %v5522_v2, %v3640_v55  ;;  %v13910_v55 = vld [vmem:[#allocation331_spill] sm:$0xff]  ;;  %v13911_v2 = vld [vmem:[#allocation106_spill] sm:$0xff] }
 0x4ee   :  { %v3279_v37 = vmul.f32 1.442695, %v2897_v43  ;;  %v5524_v19 = vpop.eup %5523  ;;  %5533 = vpow2.f32 %v3277_v32  ;;  %v2900_v43 = vmul.f32 -0.071428575, %v6156_v24  ;;  %v3643_v34 = vmin.f32 %v13911_v2, %v13910_v55  ;;  %v13913_v50 = vld [vmem:[#allocation105_spill] sm:$0xff] }
 0x4ef   :  { %4507 = vrot.lane.b32.xlu1 %v3886_v12, %s6271_s25  ;;  %v4380_v58 = vpop.permute.xlu1 %4379  ;;  %v4386_v13 = vpop.permute.xlu0 %4385  ;;  %v6155_v12 = vld [vmem:[%s13292_s0 + $0x430] sm:$0xff]  ;;  %v3891_v22 = vmul.f32 %v5524_v19, %v3641_v6  ;;  %v13912_v19 = vld [vmem:[#allocation330_spill] sm:$0xff] }
 0x4f0   :  { %5073 = vst.msk [vmem:[%s13295_s3 + $0x1c8] sm:$0xff] %vm5015_vm1, %v4380_v58  ;;  %5076 = vst.msk [vmem:[%s13295_s3 + $0x1e0] sm:$0xff] %vm5015_vm1, %v4386_v13  ;;  %4509 = vrot.lane.b32.xlu0 %v3887_v38, %s6271_s25  ;;  %v2899_v53 = vmul.f32 -0.071428575, %v6155_v12  ;;  %v3281_v13 = vmul.f32 1.442695, %v2898_v29  ;;  %v5526_v32 = vpop.eup %5525  ;;  %5535 = vpow2.f32 %v3279_v37  ;;  %v3644_v57 = vmin.f32 %v13913_v50, %v13912_v19 }
 0x4f1   :  { %v6158_v37 = vld [vmem:[%s13292_s0 + $0x448] sm:$0xff]  ;;  %v3892_v6 = vmul.f32 %v5526_v32, %v3642_v25  ;;  %v13914_v25 = vld [vmem:[#allocation333_spill] sm:$0xff]  ;;  %v13915_v32 = vld [vmem:[#allocation108_spill] sm:$0xff] }
 0x4f2   :  { %v3283_v29 = vmul.f32 1.442695, %v2899_v53  ;;  %v5528_v24 = vpop.eup %5527  ;;  %5537 = vpow2.f32 %v3281_v13  ;;  %v2902_v53 = vmul.f32 -0.071428575, %v6158_v37  ;;  %v3645_v2 = vmin.f32 %v13915_v32, %v13914_v25  ;;  %v13917_v19 = vld [vmem:[#allocation107_spill] sm:$0xff] }
 0x4f3   :  { %4511 = vrot.lane.b32.xlu1 %v3888_v41, %s6271_s25  ;;  %v4384_v58 = vpop.permute.xlu1 %4383  ;;  %v4390_v38 = vpop.permute.xlu0 %4389  ;;  %v6157_v41 = vld [vmem:[%s13292_s0 + $0x440] sm:$0xff]  ;;  %v3893_v55 = vmul.f32 %v5528_v24, %v3643_v34  ;;  %v13916_v24 = vld [vmem:[#allocation332_spill] sm:$0xff] }
 0x4f4   :  { %5075 = vst.msk [vmem:[%s13295_s3 + $0x1d8] sm:$0xff] %vm5015_vm1, %v4384_v58  ;;  %5078 = vst.msk [vmem:[%s13295_s3 + $0x1f0] sm:$0xff] %vm5015_vm1, %v4390_v38  ;;  %4513 = vrot.lane.b32.xlu0 %v3889_v15, %s6271_s25  ;;  %v2901_v12 = vmul.f32 -0.071428575, %v6157_v41  ;;  %v3285_v38 = vmul.f32 1.442695, %v2900_v43  ;;  %v5530_v13 = vpop.eup %5529  ;;  %5539 = vpow2.f32 %v3283_v29  ;;  %v3646_v50 = vmin.f32 %v13917_v19, %v13916_v24 }
 0x4f5   :  { %v6160_v29 = vld [vmem:[%s13292_s0 + $0x458] sm:$0xff]  ;;  %v3894_v34 = vmul.f32 %v5530_v13, %v3644_v57  ;;  %v13918_v57 = vld [vmem:[#allocation335_spill] sm:$0xff]  ;;  %v13919_v13 = vld [vmem:[#allocation110_spill] sm:$0xff] }
 0x4f6   :  { %v3287_v43 = vmul.f32 1.442695, %v2901_v12  ;;  %v5532_v37 = vpop.eup %5531  ;;  %5541 = vpow2.f32 %v3285_v38  ;;  %v2904_v12 = vmul.f32 -0.071428575, %v6160_v29  ;;  %v3647_v32 = vmin.f32 %v13919_v13, %v13918_v57  ;;  %v13921_v24 = vld [vmem:[#allocation109_spill] sm:$0xff] }
 0x4f7   :  { %4515 = vrot.lane.b32.xlu1 %v3890_v62, %s6271_s25  ;;  %v4388_v58 = vpop.permute.xlu1 %4387  ;;  %v4394_v15 = vpop.permute.xlu0 %4393  ;;  %v6159_v62 = vld [vmem:[%s13292_s0 + $0x450] sm:$0xff]  ;;  %v3895_v25 = vmul.f32 %v5532_v37, %v3645_v2  ;;  %v13920_v37 = vld [vmem:[#allocation334_spill] sm:$0xff] }
 0x4f8   :  { %5077 = vst.msk [vmem:[%s13295_s3 + $0x1e8] sm:$0xff] %vm5015_vm1, %v4388_v58  ;;  %5080 = vst.msk [vmem:[%s13295_s3 + $0x200] sm:$0xff] %vm5015_vm1, %v4394_v15  ;;  %4517 = vrot.lane.b32.xlu0 %v3891_v22, %s6271_s25  ;;  %v2903_v41 = vmul.f32 -0.071428575, %v6159_v62  ;;  %v3289_v15 = vmul.f32 1.442695, %v2902_v53  ;;  %v5534_v38 = vpop.eup %5533  ;;  %5543 = vpow2.f32 %v3287_v43  ;;  %v3648_v19 = vmin.f32 %v13921_v24, %v13920_v37 }
 0x4f9   :  { %v6162_v43 = vld [vmem:[%s13292_s0 + $0x468] sm:$0xff]  ;;  %v3896_v2 = vmul.f32 %v5534_v38, %v3646_v50  ;;  %v13922_v50 = vld [vmem:[#allocation337_spill] sm:$0xff]  ;;  %v13923_v38 = vld [vmem:[#allocation112_spill] sm:$0xff] }
 0x4fa   :  { %v3291_v53 = vmul.f32 1.442695, %v2903_v41  ;;  %v5536_v29 = vpop.eup %5535  ;;  %5545 = vpow2.f32 %v3289_v15  ;;  %v2906_v41 = vmul.f32 -0.071428575, %v6162_v43  ;;  %v3649_v13 = vmin.f32 %v13923_v38, %v13922_v50  ;;  %v13925_v37 = vld [vmem:[#allocation111_spill] sm:$0xff] }
 0x4fb   :  { %4519 = vrot.lane.b32.xlu1 %v3892_v6, %s6271_s25  ;;  %v4392_v58 = vpop.permute.xlu1 %4391  ;;  %v4398_v22 = vpop.permute.xlu0 %4397  ;;  %v6161_v6 = vld [vmem:[%s13292_s0 + $0x460] sm:$0xff]  ;;  %v3897_v57 = vmul.f32 %v5536_v29, %v3647_v32  ;;  %v13924_v29 = vld [vmem:[#allocation336_spill] sm:$0xff] }
 0x4fc   :  { %5079 = vst.msk [vmem:[%s13295_s3 + $0x1f8] sm:$0xff] %vm5015_vm1, %v4392_v58  ;;  %5082 = vst.msk [vmem:[%s13295_s3 + $0x210] sm:$0xff] %vm5015_vm1, %v4398_v22  ;;  %4521 = vrot.lane.b32.xlu0 %v3893_v55, %s6271_s25  ;;  %v2905_v62 = vmul.f32 -0.071428575, %v6161_v6  ;;  %v3293_v22 = vmul.f32 1.442695, %v2904_v12  ;;  %v5538_v15 = vpop.eup %5537  ;;  %5547 = vpow2.f32 %v3291_v53  ;;  %v3650_v24 = vmin.f32 %v13925_v37, %v13924_v29 }
 0x4fd   :  { %v6164_v53 = vld [vmem:[%s13292_s0 + $0x478] sm:$0xff]  ;;  %v3898_v32 = vmul.f32 %v5538_v15, %v3648_v19  ;;  %v13926_v19 = vld [vmem:[#allocation339_spill] sm:$0xff]  ;;  %v13927_v15 = vld [vmem:[#allocation114_spill] sm:$0xff] }
 0x4fe   :  { %v3295_v12 = vmul.f32 1.442695, %v2905_v62  ;;  %v5540_v43 = vpop.eup %5539  ;;  %5549 = vpow2.f32 %v3293_v22  ;;  %v2908_v62 = vmul.f32 -0.071428575, %v6164_v53  ;;  %v3651_v38 = vmin.f32 %v13927_v15, %v13926_v19  ;;  %v13929_v29 = vld [vmem:[#allocation113_spill] sm:$0xff] }
 0x4ff   :  { %4523 = vrot.lane.b32.xlu1 %v3894_v34, %s6271_s25  ;;  %v4396_v58 = vpop.permute.xlu1 %4395  ;;  %v4402_v55 = vpop.permute.xlu0 %4401  ;;  %v6163_v34 = vld [vmem:[%s13292_s0 + $0x470] sm:$0xff]  ;;  %v3899_v50 = vmul.f32 %v5540_v43, %v3649_v13  ;;  %v13928_v43 = vld [vmem:[#allocation338_spill] sm:$0xff] }
 0x500   :  { %5081 = vst.msk [vmem:[%s13295_s3 + $0x208] sm:$0xff] %vm5015_vm1, %v4396_v58  ;;  %5084 = vst.msk [vmem:[%s13295_s3 + $0x220] sm:$0xff] %vm5015_vm1, %v4402_v55  ;;  %4525 = vrot.lane.b32.xlu0 %v3895_v25, %s6271_s25  ;;  %v2907_v6 = vmul.f32 -0.071428575, %v6163_v34  ;;  %v3297_v55 = vmul.f32 1.442695, %v2906_v41  ;;  %v5542_v22 = vpop.eup %5541  ;;  %5551 = vpow2.f32 %v3295_v12  ;;  %v3652_v37 = vmin.f32 %v13929_v29, %v13928_v43 }
 0x501   :  { %v6166_v12 = vld [vmem:[%s13292_s0 + $0x488] sm:$0xff]  ;;  %v3900_v13 = vmul.f32 %v5542_v22, %v3650_v24  ;;  %v13930_v24 = vld [vmem:[#allocation341_spill] sm:$0xff]  ;;  %v13931_v22 = vld [vmem:[#allocation116_spill] sm:$0xff] }
 0x502   :  { %v3299_v41 = vmul.f32 1.442695, %v2907_v6  ;;  %v5544_v53 = vpop.eup %5543  ;;  %5553 = vpow2.f32 %v3297_v55  ;;  %v2910_v6 = vmul.f32 -0.071428575, %v6166_v12  ;;  %v3653_v15 = vmin.f32 %v13931_v22, %v13930_v24  ;;  %v13933_v43 = vld [vmem:[#allocation115_spill] sm:$0xff] }
 0x503   :  { %4527 = vrot.lane.b32.xlu1 %v3896_v2, %s6271_s25  ;;  %v4400_v58 = vpop.permute.xlu1 %4399  ;;  %v4406_v25 = vpop.permute.xlu0 %4405  ;;  %v6165_v2 = vld [vmem:[%s13292_s0 + $0x480] sm:$0xff]  ;;  %v3901_v19 = vmul.f32 %v5544_v53, %v3651_v38  ;;  %v13932_v53 = vld [vmem:[#allocation340_spill] sm:$0xff] }
 0x504   :  { %5083 = vst.msk [vmem:[%s13295_s3 + $0x218] sm:$0xff] %vm5015_vm1, %v4400_v58  ;;  %5086 = vst.msk [vmem:[%s13295_s3 + $0x230] sm:$0xff] %vm5015_vm1, %v4406_v25  ;;  %4529 = vrot.lane.b32.xlu0 %v3897_v57, %s6271_s25  ;;  %v2909_v34 = vmul.f32 -0.071428575, %v6165_v2  ;;  %v3301_v25 = vmul.f32 1.442695, %v2908_v62  ;;  %v5546_v55 = vpop.eup %5545  ;;  %5555 = vpow2.f32 %v3299_v41  ;;  %v3654_v29 = vmin.f32 %v13933_v43, %v13932_v53 }
 0x505   :  { %v6168_v41 = vld [vmem:[%s13292_s0 + $0x498] sm:$0xff]  ;;  %v3902_v38 = vmul.f32 %v5546_v55, %v3652_v37  ;;  %v13934_v37 = vld [vmem:[#allocation343_spill] sm:$0xff]  ;;  %v13935_v55 = vld [vmem:[#allocation118_spill] sm:$0xff] }
 0x506   :  { %v3303_v62 = vmul.f32 1.442695, %v2909_v34  ;;  %v5548_v12 = vpop.eup %5547  ;;  %5557 = vpow2.f32 %v3301_v25  ;;  %v2912_v34 = vmul.f32 -0.071428575, %v6168_v41  ;;  %v3655_v22 = vmin.f32 %v13935_v55, %v13934_v37  ;;  %v13937_v53 = vld [vmem:[#allocation117_spill] sm:$0xff] }
 0x507   :  { %4531 = vrot.lane.b32.xlu1 %v3898_v32, %s6271_s25  ;;  %v4404_v58 = vpop.permute.xlu1 %4403  ;;  %v4410_v57 = vpop.permute.xlu0 %4409  ;;  %v6167_v32 = vld [vmem:[%s13292_s0 + $0x490] sm:$0xff]  ;;  %v3903_v24 = vmul.f32 %v5548_v12, %v3653_v15  ;;  %v13936_v12 = vld [vmem:[#allocation342_spill] sm:$0xff] }
 0x508   :  { %5085 = vst.msk [vmem:[%s13295_s3 + $0x228] sm:$0xff] %vm5015_vm1, %v4404_v58  ;;  %5088 = vst.msk [vmem:[%s13295_s3 + $0x240] sm:$0xff] %vm5015_vm1, %v4410_v57  ;;  %4533 = vrot.lane.b32.xlu0 %v3899_v50, %s6271_s25  ;;  %v2911_v2 = vmul.f32 -0.071428575, %v6167_v32  ;;  %v3305_v57 = vmul.f32 1.442695, %v2910_v6  ;;  %v5550_v25 = vpop.eup %5549  ;;  %5559 = vpow2.f32 %v3303_v62  ;;  %v3656_v43 = vmin.f32 %v13937_v53, %v13936_v12 }
 0x509   :  { %v6170_v62 = vld [vmem:[%s13292_s0 + $0x4a8] sm:$0xff]  ;;  %v3904_v15 = vmul.f32 %v5550_v25, %v3654_v29  ;;  %v13938_v29 = vld [vmem:[#allocation345_spill] sm:$0xff]  ;;  %v13939_v25 = vld [vmem:[#allocation120_spill] sm:$0xff] }
 0x50a   :  { %v3307_v6 = vmul.f32 1.442695, %v2911_v2  ;;  %v5552_v41 = vpop.eup %5551  ;;  %5561 = vpow2.f32 %v3305_v57  ;;  %v2914_v2 = vmul.f32 -0.071428575, %v6170_v62  ;;  %v3657_v55 = vmin.f32 %v13939_v25, %v13938_v29  ;;  %v13941_v12 = vld [vmem:[#allocation119_spill] sm:$0xff] }
 0x50b   :  { %4535 = vrot.lane.b32.xlu1 %v3900_v13, %s6271_s25  ;;  %v4408_v58 = vpop.permute.xlu1 %4407  ;;  %v4414_v50 = vpop.permute.xlu0 %4413  ;;  %v6169_v13 = vld [vmem:[%s13292_s0 + $0x4a0] sm:$0xff]  ;;  %v3905_v37 = vmul.f32 %v5552_v41, %v3655_v22  ;;  %v13940_v41 = vld [vmem:[#allocation344_spill] sm:$0xff] }
 0x50c   :  { %5087 = vst.msk [vmem:[%s13295_s3 + $0x238] sm:$0xff] %vm5015_vm1, %v4408_v58  ;;  %5090 = vst.msk [vmem:[%s13295_s3 + $0x250] sm:$0xff] %vm5015_vm1, %v4414_v50  ;;  %4537 = vrot.lane.b32.xlu0 %v3901_v19, %s6271_s25  ;;  %v2913_v32 = vmul.f32 -0.071428575, %v6169_v13  ;;  %v3309_v50 = vmul.f32 1.442695, %v2912_v34  ;;  %v5554_v57 = vpop.eup %5553  ;;  %5563 = vpow2.f32 %v3307_v6  ;;  %v3658_v53 = vmin.f32 %v13941_v12, %v13940_v41 }
 0x50d   :  { %v6172_v6 = vld [vmem:[%s13292_s0 + $0x4b8] sm:$0xff]  ;;  %v3906_v22 = vmul.f32 %v5554_v57, %v3656_v43  ;;  %v13942_v43 = vld [vmem:[#allocation347_spill] sm:$0xff]  ;;  %v13943_v57 = vld [vmem:[#allocation122_spill] sm:$0xff] }
 0x50e   :  { %v3311_v34 = vmul.f32 1.442695, %v2913_v32  ;;  %v5556_v62 = vpop.eup %5555  ;;  %5565 = vpow2.f32 %v3309_v50  ;;  %v2916_v32 = vmul.f32 -0.071428575, %v6172_v6  ;;  %v3659_v25 = vmin.f32 %v13943_v57, %v13942_v43  ;;  %v13945_v41 = vld [vmem:[#allocation121_spill] sm:$0xff] }
 0x50f   :  { %4539 = vrot.lane.b32.xlu1 %v3902_v38, %s6271_s25  ;;  %v4412_v58 = vpop.permute.xlu1 %4411  ;;  %v4418_v19 = vpop.permute.xlu0 %4417  ;;  %v6171_v38 = vld [vmem:[%s13292_s0 + $0x4b0] sm:$0xff]  ;;  %v3907_v29 = vmul.f32 %v5556_v62, %v3657_v55  ;;  %v13944_v62 = vld [vmem:[#allocation346_spill] sm:$0xff] }
 0x510   :  { %5089 = vst.msk [vmem:[%s13295_s3 + $0x248] sm:$0xff] %vm5015_vm1, %v4412_v58  ;;  %5092 = vst.msk [vmem:[%s13295_s3 + $0x260] sm:$0xff] %vm5015_vm1, %v4418_v19  ;;  %4541 = vrot.lane.b32.xlu0 %v3903_v24, %s6271_s25  ;;  %v2915_v13 = vmul.f32 -0.071428575, %v6171_v38  ;;  %v3313_v19 = vmul.f32 1.442695, %v2914_v2  ;;  %v5558_v50 = vpop.eup %5557  ;;  %5567 = vpow2.f32 %v3311_v34  ;;  %v3660_v12 = vmin.f32 %v13945_v41, %v13944_v62 }
 0x511   :  { %v6174_v34 = vld [vmem:[%s13292_s0 + $0x4c8] sm:$0xff]  ;;  %v3908_v55 = vmul.f32 %v5558_v50, %v3658_v53  ;;  %v13946_v53 = vld [vmem:[#allocation349_spill] sm:$0xff]  ;;  %v13947_v50 = vld [vmem:[#allocation124_spill] sm:$0xff] }
 0x512   :  { %v3315_v2 = vmul.f32 1.442695, %v2915_v13  ;;  %v5560_v6 = vpop.eup %5559  ;;  %5569 = vpow2.f32 %v3313_v19  ;;  %v2918_v13 = vmul.f32 -0.071428575, %v6174_v34  ;;  %v3661_v57 = vmin.f32 %v13947_v50, %v13946_v53  ;;  %v13949_v62 = vld [vmem:[#allocation123_spill] sm:$0xff] }
 0x513   :  { %4543 = vrot.lane.b32.xlu1 %v3904_v15, %s6271_s25  ;;  %v4416_v58 = vpop.permute.xlu1 %4415  ;;  %v4422_v24 = vpop.permute.xlu0 %4421  ;;  %v6173_v15 = vld [vmem:[%s13292_s0 + $0x4c0] sm:$0xff]  ;;  %v3909_v43 = vmul.f32 %v5560_v6, %v3659_v25  ;;  %v13948_v6 = vld [vmem:[#allocation348_spill] sm:$0xff] }
 0x514   :  { %5091 = vst.msk [vmem:[%s13295_s3 + $0x258] sm:$0xff] %vm5015_vm1, %v4416_v58  ;;  %5094 = vst.msk [vmem:[%s13295_s3 + $0x270] sm:$0xff] %vm5015_vm1, %v4422_v24  ;;  %4545 = vrot.lane.b32.xlu0 %v3905_v37, %s6271_s25  ;;  %v2917_v38 = vmul.f32 -0.071428575, %v6173_v15  ;;  %v3317_v24 = vmul.f32 1.442695, %v2916_v32  ;;  %v5562_v19 = vpop.eup %5561  ;;  %5571 = vpow2.f32 %v3315_v2  ;;  %v3662_v41 = vmin.f32 %v13949_v62, %v13948_v6 }
 0x515   :  { %v6176_v2 = vld [vmem:[%s13292_s0 + $0x4d8] sm:$0xff]  ;;  %v3910_v25 = vmul.f32 %v5562_v19, %v3660_v12  ;;  %v13950_v12 = vld [vmem:[#allocation351_spill] sm:$0xff]  ;;  %v13951_v19 = vld [vmem:[#allocation126_spill] sm:$0xff] }
 0x516   :  { %v3319_v32 = vmul.f32 1.442695, %v2917_v38  ;;  %v5564_v34 = vpop.eup %5563  ;;  %5573 = vpow2.f32 %v3317_v24  ;;  %v2920_v38 = vmul.f32 -0.071428575, %v6176_v2  ;;  %v3663_v50 = vmin.f32 %v13951_v19, %v13950_v12  ;;  %v13953_v6 = vld [vmem:[#allocation125_spill] sm:$0xff] }
 0x517   :  { %4547 = vrot.lane.b32.xlu1 %v3906_v22, %s6271_s25  ;;  %v4420_v58 = vpop.permute.xlu1 %4419  ;;  %v4426_v37 = vpop.permute.xlu0 %4425  ;;  %v6175_v22 = vld [vmem:[%s13292_s0 + $0x4d0] sm:$0xff]  ;;  %v3911_v53 = vmul.f32 %v5564_v34, %v3661_v57  ;;  %v13952_v34 = vld [vmem:[#allocation350_spill] sm:$0xff] }
 0x518   :  { %5093 = vst.msk [vmem:[%s13295_s3 + $0x268] sm:$0xff] %vm5015_vm1, %v4420_v58  ;;  %5096 = vst.msk [vmem:[%s13295_s3 + $0x280] sm:$0xff] %vm5015_vm1, %v4426_v37  ;;  %4549 = vrot.lane.b32.xlu0 %v3907_v29, %s6271_s25  ;;  %v2919_v15 = vmul.f32 -0.071428575, %v6175_v22  ;;  %v3321_v37 = vmul.f32 1.442695, %v2918_v13  ;;  %v5566_v24 = vpop.eup %5565  ;;  %5575 = vpow2.f32 %v3319_v32  ;;  %v3664_v62 = vmin.f32 %v13953_v6, %v13952_v34 }
 0x519   :  { %v6178_v32 = vld [vmem:[%s13292_s0 + $0x4e8] sm:$0xff]  ;;  %v3912_v57 = vmul.f32 %v5566_v24, %v3662_v41  ;;  %v13954_v41 = vld [vmem:[#allocation353_spill] sm:$0xff]  ;;  %v13955_v24 = vld [vmem:[#allocation128_spill] sm:$0xff] }
 0x51a   :  { %v3323_v13 = vmul.f32 1.442695, %v2919_v15  ;;  %v5568_v2 = vpop.eup %5567  ;;  %5577 = vpow2.f32 %v3321_v37  ;;  %v2922_v15 = vmul.f32 -0.071428575, %v6178_v32  ;;  %v3665_v19 = vmin.f32 %v13955_v24, %v13954_v41  ;;  %v13957_v34 = vld [vmem:[#allocation127_spill] sm:$0xff] }
 0x51b   :  { %4551 = vrot.lane.b32.xlu1 %v3908_v55, %s6271_s25  ;;  %v4424_v58 = vpop.permute.xlu1 %4423  ;;  %v4430_v29 = vpop.permute.xlu0 %4429  ;;  %v6177_v55 = vld [vmem:[%s13292_s0 + $0x4e0] sm:$0xff]  ;;  %v3913_v12 = vmul.f32 %v5568_v2, %v3663_v50  ;;  %v13956_v2 = vld [vmem:[#allocation352_spill] sm:$0xff] }
 0x51c   :  { %5095 = vst.msk [vmem:[%s13295_s3 + $0x278] sm:$0xff] %vm5015_vm1, %v4424_v58  ;;  %5098 = vst.msk [vmem:[%s13295_s3 + $0x290] sm:$0xff] %vm5015_vm1, %v4430_v29  ;;  %4553 = vrot.lane.b32.xlu0 %v3909_v43, %s6271_s25  ;;  %v2921_v22 = vmul.f32 -0.071428575, %v6177_v55  ;;  %v3325_v29 = vmul.f32 1.442695, %v2920_v38  ;;  %v5570_v37 = vpop.eup %5569  ;;  %5579 = vpow2.f32 %v3323_v13  ;;  %v3666_v6 = vmin.f32 %v13957_v34, %v13956_v2 }
 0x51d   :  { %v6180_v13 = vld [vmem:[%s13292_s0 + $0x4f8] sm:$0xff]  ;;  %v3914_v50 = vmul.f32 %v5570_v37, %v3664_v62  ;;  %v13958_v62 = vld [vmem:[#allocation355_spill] sm:$0xff]  ;;  %v13959_v37 = vld [vmem:[#allocation130_spill] sm:$0xff] }
 0x51e   :  { %v3327_v38 = vmul.f32 1.442695, %v2921_v22  ;;  %v5572_v32 = vpop.eup %5571  ;;  %5581 = vpow2.f32 %v3325_v29  ;;  %v2924_v22 = vmul.f32 -0.071428575, %v6180_v13  ;;  %v3667_v24 = vmin.f32 %v13959_v37, %v13958_v62  ;;  %v13961_v2 = vld [vmem:[#allocation129_spill] sm:$0xff] }
 0x51f   :  { %4555 = vrot.lane.b32.xlu1 %v3910_v25, %s6271_s25  ;;  %v4428_v58 = vpop.permute.xlu1 %4427  ;;  %v4434_v43 = vpop.permute.xlu0 %4433  ;;  %v6179_v25 = vld [vmem:[%s13292_s0 + $0x4f0] sm:$0xff]  ;;  %v3915_v41 = vmul.f32 %v5572_v32, %v3665_v19  ;;  %v13960_v32 = vld [vmem:[#allocation354_spill] sm:$0xff] }
 0x520   :  { %5097 = vst.msk [vmem:[%s13295_s3 + $0x288] sm:$0xff] %vm5015_vm1, %v4428_v58  ;;  %5100 = vst.msk [vmem:[%s13295_s3 + $0x2a0] sm:$0xff] %vm5015_vm1, %v4434_v43  ;;  %4557 = vrot.lane.b32.xlu0 %v3911_v53, %s6271_s25  ;;  %v2923_v55 = vmul.f32 -0.071428575, %v6179_v25  ;;  %v3329_v43 = vmul.f32 1.442695, %v2922_v15  ;;  %v5574_v29 = vpop.eup %5573  ;;  %5583 = vpow2.f32 %v3327_v38  ;;  %v3668_v34 = vmin.f32 %v13961_v2, %v13960_v32 }
 0x521   :  { %v6182_v38 = vld [vmem:[%s13292_s0 + $0x508] sm:$0xff]  ;;  %v3916_v19 = vmul.f32 %v5574_v29, %v3666_v6  ;;  %v13962_v6 = vld [vmem:[#allocation357_spill] sm:$0xff]  ;;  %v13963_v29 = vld [vmem:[#allocation132_spill] sm:$0xff] }
 0x522   :  { %v3331_v15 = vmul.f32 1.442695, %v2923_v55  ;;  %v5576_v13 = vpop.eup %5575  ;;  %5585 = vpow2.f32 %v3329_v43  ;;  %v2926_v55 = vmul.f32 -0.071428575, %v6182_v38  ;;  %v3669_v37 = vmin.f32 %v13963_v29, %v13962_v6  ;;  %v13965_v32 = vld [vmem:[#allocation131_spill] sm:$0xff] }
 0x523   :  { %4559 = vrot.lane.b32.xlu1 %v3912_v57, %s6271_s25  ;;  %v4432_v58 = vpop.permute.xlu1 %4431  ;;  %v4438_v53 = vpop.permute.xlu0 %4437  ;;  %v6181_v57 = vld [vmem:[%s13292_s0 + $0x500] sm:$0xff]  ;;  %v3917_v62 = vmul.f32 %v5576_v13, %v3667_v24  ;;  %v13964_v13 = vld [vmem:[#allocation356_spill] sm:$0xff] }
 0x524   :  { %5099 = vst.msk [vmem:[%s13295_s3 + $0x298] sm:$0xff] %vm5015_vm1, %v4432_v58  ;;  %5102 = vst.msk [vmem:[%s13295_s3 + $0x2b0] sm:$0xff] %vm5015_vm1, %v4438_v53  ;;  %4561 = vrot.lane.b32.xlu0 %v3913_v12, %s6271_s25  ;;  %v2925_v25 = vmul.f32 -0.071428575, %v6181_v57  ;;  %v3333_v53 = vmul.f32 1.442695, %v2924_v22  ;;  %v5578_v43 = vpop.eup %5577  ;;  %5587 = vpow2.f32 %v3331_v15  ;;  %v3670_v2 = vmin.f32 %v13965_v32, %v13964_v13 }
 0x525   :  { %v6184_v15 = vld [vmem:[%s13292_s0 + $0x518] sm:$0xff]  ;;  %v3918_v24 = vmul.f32 %v5578_v43, %v3668_v34  ;;  %v13966_v34 = vld [vmem:[#allocation359_spill] sm:$0xff]  ;;  %v13967_v43 = vld [vmem:[#allocation134_spill] sm:$0xff] }
 0x526   :  { %v3335_v22 = vmul.f32 1.442695, %v2925_v25  ;;  %v5580_v38 = vpop.eup %5579  ;;  %5589 = vpow2.f32 %v3333_v53  ;;  %v2928_v25 = vmul.f32 -0.071428575, %v6184_v15  ;;  %v3671_v29 = vmin.f32 %v13967_v43, %v13966_v34  ;;  %v13969_v13 = vld [vmem:[#allocation133_spill] sm:$0xff] }
 0x527   :  { %4563 = vrot.lane.b32.xlu1 %v3914_v50, %s6271_s25  ;;  %v4436_v58 = vpop.permute.xlu1 %4435  ;;  %v4442_v12 = vpop.permute.xlu0 %4441  ;;  %v6183_v50 = vld [vmem:[%s13292_s0 + $0x510] sm:$0xff]  ;;  %v3919_v6 = vmul.f32 %v5580_v38, %v3669_v37  ;;  %v13968_v38 = vld [vmem:[#allocation358_spill] sm:$0xff] }
 0x528   :  { %5101 = vst.msk [vmem:[%s13295_s3 + $0x2a8] sm:$0xff] %vm5015_vm1, %v4436_v58  ;;  %5104 = vst.msk [vmem:[%s13295_s3 + $0x2c0] sm:$0xff] %vm5015_vm1, %v4442_v12  ;;  %4565 = vrot.lane.b32.xlu0 %v3915_v41, %s6271_s25  ;;  %v2927_v57 = vmul.f32 -0.071428575, %v6183_v50  ;;  %v3337_v12 = vmul.f32 1.442695, %v2926_v55  ;;  %v5582_v53 = vpop.eup %5581  ;;  %5591 = vpow2.f32 %v3335_v22  ;;  %v3672_v32 = vmin.f32 %v13969_v13, %v13968_v38 }
 0x529   :  { %v6186_v22 = vld [vmem:[%s13292_s0 + $0x528] sm:$0xff]  ;;  %v3920_v37 = vmul.f32 %v5582_v53, %v3670_v2  ;;  %v13970_v2 = vld [vmem:[#allocation361_spill] sm:$0xff]  ;;  %v13971_v53 = vld [vmem:[#allocation136_spill] sm:$0xff] }
 0x52a   :  { %v3339_v55 = vmul.f32 1.442695, %v2927_v57  ;;  %v5584_v15 = vpop.eup %5583  ;;  %5593 = vpow2.f32 %v3337_v12  ;;  %v2930_v57 = vmul.f32 -0.071428575, %v6186_v22  ;;  %v3673_v43 = vmin.f32 %v13971_v53, %v13970_v2  ;;  %v13973_v38 = vld [vmem:[#allocation135_spill] sm:$0xff] }
 0x52b   :  { %4567 = vrot.lane.b32.xlu1 %v3916_v19, %s6271_s25  ;;  %v4440_v58 = vpop.permute.xlu1 %4439  ;;  %v4446_v41 = vpop.permute.xlu0 %4445  ;;  %v6185_v19 = vld [vmem:[%s13292_s0 + $0x520] sm:$0xff]  ;;  %v3921_v34 = vmul.f32 %v5584_v15, %v3671_v29  ;;  %v13972_v15 = vld [vmem:[#allocation360_spill] sm:$0xff] }
 0x52c   :  { %5103 = vst.msk [vmem:[%s13295_s3 + $0x2b8] sm:$0xff] %vm5015_vm1, %v4440_v58  ;;  %5106 = vst.msk [vmem:[%s13295_s3 + $0x2d0] sm:$0xff] %vm5015_vm1, %v4446_v41  ;;  %4569 = vrot.lane.b32.xlu0 %v3917_v62, %s6271_s25  ;;  %v2929_v50 = vmul.f32 -0.071428575, %v6185_v19  ;;  %v3341_v41 = vmul.f32 1.442695, %v2928_v25  ;;  %v5586_v12 = vpop.eup %5585  ;;  %5595 = vpow2.f32 %v3339_v55  ;;  %v3674_v13 = vmin.f32 %v13973_v38, %v13972_v15 }
 0x52d   :  { %v6188_v55 = vld [vmem:[%s13292_s0 + $0x538] sm:$0xff]  ;;  %v3922_v29 = vmul.f32 %v5586_v12, %v3672_v32  ;;  %v13974_v32 = vld [vmem:[#allocation363_spill] sm:$0xff]  ;;  %v13975_v12 = vld [vmem:[#allocation138_spill] sm:$0xff] }
 0x52e   :  { %v3343_v25 = vmul.f32 1.442695, %v2929_v50  ;;  %v5588_v22 = vpop.eup %5587  ;;  %5597 = vpow2.f32 %v3341_v41  ;;  %v2932_v50 = vmul.f32 -0.071428575, %v6188_v55  ;;  %v3675_v53 = vmin.f32 %v13975_v12, %v13974_v32  ;;  %v13977_v15 = vld [vmem:[#allocation137_spill] sm:$0xff] }
 0x52f   :  { %4571 = vrot.lane.b32.xlu1 %v3918_v24, %s6271_s25  ;;  %v4444_v58 = vpop.permute.xlu1 %4443  ;;  %v4450_v62 = vpop.permute.xlu0 %4449  ;;  %v6187_v24 = vld [vmem:[%s13292_s0 + $0x530] sm:$0xff]  ;;  %v3923_v2 = vmul.f32 %v5588_v22, %v3673_v43  ;;  %v13976_v22 = vld [vmem:[#allocation362_spill] sm:$0xff] }
 0x530   :  { %5105 = vst.msk [vmem:[%s13295_s3 + $0x2c8] sm:$0xff] %vm5015_vm1, %v4444_v58  ;;  %5108 = vst.msk [vmem:[%s13295_s3 + $0x2e0] sm:$0xff] %vm5015_vm1, %v4450_v62  ;;  %4573 = vrot.lane.b32.xlu0 %v3919_v6, %s6271_s25  ;;  %v2931_v19 = vmul.f32 -0.071428575, %v6187_v24  ;;  %v3345_v62 = vmul.f32 1.442695, %v2930_v57  ;;  %v5590_v41 = vpop.eup %5589  ;;  %5599 = vpow2.f32 %v3343_v25  ;;  %v3676_v38 = vmin.f32 %v13977_v15, %v13976_v22 }
 0x531   :  { %v6190_v25 = vld [vmem:[%s13292_s0 + $0x548] sm:$0xff]  ;;  %v3924_v43 = vmul.f32 %v5590_v41, %v3674_v13  ;;  %v13978_v13 = vld [vmem:[#allocation365_spill] sm:$0xff]  ;;  %v13979_v41 = vld [vmem:[#allocation140_spill] sm:$0xff] }
 0x532   :  { %v3347_v57 = vmul.f32 1.442695, %v2931_v19  ;;  %v5592_v55 = vpop.eup %5591  ;;  %5601 = vpow2.f32 %v3345_v62  ;;  %v2934_v19 = vmul.f32 -0.071428575, %v6190_v25  ;;  %v3677_v12 = vmin.f32 %v13979_v41, %v13978_v13  ;;  %v13981_v22 = vld [vmem:[#allocation139_spill] sm:$0xff] }
 0x533   :  { %4575 = vrot.lane.b32.xlu1 %v3920_v37, %s6271_s25  ;;  %v4448_v58 = vpop.permute.xlu1 %4447  ;;  %v4454_v6 = vpop.permute.xlu0 %4453  ;;  %v6189_v37 = vld [vmem:[%s13292_s0 + $0x540] sm:$0xff]  ;;  %v3925_v32 = vmul.f32 %v5592_v55, %v3675_v53  ;;  %v13980_v55 = vld [vmem:[#allocation364_spill] sm:$0xff] }
 0x534   :  { %5107 = vst.msk [vmem:[%s13295_s3 + $0x2d8] sm:$0xff] %vm5015_vm1, %v4448_v58  ;;  %5110 = vst.msk [vmem:[%s13295_s3 + $0x2f0] sm:$0xff] %vm5015_vm1, %v4454_v6  ;;  %4577 = vrot.lane.b32.xlu0 %v3921_v34, %s6271_s25  ;;  %v2933_v24 = vmul.f32 -0.071428575, %v6189_v37  ;;  %v3349_v6 = vmul.f32 1.442695, %v2932_v50  ;;  %v5594_v62 = vpop.eup %5593  ;;  %5603 = vpow2.f32 %v3347_v57  ;;  %v3678_v15 = vmin.f32 %v13981_v22, %v13980_v55 }
 0x535   :  { %v6192_v57 = vld [vmem:[%s13292_s0 + $0x558] sm:$0xff]  ;;  %v3926_v53 = vmul.f32 %v5594_v62, %v3676_v38  ;;  %v13982_v38 = vld [vmem:[#allocation367_spill] sm:$0xff]  ;;  %v13983_v62 = vld [vmem:[#allocation142_spill] sm:$0xff] }
 0x536   :  { %v3351_v50 = vmul.f32 1.442695, %v2933_v24  ;;  %v5596_v25 = vpop.eup %5595  ;;  %5605 = vpow2.f32 %v3349_v6  ;;  %v2936_v24 = vmul.f32 -0.071428575, %v6192_v57  ;;  %v3679_v41 = vmin.f32 %v13983_v62, %v13982_v38  ;;  %v13985_v55 = vld [vmem:[#allocation141_spill] sm:$0xff] }
 0x537   :  { %4579 = vrot.lane.b32.xlu1 %v3922_v29, %s6271_s25  ;;  %v4452_v58 = vpop.permute.xlu1 %4451  ;;  %v4458_v34 = vpop.permute.xlu0 %4457  ;;  %v6191_v29 = vld [vmem:[%s13292_s0 + $0x550] sm:$0xff]  ;;  %v3927_v13 = vmul.f32 %v5596_v25, %v3677_v12  ;;  %v13984_v25 = vld [vmem:[#allocation366_spill] sm:$0xff] }
 0x538   :  { %5109 = vst.msk [vmem:[%s13295_s3 + $0x2e8] sm:$0xff] %vm5015_vm1, %v4452_v58  ;;  %5112 = vst.msk [vmem:[%s13295_s3 + $0x300] sm:$0xff] %vm5015_vm1, %v4458_v34  ;;  %4581 = vrot.lane.b32.xlu0 %v3923_v2, %s6271_s25  ;;  %v2935_v37 = vmul.f32 -0.071428575, %v6191_v29  ;;  %v3353_v34 = vmul.f32 1.442695, %v2934_v19  ;;  %v5598_v6 = vpop.eup %5597  ;;  %5607 = vpow2.f32 %v3351_v50  ;;  %v3680_v22 = vmin.f32 %v13985_v55, %v13984_v25 }
 0x539   :  { %v6194_v50 = vld [vmem:[%s13292_s0 + $0x568] sm:$0xff]  ;;  %v3928_v12 = vmul.f32 %v5598_v6, %v3678_v15  ;;  %v13986_v15 = vld [vmem:[#allocation369_spill] sm:$0xff]  ;;  %v13987_v6 = vld [vmem:[#allocation144_spill] sm:$0xff] }
 0x53a   :  { %v3355_v19 = vmul.f32 1.442695, %v2935_v37  ;;  %v5600_v57 = vpop.eup %5599  ;;  %5609 = vpow2.f32 %v3353_v34  ;;  %v2938_v37 = vmul.f32 -0.071428575, %v6194_v50  ;;  %v3681_v62 = vmin.f32 %v13987_v6, %v13986_v15  ;;  %v13989_v25 = vld [vmem:[#allocation143_spill] sm:$0xff] }
 0x53b   :  { %4583 = vrot.lane.b32.xlu1 %v3924_v43, %s6271_s25  ;;  %v4456_v58 = vpop.permute.xlu1 %4455  ;;  %v4462_v2 = vpop.permute.xlu0 %4461  ;;  %v6193_v43 = vld [vmem:[%s13292_s0 + $0x560] sm:$0xff]  ;;  %v3929_v38 = vmul.f32 %v5600_v57, %v3679_v41  ;;  %v13988_v57 = vld [vmem:[#allocation368_spill] sm:$0xff] }
 0x53c   :  { %5111 = vst.msk [vmem:[%s13295_s3 + $0x2f8] sm:$0xff] %vm5015_vm1, %v4456_v58  ;;  %5114 = vst.msk [vmem:[%s13295_s3 + $0x310] sm:$0xff] %vm5015_vm1, %v4462_v2  ;;  %4585 = vrot.lane.b32.xlu0 %v3925_v32, %s6271_s25  ;;  %v2937_v29 = vmul.f32 -0.071428575, %v6193_v43  ;;  %v3357_v2 = vmul.f32 1.442695, %v2936_v24  ;;  %v5602_v34 = vpop.eup %5601  ;;  %5611 = vpow2.f32 %v3355_v19  ;;  %v3682_v55 = vmin.f32 %v13989_v25, %v13988_v57 }
 0x53d   :  { %v6196_v19 = vld [vmem:[%s13292_s0 + $0x578] sm:$0xff]  ;;  %v3930_v41 = vmul.f32 %v5602_v34, %v3680_v22  ;;  %v13990_v22 = vld [vmem:[#allocation371_spill] sm:$0xff]  ;;  %v13991_v34 = vld [vmem:[#allocation146_spill] sm:$0xff] }
 0x53e   :  { %v3359_v24 = vmul.f32 1.442695, %v2937_v29  ;;  %v5604_v50 = vpop.eup %5603  ;;  %5613 = vpow2.f32 %v3357_v2  ;;  %v2940_v29 = vmul.f32 -0.071428575, %v6196_v19  ;;  %v3683_v6 = vmin.f32 %v13991_v34, %v13990_v22  ;;  %v13993_v57 = vld [vmem:[#allocation145_spill] sm:$0xff] }
 0x53f   :  { %4587 = vrot.lane.b32.xlu1 %v3926_v53, %s6271_s25  ;;  %v4460_v58 = vpop.permute.xlu1 %4459  ;;  %v4466_v32 = vpop.permute.xlu0 %4465  ;;  %v6195_v53 = vld [vmem:[%s13292_s0 + $0x570] sm:$0xff]  ;;  %v3931_v15 = vmul.f32 %v5604_v50, %v3681_v62  ;;  %v13992_v50 = vld [vmem:[#allocation370_spill] sm:$0xff] }
 0x540   :  { %5113 = vst.msk [vmem:[%s13295_s3 + $0x308] sm:$0xff] %vm5015_vm1, %v4460_v58  ;;  %5116 = vst.msk [vmem:[%s13295_s3 + $0x320] sm:$0xff] %vm5015_vm1, %v4466_v32  ;;  %4589 = vrot.lane.b32.xlu0 %v3927_v13, %s6271_s25  ;;  %v2939_v43 = vmul.f32 -0.071428575, %v6195_v53  ;;  %v3361_v32 = vmul.f32 1.442695, %v2938_v37  ;;  %v5606_v2 = vpop.eup %5605  ;;  %5615 = vpow2.f32 %v3359_v24  ;;  %v3684_v25 = vmin.f32 %v13993_v57, %v13992_v50 }
 0x541   :  { %v6198_v24 = vld [vmem:[%s13292_s0 + $0x588] sm:$0xff]  ;;  %v3932_v62 = vmul.f32 %v5606_v2, %v3682_v55  ;;  %v13994_v55 = vld [vmem:[#allocation373_spill] sm:$0xff]  ;;  %v13995_v2 = vld [vmem:[#allocation148_spill] sm:$0xff] }
 0x542   :  { %v3363_v37 = vmul.f32 1.442695, %v2939_v43  ;;  %v5608_v19 = vpop.eup %5607  ;;  %5617 = vpow2.f32 %v3361_v32  ;;  %v2942_v43 = vmul.f32 -0.071428575, %v6198_v24  ;;  %v3685_v34 = vmin.f32 %v13995_v2, %v13994_v55  ;;  %v13997_v50 = vld [vmem:[#allocation147_spill] sm:$0xff] }
 0x543   :  { %4591 = vrot.lane.b32.xlu1 %v3928_v12, %s6271_s25  ;;  %v4464_v58 = vpop.permute.xlu1 %4463  ;;  %v4470_v13 = vpop.permute.xlu0 %4469  ;;  %v6197_v12 = vld [vmem:[%s13292_s0 + $0x580] sm:$0xff]  ;;  %v3933_v22 = vmul.f32 %v5608_v19, %v3683_v6  ;;  %v13996_v19 = vld [vmem:[#allocation372_spill] sm:$0xff] }
 0x544   :  { %5115 = vst.msk [vmem:[%s13295_s3 + $0x318] sm:$0xff] %vm5015_vm1, %v4464_v58  ;;  %5118 = vst.msk [vmem:[%s13295_s3 + $0x330] sm:$0xff] %vm5015_vm1, %v4470_v13  ;;  %4593 = vrot.lane.b32.xlu0 %v3929_v38, %s6271_s25  ;;  %v2941_v53 = vmul.f32 -0.071428575, %v6197_v12  ;;  %v3365_v13 = vmul.f32 1.442695, %v2940_v29  ;;  %v5610_v32 = vpop.eup %5609  ;;  %5619 = vpow2.f32 %v3363_v37  ;;  %v3686_v57 = vmin.f32 %v13997_v50, %v13996_v19 }
 0x545   :  { %v6200_v37 = vld [vmem:[%s13292_s0 + $0x598] sm:$0xff]  ;;  %v3934_v6 = vmul.f32 %v5610_v32, %v3684_v25  ;;  %v13998_v25 = vld [vmem:[#allocation375_spill] sm:$0xff]  ;;  %v13999_v32 = vld [vmem:[#allocation150_spill] sm:$0xff] }
 0x546   :  { %v3367_v29 = vmul.f32 1.442695, %v2941_v53  ;;  %v5612_v24 = vpop.eup %5611  ;;  %5621 = vpow2.f32 %v3365_v13  ;;  %v2944_v53 = vmul.f32 -0.071428575, %v6200_v37  ;;  %v3687_v2 = vmin.f32 %v13999_v32, %v13998_v25  ;;  %v14001_v19 = vld [vmem:[#allocation149_spill] sm:$0xff] }
 0x547   :  { %4595 = vrot.lane.b32.xlu1 %v3930_v41, %s6271_s25  ;;  %v4468_v58 = vpop.permute.xlu1 %4467  ;;  %v4474_v38 = vpop.permute.xlu0 %4473  ;;  %v6199_v41 = vld [vmem:[%s13292_s0 + $0x590] sm:$0xff]  ;;  %v3935_v55 = vmul.f32 %v5612_v24, %v3685_v34  ;;  %v14000_v24 = vld [vmem:[#allocation374_spill] sm:$0xff] }
 0x548   :  { %5117 = vst.msk [vmem:[%s13295_s3 + $0x328] sm:$0xff] %vm5015_vm1, %v4468_v58  ;;  %5120 = vst.msk [vmem:[%s13295_s3 + $0x340] sm:$0xff] %vm5015_vm1, %v4474_v38  ;;  %4597 = vrot.lane.b32.xlu0 %v3931_v15, %s6271_s25  ;;  %v2943_v12 = vmul.f32 -0.071428575, %v6199_v41  ;;  %v3369_v38 = vmul.f32 1.442695, %v2942_v43  ;;  %v5614_v13 = vpop.eup %5613  ;;  %5623 = vpow2.f32 %v3367_v29  ;;  %v3688_v50 = vmin.f32 %v14001_v19, %v14000_v24 }
 0x549   :  { %v6202_v29 = vld [vmem:[%s13292_s0 + $0x5a8] sm:$0xff]  ;;  %v3936_v34 = vmul.f32 %v5614_v13, %v3686_v57  ;;  %v14002_v57 = vld [vmem:[#allocation377_spill] sm:$0xff]  ;;  %v14003_v13 = vld [vmem:[#allocation152_spill] sm:$0xff] }
 0x54a   :  { %v3371_v43 = vmul.f32 1.442695, %v2943_v12  ;;  %v5616_v37 = vpop.eup %5615  ;;  %5625 = vpow2.f32 %v3369_v38  ;;  %v2946_v12 = vmul.f32 -0.071428575, %v6202_v29  ;;  %v3689_v32 = vmin.f32 %v14003_v13, %v14002_v57  ;;  %v14005_v24 = vld [vmem:[#allocation151_spill] sm:$0xff] }
 0x54b   :  { %4599 = vrot.lane.b32.xlu1 %v3932_v62, %s6271_s25  ;;  %v4472_v58 = vpop.permute.xlu1 %4471  ;;  %v4478_v15 = vpop.permute.xlu0 %4477  ;;  %v6201_v62 = vld [vmem:[%s13292_s0 + $0x5a0] sm:$0xff]  ;;  %v3937_v25 = vmul.f32 %v5616_v37, %v3687_v2  ;;  %v14004_v37 = vld [vmem:[#allocation376_spill] sm:$0xff] }
 0x54c   :  { %5119 = vst.msk [vmem:[%s13295_s3 + $0x338] sm:$0xff] %vm5015_vm1, %v4472_v58  ;;  %5122 = vst.msk [vmem:[%s13295_s3 + $0x350] sm:$0xff] %vm5015_vm1, %v4478_v15  ;;  %4601 = vrot.lane.b32.xlu0 %v3933_v22, %s6271_s25  ;;  %v2945_v41 = vmul.f32 -0.071428575, %v6201_v62  ;;  %v3373_v15 = vmul.f32 1.442695, %v2944_v53  ;;  %v5618_v38 = vpop.eup %5617  ;;  %5627 = vpow2.f32 %v3371_v43  ;;  %v3690_v19 = vmin.f32 %v14005_v24, %v14004_v37 }
 0x54d   :  { %v6204_v43 = vld [vmem:[%s13292_s0 + $0x5b8] sm:$0xff]  ;;  %v3938_v2 = vmul.f32 %v5618_v38, %v3688_v50  ;;  %v14006_v50 = vld [vmem:[#allocation379_spill] sm:$0xff]  ;;  %v14007_v38 = vld [vmem:[#allocation154_spill] sm:$0xff] }
 0x54e   :  { %v3375_v53 = vmul.f32 1.442695, %v2945_v41  ;;  %v5620_v29 = vpop.eup %5619  ;;  %5629 = vpow2.f32 %v3373_v15  ;;  %v2948_v41 = vmul.f32 -0.071428575, %v6204_v43  ;;  %v3691_v13 = vmin.f32 %v14007_v38, %v14006_v50  ;;  %v14009_v37 = vld [vmem:[#allocation153_spill] sm:$0xff] }
 0x54f   :  { %4603 = vrot.lane.b32.xlu1 %v3934_v6, %s6271_s25  ;;  %v4476_v58 = vpop.permute.xlu1 %4475  ;;  %v4482_v22 = vpop.permute.xlu0 %4481  ;;  %v6203_v6 = vld [vmem:[%s13292_s0 + $0x5b0] sm:$0xff]  ;;  %v3939_v57 = vmul.f32 %v5620_v29, %v3689_v32  ;;  %v14008_v29 = vld [vmem:[#allocation378_spill] sm:$0xff] }
 0x550   :  { %5121 = vst.msk [vmem:[%s13295_s3 + $0x348] sm:$0xff] %vm5015_vm1, %v4476_v58  ;;  %5124 = vst.msk [vmem:[%s13295_s3 + $0x360] sm:$0xff] %vm5015_vm1, %v4482_v22  ;;  %4605 = vrot.lane.b32.xlu0 %v3935_v55, %s6271_s25  ;;  %v2947_v62 = vmul.f32 -0.071428575, %v6203_v6  ;;  %v3377_v22 = vmul.f32 1.442695, %v2946_v12  ;;  %v5622_v15 = vpop.eup %5621  ;;  %5631 = vpow2.f32 %v3375_v53  ;;  %v3692_v24 = vmin.f32 %v14009_v37, %v14008_v29 }
 0x551   :  { %v6206_v53 = vld [vmem:[%s13292_s0 + $0x5c8] sm:$0xff]  ;;  %v3940_v32 = vmul.f32 %v5622_v15, %v3690_v19  ;;  %v14010_v19 = vld [vmem:[#allocation381_spill] sm:$0xff]  ;;  %v14011_v15 = vld [vmem:[#allocation156_spill] sm:$0xff] }
 0x552   :  { %v3379_v12 = vmul.f32 1.442695, %v2947_v62  ;;  %v5624_v43 = vpop.eup %5623  ;;  %5633 = vpow2.f32 %v3377_v22  ;;  %v2950_v62 = vmul.f32 -0.071428575, %v6206_v53  ;;  %v3693_v38 = vmin.f32 %v14011_v15, %v14010_v19  ;;  %v14013_v29 = vld [vmem:[#allocation155_spill] sm:$0xff] }
 0x553   :  { %4607 = vrot.lane.b32.xlu1 %v3936_v34, %s6271_s25  ;;  %v4480_v58 = vpop.permute.xlu1 %4479  ;;  %v4486_v55 = vpop.permute.xlu0 %4485  ;;  %v6205_v34 = vld [vmem:[%s13292_s0 + $0x5c0] sm:$0xff]  ;;  %v3941_v50 = vmul.f32 %v5624_v43, %v3691_v13  ;;  %v14012_v43 = vld [vmem:[#allocation380_spill] sm:$0xff] }
 0x554   :  { %5123 = vst.msk [vmem:[%s13295_s3 + $0x358] sm:$0xff] %vm5015_vm1, %v4480_v58  ;;  %5126 = vst.msk [vmem:[%s13295_s3 + $0x370] sm:$0xff] %vm5015_vm1, %v4486_v55  ;;  %4609 = vrot.lane.b32.xlu0 %v3937_v25, %s6271_s25  ;;  %v2949_v6 = vmul.f32 -0.071428575, %v6205_v34  ;;  %v3381_v55 = vmul.f32 1.442695, %v2948_v41  ;;  %v5626_v22 = vpop.eup %5625  ;;  %5635 = vpow2.f32 %v3379_v12  ;;  %v3694_v37 = vmin.f32 %v14013_v29, %v14012_v43 }
 0x555   :  { %v6208_v12 = vld [vmem:[%s13292_s0 + $0x5d8] sm:$0xff]  ;;  %v3942_v13 = vmul.f32 %v5626_v22, %v3692_v24  ;;  %v14014_v24 = vld [vmem:[#allocation383_spill] sm:$0xff]  ;;  %v14015_v22 = vld [vmem:[#allocation158_spill] sm:$0xff] }
 0x556   :  { %v3383_v41 = vmul.f32 1.442695, %v2949_v6  ;;  %v5628_v53 = vpop.eup %5627  ;;  %5637 = vpow2.f32 %v3381_v55  ;;  %v2952_v6 = vmul.f32 -0.071428575, %v6208_v12  ;;  %v3695_v15 = vmin.f32 %v14015_v22, %v14014_v24  ;;  %v14017_v43 = vld [vmem:[#allocation157_spill] sm:$0xff] }
 0x557   :  { %4611 = vrot.lane.b32.xlu1 %v3938_v2, %s6271_s25  ;;  %v4484_v58 = vpop.permute.xlu1 %4483  ;;  %v4490_v25 = vpop.permute.xlu0 %4489  ;;  %v6207_v2 = vld [vmem:[%s13292_s0 + $0x5d0] sm:$0xff]  ;;  %v3943_v19 = vmul.f32 %v5628_v53, %v3693_v38  ;;  %v14016_v53 = vld [vmem:[#allocation382_spill] sm:$0xff] }
 0x558   :  { %5125 = vst.msk [vmem:[%s13295_s3 + $0x368] sm:$0xff] %vm5015_vm1, %v4484_v58  ;;  %5128 = vst.msk [vmem:[%s13295_s3 + $0x380] sm:$0xff] %vm5015_vm1, %v4490_v25  ;;  %4613 = vrot.lane.b32.xlu0 %v3939_v57, %s6271_s25  ;;  %v2951_v34 = vmul.f32 -0.071428575, %v6207_v2  ;;  %v3385_v25 = vmul.f32 1.442695, %v2950_v62  ;;  %v5630_v55 = vpop.eup %5629  ;;  %5639 = vpow2.f32 %v3383_v41  ;;  %v3696_v29 = vmin.f32 %v14017_v43, %v14016_v53 }
 0x559   :  { %v6210_v41 = vld [vmem:[%s13292_s0 + $0x5e8] sm:$0xff]  ;;  %v3944_v38 = vmul.f32 %v5630_v55, %v3694_v37  ;;  %v14018_v37 = vld [vmem:[#allocation385_spill] sm:$0xff]  ;;  %v14019_v55 = vld [vmem:[#allocation160_spill] sm:$0xff] }
 0x55a   :  { %v3387_v62 = vmul.f32 1.442695, %v2951_v34  ;;  %v5632_v12 = vpop.eup %5631  ;;  %5641 = vpow2.f32 %v3385_v25  ;;  %v2954_v34 = vmul.f32 -0.071428575, %v6210_v41  ;;  %v3697_v22 = vmin.f32 %v14019_v55, %v14018_v37  ;;  %v14021_v53 = vld [vmem:[#allocation159_spill] sm:$0xff] }
 0x55b   :  { %4615 = vrot.lane.b32.xlu1 %v3940_v32, %s6271_s25  ;;  %v4488_v58 = vpop.permute.xlu1 %4487  ;;  %v4494_v57 = vpop.permute.xlu0 %4493  ;;  %v6209_v32 = vld [vmem:[%s13292_s0 + $0x5e0] sm:$0xff]  ;;  %v3945_v24 = vmul.f32 %v5632_v12, %v3695_v15  ;;  %v14020_v12 = vld [vmem:[#allocation384_spill] sm:$0xff] }
 0x55c   :  { %5127 = vst.msk [vmem:[%s13295_s3 + $0x378] sm:$0xff] %vm5015_vm1, %v4488_v58  ;;  %5130 = vst.msk [vmem:[%s13295_s3 + $0x390] sm:$0xff] %vm5015_vm1, %v4494_v57  ;;  %4617 = vrot.lane.b32.xlu0 %v3941_v50, %s6271_s25  ;;  %v2953_v2 = vmul.f32 -0.071428575, %v6209_v32  ;;  %v3389_v57 = vmul.f32 1.442695, %v2952_v6  ;;  %v5634_v25 = vpop.eup %5633  ;;  %5643 = vpow2.f32 %v3387_v62  ;;  %v3698_v43 = vmin.f32 %v14021_v53, %v14020_v12 }
 0x55d   :  { %v6212_v62 = vld [vmem:[%s13292_s0 + $0x5f8] sm:$0xff]  ;;  %v3946_v15 = vmul.f32 %v5634_v25, %v3696_v29  ;;  %v14022_v29 = vld [vmem:[#allocation162_spill] sm:$0xff] }
 0x55e   :  { %v3391_v6 = vmul.f32 1.442695, %v2953_v2  ;;  %v5636_v41 = vpop.eup %5635  ;;  %5645 = vpow2.f32 %v3389_v57  ;;  %v2956_v2 = vmul.f32 -0.071428575, %v6212_v62  ;;  %v3699_v25 = vmin.f32 %v14022_v29, %v10694_v39  ;;  %v14024_v39 = vld [vmem:[#allocation161_spill] sm:$0xff] }
 0x55f   :  { %4619 = vrot.lane.b32.xlu1 %v3942_v13, %s6271_s25  ;;  %v4492_v58 = vpop.permute.xlu1 %4491  ;;  %v4498_v50 = vpop.permute.xlu0 %4497  ;;  %v6211_v13 = vld [vmem:[%s13292_s0 + $0x5f0] sm:$0xff]  ;;  %v3947_v37 = vmul.f32 %v5636_v41, %v3697_v22  ;;  %v14023_v41 = vld [vmem:[#allocation386_spill] sm:$0xff] }
 0x560   :  { %5129 = vst.msk [vmem:[%s13295_s3 + $0x388] sm:$0xff] %vm5015_vm1, %v4492_v58  ;;  %5132 = vst.msk [vmem:[%s13295_s3 + $0x3a0] sm:$0xff] %vm5015_vm1, %v4498_v50  ;;  %4621 = vrot.lane.b32.xlu0 %v3943_v19, %s6271_s25  ;;  %v2955_v32 = vmul.f32 -0.071428575, %v6211_v13  ;;  %v3393_v50 = vmul.f32 1.442695, %v2954_v34  ;;  %v5638_v57 = vpop.eup %5637  ;;  %5647 = vpow2.f32 %v3391_v6 }
 0x561   :  { %v3397_v62 = vmul.f32 1.442695, %v2956_v2  ;;  %v6214_v6 = vld [vmem:[%s13292_s0 + $0x608] sm:$0xff]  ;;  %v3948_v22 = vmul.f32 %v5638_v57, %v3698_v43  ;;  %v14025_v43 = vld [vmem:[#allocation164_spill] sm:$0xff] }
 0x562   :  { %v3395_v34 = vmul.f32 1.442695, %v2955_v32  ;;  %5649 = vpow2.f32 %v3393_v50  ;;  %v2958_v32 = vmul.f32 -0.071428575, %v6214_v6  ;;  %v3701_v57 = vmin.f32 %v14025_v43, %v10709_v51  ;;  %v14027_v51 = vld [vmem:[#allocation163_spill] sm:$0xff] }
 0x563   :  { %4623 = vrot.lane.b32.xlu1 %v3944_v38, %s6271_s25  ;;  %v4496_v58 = vpop.permute.xlu1 %4495  ;;  %v4502_v19 = vpop.permute.xlu0 %4501  ;;  %v6213_v38 = vld [vmem:[%s13292_s0 + $0x600] sm:$0xff] }
 0x564   :  { %5131 = vst.msk [vmem:[%s13295_s3 + $0x398] sm:$0xff] %vm5015_vm1, %v4496_v58  ;;  %5134 = vst.msk [vmem:[%s13295_s3 + $0x3b0] sm:$0xff] %vm5015_vm1, %v4502_v19  ;;  %4625 = vrot.lane.b32.xlu0 %v3945_v24, %s6271_s25  ;;  %v2957_v13 = vmul.f32 -0.071428575, %v6213_v38  ;;  %v5640_v58 = vpop.eup %5639  ;;  %v3700_v19 = vmin.f32 %v14024_v39, %v14023_v41  ;;  %5651 = vpow2.f32 %v3395_v34  ;;  %v6216_v34 = vld [vmem:[%s13292_s0 + $0x618] sm:$0xff]  ;;  %v14028_v39 = vld [vmem:[#allocation166_spill] sm:$0xff] }
 0x565   :  { %v5642_v50 = vpop.eup %5641  ;;  %v3949_v53 = vmul.f32 %v5640_v58, %v3699_v25  ;;  %5653 = vpow2.f32 %v3397_v62  ;;  %v14026_v58 = vld [vmem:[#allocation387_spill] sm:$0xff] }
 0x566   :  { %v3399_v2 = vmul.f32 1.442695, %v2957_v13  ;;  %v5644_v29 = vpop.eup %5643  ;;  %v2960_v13 = vmul.f32 -0.071428575, %v6216_v34  ;;  %v3950_v25 = vmul.f32 %v5642_v50, %v3700_v19  ;;  %v3702_v6 = vmin.f32 %v14027_v51, %v14026_v58  ;;  %v6219_v34 = vld [vmem:[%s13292_s0 + $0x630] sm:$0xff] }
 0x567   :  { %4627 = vrot.lane.b32.xlu1 %v3946_v15, %s6271_s25  ;;  %v4500_v55 = vpop.permute.xlu1 %4499  ;;  %v4506_v24 = vpop.permute.xlu0 %4505  ;;  %v6215_v15 = vld [vmem:[%s13292_s0 + $0x610] sm:$0xff]  ;;  %v3951_v41 = vmul.f32 %v5644_v29, %v3701_v57  ;;  %v3703_v19 = vmin.f32 %v14028_v39, %v10724_v44  ;;  %v14029_v44 = vld [vmem:[#allocation165_spill] sm:$0xff] }
 0x568   :  { %5133 = vst.msk [vmem:[%s13295_s3 + $0x3a8] sm:$0xff] %vm5015_vm1, %v4500_v55  ;;  %5136 = vst.msk [vmem:[%s13295_s3 + $0x3c0] sm:$0xff] %vm5015_vm1, %v4506_v24  ;;  %4629 = vrot.lane.b32.xlu0 %v3947_v37, %s6271_s25  ;;  %v2959_v12 = vmul.f32 -0.071428575, %v6215_v15  ;;  %v3401_v55 = vmul.f32 1.442695, %v2958_v32  ;;  %v5646_v62 = vpop.eup %5645  ;;  %5655 = vpow2.f32 %v3399_v2 }
 0x569   :  { %v6217_v24 = vld [vmem:[%s13292_s0 + $0x620] sm:$0xff]  ;;  %v3405_v43 = vmul.f32 1.442695, %v2960_v13  ;;  %v6218_v2 = vld [vmem:[%s13292_s0 + $0x628] sm:$0xff]  ;;  %v3952_v57 = vmul.f32 %v5646_v62, %v3702_v6  ;;  %v2963_v13 = vmul.f32 -0.071428575, %v6219_v34 }
 0x56a   :  { %v3403_v32 = vmul.f32 1.442695, %v2959_v12  ;;  %v5648_v15 = vpop.eup %5647  ;;  %5657 = vpow2.f32 %v3401_v55  ;;  %v2962_v12 = vmul.f32 -0.071428575, %v6218_v2  ;;  %v6220_v62 = vld [vmem:[%s13292_s0 + $0x638] sm:$0xff]  ;;  %v14032_v2 = vld [vmem:[#allocation170_spill] sm:$0xff] }
 0x56b   :  { %4631 = vrot.lane.b32.xlu1 %v3948_v22, %s6271_s25  ;;  %v4504_v38 = vpop.permute.xlu1 %4503  ;;  %v4510_v37 = vpop.permute.xlu0 %4509  ;;  %v2961_v22 = vmul.f32 -0.071428575, %v6217_v24 }
 0x56c   :  { %5135 = vst.msk [vmem:[%s13295_s3 + $0x3b8] sm:$0xff] %vm5015_vm1, %v4504_v38  ;;  %5138 = vst.msk [vmem:[%s13295_s3 + $0x3d0] sm:$0xff] %vm5015_vm1, %v4510_v37  ;;  %4633 = vrot.lane.b32.xlu0 %v3949_v53, %s6271_s25  ;;  %v3704_v38 = vmin.f32 %v14029_v44, %v10718_v5  ;;  %v5650_v29 = vpop.eup %5649  ;;  %5659 = vpow2.f32 %v3403_v32  ;;  %v3953_v37 = vmul.f32 %v5648_v15, %v3703_v19  ;;  %v3409_v6 = vmul.f32 1.442695, %v2962_v12  ;;  %v6222_v44 = vld [vmem:[%s13292_s0 + $0x648] sm:$0xff] }
 0x56d   :  { %v3407_v55 = vmul.f32 1.442695, %v2961_v22  ;;  %5661 = vpow2.f32 %v3405_v43  ;;  %v2964_v32 = vmul.f32 -0.071428575, %v6220_v62  ;;  %v3411_v19 = vmul.f32 1.442695, %v2963_v13 }
 0x56e   :  { %v5652_v51 = vpop.eup %5651  ;;  %v3954_v22 = vmul.f32 %v5650_v29, %v3704_v38  ;;  %v3707_v12 = vmin.f32 %v14032_v2, %v10756_v4  ;;  %v2966_v38 = vmul.f32 -0.071428575, %v6222_v44  ;;  %v14033_v4 = vld [vmem:[#allocation169_spill] sm:$0xff]  ;;  %v6226_v44 = vld [vmem:[%s13292_s0 + $0x668] sm:$0xff] }
 0x56f   :  { %4635 = vrot.lane.b32.xlu1 %v3950_v25, %s6271_s25  ;;  %v4508_v50 = vpop.permute.xlu1 %4507  ;;  %v4514_v53 = vpop.permute.xlu0 %4513  ;;  %v14030_v25 = vld [vmem:[#allocation168_spill] sm:$0xff]  ;;  %5663 = vpow2.f32 %v3407_v55  ;;  %v3708_v34 = vmin.f32 %v14033_v4, %v10750_v46 }
 0x570   :  { %5137 = vst.msk [vmem:[%s13295_s3 + $0x3c8] sm:$0xff] %vm5015_vm1, %v4508_v50  ;;  %5140 = vst.msk [vmem:[%s13295_s3 + $0x3e0] sm:$0xff] %vm5015_vm1, %v4514_v53  ;;  %4637 = vrot.lane.b32.xlu0 %v3951_v41, %s6271_s25  ;;  %v3705_v58 = vmin.f32 %v14030_v25, %v10740_v56  ;;  %v14031_v56 = vld [vmem:[#allocation167_spill] sm:$0xff]  ;;  %v5654_v39 = vpop.eup %5653  ;;  %v6221_v50 = vld [vmem:[%s13292_s0 + $0x640] sm:$0xff]  ;;  %5665 = vpow2.f32 %v3409_v6 }
 0x571   :  { %v3706_v41 = vmin.f32 %v14031_v56, %v10734_v33  ;;  %v2965_v15 = vmul.f32 -0.071428575, %v6221_v50  ;;  %5667 = vpow2.f32 %v3411_v19  ;;  %v6223_v25 = vld [vmem:[%s13292_s0 + $0x650] sm:$0xff] }
 0x572   :  { %v3955_v43 = vmul.f32 %v5652_v51, %v3705_v58  ;;  %v5656_v53 = vpop.eup %5655  ;;  %v2967_v58 = vmul.f32 -0.071428575, %v6223_v25  ;;  %v14034_v51 = vld [vmem:[#allocation172_spill] sm:$0xff] }
 0x573   :  { %4639 = vrot.lane.b32.xlu1 %v3952_v57, %s6271_s25  ;;  %v4512_v5 = vpop.permute.xlu1 %4511  ;;  %v4518_v24 = vpop.permute.xlu0 %4517  ;;  %v3413_v57 = vmul.f32 1.442695, %v2964_v32  ;;  %v3956_v55 = vmul.f32 %v5654_v39, %v3706_v41  ;;  %v3709_v6 = vmin.f32 %v14034_v51, %v10772_v45  ;;  %v3417_v32 = vmul.f32 1.442695, %v2966_v38  ;;  %v14035_v45 = vld [vmem:[#allocation171_spill] sm:$0xff] }
 0x574   :  { %5139 = vst.msk [vmem:[%s13295_s3 + $0x3d8] sm:$0xff] %vm5015_vm1, %v4512_v5  ;;  %5142 = vst.msk [vmem:[%s13295_s3 + $0x3f0] sm:$0xff] %vm5015_vm1, %v4518_v24  ;;  %4641 = vrot.lane.b32.xlu0 %v3953_v37, %s6271_s25  ;;  %v5658_v13 = vpop.eup %5657  ;;  %v3415_v37 = vmul.f32 1.442695, %v2965_v15  ;;  %v3957_v5 = vmul.f32 %v5656_v53, %v3707_v12  ;;  %v6224_v24 = vld [vmem:[%s13292_s0 + $0x658] sm:$0xff]  ;;  %v3710_v39 = vmin.f32 %v14035_v45, %v10766_v23  ;;  %v14036_v12 = vld [vmem:[#allocation174_spill] sm:$0xff] }
 0x575   :  { %5669 = vpow2.f32 %v3413_v57  ;;  %v3958_v41 = vmul.f32 %v5658_v13, %v3708_v34  ;;  %v3419_v50 = vmul.f32 1.442695, %v2967_v58  ;;  %v6225_v15 = vld [vmem:[%s13292_s0 + $0x660] sm:$0xff]  ;;  %v2970_v38 = vmul.f32 -0.071428575, %v6226_v44 }
 0x576   :  { %v5660_v62 = vpop.eup %5659  ;;  %5671 = vpow2.f32 %v3415_v37  ;;  %v6227_v37 = vld [vmem:[%s13292_s0 + $0x670] sm:$0xff] }
 0x577   :  { %4643 = vrot.lane.b32.xlu1 %v3954_v22, %s6271_s25  ;;  %v4516_v33 = vpop.permute.xlu1 %4515  ;;  %v4522_v29 = vpop.permute.xlu0 %4521  ;;  %v2968_v22 = vmul.f32 -0.071428575, %v6224_v24  ;;  %v3959_v2 = vmul.f32 %v5660_v62, %v3709_v6  ;;  %5673 = vpow2.f32 %v3417_v32  ;;  %v2971_v25 = vmul.f32 -0.071428575, %v6227_v37  ;;  %v6228_v62 = vld [vmem:[%s13292_s0 + $0x678] sm:$0xff] }
 0x578   :  { %5141 = vst.msk [vmem:[%s13295_s3 + $0x3e8] sm:$0xff] %vm5015_vm1, %v4516_v33  ;;  %5144 = vst.msk [vmem:[%s13295_s3 + $0x400] sm:$0xff] %vm5015_vm1, %v4522_v29  ;;  %4645 = vrot.lane.b32.xlu0 %v3955_v43, %s6271_s25  ;;  %v5662_v19 = vpop.eup %5661  ;;  %v2969_v43 = vmul.f32 -0.071428575, %v6225_v15  ;;  %v3711_v33 = vmin.f32 %v14036_v12, %v10788_v8  ;;  %v14037_v8 = vld [vmem:[#allocation173_spill] sm:$0xff]  ;;  %5675 = vpow2.f32 %v3419_v50  ;;  %v14040_v15 = vld [vmem:[#allocation178_spill] sm:$0xff] }
 0x579   :  { %v5664_v53 = vpop.eup %5663  ;;  %v3421_v57 = vmul.f32 1.442695, %v2968_v22  ;;  %v3712_v4 = vmin.f32 %v14037_v8, %v10782_v42  ;;  %v2972_v32 = vmul.f32 -0.071428575, %v6228_v62  ;;  %v3427_v45 = vmul.f32 1.442695, %v2971_v25 }
 0x57a   :  { %v5666_v34 = vpop.eup %5665  ;;  %v3423_v13 = vmul.f32 1.442695, %v2969_v43  ;;  %v3961_v58 = vmul.f32 %v5664_v53, %v3711_v33  ;;  %v3715_v43 = vmin.f32 %v14040_v15, %v10820_v30  ;;  %v6230_v33 = vld [vmem:[%s13292_s0 + $0x688] sm:$0xff]  ;;  %v14041_v30 = vld [vmem:[#allocation177_spill] sm:$0xff] }
 0x57b   :  { %4647 = vrot.lane.b32.xlu1 %v3956_v55, %s6271_s25  ;;  %v4520_v46 = vpop.permute.xlu1 %4519  ;;  %v4526_v56 = vpop.permute.xlu0 %4525  ;;  %v3960_v55 = vmul.f32 %v5662_v19, %v3710_v39  ;;  %5677 = vpow2.f32 %v3421_v57  ;;  %v3962_v22 = vmul.f32 %v5666_v34, %v3712_v4  ;;  %v6229_v39 = vld [vmem:[%s13292_s0 + $0x680] sm:$0xff]  ;;  %v3429_v12 = vmul.f32 1.442695, %v2972_v32  ;;  %v14042_v34 = vld [vmem:[#allocation180_spill] sm:$0xff] }
 0x57c   :  { %5143 = vst.msk [vmem:[%s13295_s3 + $0x3f8] sm:$0xff] %vm5015_vm1, %v4520_v46  ;;  %5146 = vst.msk [vmem:[%s13295_s3 + $0x410] sm:$0xff] %vm5015_vm1, %v4526_v56  ;;  %4649 = vrot.lane.b32.xlu0 %v3957_v5, %s6271_s25  ;;  %v14038_v5 = vld [vmem:[#allocation176_spill] sm:$0xff]  ;;  %v5668_v6 = vpop.eup %5667  ;;  %v3425_v46 = vmul.f32 1.442695, %v2970_v38  ;;  %5679 = vpow2.f32 %v3423_v13  ;;  %v3716_v44 = vmin.f32 %v14041_v30, %v10814_v31  ;;  %v3717_v13 = vmin.f32 %v14042_v34, %v10836_v10  ;;  %v14043_v10 = vld [vmem:[#allocation179_spill] sm:$0xff] }
 0x57d   :  { %v3713_v51 = vmin.f32 %v14038_v5, %v10804_v60  ;;  %v14039_v60 = vld [vmem:[#allocation175_spill] sm:$0xff]  ;;  %v2973_v19 = vmul.f32 -0.071428575, %v6229_v39  ;;  %v6233_v32 = vld [vmem:[%s13292_s0 + $0x6a0] sm:$0xff] }
 0x57e   :  { %v3714_v56 = vmin.f32 %v14039_v60, %v10798_v14  ;;  %5681 = vpow2.f32 %v3425_v46  ;;  %v14044_v60 = vld [vmem:[#allocation182_spill] sm:$0xff]  ;;  %v6234_v39 = vld [vmem:[%s13292_s0 + $0x6a8] sm:$0xff] }
 0x57f   :  { %4651 = vrot.lane.b32.xlu1 %v3958_v41, %s6271_s25  ;;  %v4524_v23 = vpop.permute.xlu1 %4523  ;;  %v4530_v29 = vpop.permute.xlu0 %4529  ;;  %v3963_v50 = vmul.f32 %v5668_v6, %v3713_v51  ;;  %5683 = vpow2.f32 %v3427_v45  ;;  %v3718_v6 = vmin.f32 %v14043_v10, %v10830_v26  ;;  %v6238_v10 = vld [vmem:[%s13292_s0 + $0x6c8] sm:$0xff] }
 0x580   :  { %5145 = vst.msk [vmem:[%s13295_s3 + $0x408] sm:$0xff] %vm5015_vm1, %v4524_v23  ;;  %5148 = vst.msk [vmem:[%s13295_s3 + $0x420] sm:$0xff] %vm5015_vm1, %v4530_v29  ;;  %4653 = vrot.lane.b32.xlu0 %v3959_v2, %s6271_s25  ;;  %v5670_v41 = vpop.eup %5669  ;;  %v2974_v23 = vmul.f32 -0.071428575, %v6230_v33  ;;  %v3431_v29 = vmul.f32 1.442695, %v2973_v19  ;;  %5685 = vpow2.f32 %v3429_v12 }
 0x581   :  { %v5672_v2 = vpop.eup %5671  ;;  %v3964_v57 = vmul.f32 %v5670_v41, %v3714_v56  ;;  %v3719_v56 = vmin.f32 %v14044_v60, %v10852_v18  ;;  %v2978_v19 = vmul.f32 -0.071428575, %v6234_v39  ;;  %v14045_v18 = vld [vmem:[#allocation181_spill] sm:$0xff]  ;;  %v6235_v12 = vld [vmem:[%s13292_s0 + $0x6b0] sm:$0xff] }
 0x582   :  { %v5674_v38 = vpop.eup %5673  ;;  %v3965_v4 = vmul.f32 %v5672_v2, %v3715_v43  ;;  %v3433_v25 = vmul.f32 1.442695, %v2974_v23  ;;  %5687 = vpow2.f32 %v3431_v29  ;;  %v3720_v43 = vmin.f32 %v14045_v18, %v10846_v20  ;;  %v6239_v60 = vld [vmem:[%s13292_s0 + $0x6d0] sm:$0xff] }
 0x583   :  { %4655 = vrot.lane.b32.xlu1 %v3960_v55, %s6271_s25  ;;  %v4528_v42 = vpop.permute.xlu1 %4527  ;;  %v4534_v24 = vpop.permute.xlu0 %4533  ;;  %v6231_v55 = vld [vmem:[%s13292_s0 + $0x690] sm:$0xff]  ;;  %v2979_v33 = vmul.f32 -0.071428575, %v6235_v12 }
 0x584   :  { %5147 = vst.msk [vmem:[%s13295_s3 + $0x418] sm:$0xff] %vm5015_vm1, %v4528_v42  ;;  %5150 = vst.msk [vmem:[%s13295_s3 + $0x430] sm:$0xff] %vm5015_vm1, %v4534_v24  ;;  %4657 = vrot.lane.b32.xlu0 %v3961_v58, %s6271_s25  ;;  %v2975_v8 = vmul.f32 -0.071428575, %v6231_v55  ;;  %v5676_v37 = vpop.eup %5675  ;;  %v6232_v58 = vld [vmem:[%s13292_s0 + $0x698] sm:$0xff]  ;;  %v3966_v42 = vmul.f32 %v5674_v38, %v3716_v44  ;;  %5689 = vpow2.f32 %v3433_v25 }
 0x585   :  { %v2976_v5 = vmul.f32 -0.071428575, %v6232_v58  ;;  %v5678_v46 = vpop.eup %5677  ;;  %v2977_v24 = vmul.f32 -0.071428575, %v6233_v32  ;;  %v3441_v44 = vmul.f32 1.442695, %v2978_v19 }
 0x586   :  { %v3435_v62 = vmul.f32 1.442695, %v2975_v8  ;;  %v5680_v41 = vpop.eup %5679  ;;  %v3968_v15 = vmul.f32 %v5678_v46, %v3718_v6  ;;  %v6236_v38 = vld [vmem:[%s13292_s0 + $0x6b8] sm:$0xff]  ;;  %v14048_v58 = vld [vmem:[#allocation186_spill] sm:$0xff]  ;;  %v2982_v6 = vmul.f32 -0.071428575, %v6238_v10 }
 0x587   :  { %4659 = vrot.lane.b32.xlu1 %v3962_v22, %s6271_s25  ;;  %v4532_v14 = vpop.permute.xlu1 %4531  ;;  %v4538_v53 = vpop.permute.xlu0 %4537  ;;  %v3967_v22 = vmul.f32 %v5676_v37, %v3717_v13  ;;  %v3437_v45 = vmul.f32 1.442695, %v2976_v5  ;;  %v3439_v2 = vmul.f32 1.442695, %v2977_v24  ;;  %v3969_v23 = vmul.f32 %v5680_v41, %v3719_v56  ;;  %v14050_v41 = vld [vmem:[#allocation188_spill] sm:$0xff] }
 0x588   :  { %5149 = vst.msk [vmem:[%s13295_s3 + $0x428] sm:$0xff] %vm5015_vm1, %v4532_v14  ;;  %5152 = vst.msk [vmem:[%s13295_s3 + $0x440] sm:$0xff] %vm5015_vm1, %v4538_v53  ;;  %4661 = vrot.lane.b32.xlu0 %v3963_v50, %s6271_s25  ;;  %v5682_v14 = vpop.eup %5681  ;;  %5691 = vpow2.f32 %v3435_v62  ;;  %v14046_v53 = vld [vmem:[#allocation184_spill] sm:$0xff]  ;;  %v2980_v29 = vmul.f32 -0.071428575, %v6236_v38  ;;  %v3723_v5 = vmin.f32 %v14048_v58, %v10884_v63  ;;  %v14049_v63 = vld [vmem:[#allocation185_spill] sm:$0xff] }
 0x589   :  { %v5684_v30 = vpop.eup %5683  ;;  %5693 = vpow2.f32 %v3437_v45  ;;  %v3970_v8 = vmul.f32 %v5682_v14, %v3720_v43  ;;  %v3443_v13 = vmul.f32 1.442695, %v2979_v33  ;;  %v3724_v32 = vmin.f32 %v14049_v63, %v10878_v49  ;;  %v6241_v33 = vld [vmem:[%s13292_s0 + $0x6e0] sm:$0xff]  ;;  %v6242_v38 = vld [vmem:[%s13292_s0 + $0x6e8] sm:$0xff] }
 0x58a   :  { %v5686_v34 = vpop.eup %5685  ;;  %5695 = vpow2.f32 %v3439_v2  ;;  %v2983_v56 = vmul.f32 -0.071428575, %v6239_v60  ;;  %v3725_v45 = vmin.f32 %v14050_v41, %v10900_v48  ;;  %v3449_v19 = vmul.f32 1.442695, %v2982_v6  ;;  %v14051_v48 = vld [vmem:[#allocation187_spill] sm:$0xff]  ;;  %v14056_v60 = vld [vmem:[#allocation194_spill] sm:$0xff] }
 0x58b   :  { %4663 = vrot.lane.b32.xlu1 %v3964_v57, %s6271_s25  ;;  %v4536_v31 = vpop.permute.xlu1 %4535  ;;  %v4542_v51 = vpop.permute.xlu0 %4541  ;;  %v3721_v57 = vmin.f32 %v14046_v53, %v10868_v11  ;;  %v14047_v11 = vld [vmem:[#allocation183_spill] sm:$0xff]  ;;  %5697 = vpow2.f32 %v3441_v44  ;;  %v3726_v14 = vmin.f32 %v14051_v48, %v10894_v7 }
 0x58c   :  { %5151 = vst.msk [vmem:[%s13295_s3 + $0x438] sm:$0xff] %vm5015_vm1, %v4536_v31  ;;  %5154 = vst.msk [vmem:[%s13295_s3 + $0x450] sm:$0xff] %vm5015_vm1, %v4542_v51  ;;  %4665 = vrot.lane.b32.xlu0 %v3965_v4, %s6271_s25  ;;  %v3722_v4 = vmin.f32 %v14047_v11, %v10862_v35  ;;  %v6237_v31 = vld [vmem:[%s13292_s0 + $0x6c0] sm:$0xff]  ;;  %v5688_v51 = vpop.eup %5687  ;;  %5699 = vpow2.f32 %v3443_v13  ;;  %v3451_v12 = vmul.f32 1.442695, %v2983_v56  ;;  %v3731_v56 = vmin.f32 %v14056_v60, %v10948_v52  ;;  %v14057_v52 = vld [vmem:[#allocation193_spill] sm:$0xff] }
 0x58d   :  { %v2981_v37 = vmul.f32 -0.071428575, %v6237_v31  ;;  %v3971_v25 = vmul.f32 %v5684_v30, %v3721_v57  ;;  %v14052_v57 = vld [vmem:[#allocation190_spill] sm:$0xff]  ;;  %v6243_v13 = vld [vmem:[%s13292_s0 + $0x6f0] sm:$0xff] }
 0x58e   :  { %v3972_v62 = vmul.f32 %v5686_v34, %v3722_v4  ;;  %v5690_v24 = vpop.eup %5689  ;;  %v2987_v31 = vmul.f32 -0.071428575, %v6243_v13  ;;  %v6250_v13 = vld [vmem:[%s13292_s0 + $0x728] sm:$0xff] }
 0x58f   :  { %4667 = vrot.lane.b32.xlu1 %v3966_v42, %s6271_s25  ;;  %v4540_v26 = vpop.permute.xlu1 %4539  ;;  %v4546_v50 = vpop.permute.xlu0 %4545  ;;  %v3445_v42 = vmul.f32 1.442695, %v2980_v29  ;;  %v3974_v43 = vmul.f32 %v5690_v24, %v3724_v32  ;;  %v2986_v29 = vmul.f32 -0.071428575, %v6242_v38  ;;  %v6245_v32 = vld [vmem:[%s13292_s0 + $0x700] sm:$0xff] }
 0x590   :  { %5153 = vst.msk [vmem:[%s13295_s3 + $0x448] sm:$0xff] %vm5015_vm1, %v4540_v26  ;;  %5156 = vst.msk [vmem:[%s13295_s3 + $0x460] sm:$0xff] %vm5015_vm1, %v4546_v50  ;;  %4669 = vrot.lane.b32.xlu0 %v3967_v22, %s6271_s25  ;;  %v3447_v22 = vmul.f32 1.442695, %v2981_v37  ;;  %v3973_v26 = vmul.f32 %v5688_v51, %v3723_v5  ;;  %v6240_v50 = vld [vmem:[%s13292_s0 + $0x6d8] sm:$0xff] }
 0x591   :  { %5701 = vpow2.f32 %v3445_v42  ;;  %v6244_v51 = vld [vmem:[%s13292_s0 + $0x6f8] sm:$0xff]  ;;  %v3459_v63 = vmul.f32 1.442695, %v2987_v31  ;;  %v2989_v24 = vmul.f32 -0.071428575, %v6245_v32 }
 0x592   :  { %v5692_v39 = vpop.eup %5691  ;;  %5703 = vpow2.f32 %v3447_v22  ;;  %v2988_v42 = vmul.f32 -0.071428575, %v6244_v51  ;;  %v2994_v31 = vmul.f32 -0.071428575, %v6250_v13 }
 0x593   :  { %4671 = vrot.lane.b32.xlu1 %v3968_v15, %s6271_s25  ;;  %v4544_v20 = vpop.permute.xlu1 %4543  ;;  %v4550_v55 = vpop.permute.xlu0 %4549  ;;  %v2984_v15 = vmul.f32 -0.071428575, %v6240_v50  ;;  %v3975_v53 = vmul.f32 %v5692_v39, %v3725_v45  ;;  %5705 = vpow2.f32 %v3449_v19  ;;  %v6246_v45 = vld [vmem:[%s13292_s0 + $0x708] sm:$0xff]  ;;  %v3732_v50 = vmin.f32 %v14057_v52, %v10942_v17 }
 0x594   :  { %5155 = vst.msk [vmem:[%s13295_s3 + $0x458] sm:$0xff] %vm5015_vm1, %v4544_v20  ;;  %5158 = vst.msk [vmem:[%s13295_s3 + $0x470] sm:$0xff] %vm5015_vm1, %v4550_v55  ;;  %4673 = vrot.lane.b32.xlu0 %v3969_v23, %s6271_s25  ;;  %v5694_v2 = vpop.eup %5693  ;;  %v2985_v23 = vmul.f32 -0.071428575, %v6241_v33  ;;  %v3727_v20 = vmin.f32 %v14052_v57, %v10916_v28  ;;  %v14053_v28 = vld [vmem:[#allocation189_spill] sm:$0xff]  ;;  %5707 = vpow2.f32 %v3451_v12  ;;  %v6254_v52 = vld [vmem:[%s13292_s0 + $0x748] sm:$0xff] }
 0x595   :  { %v5696_v30 = vpop.eup %5695  ;;  %v3453_v44 = vmul.f32 1.442695, %v2984_v15  ;;  %v3728_v11 = vmin.f32 %v14053_v28, %v10910_v40  ;;  %v3461_v41 = vmul.f32 1.442695, %v2988_v42  ;;  %v14060_v28 = vld [vmem:[#allocation198_spill] sm:$0xff] }
 0x596   :  { %v5698_v4 = vpop.eup %5697  ;;  %v3455_v34 = vmul.f32 1.442695, %v2985_v23  ;;  %v3977_v37 = vmul.f32 %v5696_v30, %v3727_v20 }
 0x597   :  { %4675 = vrot.lane.b32.xlu1 %v3970_v8, %s6271_s25  ;;  %v4548_v35 = vpop.permute.xlu1 %4547  ;;  %v4554_v46 = vpop.permute.xlu0 %4553  ;;  %v3976_v8 = vmul.f32 %v5694_v2, %v3726_v14  ;;  %5709 = vpow2.f32 %v3453_v44  ;;  %v3978_v6 = vmul.f32 %v5698_v4, %v3728_v11  ;;  %v14058_v2 = vld [vmem:[#allocation196_spill] sm:$0xff]  ;;  %v3735_v11 = vmin.f32 %v14060_v28, %v10980_v47  ;;  %v14061_v47 = vld [vmem:[#allocation197_spill] sm:$0xff] }
 0x598   :  { %5157 = vst.msk [vmem:[%s13295_s3 + $0x468] sm:$0xff] %vm5015_vm1, %v4548_v35  ;;  %5160 = vst.msk [vmem:[%s13295_s3 + $0x480] sm:$0xff] %vm5015_vm1, %v4554_v46  ;;  %4677 = vrot.lane.b32.xlu0 %v3971_v25, %s6271_s25  ;;  %v14054_v25 = vld [vmem:[#allocation192_spill] sm:$0xff]  ;;  %v5700_v5 = vpop.eup %5699  ;;  %v3457_v35 = vmul.f32 1.442695, %v2986_v29  ;;  %5711 = vpow2.f32 %v3455_v34  ;;  %v3733_v12 = vmin.f32 %v14058_v2, %v10964_v54  ;;  %v14059_v54 = vld [vmem:[#allocation195_spill] sm:$0xff] }
 0x599   :  { %v3729_v58 = vmin.f32 %v14054_v25, %v10932_v16  ;;  %v14055_v16 = vld [vmem:[#allocation191_spill] sm:$0xff]  ;;  %v3734_v30 = vmin.f32 %v14059_v54, %v10958_v0  ;;  %v6249_v29 = vld [vmem:[%s13292_s0 + $0x720] sm:$0xff]  ;;  %v6255_v2 = vld [vmem:[%s13292_s0 + $0x750] sm:$0xff] }
 0x59a   :  { %v3730_v46 = vmin.f32 %v14055_v16, %v10926_v21  ;;  %5713 = vpow2.f32 %v3457_v35  ;;  %v6251_v35 = vld [vmem:[%s13292_s0 + $0x730] sm:$0xff] }
 0x59b   :  { %4679 = vrot.lane.b32.xlu1 %v3972_v62, %s6271_s25  ;;  %v4552_v49 = vpop.permute.xlu1 %4551  ;;  %v4558_v18 = vpop.permute.xlu0 %4557  ;;  %v3979_v22 = vmul.f32 %v5700_v5, %v3729_v58  ;;  %5715 = vpow2.f32 %v3459_v63  ;;  %v3736_v58 = vmin.f32 %v14061_v47, %v10974_v3  ;;  %v2995_v51 = vmul.f32 -0.071428575, %v6251_v35  ;;  %v14072_v35 = vld [vmem:[#allocation205_spill] sm:$0xff] }
 0x59c   :  { %5159 = vst.msk [vmem:[%s13295_s3 + $0x478] sm:$0xff] %vm5015_vm1, %v4552_v49  ;;  %5162 = vst.msk [vmem:[%s13295_s3 + $0x490] sm:$0xff] %vm5015_vm1, %v4558_v18  ;;  %4681 = vrot.lane.b32.xlu0 %v3973_v26, %s6271_s25  ;;  %v5702_v62 = vpop.eup %5701  ;;  %v2990_v49 = vmul.f32 -0.071428575, %v6246_v45  ;;  %v3463_v18 = vmul.f32 1.442695, %v2989_v24  ;;  %5717 = vpow2.f32 %v3461_v41 }
 0x59d   :  { %v5704_v26 = vpop.eup %5703  ;;  %v3980_v19 = vmul.f32 %v5702_v62, %v3730_v46  ;;  %v3473_v46 = vmul.f32 1.442695, %v2994_v31  ;;  %v6252_v62 = vld [vmem:[%s13292_s0 + $0x738] sm:$0xff]  ;;  %v14064_v45 = vld [vmem:[#allocation202_spill] sm:$0xff] }
 0x59e   :  { %v5706_v15 = vpop.eup %5705  ;;  %v3981_v14 = vmul.f32 %v5704_v26, %v3731_v56  ;;  %v3465_v23 = vmul.f32 1.442695, %v2990_v49  ;;  %5719 = vpow2.f32 %v3463_v18  ;;  %v2996_v63 = vmul.f32 -0.071428575, %v6252_v62  ;;  %v14074_v62 = vld [vmem:[#allocation208_spill] sm:$0xff] }
 0x59f   :  { %4683 = vrot.lane.b32.xlu1 %v3974_v43, %s6271_s25  ;;  %v4556_v7 = vpop.permute.xlu1 %4555  ;;  %v4562_v55 = vpop.permute.xlu0 %4561  ;;  %v6247_v43 = vld [vmem:[%s13292_s0 + $0x710] sm:$0xff]  ;;  %v3475_v56 = vmul.f32 1.442695, %v2995_v51  ;;  %v3739_v49 = vmin.f32 %v14064_v45, %v11012_v9  ;;  %v14065_v9 = vld [vmem:[#allocation201_spill] sm:$0xff] }
 0x5a0   :  { %5161 = vst.msk [vmem:[%s13295_s3 + $0x488] sm:$0xff] %vm5015_vm1, %v4556_v7  ;;  %5164 = vst.msk [vmem:[%s13295_s3 + $0x4a0] sm:$0xff] %vm5015_vm1, %v4562_v55  ;;  %4685 = vrot.lane.b32.xlu0 %v3975_v53, %s6271_s25  ;;  %v2991_v48 = vmul.f32 -0.071428575, %v6247_v43  ;;  %v5708_v33 = vpop.eup %5707  ;;  %v6248_v53 = vld [vmem:[%s13292_s0 + $0x718] sm:$0xff]  ;;  %v3982_v7 = vmul.f32 %v5706_v15, %v3732_v50  ;;  %5721 = vpow2.f32 %v3465_v23  ;;  %v3740_v43 = vmin.f32 %v14065_v9, %v11006_v1 }
 0x5a1   :  { %v2992_v57 = vmul.f32 -0.071428575, %v6248_v53  ;;  %v5710_v44 = vpop.eup %5709  ;;  %v2993_v55 = vmul.f32 -0.071428575, %v6249_v29  ;;  %v2998_v50 = vmul.f32 -0.071428575, %v6254_v52 }
 0x5a2   :  { %v3467_v38 = vmul.f32 1.442695, %v2991_v48  ;;  %v5712_v4 = vpop.eup %5711  ;;  %v3984_v25 = vmul.f32 %v5710_v44, %v3734_v30  ;;  %v14067_v44 = vld [vmem:[#allocation227_spill] sm:$0xff] }
 0x5a3   :  { %4687 = vrot.lane.b32.xlu1 %v3976_v8, %s6271_s25  ;;  %v4560_v40 = vpop.permute.xlu1 %4559  ;;  %v4566_v10 = vpop.permute.xlu0 %4565  ;;  %v3983_v8 = vmul.f32 %v5708_v33, %v3733_v12  ;;  %v3469_v34 = vmul.f32 1.442695, %v2992_v57  ;;  %v3471_v5 = vmul.f32 1.442695, %v2993_v55  ;;  %v3985_v42 = vmul.f32 %v5712_v4, %v3735_v11  ;;  %v14066_v33 = vld [vmem:[#allocation204_spill] sm:$0xff]  ;;  %v14070_v4 = vld [vmem:[#allocation206_spill] sm:$0xff] }
 0x5a4   :  { %5163 = vst.msk [vmem:[%s13295_s3 + $0x498] sm:$0xff] %vm5015_vm1, %v4560_v40  ;;  %5166 = vst.msk [vmem:[%s13295_s3 + $0x4b0] sm:$0xff] %vm5015_vm1, %v4566_v10  ;;  %4689 = vrot.lane.b32.xlu0 %v3977_v37, %s6271_s25  ;;  %v5714_v40 = vpop.eup %5713  ;;  %5723 = vpow2.f32 %v3467_v38  ;;  %v14062_v10 = vld [vmem:[#allocation200_spill] sm:$0xff]  ;;  %v2999_v12 = vmul.f32 -0.071428575, %v6255_v2  ;;  %v3741_v23 = vmin.f32 %v14066_v33, %v11028_v36  ;;  %v14068_v36 = vld [vmem:[#allocation203_spill] sm:$0xff] }
 0x5a5   :  { %v5716_v16 = vpop.eup %5715  ;;  %5725 = vpow2.f32 %v3469_v34  ;;  %v3986_v24 = vmul.f32 %v5714_v40, %v3736_v58  ;;  %v3481_v57 = vmul.f32 1.442695, %v2998_v50  ;;  %v3742_v38 = vmin.f32 %v14068_v36, %v14067_v44  ;;  %v14077_v50 = vld [vmem:[#allocation231_spill] sm:$0xff]  ;;  %v14082_v44 = vld [vmem:[#allocation212_spill] sm:$0xff] }
 0x5a6   :  { %v5718_v60 = vpop.eup %5717  ;;  %5727 = vpow2.f32 %v3471_v5  ;;  %v3483_v55 = vmul.f32 1.442695, %v2999_v12  ;;  %v14071_v5 = vld [vmem:[#allocation2_spill] sm:$0xff]  ;;  %v14079_v33 = vld [vmem:[#allocation3_spill] sm:$0xff] }
 0x5a7   :  { %4691 = vrot.lane.b32.xlu1 %v3978_v6, %s6271_s25  ;;  %v4564_v21 = vpop.permute.xlu1 %4563  ;;  %v4570_v39 = vpop.permute.xlu0 %4569  ;;  %v3737_v6 = vmin.f32 %v14062_v10, %v10996_v59  ;;  %v14063_v59 = vld [vmem:[#allocation199_spill] sm:$0xff]  ;;  %5729 = vpow2.f32 %v3473_v46  ;;  %v3744_v51 = vmin.f32 %v14072_v35, %v14071_v5  ;;  %v14073_v46 = vld [vmem:[#allocation228_spill] sm:$0xff]  ;;  %v14086_v5 = vld [vmem:[#allocation214_spill] sm:$0xff] }
 0x5a8   :  { %5165 = vst.msk [vmem:[%s13295_s3 + $0x4a8] sm:$0xff] %vm5015_vm1, %v4564_v21  ;;  %5168 = vst.msk [vmem:[%s13295_s3 + $0x4c0] sm:$0xff] %vm5015_vm1, %v4570_v39  ;;  %4693 = vrot.lane.b32.xlu0 %v3979_v22, %s6271_s25  ;;  %v3738_v22 = vmin.f32 %v14063_v59, %v10990_v27  ;;  %v6253_v21 = vld [vmem:[%s13292_s0 + $0x740] sm:$0xff]  ;;  %v5720_v39 = vpop.eup %5719  ;;  %5731 = vpow2.f32 %v3475_v56 }
 0x5a9   :  { %v2997_v26 = vmul.f32 -0.071428575, %v6253_v21  ;;  %v3987_v41 = vmul.f32 %v5716_v16, %v3737_v6  ;;  %v6259_v6 = vld [vmem:[%s13292_s0 + $0x770] sm:$0xff] }
 0x5aa   :  { %v3988_v18 = vmul.f32 %v5718_v60, %v3738_v22  ;;  %v5722_v48 = vpop.eup %5721  ;;  %v6260_v22 = vld [vmem:[%s13292_s0 + $0x778] sm:$0xff] }
 0x5ab   :  { %4695 = vrot.lane.b32.xlu1 %v3980_v19, %s6271_s25  ;;  %v4568_v17 = vpop.permute.xlu1 %4567  ;;  %v4574_v20 = vpop.permute.xlu0 %4573  ;;  %v3477_v19 = vmul.f32 1.442695, %v2996_v63  ;;  %v3990_v30 = vmul.f32 %v5722_v48, %v3740_v43  ;;  %v3745_v63 = vmin.f32 %v14074_v62, %v14073_v46  ;;  %v3004_v60 = vmul.f32 -0.071428575, %v6260_v22  ;;  %v14087_v62 = vld [vmem:[#allocation5_spill] sm:$0xff]  ;;  %v6267_v22 = vld [vmem:[%s13292_s0 + $0x7b0] sm:$0xff] }
 0x5ac   :  { %5167 = vst.msk [vmem:[%s13295_s3 + $0x4b8] sm:$0xff] %vm5015_vm1, %v4568_v17  ;;  %5170 = vst.msk [vmem:[%s13295_s3 + $0x4d0] sm:$0xff] %vm5015_vm1, %v4574_v20  ;;  %4697 = vrot.lane.b32.xlu0 %v3981_v14, %s6271_s25  ;;  %v3479_v14 = vmul.f32 1.442695, %v2997_v26  ;;  %v3989_v17 = vmul.f32 %v5720_v39, %v3739_v49  ;;  %v6256_v20 = vld [vmem:[%s13292_s0 + $0x758] sm:$0xff]  ;;  %v14075_v26 = vld [vmem:[#allocation4_spill] sm:$0xff] }
 0x5ad   :  { %5733 = vpow2.f32 %v3477_v19  ;;  %v6261_v39 = vld [vmem:[%s13292_s0 + $0x780] sm:$0xff]  ;;  %v3493_v48 = vmul.f32 1.442695, %v3004_v60  ;;  %v3011_v60 = vmul.f32 -0.071428575, %v6267_v22 }
 0x5ae   :  { %v5724_v53 = vpop.eup %5723  ;;  %5735 = vpow2.f32 %v3479_v14  ;;  %v3005_v19 = vmul.f32 -0.071428575, %v6261_v39  ;;  %v6262_v14 = vld [vmem:[%s13292_s0 + $0x788] sm:$0xff]  ;;  %v6268_v39 = vld [vmem:[%s13292_s0 + $0x7b8] sm:$0xff] }
 0x5af   :  { %4699 = vrot.lane.b32.xlu1 %v3982_v7, %s6271_s25  ;;  %v4572_v0 = vpop.permute.xlu1 %4571  ;;  %v4578_v37 = vpop.permute.xlu0 %4577  ;;  %v3000_v7 = vmul.f32 -0.071428575, %v6256_v20  ;;  %v3991_v11 = vmul.f32 %v5724_v53, %v3741_v23  ;;  %5737 = vpow2.f32 %v3481_v57  ;;  %v3006_v2 = vmul.f32 -0.071428575, %v6262_v14  ;;  %v14080_v23 = vld [vmem:[#allocation209_spill] sm:$0xff]  ;;  %v6263_v20 = vld [vmem:[%s13292_s0 + $0x790] sm:$0xff] }
 0x5b0   :  { %5169 = vst.msk [vmem:[%s13295_s3 + $0x4c8] sm:$0xff] %vm5015_vm1, %v4572_v0  ;;  %5172 = vst.msk [vmem:[%s13295_s3 + $0x4e0] sm:$0xff] %vm5015_vm1, %v4578_v37  ;;  %4701 = vrot.lane.b32.xlu0 %v3983_v8, %s6271_s25  ;;  %v5726_v29 = vpop.eup %5725  ;;  %v6257_v8 = vld [vmem:[%s13292_s0 + $0x760] sm:$0xff]  ;;  %v14069_v0 = vld [vmem:[#allocation229_spill] sm:$0xff]  ;;  %5739 = vpow2.f32 %v3483_v55  ;;  %v3495_v57 = vmul.f32 1.442695, %v3005_v19 }
 0x5b1   :  { %v3001_v28 = vmul.f32 -0.071428575, %v6257_v8  ;;  %v3743_v34 = vmin.f32 %v14070_v4, %v14069_v0  ;;  %v5728_v31 = vpop.eup %5727  ;;  %v3485_v37 = vmul.f32 1.442695, %v3000_v7  ;;  %v3992_v40 = vmul.f32 %v5726_v29, %v3742_v38  ;;  %v6264_v8 = vld [vmem:[%s13292_s0 + $0x798] sm:$0xff]  ;;  %v14083_v4 = vld [vmem:[#allocation6_spill] sm:$0xff] }
 0x5b2   :  { %v3007_v7 = vmul.f32 -0.071428575, %v6263_v20  ;;  %v3497_v55 = vmul.f32 1.442695, %v3006_v2  ;;  %v3012_v19 = vmul.f32 -0.071428575, %v6268_v39 }
 0x5b3   :  { %4703 = vrot.lane.b32.xlu1 %v3984_v25, %s6271_s25  ;;  %v4576_v3 = vpop.permute.xlu1 %4575  ;;  %v4582_v32 = vpop.permute.xlu0 %4581  ;;  %v6258_v25 = vld [vmem:[%s13292_s0 + $0x768] sm:$0xff]  ;;  %v3487_v10 = vmul.f32 1.442695, %v3001_v28  ;;  %v3993_v16 = vmul.f32 %v5728_v31, %v3743_v34  ;;  %5741 = vpow2.f32 %v3485_v37  ;;  %v3008_v28 = vmul.f32 -0.071428575, %v6264_v8  ;;  %v6269_v14 = vld [vmem:[%s13292_s0 + $0x7c0] sm:$0xff] }
 0x5b4   :  { %5171 = vst.msk [vmem:[%s13295_s3 + $0x4d8] sm:$0xff] %vm5015_vm1, %v4576_v3  ;;  %5174 = vst.msk [vmem:[%s13295_s3 + $0x4f0] sm:$0xff] %vm5015_vm1, %v4582_v32  ;;  %4705 = vrot.lane.b32.xlu0 %v3985_v42, %s6271_s25  ;;  %v3002_v47 = vmul.f32 -0.071428575, %v6258_v25  ;;  %v5730_v42 = vpop.eup %5729  ;;  %v3003_v3 = vmul.f32 -0.071428575, %v6259_v6 }
 0x5b5   :  { %v3994_v21 = vmul.f32 %v5730_v42, %v3744_v51  ;;  %5743 = vpow2.f32 %v3487_v10  ;;  %v14084_v34 = vld [vmem:[#allocation211_spill] sm:$0xff]  ;;  %v3499_v37 = vmul.f32 1.442695, %v3007_v7  ;;  %v6265_v25 = vld [vmem:[%s13292_s0 + $0x7a0] sm:$0xff]  ;;  %v3501_v10 = vmul.f32 1.442695, %v3008_v28 }
 0x5b6   :  { %v3489_v59 = vmul.f32 1.442695, %v3002_v47  ;;  %v3009_v47 = vmul.f32 -0.071428575, %v6265_v25  ;;  %v6266_v6 = vld [vmem:[%s13292_s0 + $0x7a8] sm:$0xff]  ;;  %v14097_v28 = vld [vmem:[#allocation234_spill] sm:$0xff] }
 0x5b7   :  { %4707 = vrot.lane.b32.xlu1 %v3986_v24, %s6271_s25  ;;  %v4580_v27 = vpop.permute.xlu1 %4579  ;;  %v4586_v15 = vpop.permute.xlu0 %4585  ;;  %v3013_v2 = vmul.f32 -0.071428575, %v6269_v14  ;;  %v6270_v20 = vld [vmem:[%s13292_s0 + $0x7c8] sm:$0xff]  ;;  %v14099_v25 = vld [vmem:[#allocation10_spill] sm:$0xff] }
 0x5b8   :  { %5173 = vst.msk [vmem:[%s13295_s3 + $0x4e8] sm:$0xff] %vm5015_vm1, %v4580_v27  ;;  %5176 = vst.msk [vmem:[%s13295_s3 + $0x500] sm:$0xff] %vm5015_vm1, %v4586_v15  ;;  %4709 = vrot.lane.b32.xlu0 %v3987_v41, %s6271_s25  ;;  %v5732_v24 = vpop.eup %5731  ;;  %v14076_v41 = vld [vmem:[#allocation207_spill] sm:$0xff]  ;;  %v3491_v27 = vmul.f32 1.442695, %v3003_v3  ;;  %v14078_v15 = vld [vmem:[#allocation210_spill] sm:$0xff]  ;;  %5745 = vpow2.f32 %v3489_v59 }
 0x5b9   :  { %v3746_v45 = vmin.f32 %v14076_v41, %v14075_v26  ;;  %v5734_v49 = vpop.eup %5733  ;;  %v3995_v52 = vmul.f32 %v5732_v24, %v3745_v63  ;;  %v3010_v3 = vmul.f32 -0.071428575, %v6266_v6  ;;  %v14088_v63 = vld [vmem:[#allocation213_spill] sm:$0xff]  ;;  %v3503_v59 = vmul.f32 1.442695, %v3009_v47  ;;  %v14090_v26 = vld [vmem:[#allocation216_spill] sm:$0xff] }
 0x5ba   :  { %v5736_v43 = vpop.eup %5735  ;;  %5747 = vpow2.f32 %v3491_v27  ;;  %v3014_v7 = vmul.f32 -0.071428575, %v6270_v20  ;;  %v14100_v47 = vld [vmem:[#allocation219_spill] sm:$0xff] }
 0x5bb   :  { %4711 = vrot.lane.b32.xlu1 %v3988_v18, %s6271_s25  ;;  %v4584_v1 = vpop.permute.xlu1 %4583  ;;  %v4590_v54 = vpop.permute.xlu0 %4589  ;;  %v3747_v18 = vmin.f32 %v14078_v15, %v14077_v50  ;;  %5749 = vpow2.f32 %v3493_v48  ;;  %v3505_v27 = vmul.f32 1.442695, %v3010_v3  ;;  %v14091_v15 = vld [vmem:[#allocation8_spill] sm:$0xff]  ;;  %v3507_v48 = vmul.f32 1.442695, %v3011_v60  ;;  %v14108_v39 = vld [vmem:[#allocation11_spill] sm:$0xff] }
 0x5bc   :  { %5175 = vst.msk [vmem:[%s13295_s3 + $0x4f8] sm:$0xff] %vm5015_vm1, %v4584_v1  ;;  %5178 = vst.msk [vmem:[%s13295_s3 + $0x510] sm:$0xff] %vm5015_vm1, %v4590_v54  ;;  %4713 = vrot.lane.b32.xlu0 %v3989_v17, %s6271_s25  ;;  %v3996_v17 = vmul.f32 %v5734_v49, %v3746_v45  ;;  %v3748_v1 = vmin.f32 %v14080_v23, %v14079_v33  ;;  %v5738_v53 = vpop.eup %5737  ;;  %5751 = vpow2.f32 %v3495_v57  ;;  %v14094_v33 = vld [vmem:[#allocation218_spill] sm:$0xff]  ;;  %v3509_v57 = vmul.f32 1.442695, %v3012_v19 }
 0x5bd   :  { %v3997_v54 = vmul.f32 %v5736_v43, %v3747_v18  ;;  %v5740_v29 = vpop.eup %5739  ;;  %5753 = vpow2.f32 %v3497_v55  ;;  %v14092_v18 = vld [vmem:[#allocation215_spill] sm:$0xff]  ;;  %v3511_v55 = vmul.f32 1.442695, %v3013_v2  ;;  %v14109_v19 = vld [vmem:[#allocation226_spill] sm:$0xff] }
 0x5be   :  { %v3998_v0 = vmul.f32 %v5738_v53, %v3748_v1  ;;  %v5742_v31 = vpop.eup %5741  ;;  %5755 = vpow2.f32 %v3499_v37 }
 0x5bf   :  { %4715 = vrot.lane.b32.xlu1 %v3990_v30, %s6271_s25  ;;  %v4588_v13 = vpop.permute.xlu1 %4587  ;;  %v4594_v58 = vpop.permute.xlu0 %4593  ;;  %v14081_v30 = vld [vmem:[#allocation230_spill] sm:$0xff]  ;;  %5757 = vpow2.f32 %v3501_v10 }
 0x5c0   :  { %5177 = vst.msk [vmem:[%s13295_s3 + $0x508] sm:$0xff] %vm5015_vm1, %v4588_v13  ;;  %5180 = vst.msk [vmem:[%s13295_s3 + $0x520] sm:$0xff] %vm5015_vm1, %v4594_v58  ;;  %4717 = vrot.lane.b32.xlu0 %v3991_v11, %s6271_s25  ;;  %v3749_v36 = vmin.f32 %v14082_v44, %v14081_v30  ;;  %v3750_v13 = vmin.f32 %v14084_v34, %v14083_v4  ;;  %v5744_v42 = vpop.eup %5743  ;;  %5759 = vpow2.f32 %v3503_v59  ;;  %v14095_v44 = vld [vmem:[#allocation7_spill] sm:$0xff]  ;;  %v14105_v59 = vld [vmem:[#allocation224_spill] sm:$0xff] }
 0x5c1   :  { %5761 = vpow2.f32 %v3505_v27  ;;  %v3761_v22 = vmin.f32 %v14105_v59, %v11188_v61 }
 0x5c2   :  { %v3999_v58 = vmul.f32 %v5740_v29, %v3749_v36  ;;  %v4000_v46 = vmul.f32 %v5742_v31, %v3750_v13  ;;  %v5746_v24 = vpop.eup %5745  ;;  %v14096_v36 = vld [vmem:[#allocation217_spill] sm:$0xff]  ;;  %5763 = vpow2.f32 %v3507_v48  ;;  %v3513_v13 = vmul.f32 1.442695, %v3014_v7 }
 0x5c3   :  { %4719 = vrot.lane.b32.xlu1 %v3992_v40, %s6271_s25  ;;  %v4592_v32 = vpop.permute.xlu1 %4591  ;;  %v4598_v56 = vpop.permute.xlu0 %4597  ;;  %v14085_v40 = vld [vmem:[#allocation233_spill] sm:$0xff]  ;;  %5765 = vpow2.f32 %v3509_v57 }
 0x5c4   :  { %5179 = vst.msk [vmem:[%s13295_s3 + $0x518] sm:$0xff] %vm5015_vm1, %v4592_v32  ;;  %5182 = vst.msk [vmem:[%s13295_s3 + $0x530] sm:$0xff] %vm5015_vm1, %v4598_v56  ;;  %4721 = vrot.lane.b32.xlu0 %v3993_v16, %s6271_s25  ;;  %v3751_v35 = vmin.f32 %v14086_v5, %v14085_v40  ;;  %v3752_v32 = vmin.f32 %v14088_v63, %v14087_v62  ;;  %v5748_v49 = vpop.eup %5747  ;;  %5767 = vpow2.f32 %v3511_v55  ;;  %v14104_v62 = vld [vmem:[#allocation221_spill] sm:$0xff] }
 0x5c5   :  { %v5750_v43 = vpop.eup %5749  ;;  %5769 = vpow2.f32 %v3513_v13  ;;  %v14111_v48 = vld [vmem:[#allocation225_spill] sm:$0xff] }
 0x5c6   :  { %v4001_v56 = vmul.f32 %v5744_v42, %v3751_v35  ;;  %v4002_v50 = vmul.f32 %v5746_v24, %v3752_v32  ;;  %v5752_v53 = vpop.eup %5751  ;;  %v14101_v35 = vld [vmem:[#allocation237_spill] sm:$0xff] }
 0x5c7   :  { %4723 = vrot.lane.b32.xlu1 %v3994_v21, %s6271_s25  ;;  %v4596_v9 = vpop.permute.xlu1 %4595  ;;  %v4602_v12 = vpop.permute.xlu0 %4601  ;;  %v14089_v21 = vld [vmem:[#allocation232_spill] sm:$0xff] }
 0x5c8   :  { %5181 = vst.msk [vmem:[%s13295_s3 + $0x528] sm:$0xff] %vm5015_vm1, %v4596_v9  ;;  %5184 = vst.msk [vmem:[%s13295_s3 + $0x540] sm:$0xff] %vm5015_vm1, %v4602_v12  ;;  %4725 = vrot.lane.b32.xlu0 %v3995_v52, %s6271_s25  ;;  %v3753_v41 = vmin.f32 %v14090_v26, %v14089_v21  ;;  %v3754_v9 = vmin.f32 %v14092_v18, %v14091_v15  ;;  %v5754_v29 = vpop.eup %5753 }
 0x5c9   :  { %v5756_v34 = vpop.eup %5755 }
 0x5ca   :  { %v4003_v12 = vmul.f32 %v5748_v49, %v3753_v41  ;;  %v4004_v30 = vmul.f32 %v5750_v43, %v3754_v9  ;;  %v5758_v40 = vpop.eup %5757  ;;  %v14106_v41 = vld [vmem:[#allocation12_spill] sm:$0xff] }
 0x5cb   :  { %4727 = vrot.lane.b32.xlu1 %v3996_v17, %s6271_s25  ;;  %v4600_v38 = vpop.permute.xlu1 %4599  ;;  %v4606_v11 = vpop.permute.xlu0 %4605  ;;  %v14093_v17 = vld [vmem:[#allocation235_spill] sm:$0xff]  ;;  %v14110_v43 = vld [vmem:[#allocation236_spill] sm:$0xff] }
 0x5cc   :  { %5183 = vst.msk [vmem:[%s13295_s3 + $0x538] sm:$0xff] %vm5015_vm1, %v4600_v38  ;;  %5186 = vst.msk [vmem:[%s13295_s3 + $0x550] sm:$0xff] %vm5015_vm1, %v4606_v11  ;;  %4729 = vrot.lane.b32.xlu0 %v3997_v54, %s6271_s25  ;;  %v3755_v23 = vmin.f32 %v14094_v33, %v14093_v17  ;;  %v3756_v38 = vmin.f32 %v14096_v36, %v14095_v44  ;;  %v14098_v11 = vld [vmem:[#allocation220_spill] sm:$0xff]  ;;  %v5760_v6 = vpop.eup %5759  ;;  %v3764_v14 = vmin.f32 %v14111_v48, %v14110_v43 }
 0x5cd   :  { %v5762_v32 = vpop.eup %5761 }
 0x5ce   :  { %v4005_v8 = vmul.f32 %v5752_v53, %v3755_v23  ;;  %v4006_v37 = vmul.f32 %v5754_v29, %v3756_v38 }
 0x5cf   :  { %4731 = vrot.lane.b32.xlu1 %v3998_v0, %s6271_s25  ;;  %v4604_v51 = vpop.permute.xlu1 %4603  ;;  %v4610_v16 = vpop.permute.xlu0 %4609  ;;  %v3757_v0 = vmin.f32 %v14098_v11, %v14097_v28 }
 0x5d0   :  { %5185 = vst.msk [vmem:[%s13295_s3 + $0x548] sm:$0xff] %vm5015_vm1, %v4604_v51  ;;  %5188 = vst.msk [vmem:[%s13295_s3 + $0x560] sm:$0xff] %vm5015_vm1, %v4610_v16  ;;  %4733 = vrot.lane.b32.xlu0 %v3999_v58, %s6271_s25  ;;  %v3758_v58 = vmin.f32 %v14100_v47, %v14099_v25  ;;  %v14102_v51 = vld [vmem:[#allocation222_spill] sm:$0xff] }
 0x5d1   :  { %v4007_v5 = vmul.f32 %v5756_v34, %v3757_v0  ;;  %v3759_v42 = vmin.f32 %v14102_v51, %v14101_v35 }
 0x5d2   :  { %v4008_v16 = vmul.f32 %v5758_v40, %v3758_v58 }
 0x5d3   :  { %4735 = vrot.lane.b32.xlu1 %v4000_v46, %s6271_s25  ;;  %v4608_v45 = vpop.permute.xlu1 %4607  ;;  %v4614_v52 = vpop.permute.xlu0 %4613  ;;  %v14103_v46 = vld [vmem:[#allocation9_spill] sm:$0xff]  ;;  %v4009_v24 = vmul.f32 %v5760_v6, %v3759_v42 }
 0x5d4   :  { %5187 = vst.msk [vmem:[%s13295_s3 + $0x558] sm:$0xff] %vm5015_vm1, %v4608_v45  ;;  %5190 = vst.msk [vmem:[%s13295_s3 + $0x570] sm:$0xff] %vm5015_vm1, %v4614_v52  ;;  %4737 = vrot.lane.b32.xlu0 %v4001_v56, %s6271_s25  ;;  %v3760_v63 = vmin.f32 %v14104_v62, %v14103_v46  ;;  %v5764_v56 = vpop.eup %5763  ;;  %v14107_v45 = vld [vmem:[#allocation223_spill] sm:$0xff]  ;;  %v3763_v52 = vmin.f32 %v14109_v19, %v14108_v39 }
 0x5d5   :  { %v3762_v49 = vmin.f32 %v14107_v45, %v14106_v41  ;;  %v5766_v61 = vpop.eup %5765  ;;  %v4011_v27 = vmul.f32 %v5764_v56, %v3761_v22 }
 0x5d6   :  { %v4010_v26 = vmul.f32 %v5762_v32, %v3760_v63  ;;  %v5768_v15 = vpop.eup %5767 }
 0x5d7   :  { %4739 = vrot.lane.b32.xlu1 %v4002_v50, %s6271_s25  ;;  %v4612_v1 = vpop.permute.xlu1 %4611  ;;  %v4618_v54 = vpop.permute.xlu0 %4617  ;;  %v4012_v9 = vmul.f32 %v5766_v61, %v3762_v49 }
 0x5d8   :  { %5189 = vst.msk [vmem:[%s13295_s3 + $0x568] sm:$0xff] %vm5015_vm1, %v4612_v1  ;;  %5192 = vst.msk [vmem:[%s13295_s3 + $0x580] sm:$0xff] %vm5015_vm1, %v4618_v54  ;;  %4741 = vrot.lane.b32.xlu0 %v4003_v12, %s6271_s25  ;;  %v5770_v2 = vpop.eup %5769  ;;  %v4013_v12 = vmul.f32 %v5768_v15, %v3763_v52 }
 0x5d9   :  { %v4014_v23 = vmul.f32 %v5770_v2, %v3764_v14 }
 0x5db   :  { %4743 = vrot.lane.b32.xlu1 %v4004_v30, %s6271_s25  ;;  %v4616_v4 = vpop.permute.xlu1 %4615  ;;  %v4622_v31 = vpop.permute.xlu0 %4621 }
 0x5dc   :  { %5191 = vst.msk [vmem:[%s13295_s3 + $0x578] sm:$0xff] %vm5015_vm1, %v4616_v4  ;;  %5194 = vst.msk [vmem:[%s13295_s3 + $0x590] sm:$0xff] %vm5015_vm1, %v4622_v31  ;;  %4745 = vrot.lane.b32.xlu0 %v4005_v8, %s6271_s25 }
 0x5df   :  { %4747 = vrot.lane.b32.xlu1 %v4006_v37, %s6271_s25  ;;  %v4620_v10 = vpop.permute.xlu1 %4619  ;;  %v4626_v3 = vpop.permute.xlu0 %4625 }
 0x5e0   :  { %5193 = vst.msk [vmem:[%s13295_s3 + $0x588] sm:$0xff] %vm5015_vm1, %v4620_v10  ;;  %5196 = vst.msk [vmem:[%s13295_s3 + $0x5a0] sm:$0xff] %vm5015_vm1, %v4626_v3  ;;  %4749 = vrot.lane.b32.xlu0 %v4007_v5, %s6271_s25 }
 0x5e3   :  { %4751 = vrot.lane.b32.xlu1 %v4008_v16, %s6271_s25  ;;  %v4624_v60 = vpop.permute.xlu1 %4623  ;;  %v4630_v21 = vpop.permute.xlu0 %4629 }
 0x5e4   :  { %5195 = vst.msk [vmem:[%s13295_s3 + $0x598] sm:$0xff] %vm5015_vm1, %v4624_v60  ;;  %5198 = vst.msk [vmem:[%s13295_s3 + $0x5b0] sm:$0xff] %vm5015_vm1, %v4630_v21  ;;  %4753 = vrot.lane.b32.xlu0 %v4009_v24, %s6271_s25 }
 0x5e7   :  { %4755 = vrot.lane.b32.xlu1 %v4010_v26, %s6271_s25  ;;  %v4628_v50 = vpop.permute.xlu1 %4627  ;;  %v4634_v18 = vpop.permute.xlu0 %4633 }
 0x5e8   :  { %5197 = vst.msk [vmem:[%s13295_s3 + $0x5a8] sm:$0xff] %vm5015_vm1, %v4628_v50  ;;  %5200 = vst.msk [vmem:[%s13295_s3 + $0x5c0] sm:$0xff] %vm5015_vm1, %v4634_v18  ;;  %4757 = vrot.lane.b32.xlu0 %v4011_v27, %s6271_s25 }
 0x5eb   :  { %4759 = vrot.lane.b32.xlu1 %v4012_v9, %s6271_s25  ;;  %v4632_v17 = vpop.permute.xlu1 %4631  ;;  %v4638_v33 = vpop.permute.xlu0 %4637 }
 0x5ec   :  { %5199 = vst.msk [vmem:[%s13295_s3 + $0x5b8] sm:$0xff] %vm5015_vm1, %v4632_v17  ;;  %5202 = vst.msk [vmem:[%s13295_s3 + $0x5d0] sm:$0xff] %vm5015_vm1, %v4638_v33  ;;  %4761 = vrot.lane.b32.xlu0 %v4013_v12, %s6271_s25 }
 0x5ef   :  { %4763 = vrot.lane.b32.xlu1 %v4014_v23, %s6271_s25  ;;  %v4636_v1 = vpop.permute.xlu1 %4635  ;;  %v4642_v53 = vpop.permute.xlu0 %4641 }
 0x5f0   :  { %5201 = vst.msk [vmem:[%s13295_s3 + $0x5c8] sm:$0xff] %vm5015_vm1, %v4636_v1  ;;  %5204 = vst.msk [vmem:[%s13295_s3 + $0x5e0] sm:$0xff] %vm5015_vm1, %v4642_v53 }
 0x5f3   :  { %v4640_v57 = vpop.permute.xlu1 %4639  ;;  %v4646_v20 = vpop.permute.xlu0 %4645 }
 0x5f4   :  { %5203 = vst.msk [vmem:[%s13295_s3 + $0x5d8] sm:$0xff] %vm5015_vm1, %v4640_v57  ;;  %5206 = vst.msk [vmem:[%s13295_s3 + $0x5f0] sm:$0xff] %vm5015_vm1, %v4646_v20 }
 0x5f7   :  { %v4644_v7 = vpop.permute.xlu1 %4643  ;;  %v4650_v54 = vpop.permute.xlu0 %4649 }
 0x5f8   :  { %5205 = vst.msk [vmem:[%s13295_s3 + $0x5e8] sm:$0xff] %vm5015_vm1, %v4644_v7  ;;  %5208 = vst.msk [vmem:[%s13295_s3 + $0x600] sm:$0xff] %vm5015_vm1, %v4650_v54 }
 0x5fb   :  { %v4648_v30 = vpop.permute.xlu1 %4647  ;;  %v4654_v44 = vpop.permute.xlu0 %4653 }
 0x5fc   :  { %5207 = vst.msk [vmem:[%s13295_s3 + $0x5f8] sm:$0xff] %vm5015_vm1, %v4648_v30  ;;  %5210 = vst.msk [vmem:[%s13295_s3 + $0x610] sm:$0xff] %vm5015_vm1, %v4654_v44 }
 0x5ff   :  { %v4652_v36 = vpop.permute.xlu1 %4651  ;;  %v4658_v38 = vpop.permute.xlu0 %4657 }
 0x600   :  { %5209 = vst.msk [vmem:[%s13295_s3 + $0x608] sm:$0xff] %vm5015_vm1, %v4652_v36  ;;  %5212 = vst.msk [vmem:[%s13295_s3 + $0x620] sm:$0xff] %vm5015_vm1, %v4658_v38 }
 0x603   :  { %v4656_v29 = vpop.permute.xlu1 %4655  ;;  %v4662_v55 = vpop.permute.xlu0 %4661 }
 0x604   :  { %5211 = vst.msk [vmem:[%s13295_s3 + $0x618] sm:$0xff] %vm5015_vm1, %v4656_v29  ;;  %5214 = vst.msk [vmem:[%s13295_s3 + $0x630] sm:$0xff] %vm5015_vm1, %v4662_v55 }
 0x607   :  { %v4660_v8 = vpop.permute.xlu1 %4659  ;;  %v4666_v28 = vpop.permute.xlu0 %4665 }
 0x608   :  { %5213 = vst.msk [vmem:[%s13295_s3 + $0x628] sm:$0xff] %vm5015_vm1, %v4660_v8  ;;  %5216 = vst.msk [vmem:[%s13295_s3 + $0x640] sm:$0xff] %vm5015_vm1, %v4666_v28 }
 0x60b   :  { %v4664_v11 = vpop.permute.xlu1 %4663  ;;  %v4670_v0 = vpop.permute.xlu0 %4669 }
 0x60c   :  { %5215 = vst.msk [vmem:[%s13295_s3 + $0x638] sm:$0xff] %vm5015_vm1, %v4664_v11  ;;  %5218 = vst.msk [vmem:[%s13295_s3 + $0x650] sm:$0xff] %vm5015_vm1, %v4670_v0 }
 0x60f   :  { %v4668_v4 = vpop.permute.xlu1 %4667  ;;  %v4674_v34 = vpop.permute.xlu0 %4673 }
 0x610   :  { %5217 = vst.msk [vmem:[%s13295_s3 + $0x648] sm:$0xff] %vm5015_vm1, %v4668_v4  ;;  %5220 = vst.msk [vmem:[%s13295_s3 + $0x660] sm:$0xff] %vm5015_vm1, %v4674_v34 }
 0x613   :  { %v4672_v13 = vpop.permute.xlu1 %4671  ;;  %v4678_v31 = vpop.permute.xlu0 %4677 }
 0x614   :  { %5219 = vst.msk [vmem:[%s13295_s3 + $0x658] sm:$0xff] %vm5015_vm1, %v4672_v13  ;;  %5222 = vst.msk [vmem:[%s13295_s3 + $0x670] sm:$0xff] %vm5015_vm1, %v4678_v31 }
 0x617   :  { %v4676_v37 = vpop.permute.xlu1 %4675  ;;  %v4682_v25 = vpop.permute.xlu0 %4681 }
 0x618   :  { %5221 = vst.msk [vmem:[%s13295_s3 + $0x668] sm:$0xff] %vm5015_vm1, %v4676_v37  ;;  %5224 = vst.msk [vmem:[%s13295_s3 + $0x680] sm:$0xff] %vm5015_vm1, %v4682_v25 }
 0x61b   :  { %v4680_v47 = vpop.permute.xlu1 %4679  ;;  %v4686_v58 = vpop.permute.xlu0 %4685 }
 0x61c   :  { %5223 = vst.msk [vmem:[%s13295_s3 + $0x678] sm:$0xff] %vm5015_vm1, %v4680_v47  ;;  %5226 = vst.msk [vmem:[%s13295_s3 + $0x690] sm:$0xff] %vm5015_vm1, %v4686_v58 }
 0x61f   :  { %v4684_v40 = vpop.permute.xlu1 %4683  ;;  %v4690_v5 = vpop.permute.xlu0 %4689 }
 0x620   :  { %5225 = vst.msk [vmem:[%s13295_s3 + $0x688] sm:$0xff] %vm5015_vm1, %v4684_v40  ;;  %5228 = vst.msk [vmem:[%s13295_s3 + $0x6a0] sm:$0xff] %vm5015_vm1, %v4690_v5 }
 0x623   :  { %v4688_v35 = vpop.permute.xlu1 %4687  ;;  %v4694_v51 = vpop.permute.xlu0 %4693 }
 0x624   :  { %5227 = vst.msk [vmem:[%s13295_s3 + $0x698] sm:$0xff] %vm5015_vm1, %v4688_v35  ;;  %5230 = vst.msk [vmem:[%s13295_s3 + $0x6b0] sm:$0xff] %vm5015_vm1, %v4694_v51 }
 0x627   :  { %v4692_v42 = vpop.permute.xlu1 %4691  ;;  %v4698_v10 = vpop.permute.xlu0 %4697 }
 0x628   :  { %5229 = vst.msk [vmem:[%s13295_s3 + $0x6a8] sm:$0xff] %vm5015_vm1, %v4692_v42  ;;  %5232 = vst.msk [vmem:[%s13295_s3 + $0x6c0] sm:$0xff] %vm5015_vm1, %v4698_v10 }
 0x62b   :  { %v4696_v6 = vpop.permute.xlu1 %4695  ;;  %v4702_v3 = vpop.permute.xlu0 %4701 }
 0x62c   :  { %5231 = vst.msk [vmem:[%s13295_s3 + $0x6b8] sm:$0xff] %vm5015_vm1, %v4696_v6  ;;  %5234 = vst.msk [vmem:[%s13295_s3 + $0x6d0] sm:$0xff] %vm5015_vm1, %v4702_v3 }
 0x62f   :  { %v4700_v16 = vpop.permute.xlu1 %4699  ;;  %v4706_v46 = vpop.permute.xlu0 %4705 }
 0x630   :  { %5233 = vst.msk [vmem:[%s13295_s3 + $0x6c8] sm:$0xff] %vm5015_vm1, %v4700_v16  ;;  %5236 = vst.msk [vmem:[%s13295_s3 + $0x6e0] sm:$0xff] %vm5015_vm1, %v4706_v46 }
 0x633   :  { %v4704_v62 = vpop.permute.xlu1 %4703  ;;  %v4710_v63 = vpop.permute.xlu0 %4709 }
 0x634   :  { %5235 = vst.msk [vmem:[%s13295_s3 + $0x6d8] sm:$0xff] %vm5015_vm1, %v4704_v62  ;;  %5238 = vst.msk [vmem:[%s13295_s3 + $0x6f0] sm:$0xff] %vm5015_vm1, %v4710_v63 }
 0x637   :  { %v4708_v32 = vpop.permute.xlu1 %4707  ;;  %v4714_v24 = vpop.permute.xlu0 %4713 }
 0x638   :  { %5237 = vst.msk [vmem:[%s13295_s3 + $0x6e8] sm:$0xff] %vm5015_vm1, %v4708_v32  ;;  %5240 = vst.msk [vmem:[%s13295_s3 + $0x700] sm:$0xff] %vm5015_vm1, %v4714_v24 }
 0x63b   :  { %v4712_v59 = vpop.permute.xlu1 %4711  ;;  %v4718_v22 = vpop.permute.xlu0 %4717 }
 0x63c   :  { %5239 = vst.msk [vmem:[%s13295_s3 + $0x6f8] sm:$0xff] %vm5015_vm1, %v4712_v59  ;;  %5242 = vst.msk [vmem:[%s13295_s3 + $0x710] sm:$0xff] %vm5015_vm1, %v4718_v22 }
 0x63f   :  { %v4716_v60 = vpop.permute.xlu1 %4715  ;;  %v4722_v56 = vpop.permute.xlu0 %4721 }
 0x640   :  { %5241 = vst.msk [vmem:[%s13295_s3 + $0x708] sm:$0xff] %vm5015_vm1, %v4716_v60  ;;  %5244 = vst.msk [vmem:[%s13295_s3 + $0x720] sm:$0xff] %vm5015_vm1, %v4722_v56 }
 0x643   :  { %v4720_v21 = vpop.permute.xlu1 %4719  ;;  %v4726_v26 = vpop.permute.xlu0 %4725 }
 0x644   :  { %5243 = vst.msk [vmem:[%s13295_s3 + $0x718] sm:$0xff] %vm5015_vm1, %v4720_v21  ;;  %5246 = vst.msk [vmem:[%s13295_s3 + $0x730] sm:$0xff] %vm5015_vm1, %v4726_v26 }
 0x647   :  { %v4724_v41 = vpop.permute.xlu1 %4723  ;;  %v4730_v45 = vpop.permute.xlu0 %4729 }
 0x648   :  { %5245 = vst.msk [vmem:[%s13295_s3 + $0x728] sm:$0xff] %vm5015_vm1, %v4724_v41  ;;  %5248 = vst.msk [vmem:[%s13295_s3 + $0x740] sm:$0xff] %vm5015_vm1, %v4730_v45 }
 0x64b   :  { %v4728_v49 = vpop.permute.xlu1 %4727  ;;  %v4734_v61 = vpop.permute.xlu0 %4733 }
 0x64c   :  { %5247 = vst.msk [vmem:[%s13295_s3 + $0x738] sm:$0xff] %vm5015_vm1, %v4728_v49  ;;  %5250 = vst.msk [vmem:[%s13295_s3 + $0x750] sm:$0xff] %vm5015_vm1, %v4734_v61 }
 0x64f   :  { %v4732_v27 = vpop.permute.xlu1 %4731  ;;  %v4738_v39 = vpop.permute.xlu0 %4737 }
 0x650   :  { %5249 = vst.msk [vmem:[%s13295_s3 + $0x748] sm:$0xff] %vm5015_vm1, %v4732_v27  ;;  %5252 = vst.msk [vmem:[%s13295_s3 + $0x760] sm:$0xff] %vm5015_vm1, %v4738_v39 }
 0x653   :  { %v4736_v19 = vpop.permute.xlu1 %4735  ;;  %v4742_v52 = vpop.permute.xlu0 %4741 }
 0x654   :  { %5251 = vst.msk [vmem:[%s13295_s3 + $0x758] sm:$0xff] %vm5015_vm1, %v4736_v19  ;;  %5254 = vst.msk [vmem:[%s13295_s3 + $0x770] sm:$0xff] %vm5015_vm1, %v4742_v52 }
 0x657   :  { %v4740_v50 = vpop.permute.xlu1 %4739  ;;  %v4746_v15 = vpop.permute.xlu0 %4745 }
 0x658   :  { %5253 = vst.msk [vmem:[%s13295_s3 + $0x768] sm:$0xff] %vm5015_vm1, %v4740_v50  ;;  %5256 = vst.msk [vmem:[%s13295_s3 + $0x780] sm:$0xff] %vm5015_vm1, %v4746_v15 }
 0x65b   :  { %v4744_v18 = vpop.permute.xlu1 %4743  ;;  %v4750_v9 = vpop.permute.xlu0 %4749 }
 0x65c   :  { %5255 = vst.msk [vmem:[%s13295_s3 + $0x778] sm:$0xff] %vm5015_vm1, %v4744_v18  ;;  %5258 = vst.msk [vmem:[%s13295_s3 + $0x790] sm:$0xff] %vm5015_vm1, %v4750_v9 }
 0x65f   :  { %v4748_v43 = vpop.permute.xlu1 %4747  ;;  %v4754_v48 = vpop.permute.xlu0 %4753 }
 0x660   :  { %5257 = vst.msk [vmem:[%s13295_s3 + $0x788] sm:$0xff] %vm5015_vm1, %v4748_v43  ;;  %5260 = vst.msk [vmem:[%s13295_s3 + $0x7a0] sm:$0xff] %vm5015_vm1, %v4754_v48 }
 0x663   :  { %v4752_v14 = vpop.permute.xlu1 %4751  ;;  %v4758_v2 = vpop.permute.xlu0 %4757 }
 0x664   :  { %5259 = vst.msk [vmem:[%s13295_s3 + $0x798] sm:$0xff] %vm5015_vm1, %v4752_v14  ;;  %5262 = vst.msk [vmem:[%s13295_s3 + $0x7b0] sm:$0xff] %vm5015_vm1, %v4758_v2 }
 0x667   :  { %v4756_v12 = vpop.permute.xlu1 %4755  ;;  %v4762_v17 = vpop.permute.xlu0 %4761 }
 0x668   :  { %5261 = vst.msk [vmem:[%s13295_s3 + $0x7a8] sm:$0xff] %vm5015_vm1, %v4756_v12  ;;  %5264 = vst.msk [vmem:[%s13295_s3 + $0x7c0] sm:$0xff] %vm5015_vm1, %v4762_v17 }
 0x66b   :  { %v4760_v33 = vpop.permute.xlu1 %4759 }
 0x66c   :  { %5263 = vst.msk [vmem:[%s13295_s3 + $0x7b8] sm:$0xff] %vm5015_vm1, %v4760_v33 }
 0x66f   :  { %v4764_v23 = vpop.permute.xlu1 %4763 }
 0x670   :  { %5265 = vst.msk [vmem:[%s13295_s3 + $0x7c8] sm:$0xff] %vm5015_vm1, %v4764_v23 }

</bundles_post_ra>
